<compile_context>
chip_gen: v6e
topology: v6e:2x2x1
jax: 0.10.0
libtpu: 0.0.40
codegen_flags: <defaults>
</compile_context>

<pallas_src>
import numpy as np
from functools import partial

import jax
import jax.numpy as jnp
from jax.experimental import pallas as pl
from jax.experimental.pallas import tpu as pltpu


_VMEM_LIMIT = 64 * 1024 * 1024
_CP1 = pltpu.CompilerParams(dimension_semantics=("parallel",), vmem_limit_bytes=_VMEM_LIMIT)
_CP2 = pltpu.CompilerParams(dimension_semantics=("parallel", "parallel"),
                            vmem_limit_bytes=_VMEM_LIMIT)
_MAX_TM = 1024  # rows per grid step for the mem-bound row-wise kernels


# ----------------------------------------------------------------------------
# In-kernel helpers (traced)
# ----------------------------------------------------------------------------

def _std(x):
    """LayerNorm standardization only (gamma/beta folded into the following matmul)."""
    mu = jnp.mean(x, axis=-1, keepdims=True)
    xc = x - mu
    var = jnp.mean(xc * xc, axis=-1, keepdims=True)
    return xc * jax.lax.rsqrt(var + np.float32(1e-5))


def _gelu(x):
    # TODO(synk): PyTorch nn.GELU default is exact erf; tanh approximation used in-kernel.
    c = np.float32(np.sqrt(2.0 / np.pi))
    return 0.5 * x * (1.0 + jnp.tanh(c * (x + np.float32(0.044715) * x * x * x)))


# ----------------------------------------------------------------------------
# Row-wise fused kernels (LN-folded linears)
# ----------------------------------------------------------------------------

def _std_linear_kernel(x_ref, w_ref, b_ref, o_ref):
    """out = standardize(x) @ W' + b'   (LN affine folded into W'/b' offline)."""
    xn = _std(x_ref[...].astype(jnp.float32))
    y = jnp.dot(xn.astype(jnp.bfloat16), w_ref[...], preferred_element_type=jnp.float32)
    o_ref[...] = (y + b_ref[...]).astype(o_ref.dtype)


def _linear_ln_kernel(x_ref, w_ref, b_ref, g_ref, beta_ref, o_ref):
    """out = LayerNorm(x @ W + b)  (patch-embed conv-as-matmul + post-norm)."""
    y = jnp.dot(x_ref[...].astype(jnp.bfloat16), w_ref[...], preferred_element_type=jnp.float32)
    y = y + b_ref[...]
    o_ref[...] = (_std(y) * g_ref[...] + beta_ref[...]).astype(o_ref.dtype)


def _std_cat_linear_kernel(a_ref, b_ref, w1_ref, w2_ref, bias_ref, o_ref):
    """out = standardize(a) @ w1' + skip @ w2 + bias'   (skip-concat linear, no HBM concat)."""
    an = _std(a_ref[...].astype(jnp.float32))
    y = jnp.dot(an.astype(jnp.bfloat16), w1_ref[...], preferred_element_type=jnp.float32)
    y = y + jnp.dot(b_ref[...].astype(jnp.bfloat16), w2_ref[...],
                    preferred_element_type=jnp.float32)
    o_ref[...] = (y + bias_ref[...]).astype(o_ref.dtype)


def _rowwise_call(kernel, row_args, const_args, out_cols, out_dtype):
    M = row_args[0].shape[0]
    tm = M if M <= _MAX_TM else _MAX_TM
    grid = (pl.cdiv(M, tm),)
    in_specs = ([pl.BlockSpec((tm, a.shape[1]), lambda i: (i, 0)) for a in row_args] +
                [pl.BlockSpec(a.shape, lambda i: (0, 0)) for a in const_args])
    return pl.pallas_call(
        kernel,
        out_shape=jax.ShapeDtypeStruct((M, out_cols), out_dtype),
        grid=grid,
        in_specs=in_specs,
        out_specs=pl.BlockSpec((tm, out_cols), lambda i: (i, 0)),
        compiler_params=_CP1,
    )(*row_args, *const_args)


def std_linear(x, w, b, out_dtype=jnp.bfloat16):
    return _rowwise_call(_std_linear_kernel, [x], [w, b], w.shape[1], out_dtype)


def linear_ln(x, w, b, g, beta, out_dtype=jnp.bfloat16):
    return _rowwise_call(_linear_ln_kernel, [x], [w, b, g, beta], w.shape[1], out_dtype)


def std_cat_linear(a, skip, w1, w2, bias, out_dtype=jnp.bfloat16):
    return _rowwise_call(_std_cat_linear_kernel, [a, skip], [w1, w2, bias],
                         w1.shape[1], out_dtype)


# ----------------------------------------------------------------------------
# Fused Swin block kernel (windowing + attention + MLP, spatial in / spatial out)
# ----------------------------------------------------------------------------

def _swin_block_kernel(*refs, heads, win, nww, has_mask):
    if has_mask:
        (x_ref, qkv_w, qkv_b, rel_ref, mask_ref,
         proj_w, proj_b, fc1_w, fc1_b, fc2_w, fc2_b, o_ref) = refs
    else:
        (x_ref, qkv_w, qkv_b, rel_ref,
         proj_w, proj_b, fc1_w, fc1_b, fc2_w, fc2_b, o_ref) = refs
        mask_ref = None

    N = win * win
    C = qkv_w.shape[0]
    d = C // heads
    scale = np.float32(d ** -0.5)

    # ---- window partition straight off the (1, win, W, C) stripe (no HBM relayout) ----
    xs = x_ref[0].astype(jnp.float32)                           # (win, W, C)
    cols = [xs[:, ww * win:(ww + 1) * win, :].reshape(N, C) for ww in range(nww)]
    xw = jnp.stack(cols, axis=0).reshape(nww * N, C)            # window-major tokens (shortcut)

    # ---- LN1 (affine pre-folded) + fused QKV projection ----
    qkv = jnp.dot(_std(xw).astype(jnp.bfloat16), qkv_w[...],
                  preferred_element_type=jnp.float32)
    qkv = (qkv + qkv_b[...]).reshape(nww, N, 3 * C).astype(jnp.bfloat16)

    rel = rel_ref[...]                                          # (heads, N, N) f32

    # ---- per-head attention; project + accumulate into one (tokens, C) buffer ----
    y = jnp.zeros((nww * N, C), jnp.float32)
    for h in range(heads):
        qh = qkv[:, :, h * d:(h + 1) * d]
        kh = qkv[:, :, C + h * d:C + (h + 1) * d]
        vh = qkv[:, :, 2 * C + h * d:2 * C + (h + 1) * d]
        s = jnp.einsum('wnd,wmd->wnm', qh, kh, preferred_element_type=jnp.float32)
        s = s * scale + rel[h][None, :, :]
        if has_mask:
            s = s + mask_ref[...]
        m = jnp.max(s, axis=-1, keepdims=True)
        p = jnp.exp(s - m)
        p = p / jnp.sum(p, axis=-1, keepdims=True)
        oh = jnp.einsum('wnm,wmd->wnd', p.astype(jnp.bfloat16), vh,
                        preferred_element_type=jnp.float32)
        y = y + jnp.dot(oh.reshape(nww * N, d).astype(jnp.bfloat16),
                        proj_w[h * d:(h + 1) * d, :],
                        preferred_element_type=jnp.float32)
    y = y + proj_b[...]

    # ---- residual + LN2(folded) + MLP + residual (per-token; stays in window order) ----
    t = xw + y
    hid = jnp.dot(_std(t).astype(jnp.bfloat16), fc1_w[...], preferred_element_type=jnp.float32)
    hid = _gelu(hid + fc1_b[...])
    out = jnp.dot(hid.astype(jnp.bfloat16), fc2_w[...], preferred_element_type=jnp.float32)
    out = out + fc2_b[...] + t

    # ---- window reverse: scatter window columns back into the spatial stripe ----
    outw = out.reshape(nww, N, C)
    for ww in range(nww):
        piece = outw[ww].reshape(win, win, C).astype(o_ref.dtype)
        o_ref[0, :, ww * win:(ww + 1) * win, :] = piece


def _swin_block_call(x, p, heads, win, mask):
    """x: (B, H, W, C) bf16 (already cyclically shifted if needed); mask: (nW, N, N) f32 or None."""
    B, H, W, C = x.shape
    nwh, nww = H // win, W // win
    N = win * win
    has_mask = mask is not None

    args = [x, p['qkv_w'], p['qkv_b'], p['attn_bias']]
    in_specs = [
        pl.BlockSpec((1, win, W, C), lambda b, r: (b, r, 0, 0)),
        pl.BlockSpec(p['qkv_w'].shape, lambda b, r: (0, 0)),
        pl.BlockSpec(p['qkv_b'].shape, lambda b, r: (0, 0)),
        pl.BlockSpec(p['attn_bias'].shape, lambda b, r: (0, 0, 0)),
    ]
    if has_mask:
        args.append(mask)
        in_specs.append(pl.BlockSpec((nww, N, N), lambda b, r: (r, 0, 0)))
    tail = [p['proj_w'], p['proj_b'], p['fc1_w'], p['fc1_b'], p['fc2_w'], p['fc2_b']]
    args += tail
    in_specs += [pl.BlockSpec(a.shape, lambda b, r: (0, 0)) for a in tail]

    kern = partial(_swin_block_kernel, heads=heads, win=win, nww=nww, has_mask=has_mask)
    return pl.pallas_call(
        kern,
        out_shape=jax.ShapeDtypeStruct((B, H, W, C), jnp.bfloat16),
        grid=(B, nwh),
        in_specs=in_specs,
        out_specs=pl.BlockSpec((1, win, W, C), lambda b, r: (b, r, 0, 0)),
        compiler_params=_CP2,
    )(*args)


def swin_block(x, p, heads, win, shift, mask):
    """One Swin transformer block on spatial layout (B, H, W, C)."""
    if shift > 0:
        # TODO(synk): shift still uses an XLA roll (HBM copy) in/out; everything else is fused.
        xs = jnp.roll(x, shift=(-shift, -shift), axis=(1, 2))
        y = _swin_block_call(xs, p, heads, win, mask)
        return jnp.roll(y, shift=(shift, shift), axis=(1, 2))
    return _swin_block_call(x, p, heads, win, None)


# ----------------------------------------------------------------------------
# Swin helpers (precompute, numpy)
# ----------------------------------------------------------------------------

def rel_position_index(window):
    coords = np.stack(np.meshgrid(np.arange(window), np.arange(window), indexing='ij'))
    coords_flat = coords.reshape(2, -1)
    rel = coords_flat[:, :, None] - coords_flat[:, None, :]
    rel = rel.transpose(1, 2, 0).astype(np.int64)
    rel[:, :, 0] += window - 1
    rel[:, :, 1] += window - 1
    rel[:, :, 0] *= 2 * window - 1
    return rel.sum(-1)  # (N, N)


def shift_attn_mask(H, W, window, shift):
    img_mask = np.zeros((1, H, W, 1), np.float32)
    slices = (slice(0, -window), slice(-window, -shift), slice(-shift, None))
    cnt = 0
    for hs in slices:
        for ws in slices:
            img_mask[:, hs, ws, :] = cnt
            cnt += 1
    x = img_mask.reshape(1, H // window, window, W // window, window, 1)
    x = x.transpose(0, 1, 3, 2, 4, 5).reshape(-1, window * window)
    attn_mask = x[:, None, :] - x[:, :, None]
    return np.where(attn_mask != 0, np.float32(-100.0), np.float32(0.0))  # (nW, N, N)


def stage_wincfg(h, w, win):
    wn, sh_odd = win, win // 2
    if min(h, w) <= win:
        wn, sh_odd = min(h, w), 0
    return wn, sh_odd


# ----------------------------------------------------------------------------
# Model pieces
# ----------------------------------------------------------------------------

def patch_merging(x, p, H, W, C):
    B = x.shape[0]
    x = x.reshape(B, H, W, C)
    x0 = x[:, 0::2, 0::2, :]
    x1 = x[:, 1::2, 0::2, :]
    x2 = x[:, 0::2, 1::2, :]
    x3 = x[:, 1::2, 1::2, :]
    xc = jnp.concatenate([x0, x1, x2, x3], -1).reshape(B * (H // 2) * (W // 2), 4 * C)
    y = std_linear(xc, p['red_w'], p['red_b'])       # merging-norm affine folded into red_w/red_b
    return y.reshape(B, H // 2, W // 2, 2 * C)


def cs_unet_forward(rt, x, cfg):
    # CS_Unet.forward: repeat single-channel input to 3 channels
    if x.shape[1] == 1:
        x = jnp.repeat(x, 3, axis=1)
    B, Cin, H, W = x.shape
    ps = cfg['patch_size']
    C = cfg['embed_dim']
    win = cfg['window_size']
    nc = cfg['num_classes']
    Hp, Wp = H // ps, W // ps
    resolutions = [(Hp, Wp), (Hp // 2, Wp // 2)]
    dims = [C, 2 * C]

    # --- patch embed: Conv2d(Cin, C, k=ps, s=ps) as im2col matmul fused with its LayerNorm ---
    xp = x.reshape(B, Cin, Hp, ps, Wp, ps)
    xp = jnp.transpose(xp, (0, 2, 4, 1, 3, 5)).reshape(B * Hp * Wp, Cin * ps * ps)
    pe = rt['patch_embed']
    t = linear_ln(xp, pe['w'], pe['b'], pe['norm_g'], pe['norm_b']).reshape(B, Hp, Wp, C)

    # --- encoder ---
    x_downsample = []
    for i, layer in enumerate(rt['layers']):
        x_downsample.append(t)
        h, w = resolutions[i]
        heads = cfg['num_heads'][i]
        wn, sh_odd = stage_wincfg(h, w, win)
        for bi, bp in enumerate(layer['blocks']):
            sh = 0 if bi % 2 == 0 else sh_odd
            t = swin_block(t, bp, heads, wn, sh, layer['mask'] if sh > 0 else None)
        if 'downsample' in layer:
            t = patch_merging(t, layer['downsample'], h, w, dims[i])

    # --- decoder: encoder norm folded into the first patch-expand linear ---
    h2, w2 = resolutions[-1]
    ex = rt['expand0']
    t = std_linear(t.reshape(B * h2 * w2, dims[-1]), ex['w'], ex['b'])
    t = t.reshape(B, h2, w2, 2, 2, C)
    t = jnp.transpose(t, (0, 1, 3, 2, 4, 5)).reshape(B * Hp * Wp, C)

    # patch-expand LN (folded into w1) + skip concat + concat_back linear, no HBM concat
    skip = x_downsample[0].reshape(B * Hp * Wp, C)
    cb = rt['concat_back']
    t = std_cat_linear(t, skip, cb['w1'], cb['w2'], cb['b']).reshape(B, Hp, Wp, C)

    h, w = resolutions[0]
    wn, sh_odd = stage_wincfg(h, w, win)
    lu = rt['layers_up1']
    for bi, bp in enumerate(lu['blocks']):
        sh = 0 if bi % 2 == 0 else sh_odd
        t = swin_block(t, bp, cfg['num_heads'][0], wn, sh, lu['mask'] if sh > 0 else None)

    # --- final: norm_up folded into 4x expand; final-expand LN folded into the 1x1 out conv.
    # The per-token LN + 1x1 conv commute with the pixel shuffle, so the shuffle + NCHW
    # transpose run on num_classes channels only. ---
    fe = rt['final_expand']
    t = std_linear(t.reshape(B * Hp * Wp, C), fe['w'], fe['b'])          # (B*Hp*Wp, 16C)
    t = t.reshape(B * Hp * Wp * ps * ps, C)                               # free (row-major) reshape
    logits = std_linear(t, rt['out_w'], rt['out_b'], out_dtype=jnp.float32)
    logits = logits.reshape(B, Hp, Wp, ps, ps, nc)
    logits = jnp.transpose(logits, (0, 5, 1, 3, 2, 4)).reshape(B, nc, H, W)
    return logits


# ----------------------------------------------------------------------------
# Deterministic parameter init (shapes follow the module's __init__)
# ----------------------------------------------------------------------------

class ParamGen:
    def __init__(self, key):
        self.key = key

    def normal(self, shape, std=0.02):
        self.key, sub = jax.random.split(self.key)
        return jax.random.normal(sub, shape, jnp.float32) * std


def init_block(pg, dim, heads, window):
    return dict(
        norm1_g=jnp.ones((dim,), jnp.float32), norm1_b=jnp.zeros((dim,), jnp.float32),
        qkv_w=pg.normal((dim, 3 * dim)), qkv_b=jnp.zeros((3 * dim,), jnp.float32),
        rel_bias=pg.normal(((2 * window - 1) ** 2, heads)),
        proj_w=pg.normal((dim, dim)), proj_b=jnp.zeros((dim,), jnp.float32),
        norm2_g=jnp.ones((dim,), jnp.float32), norm2_b=jnp.zeros((dim,), jnp.float32),
        fc1_w=pg.normal((dim, 4 * dim)), fc1_b=jnp.zeros((4 * dim,), jnp.float32),
        fc2_w=pg.normal((4 * dim, dim)), fc2_b=jnp.zeros((dim,), jnp.float32),
    )


def init_params(key, cfg):
    pg = ParamGen(key)
    C = cfg['embed_dim']
    win = cfg['window_size']
    ps = cfg['patch_size']
    params = {}
    params['patch_embed'] = dict(
        w=pg.normal((cfg['in_channels'] * ps * ps, C)),
        b=jnp.zeros((C,), jnp.float32),
        norm_g=jnp.ones((C,), jnp.float32), norm_b=jnp.zeros((C,), jnp.float32))

    dims = [C, 2 * C]
    layers = []
    for i in range(2):
        layer = {'blocks': [init_block(pg, dims[i], cfg['num_heads'][i], win)
                            for _ in range(cfg['depths'][i])]}
        if i == 0:
            layer['downsample'] = dict(
                norm_g=jnp.ones((4 * dims[i],), jnp.float32),
                norm_b=jnp.zeros((4 * dims[i],), jnp.float32),
                red_w=pg.normal((4 * dims[i], 2 * dims[i])))
        layers.append(layer)
    params['layers'] = layers

    params['norm_g'] = jnp.ones((2 * C,), jnp.float32)
    params['norm_b'] = jnp.zeros((2 * C,), jnp.float32)

    params['expand0'] = dict(w=pg.normal((2 * C, 4 * C)),
                             norm_g=jnp.ones((C,), jnp.float32),
                             norm_b=jnp.zeros((C,), jnp.float32))
    params['concat_back'] = dict(w=pg.normal((2 * C, C)), b=jnp.zeros((C,), jnp.float32))
    params['layers_up1'] = {'blocks': [init_block(pg, C, cfg['num_heads'][0], win)
                                       for _ in range(cfg['depths'][0])]}
    params['norm_up_g'] = jnp.ones((C,), jnp.float32)
    params['norm_up_b'] = jnp.zeros((C,), jnp.float32)
    params['final_expand'] = dict(w=pg.normal((C, 16 * C)),
                                  norm_g=jnp.ones((C,), jnp.float32),
                                  norm_b=jnp.zeros((C,), jnp.float32))
    params['out_w'] = pg.normal((C, cfg['num_classes']))
    return params


# ----------------------------------------------------------------------------
# One-time runtime prep: LN-affine folding, bf16 weights, rel-pos bias gather, shift masks
# ----------------------------------------------------------------------------

def prepare_runtime(params, cfg):
    C = cfg['embed_dim']
    win = cfg['window_size']
    ps = cfg['patch_size']
    Hp = Wp = cfg['img_size'] // ps
    resolutions = [(Hp, Wp), (Hp // 2, Wp // 2)]

    bf = lambda a: a.astype(jnp.bfloat16)
    row = lambda a: a.reshape(1, -1).astype(jnp.float32)

    def fold_ln_linear(g, b, w, bias=None):
        """LN(x)@W+c  ==  std(x) @ (g[:,None]*W) + (b@W + c)."""
        w32 = w.astype(jnp.float32)
        wf = g[:, None] * w32
        bf_ = b @ w32 + (bias if bias is not None else 0.0)
        return bf(wf), row(bf_)

    def prep_block(bp, heads, wn):
        N = wn * wn
        rel_idx = rel_position_index(wn).reshape(-1)
        ab = bp['rel_bias'][rel_idx].reshape(N, N, heads)
        ab = jnp.transpose(ab, (2, 0, 1)).astype(jnp.float32)            # (heads, N, N)
        qkv_w, qkv_b = fold_ln_linear(bp['norm1_g'], bp['norm1_b'], bp['qkv_w'], bp['qkv_b'])
        fc1_w, fc1_b = fold_ln_linear(bp['norm2_g'], bp['norm2_b'], bp['fc1_w'], bp['fc1_b'])
        return dict(qkv_w=qkv_w, qkv_b=qkv_b, attn_bias=ab,
                    proj_w=bf(bp['proj_w']), proj_b=row(bp['proj_b']),
                    fc1_w=fc1_w, fc1_b=fc1_b,
                    fc2_w=bf(bp['fc2_w']), fc2_b=row(bp['fc2_b']))

    def stage_mask(h, w, wn, sh_odd):
        if sh_odd <= 0:
            return None                     # no zero-mask DMA for non-shifted stages
        return jnp.asarray(shift_attn_mask(h, w, wn, sh_odd))

    rt = {}
    pe = params['patch_embed']
    rt['patch_embed'] = dict(w=bf(pe['w']), b=row(pe['b']),
                             norm_g=row(pe['norm_g']), norm_b=row(pe['norm_b']))

    layers = []
    for i, layer in enumerate(params['layers']):
        h, w = resolutions[i]
        wn, sh_odd = stage_wincfg(h, w, win)
        lr = dict(blocks=[prep_block(bp, cfg['num_heads'][i], wn) for bp in layer['blocks']],
                  mask=stage_mask(h, w, wn, sh_odd))
        if 'downsample' in layer:
            ds = layer['downsample']
            red_w, red_b = fold_ln_linear(ds['norm_g'], ds['norm_b'], ds['red_w'])
            lr['downsample'] = dict(red_w=red_w, red_b=red_b)
        layers.append(lr)
    rt['layers'] = layers

    # encoder final norm folded into the first patch-expand linear (no bias in expand)
    ew, eb = fold_ln_linear(params['norm_g'], params['norm_b'], params['expand0']['w'])
    rt['expand0'] = dict(w=ew, b=eb)

    # expand0's own LN folded into the first half of concat_back
    cbw = params['concat_back']['w']
    w1, b1 = fold_ln_linear(params['expand0']['norm_g'], params['expand0']['norm_b'],
                            cbw[:C], params['concat_back']['b'])
    rt['concat_back'] = dict(w1=w1, w2=bf(cbw[C:]), b=b1)

    h, w = resolutions[0]
    wn, sh_odd = stage_wincfg(h, w, win)
    rt['layers_up1'] = dict(blocks=[prep_block(bp, cfg['num_heads'][0], wn)
                                    for bp in params['layers_up1']['blocks']],
                            mask=stage_mask(h, w, wn, sh_odd))

    # norm_up folded into final 4x expand; final-expand norm folded into the 1x1 out conv
    few, feb = fold_ln_linear(params['norm_up_g'], params['norm_up_b'],
                              params['final_expand']['w'])
    rt['final_expand'] = dict(w=few, b=feb)
    ow, ob = fold_ln_linear(params['final_expand']['norm_g'], params['final_expand']['norm_b'],
                            params['out_w'])
    rt['out_w'] = ow
    rt['out_b'] = ob
    return rt


# ----------------------------------------------------------------------------

if __name__ == "__main__":
    cfg = dict(
        img_size=16, patch_size=4, in_channels=3, num_classes=4,
        embed_dim=32, depths=(2, 2), num_heads=(2, 4), window_size=2,
    )
    key = jax.random.PRNGKey(0)
    k_par, k_x = jax.random.split(key)
    params = init_params(k_par, cfg)
    rt = prepare_runtime(params, cfg)   # precomputed once, outside the traced forward

    # single-channel input exercises the `repeat(1,3,1,1)` branch of CS_Unet.forward
    x = jax.random.normal(k_x, (2, 1, cfg['img_size'], cfg['img_size']), jnp.float32)

    fwd = jax.jit(partial(cs_unet_forward, cfg=cfg))
    logits = jax.block_until_ready(fwd(rt, x))

    assert logits.shape == (2, cfg['num_classes'], cfg['img_size'], cfg['img_size'])
    assert bool(jnp.all(jnp.isfinite(logits)))
    print("KERNEL_OK")
</pallas_src>

<mosaic_0001>
module attributes {stable_mosaic.version = 11 : i64} {
  func.func @_linear_ln_kernel(%arg0: i32, %arg1: memref<32x48xf32, #tpu.memory_space<vmem>>, %arg2: memref<48x32xbf16, #tpu.memory_space<vmem>>, %arg3: memref<1x32xf32, #tpu.memory_space<vmem>>, %arg4: memref<1x32xf32, #tpu.memory_space<vmem>>, %arg5: memref<1x32xf32, #tpu.memory_space<vmem>>, %arg6: memref<32x32xbf16, #tpu.memory_space<vmem>>) attributes {dimension_semantics = [#tpu.dimension_semantics<parallel>], iteration_bounds = array<i64: 1>, scalar_prefetch = 0 : i64, scratch_operands = 0 : i64, tpu.core_type = #tpu.core_type<tc>, window_params = [{transform_indices = @transform_0, window_bounds = array<i64: 32, 48>}, {pipeline_mode = #tpu.pipeline_mode<synchronous>, transform_indices = @transform_1, window_bounds = array<i64: 48, 32>}, {pipeline_mode = #tpu.pipeline_mode<synchronous>, transform_indices = @transform_2, window_bounds = array<i64: 1, 32>}, {pipeline_mode = #tpu.pipeline_mode<synchronous>, transform_indices = @transform_3, window_bounds = array<i64: 1, 32>}, {pipeline_mode = #tpu.pipeline_mode<synchronous>, transform_indices = @transform_4, window_bounds = array<i64: 1, 32>}, {transform_indices = @transform_5, window_bounds = array<i64: 32, 32>}]} {
    %c0 = arith.constant 0 : index
    %c0_0 = arith.constant 0 : index
    %0 = vector.load %arg1[%c0, %c0_0] : memref<32x48xf32, #tpu.memory_space<vmem>>, vector<32x48xf32>
    %1 = arith.truncf %0 : vector<32x48xf32> to vector<32x48xbf16>
    %c0_1 = arith.constant 0 : index
    %c0_2 = arith.constant 0 : index
    %2 = vector.load %arg2[%c0_1, %c0_2] : memref<48x32xbf16, #tpu.memory_space<vmem>>, vector<48x32xbf16>
    %cst = arith.constant dense<0.000000e+00> : vector<32x32xf32>
    %3 = tpu.matmul %1, %2, %cst {dimension_numbers = #tpu.dot_dimension_numbers<[1], [0], [0], [1], [0, 0, 1, 1], [], []>} : vector<32x48xbf16>, vector<48x32xbf16>, vector<32x32xf32> -> vector<32x32xf32>
    %c0_3 = arith.constant 0 : index
    %c0_4 = arith.constant 0 : index
    %4 = vector.load %arg3[%c0_3, %c0_4] : memref<1x32xf32, #tpu.memory_space<vmem>>, vector<1x32xf32>
    %5 = vector.broadcast %4 : vector<1x32xf32> to vector<32x32xf32>
    %6 = arith.addf %3, %5 : vector<32x32xf32>
    %cst_5 = arith.constant dense<0.000000e+00> : vector<32xf32>
    %7 = vector.multi_reduction <add>, %6, %cst_5 [1] : vector<32x32xf32> to vector<32xf32>
    %8 = vector.shape_cast %7 : vector<32xf32> to vector<32x1xf32>
    %cst_6 = arith.constant 3.200000e+01 : f32
    %9 = vector.broadcast %cst_6 : f32 to vector<32x1xf32>
    %10 = arith.divf %8, %9 : vector<32x1xf32>
    %11 = vector.broadcast %10 : vector<32x1xf32> to vector<32x32xf32>
    %12 = arith.subf %6, %11 : vector<32x32xf32>
    %13 = arith.mulf %12, %12 : vector<32x32xf32>
    %cst_7 = arith.constant dense<0.000000e+00> : vector<32xf32>
    %14 = vector.multi_reduction <add>, %13, %cst_7 [1] : vector<32x32xf32> to vector<32xf32>
    %15 = vector.shape_cast %14 : vector<32xf32> to vector<32x1xf32>
    %cst_8 = arith.constant 3.200000e+01 : f32
    %16 = vector.broadcast %cst_8 : f32 to vector<32x1xf32>
    %17 = arith.divf %15, %16 : vector<32x1xf32>
    %cst_9 = arith.constant 9.99999974E-6 : f32
    %18 = vector.broadcast %cst_9 : f32 to vector<32x1xf32>
    %19 = arith.addf %17, %18 : vector<32x1xf32>
    %20 = math.rsqrt %19 : vector<32x1xf32>
    %21 = vector.broadcast %20 : vector<32x1xf32> to vector<32x32xf32>
    %22 = arith.mulf %12, %21 : vector<32x32xf32>
    %c0_10 = arith.constant 0 : index
    %c0_11 = arith.constant 0 : index
    %23 = vector.load %arg4[%c0_10, %c0_11] : memref<1x32xf32, #tpu.memory_space<vmem>>, vector<1x32xf32>
    %24 = vector.broadcast %23 : vector<1x32xf32> to vector<32x32xf32>
    %25 = arith.mulf %22, %24 : vector<32x32xf32>
    %c0_12 = arith.constant 0 : index
    %c0_13 = arith.constant 0 : index
    %26 = vector.load %arg5[%c0_12, %c0_13] : memref<1x32xf32, #tpu.memory_space<vmem>>, vector<1x32xf32>
    %27 = vector.broadcast %26 : vector<1x32xf32> to vector<32x32xf32>
    %28 = arith.addf %25, %27 : vector<32x32xf32>
    %29 = arith.truncf %28 : vector<32x32xf32> to vector<32x32xbf16>
    %c0_14 = arith.constant 0 : index
    %c0_15 = arith.constant 0 : index
    %30 = vector.load %arg6[%c0_14, %c0_15] : memref<32x32xbf16, #tpu.memory_space<vmem>>, vector<32x32xbf16>
    tpu.vector_store %arg6[%c0_14, %c0_15], %29 {strides = array<i32>} : memref<32x32xbf16, #tpu.memory_space<vmem>>, vector<32x32xbf16>,
    return
  }
  func.func @transform_0(%arg0: i32) -> (i32, i32) {
    %c0_i32 = arith.constant 0 : i32
    %c0_i32_0 = arith.constant 0 : i32
    return %arg0, %c0_i32 : i32, i32
  }
  func.func @transform_1(%arg0: i32) -> (i32, i32) {
    %c0_i32 = arith.constant 0 : i32
    %c0_i32_0 = arith.constant 0 : i32
    %c0_i32_1 = arith.constant 0 : i32
    return %c0_i32, %c0_i32_0 : i32, i32
  }
  func.func @transform_2(%arg0: i32) -> (i32, i32) {
    %c0_i32 = arith.constant 0 : i32
    %c0_i32_0 = arith.constant 0 : i32
    %c0_i32_1 = arith.constant 0 : i32
    return %c0_i32, %c0_i32_0 : i32, i32
  }
  func.func @transform_3(%arg0: i32) -> (i32, i32) {
    %c0_i32 = arith.constant 0 : i32
    %c0_i32_0 = arith.constant 0 : i32
    %c0_i32_1 = arith.constant 0 : i32
    return %c0_i32, %c0_i32_0 : i32, i32
  }
  func.func @transform_4(%arg0: i32) -> (i32, i32) {
    %c0_i32 = arith.constant 0 : i32
    %c0_i32_0 = arith.constant 0 : i32
    %c0_i32_1 = arith.constant 0 : i32
    return %c0_i32, %c0_i32_0 : i32, i32
  }
  func.func @transform_5(%arg0: i32) -> (i32, i32) {
    %c0_i32 = arith.constant 0 : i32
    %c0_i32_0 = arith.constant 0 : i32
    return %arg0, %c0_i32 : i32, i32
  }
}

module attributes {stable_mosaic.version = 11 : i64} {
  func.func @_swin_block_kernel(%arg0: i32, %arg1: i32, %arg2: memref<1x2x4x32xbf16, #tpu.memory_space<vmem>>, %arg3: memref<32x96xbf16, #tpu.memory_space<vmem>>, %arg4: memref<1x96xf32, #tpu.memory_space<vmem>>, %arg5: memref<2x4x4xf32, #tpu.memory_space<vmem>>, %arg6: memref<32x32xbf16, #tpu.memory_space<vmem>>, %arg7: memref<1x32xf32, #tpu.memory_space<vmem>>, %arg8: memref<32x128xbf16, #tpu.memory_space<vmem>>, %arg9: memref<1x128xf32, #tpu.memory_space<vmem>>, %arg10: memref<128x32xbf16, #tpu.memory_space<vmem>>, %arg11: memref<1x32xf32, #tpu.memory_space<vmem>>, %arg12: memref<1x2x4x32xbf16, #tpu.memory_space<vmem>>) attributes {dimension_semantics = [#tpu.dimension_semantics<parallel>, #tpu.dimension_semantics<parallel>], iteration_bounds = array<i64: 2, 2>, scalar_prefetch = 0 : i64, scratch_operands = 0 : i64, tpu.core_type = #tpu.core_type<tc>, window_params = [{transform_indices = @transform_0, window_bounds = array<i64: 1, 2, 4, 32>}, {pipeline_mode = #tpu.pipeline_mode<synchronous>, transform_indices = @transform_1, window_bounds = array<i64: 32, 96>}, {pipeline_mode = #tpu.pipeline_mode<synchronous>, transform_indices = @transform_2, window_bounds = array<i64: 1, 96>}, {pipeline_mode = #tpu.pipeline_mode<synchronous>, transform_indices = @transform_3, window_bounds = array<i64: 2, 4, 4>}, {pipeline_mode = #tpu.pipeline_mode<synchronous>, transform_indices = @transform_4, window_bounds = array<i64: 32, 32>}, {pipeline_mode = #tpu.pipeline_mode<synchronous>, transform_indices = @transform_5, window_bounds = array<i64: 1, 32>}, {pipeline_mode = #tpu.pipeline_mode<synchronous>, transform_indices = @transform_6, window_bounds = array<i64: 32, 128>}, {pipeline_mode = #tpu.pipeline_mode<synchronous>, transform_indices = @transform_7, window_bounds = array<i64: 1, 128>}, {pipeline_mode = #tpu.pipeline_mode<synchronous>, transform_indices = @transform_8, window_bounds = array<i64: 128, 32>}, {pipeline_mode = #tpu.pipeline_mode<synchronous>, transform_indices = @transform_9, window_bounds = array<i64: 1, 32>}, {transform_indices = @transform_10, window_bounds = array<i64: 1, 2, 4, 32>}]} {
    %c0 = arith.constant 0 : index
    %c0_0 = arith.constant 0 : index
    %c0_1 = arith.constant 0 : index
    %c0_2 = arith.constant 0 : index
    %0 = vector.load %arg2[%c0, %c0_0, %c0_1, %c0_2] : memref<1x2x4x32xbf16, #tpu.memory_space<vmem>>, vector<1x2x4x32xbf16>
    %1 = vector.shape_cast %0 : vector<1x2x4x32xbf16> to vector<2x4x32xbf16>
    %2 = arith.extf %1 : vector<2x4x32xbf16> to vector<2x4x32xf32>
    %3 = vector.extract_strided_slice %2 {offsets = [0, 0, 0], sizes = [2, 2, 32], strides = [1, 1, 1]} : vector<2x4x32xf32> to vector<2x2x32xf32>
    %4 = vector.shape_cast %3 : vector<2x2x32xf32> to vector<4x32xf32>
    %5 = vector.extract_strided_slice %2 {offsets = [0, 2, 0], sizes = [2, 2, 32], strides = [1, 1, 1]} : vector<2x4x32xf32> to vector<2x2x32xf32>
    %6 = vector.shape_cast %5 : vector<2x2x32xf32> to vector<4x32xf32>
    %7 = vector.shape_cast %4 : vector<4x32xf32> to vector<1x4x32xf32>
    %8 = vector.shape_cast %6 : vector<4x32xf32> to vector<1x4x32xf32>
    %9 = tpu.concatenate %7, %8 in 0 : vector<1x4x32xf32>, vector<1x4x32xf32> -> vector<2x4x32xf32>
    %10 = vector.shape_cast %9 : vector<2x4x32xf32> to vector<8x32xf32>
    %cst = arith.constant dense<0.000000e+00> : vector<8xf32>
    %11 = vector.multi_reduction <add>, %10, %cst [1] : vector<8x32xf32> to vector<8xf32>
    %12 = vector.shape_cast %11 : vector<8xf32> to vector<8x1xf32>
    %cst_3 = arith.constant 3.200000e+01 : f32
    %13 = vector.broadcast %cst_3 : f32 to vector<8x1xf32>
    %14 = arith.divf %12, %13 : vector<8x1xf32>
    %15 = vector.broadcast %14 : vector<8x1xf32> to vector<8x32xf32>
    %16 = arith.subf %10, %15 : vector<8x32xf32>
    %17 = arith.mulf %16, %16 : vector<8x32xf32>
    %cst_4 = arith.constant dense<0.000000e+00> : vector<8xf32>
    %18 = vector.multi_reduction <add>, %17, %cst_4 [1] : vector<8x32xf32> to vector<8xf32>
    %19 = vector.shape_cast %18 : vector<8xf32> to vector<8x1xf32>
    %cst_5 = arith.constant 3.200000e+01 : f32
    %20 = vector.broadcast %cst_5 : f32 to vector<8x1xf32>
    %21 = arith.divf %19, %20 : vector<8x1xf32>
    %cst_6 = arith.constant 9.99999974E-6 : f32
    %22 = vector.broadcast %cst_6 : f32 to vector<8x1xf32>
    %23 = arith.addf %21, %22 : vector<8x1xf32>
    %24 = math.rsqrt %23 : vector<8x1xf32>
    %25 = vector.broadcast %24 : vector<8x1xf32> to vector<8x32xf32>
    %26 = arith.mulf %16, %25 : vector<8x32xf32>
    %27 = arith.truncf %26 : vector<8x32xf32> to vector<8x32xbf16>
    %c0_7 = arith.constant 0 : index
    %c0_8 = arith.constant 0 : index
    %28 = vector.load %arg3[%c0_7, %c0_8] : memref<32x96xbf16, #tpu.memory_space<vmem>>, vector<32x96xbf16>
    %cst_9 = arith.constant dense<0.000000e+00> : vector<8x96xf32>
    %29 = tpu.matmul %27, %28, %cst_9 {dimension_numbers = #tpu.dot_dimension_numbers<[1], [0], [0], [1], [0, 0, 1, 1], [], []>} : vector<8x32xbf16>, vector<32x96xbf16>, vector<8x96xf32> -> vector<8x96xf32>
    %c0_10 = arith.constant 0 : index
    %c0_11 = arith.constant 0 : index
    %30 = vector.load %arg4[%c0_10, %c0_11] : memref<1x96xf32, #tpu.memory_space<vmem>>, vector<1x96xf32>
    %31 = vector.broadcast %30 : vector<1x96xf32> to vector<8x96xf32>
    %32 = arith.addf %29, %31 : vector<8x96xf32>
    %33 = vector.shape_cast %32 : vector<8x96xf32> to vector<2x4x96xf32>
    %34 = arith.truncf %33 : vector<2x4x96xf32> to vector<2x4x96xbf16>
    %c0_12 = arith.constant 0 : index
    %c0_13 = arith.constant 0 : index
    %c0_14 = arith.constant 0 : index
    %35 = vector.load %arg5[%c0_12, %c0_13, %c0_14] : memref<2x4x4xf32, #tpu.memory_space<vmem>>, vector<2x4x4xf32>
    %cst_15 = arith.constant 0.000000e+00 : f32
    %36 = vector.broadcast %cst_15 : f32 to vector<8x32xf32>
    %37 = vector.extract_strided_slice %34 {offsets = [0, 0, 0], sizes = [2, 4, 16], strides = [1, 1, 1]} : vector<2x4x96xbf16> to vector<2x4x16xbf16>
    %38 = vector.extract_strided_slice %34 {offsets = [0, 0, 32], sizes = [2, 4, 16], strides = [1, 1, 1]} : vector<2x4x96xbf16> to vector<2x4x16xbf16>
    %39 = vector.extract_strided_slice %34 {offsets = [0, 0, 64], sizes = [2, 4, 16], strides = [1, 1, 1]} : vector<2x4x96xbf16> to vector<2x4x16xbf16>
    "tpu.trace_start"() <{level = 10 : i32, message = "wnd,wmd->wnm"}> : () -> ()
    %cst_16 = arith.constant dense<0.000000e+00> : vector<2x4x4xf32>
    %40 = tpu.matmul %37, %38, %cst_16 {dimension_numbers = #tpu.dot_dimension_numbers<[2], [2], [1], [1], [0, 0, 0, 1, 1, 1], [0], [0]>} : vector<2x4x16xbf16>, vector<2x4x16xbf16>, vector<2x4x4xf32> -> vector<2x4x4xf32>
    "tpu.trace_stop"() : () -> ()
    %cst_17 = arith.constant 2.500000e-01 : f32
    %41 = vector.broadcast %cst_17 : f32 to vector<2x4x4xf32>
    %42 = arith.mulf %40, %41 : vector<2x4x4xf32>
    %43 = vector.extract_strided_slice %35 {offsets = [0, 0, 0], sizes = [1, 4, 4], strides = [1, 1, 1]} : vector<2x4x4xf32> to vector<1x4x4xf32>
    %44 = vector.shape_cast %43 : vector<1x4x4xf32> to vector<4x4xf32>
    %45 = vector.shape_cast %44 : vector<4x4xf32> to vector<1x4x4xf32>
    %46 = vector.broadcast %45 : vector<1x4x4xf32> to vector<2x4x4xf32>
    %47 = arith.addf %42, %46 : vector<2x4x4xf32>
    %cst_18 = arith.constant dense<0xFF800000> : vector<2x4xf32>
    %48 = vector.multi_reduction <maximumf>, %47, %cst_18 [2] : vector<2x4x4xf32> to vector<2x4xf32>
    %49 = vector.shape_cast %48 : vector<2x4xf32> to vector<2x4x1xf32>
    %50 = vector.broadcast %49 : vector<2x4x1xf32> to vector<2x4x4xf32>
    %51 = arith.subf %47, %50 : vector<2x4x4xf32>
    %52 = math.exp %51 : vector<2x4x4xf32>
    %cst_19 = arith.constant dense<0.000000e+00> : vector<2x4xf32>
    %53 = vector.multi_reduction <add>, %52, %cst_19 [2] : vector<2x4x4xf32> to vector<2x4xf32>
    %54 = vector.shape_cast %53 : vector<2x4xf32> to vector<2x4x1xf32>
    %55 = vector.broadcast %54 : vector<2x4x1xf32> to vector<2x4x4xf32>
    %56 = arith.divf %52, %55 : vector<2x4x4xf32>
    %57 = arith.truncf %56 : vector<2x4x4xf32> to vector<2x4x4xbf16>
    "tpu.trace_start"() <{level = 10 : i32, message = "wnm,wmd->wnd"}> : () -> ()
    %cst_20 = arith.constant dense<0.000000e+00> : vector<2x4x16xf32>
    %58 = tpu.matmul %57, %39, %cst_20 {dimension_numbers = #tpu.dot_dimension_numbers<[2], [1], [1], [2], [0, 0, 0, 1, 1, 2], [0], [0]>} : vector<2x4x4xbf16>, vector<2x4x16xbf16>, vector<2x4x16xf32> -> vector<2x4x16xf32>
    "tpu.trace_stop"() : () -> ()
    %59 = vector.shape_cast %58 : vector<2x4x16xf32> to vector<8x16xf32>
    %60 = arith.truncf %59 : vector<8x16xf32> to vector<8x16xbf16>
    %c0_21 = arith.constant 0 : index
    %c0_22 = arith.constant 0 : index
    %61 = vector.load %arg6[%c0_21, %c0_22] : memref<32x32xbf16, #tpu.memory_space<vmem>>, vector<16x32xbf16>
    %cst_23 = arith.constant dense<0.000000e+00> : vector<8x32xf32>
    %62 = tpu.matmul %60, %61, %cst_23 {dimension_numbers = #tpu.dot_dimension_numbers<[1], [0], [0], [1], [0, 0, 1, 1], [], []>} : vector<8x16xbf16>, vector<16x32xbf16>, vector<8x32xf32> -> vector<8x32xf32>
    %63 = arith.addf %36, %62 : vector<8x32xf32>
    %64 = vector.extract_strided_slice %34 {offsets = [0, 0, 16], sizes = [2, 4, 16], strides = [1, 1, 1]} : vector<2x4x96xbf16> to vector<2x4x16xbf16>
    %65 = vector.extract_strided_slice %34 {offsets = [0, 0, 48], sizes = [2, 4, 16], strides = [1, 1, 1]} : vector<2x4x96xbf16> to vector<2x4x16xbf16>
    %66 = vector.extract_strided_slice %34 {offsets = [0, 0, 80], sizes = [2, 4, 16], strides = [1, 1, 1]} : vector<2x4x96xbf16> to vector<2x4x16xbf16>
    "tpu.trace_start"() <{level = 10 : i32, message = "wnd,wmd->wnm"}> : () -> ()
    %cst_24 = arith.constant dense<0.000000e+00> : vector<2x4x4xf32>
    %67 = tpu.matmul %64, %65, %cst_24 {dimension_numbers = #tpu.dot_dimension_numbers<[2], [2], [1], [1], [0, 0, 0, 1, 1, 1], [0], [0]>} : vector<2x4x16xbf16>, vector<2x4x16xbf16>, vector<2x4x4xf32> -> vector<2x4x4xf32>
    "tpu.trace_stop"() : () -> ()
    %cst_25 = arith.constant 2.500000e-01 : f32
    %68 = vector.broadcast %cst_25 : f32 to vector<2x4x4xf32>
    %69 = arith.mulf %67, %68 : vector<2x4x4xf32>
    %70 = vector.extract_strided_slice %35 {offsets = [1, 0, 0], sizes = [1, 4, 4], strides = [1, 1, 1]} : vector<2x4x4xf32> to vector<1x4x4xf32>
    %71 = vector.shape_cast %70 : vector<1x4x4xf32> to vector<4x4xf32>
    %72 = vector.shape_cast %71 : vector<4x4xf32> to vector<1x4x4xf32>
    %73 = vector.broadcast %72 : vector<1x4x4xf32> to vector<2x4x4xf32>
    %74 = arith.addf %69, %73 : vector<2x4x4xf32>
    %cst_26 = arith.constant dense<0xFF800000> : vector<2x4xf32>
    %75 = vector.multi_reduction <maximumf>, %74, %cst_26 [2] : vector<2x4x4xf32> to vector<2x4xf32>
    %76 = vector.shape_cast %75 : vector<2x4xf32> to vector<2x4x1xf32>
    %77 = vector.broadcast %76 : vector<2x4x1xf32> to vector<2x4x4xf32>
    %78 = arith.subf %74, %77 : vector<2x4x4xf32>
    %79 = math.exp %78 : vector<2x4x4xf32>
    %cst_27 = arith.constant dense<0.000000e+00> : vector<2x4xf32>
    %80 = vector.multi_reduction <add>, %79, %cst_27 [2] : vector<2x4x4xf32> to vector<2x4xf32>
    %81 = vector.shape_cast %80 : vector<2x4xf32> to vector<2x4x1xf32>
    %82 = vector.broadcast %81 : vector<2x4x1xf32> to vector<2x4x4xf32>
    %83 = arith.divf %79, %82 : vector<2x4x4xf32>
    %84 = arith.truncf %83 : vector<2x4x4xf32> to vector<2x4x4xbf16>
    "tpu.trace_start"() <{level = 10 : i32, message = "wnm,wmd->wnd"}> : () -> ()
    %cst_28 = arith.constant dense<0.000000e+00> : vector<2x4x16xf32>
    %85 = tpu.matmul %84, %66, %cst_28 {dimension_numbers = #tpu.dot_dimension_numbers<[2], [1], [1], [2], [0, 0, 0, 1, 1, 2], [0], [0]>} : vector<2x4x4xbf16>, vector<2x4x16xbf16>, vector<2x4x16xf32> -> vector<2x4x16xf32>
    "tpu.trace_stop"() : () -> ()
    %86 = vector.shape_cast %85 : vector<2x4x16xf32> to vector<8x16xf32>
    %87 = arith.truncf %86 : vector<8x16xf32> to vector<8x16xbf16>
    %c16 = arith.constant 16 : index
    %c0_29 = arith.constant 0 : index
    %88 = vector.load %arg6[%c16, %c0_29] : memref<32x32xbf16, #tpu.memory_space<vmem>>, vector<16x32xbf16>
    %cst_30 = arith.constant dense<0.000000e+00> : vector<8x32xf32>
    %89 = tpu.matmul %87, %88, %cst_30 {dimension_numbers = #tpu.dot_dimension_numbers<[1], [0], [0], [1], [0, 0, 1, 1], [], []>} : vector<8x16xbf16>, vector<16x32xbf16>, vector<8x32xf32> -> vector<8x32xf32>
    %90 = arith.addf %63, %89 : vector<8x32xf32>
    %c0_31 = arith.constant 0 : index
    %c0_32 = arith.constant 0 : index
    %91 = vector.load %arg7[%c0_31, %c0_32] : memref<1x32xf32, #tpu.memory_space<vmem>>, vector<1x32xf32>
    %92 = vector.broadcast %91 : vector<1x32xf32> to vector<8x32xf32>
    %93 = arith.addf %90, %92 : vector<8x32xf32>
    %94 = arith.addf %10, %93 : vector<8x32xf32>
    %cst_33 = arith.constant dense<0.000000e+00> : vector<8xf32>
    %95 = vector.multi_reduction <add>, %94, %cst_33 [1] : vector<8x32xf32> to vector<8xf32>
    %96 = vector.shape_cast %95 : vector<8xf32> to vector<8x1xf32>
    %cst_34 = arith.constant 3.200000e+01 : f32
    %97 = vector.broadcast %cst_34 : f32 to vector<8x1xf32>
    %98 = arith.divf %96, %97 : vector<8x1xf32>
    %99 = vector.broadcast %98 : vector<8x1xf32> to vector<8x32xf32>
    %100 = arith.subf %94, %99 : vector<8x32xf32>
    %101 = arith.mulf %100, %100 : vector<8x32xf32>
    %cst_35 = arith.constant dense<0.000000e+00> : vector<8xf32>
    %102 = vector.multi_reduction <add>, %101, %cst_35 [1] : vector<8x32xf32> to vector<8xf32>
    %103 = vector.shape_cast %102 : vector<8xf32> to vector<8x1xf32>
    %cst_36 = arith.constant 3.200000e+01 : f32
    %104 = vector.broadcast %cst_36 : f32 to vector<8x1xf32>
    %105 = arith.divf %103, %104 : vector<8x1xf32>
    %cst_37 = arith.constant 9.99999974E-6 : f32
    %106 = vector.broadcast %cst_37 : f32 to vector<8x1xf32>
    %107 = arith.addf %105, %106 : vector<8x1xf32>
    %108 = math.rsqrt %107 : vector<8x1xf32>
    %109 = vector.broadcast %108 : vector<8x1xf32> to vector<8x32xf32>
    %110 = arith.mulf %100, %109 : vector<8x32xf32>
    %111 = arith.truncf %110 : vector<8x32xf32> to vector<8x32xbf16>
    %c0_38 = arith.constant 0 : index
    %c0_39 = arith.constant 0 : index
    %112 = vector.load %arg8[%c0_38, %c0_39] : memref<32x128xbf16, #tpu.memory_space<vmem>>, vector<32x128xbf16>
    %cst_40 = arith.constant dense<0.000000e+00> : vector<8x128xf32>
    %113 = tpu.matmul %111, %112, %cst_40 {dimension_numbers = #tpu.dot_dimension_numbers<[1], [0], [0], [1], [0, 0, 1, 1], [], []>} : vector<8x32xbf16>, vector<32x128xbf16>, vector<8x128xf32> -> vector<8x128xf32>
    %c0_41 = arith.constant 0 : index
    %c0_42 = arith.constant 0 : index
    %114 = vector.load %arg9[%c0_41, %c0_42] : memref<1x128xf32, #tpu.memory_space<vmem>>, vector<1x128xf32>
    %115 = vector.broadcast %114 : vector<1x128xf32> to vector<8x128xf32>
    %116 = arith.addf %113, %115 : vector<8x128xf32>
    %cst_43 = arith.constant 5.000000e-01 : f32
    %117 = vector.broadcast %cst_43 : f32 to vector<8x128xf32>
    %118 = arith.mulf %117, %116 : vector<8x128xf32>
    %cst_44 = arith.constant 4.471500e-02 : f32
    %119 = vector.broadcast %cst_44 : f32 to vector<8x128xf32>
    %120 = arith.mulf %119, %116 : vector<8x128xf32>
    %121 = arith.mulf %120, %116 : vector<8x128xf32>
    %122 = arith.mulf %121, %116 : vector<8x128xf32>
    %123 = arith.addf %116, %122 : vector<8x128xf32>
    %cst_45 = arith.constant 0.797884583 : f32
    %124 = vector.broadcast %cst_45 : f32 to vector<8x128xf32>
    %125 = arith.mulf %124, %123 : vector<8x128xf32>
    %126 = math.tanh %125 : vector<8x128xf32>
    %cst_46 = arith.constant 1.000000e+00 : f32
    %127 = vector.broadcast %cst_46 : f32 to vector<8x128xf32>
    %128 = arith.addf %127, %126 : vector<8x128xf32>
    %129 = arith.mulf %118, %128 : vector<8x128xf32>
    %130 = arith.truncf %129 : vector<8x128xf32> to vector<8x128xbf16>
    %c0_47 = arith.constant 0 : index
    %c0_48 = arith.constant 0 : index
    %131 = vector.load %arg10[%c0_47, %c0_48] : memref<128x32xbf16, #tpu.memory_space<vmem>>, vector<128x32xbf16>
    %cst_49 = arith.constant dense<0.000000e+00> : vector<8x32xf32>
    %132 = tpu.matmul %130, %131, %cst_49 {dimension_numbers = #tpu.dot_dimension_numbers<[1], [0], [0], [1], [0, 0, 1, 1], [], []>} : vector<8x128xbf16>, vector<128x32xbf16>, vector<8x32xf32> -> vector<8x32xf32>
    %c0_50 = arith.constant 0 : index
    %c0_51 = arith.constant 0 : index
    %133 = vector.load %arg11[%c0_50, %c0_51] : memref<1x32xf32, #tpu.memory_space<vmem>>, vector<1x32xf32>
    %134 = vector.broadcast %133 : vector<1x32xf32> to vector<8x32xf32>
    %135 = arith.addf %132, %134 : vector<8x32xf32>
    %136 = arith.addf %135, %94 : vector<8x32xf32>
    %137 = vector.shape_cast %136 : vector<8x32xf32> to vector<2x4x32xf32>
    %138 = vector.extract_strided_slice %137 {offsets = [0, 0, 0], sizes = [1, 4, 32], strides = [1, 1, 1]} : vector<2x4x32xf32> to vector<1x4x32xf32>
    %139 = vector.shape_cast %138 : vector<1x4x32xf32> to vector<4x32xf32>
    %140 = vector.shape_cast %139 : vector<4x32xf32> to vector<2x2x32xf32>
    %141 = arith.truncf %140 : vector<2x2x32xf32> to vector<2x2x32xbf16>
    %c0_52 = arith.constant 0 : index
    %c0_53 = arith.constant 0 : index
    %c0_54 = arith.constant 0 : index
    %c0_55 = arith.constant 0 : index
    %142 = vector.load %arg12[%c0_52, %c0_53, %c0_54, %c0_55] : memref<1x2x4x32xbf16, #tpu.memory_space<vmem>>, vector<1x2x2x32xbf16>
    %143 = vector.shape_cast %142 : vector<1x2x2x32xbf16> to vector<2x2x32xbf16>
    %144 = vector.shape_cast %141 : vector<2x2x32xbf16> to vector<1x2x2x32xbf16>
    tpu.vector_store %arg12[%c0_52, %c0_53, %c0_54, %c0_55], %144 {strides = array<i32>} : memref<1x2x4x32xbf16, #tpu.memory_space<vmem>>, vector<1x2x2x32xbf16>,
    %145 = vector.extract_strided_slice %137 {offsets = [1, 0, 0], sizes = [1, 4, 32], strides = [1, 1, 1]} : vector<2x4x32xf32> to vector<1x4x32xf32>
    %146 = vector.shape_cast %145 : vector<1x4x32xf32> to vector<4x32xf32>
    %147 = vector.shape_cast %146 : vector<4x32xf32> to vector<2x2x32xf32>
    %148 = arith.truncf %147 : vector<2x2x32xf32> to vector<2x2x32xbf16>
    %c0_56 = arith.constant 0 : index
    %c0_57 = arith.constant 0 : index
    %c2 = arith.constant 2 : index
    %c0_58 = arith.constant 0 : index
    %149 = vector.load %arg12[%c0_56, %c0_57, %c2, %c0_58] : memref<1x2x4x32xbf16, #tpu.memory_space<vmem>>, vector<1x2x2x32xbf16>
    %150 = vector.shape_cast %149 : vector<1x2x2x32xbf16> to vector<2x2x32xbf16>
    %151 = vector.shape_cast %148 : vector<2x2x32xbf16> to vector<1x2x2x32xbf16>
    tpu.vector_store %arg12[%c0_56, %c0_57, %c2, %c0_58], %151 {strides = array<i32>} : memref<1x2x4x32xbf16, #tpu.memory_space<vmem>>, vector<1x2x2x32xbf16>,
    return
  }
  func.func @transform_0(%arg0: i32, %arg1: i32) -> (i32, i32, i32, i32) {
    %c0_i32 = arith.constant 0 : i32
    %c0_i32_0 = arith.constant 0 : i32
    %c0_i32_1 = arith.constant 0 : i32
    return %arg0, %arg1, %c0_i32, %c0_i32_0 : i32, i32, i32, i32
  }
  func.func @transform_1(%arg0: i32, %arg1: i32) -> (i32, i32) {
    %c0_i32 = arith.constant 0 : i32
    %c0_i32_0 = arith.constant 0 : i32
    %c0_i32_1 = arith.constant 0 : i32
    return %c0_i32, %c0_i32_0 : i32, i32
  }
  func.func @transform_2(%arg0: i32, %arg1: i32) -> (i32, i32) {
    %c0_i32 = arith.constant 0 : i32
    %c0_i32_0 = arith.constant 0 : i32
    %c0_i32_1 = arith.constant 0 : i32
    return %c0_i32, %c0_i32_0 : i32, i32
  }
  func.func @transform_3(%arg0: i32, %arg1: i32) -> (i32, i32, i32) {
    %c0_i32 = arith.constant 0 : i32
    %c0_i32_0 = arith.constant 0 : i32
    %c0_i32_1 = arith.constant 0 : i32
    %c0_i32_2 = arith.constant 0 : i32
    return %c0_i32, %c0_i32_0, %c0_i32_1 : i32, i32, i32
  }
  func.func @transform_4(%arg0: i32, %arg1: i32) -> (i32, i32) {
    %c0_i32 = arith.constant 0 : i32
    %c0_i32_0 = arith.constant 0 : i32
    %c0_i32_1 = arith.constant 0 : i32
    return %c0_i32, %c0_i32_0 : i32, i32
  }
  func.func @transform_5(%arg0: i32, %arg1: i32) -> (i32, i32) {
    %c0_i32 = arith.constant 0 : i32
    %c0_i32_0 = arith.constant 0 : i32
    %c0_i32_1 = arith.constant 0 : i32
    return %c0_i32, %c0_i32_0 : i32, i32
  }
  func.func @transform_6(%arg0: i32, %arg1: i32) -> (i32, i32) {
    %c0_i32 = arith.constant 0 : i32
    %c0_i32_0 = arith.constant 0 : i32
    %c0_i32_1 = arith.constant 0 : i32
    return %c0_i32, %c0_i32_0 : i32, i32
  }
  func.func @transform_7(%arg0: i32, %arg1: i32) -> (i32, i32) {
    %c0_i32 = arith.constant 0 : i32
    %c0_i32_0 = arith.constant 0 : i32
    %c0_i32_1 = arith.constant 0 : i32
    return %c0_i32, %c0_i32_0 : i32, i32
  }
  func.func @transform_8(%arg0: i32, %arg1: i32) -> (i32, i32) {
    %c0_i32 = arith.constant 0 : i32
    %c0_i32_0 = arith.constant 0 : i32
    %c0_i32_1 = arith.constant 0 : i32
    return %c0_i32, %c0_i32_0 : i32, i32
  }
  func.func @transform_9(%arg0: i32, %arg1: i32) -> (i32, i32) {
    %c0_i32 = arith.constant 0 : i32
    %c0_i32_0 = arith.constant 0 : i32
    %c0_i32_1 = arith.constant 0 : i32
    return %c0_i32, %c0_i32_0 : i32, i32
  }
  func.func @transform_10(%arg0: i32, %arg1: i32) -> (i32, i32, i32, i32) {
    %c0_i32 = arith.constant 0 : i32
    %c0_i32_0 = arith.constant 0 : i32
    %c0_i32_1 = arith.constant 0 : i32
    return %arg0, %arg1, %c0_i32, %c0_i32_0 : i32, i32, i32, i32
  }
}

module attributes {stable_mosaic.version = 11 : i64} {
  func.func @_swin_block_kernel(%arg0: i32, %arg1: i32, %arg2: memref<1x2x4x32xbf16, #tpu.memory_space<vmem>>, %arg3: memref<32x96xbf16, #tpu.memory_space<vmem>>, %arg4: memref<1x96xf32, #tpu.memory_space<vmem>>, %arg5: memref<2x4x4xf32, #tpu.memory_space<vmem>>, %arg6: memref<2x4x4xf32, #tpu.memory_space<vmem>>, %arg7: memref<32x32xbf16, #tpu.memory_space<vmem>>, %arg8: memref<1x32xf32, #tpu.memory_space<vmem>>, %arg9: memref<32x128xbf16, #tpu.memory_space<vmem>>, %arg10: memref<1x128xf32, #tpu.memory_space<vmem>>, %arg11: memref<128x32xbf16, #tpu.memory_space<vmem>>, %arg12: memref<1x32xf32, #tpu.memory_space<vmem>>, %arg13: memref<1x2x4x32xbf16, #tpu.memory_space<vmem>>) attributes {dimension_semantics = [#tpu.dimension_semantics<parallel>, #tpu.dimension_semantics<parallel>], iteration_bounds = array<i64: 2, 2>, scalar_prefetch = 0 : i64, scratch_operands = 0 : i64, tpu.core_type = #tpu.core_type<tc>, window_params = [{transform_indices = @transform_0, window_bounds = array<i64: 1, 2, 4, 32>}, {pipeline_mode = #tpu.pipeline_mode<synchronous>, transform_indices = @transform_1, window_bounds = array<i64: 32, 96>}, {pipeline_mode = #tpu.pipeline_mode<synchronous>, transform_indices = @transform_2, window_bounds = array<i64: 1, 96>}, {pipeline_mode = #tpu.pipeline_mode<synchronous>, transform_indices = @transform_3, window_bounds = array<i64: 2, 4, 4>}, {transform_indices = @transform_4, window_bounds = array<i64: 2, 4, 4>}, {pipeline_mode = #tpu.pipeline_mode<synchronous>, transform_indices = @transform_5, window_bounds = array<i64: 32, 32>}, {pipeline_mode = #tpu.pipeline_mode<synchronous>, transform_indices = @transform_6, window_bounds = array<i64: 1, 32>}, {pipeline_mode = #tpu.pipeline_mode<synchronous>, transform_indices = @transform_7, window_bounds = array<i64: 32, 128>}, {pipeline_mode = #tpu.pipeline_mode<synchronous>, transform_indices = @transform_8, window_bounds = array<i64: 1, 128>}, {pipeline_mode = #tpu.pipeline_mode<synchronous>, transform_indices = @transform_9, window_bounds = array<i64: 128, 32>}, {pipeline_mode = #tpu.pipeline_mode<synchronous>, transform_indices = @transform_10, window_bounds = array<i64: 1, 32>}, {transform_indices = @transform_11, window_bounds = array<i64: 1, 2, 4, 32>}]} {
    %c0 = arith.constant 0 : index
    %c0_0 = arith.constant 0 : index
    %c0_1 = arith.constant 0 : index
    %c0_2 = arith.constant 0 : index
    %0 = vector.load %arg2[%c0, %c0_0, %c0_1, %c0_2] : memref<1x2x4x32xbf16, #tpu.memory_space<vmem>>, vector<1x2x4x32xbf16>
    %1 = vector.shape_cast %0 : vector<1x2x4x32xbf16> to vector<2x4x32xbf16>
    %2 = arith.extf %1 : vector<2x4x32xbf16> to vector<2x4x32xf32>
    %3 = vector.extract_strided_slice %2 {offsets = [0, 0, 0], sizes = [2, 2, 32], strides = [1, 1, 1]} : vector<2x4x32xf32> to vector<2x2x32xf32>
    %4 = vector.shape_cast %3 : vector<2x2x32xf32> to vector<4x32xf32>
    %5 = vector.extract_strided_slice %2 {offsets = [0, 2, 0], sizes = [2, 2, 32], strides = [1, 1, 1]} : vector<2x4x32xf32> to vector<2x2x32xf32>
    %6 = vector.shape_cast %5 : vector<2x2x32xf32> to vector<4x32xf32>
    %7 = vector.shape_cast %4 : vector<4x32xf32> to vector<1x4x32xf32>
    %8 = vector.shape_cast %6 : vector<4x32xf32> to vector<1x4x32xf32>
    %9 = tpu.concatenate %7, %8 in 0 : vector<1x4x32xf32>, vector<1x4x32xf32> -> vector<2x4x32xf32>
    %10 = vector.shape_cast %9 : vector<2x4x32xf32> to vector<8x32xf32>
    %cst = arith.constant dense<0.000000e+00> : vector<8xf32>
    %11 = vector.multi_reduction <add>, %10, %cst [1] : vector<8x32xf32> to vector<8xf32>
    %12 = vector.shape_cast %11 : vector<8xf32> to vector<8x1xf32>
    %cst_3 = arith.constant 3.200000e+01 : f32
    %13 = vector.broadcast %cst_3 : f32 to vector<8x1xf32>
    %14 = arith.divf %12, %13 : vector<8x1xf32>
    %15 = vector.broadcast %14 : vector<8x1xf32> to vector<8x32xf32>
    %16 = arith.subf %10, %15 : vector<8x32xf32>
    %17 = arith.mulf %16, %16 : vector<8x32xf32>
    %cst_4 = arith.constant dense<0.000000e+00> : vector<8xf32>
    %18 = vector.multi_reduction <add>, %17, %cst_4 [1] : vector<8x32xf32> to vector<8xf32>
    %19 = vector.shape_cast %18 : vector<8xf32> to vector<8x1xf32>
    %cst_5 = arith.constant 3.200000e+01 : f32
    %20 = vector.broadcast %cst_5 : f32 to vector<8x1xf32>
    %21 = arith.divf %19, %20 : vector<8x1xf32>
    %cst_6 = arith.constant 9.99999974E-6 : f32
    %22 = vector.broadcast %cst_6 : f32 to vector<8x1xf32>
    %23 = arith.addf %21, %22 : vector<8x1xf32>
    %24 = math.rsqrt %23 : vector<8x1xf32>
    %25 = vector.broadcast %24 : vector<8x1xf32> to vector<8x32xf32>
    %26 = arith.mulf %16, %25 : vector<8x32xf32>
    %27 = arith.truncf %26 : vector<8x32xf32> to vector<8x32xbf16>
    %c0_7 = arith.constant 0 : index
    %c0_8 = arith.constant 0 : index
    %28 = vector.load %arg3[%c0_7, %c0_8] : memref<32x96xbf16, #tpu.memory_space<vmem>>, vector<32x96xbf16>
    %cst_9 = arith.constant dense<0.000000e+00> : vector<8x96xf32>
    %29 = tpu.matmul %27, %28, %cst_9 {dimension_numbers = #tpu.dot_dimension_numbers<[1], [0], [0], [1], [0, 0, 1, 1], [], []>} : vector<8x32xbf16>, vector<32x96xbf16>, vector<8x96xf32> -> vector<8x96xf32>
    %c0_10 = arith.constant 0 : index
    %c0_11 = arith.constant 0 : index
    %30 = vector.load %arg4[%c0_10, %c0_11] : memref<1x96xf32, #tpu.memory_space<vmem>>, vector<1x96xf32>
    %31 = vector.broadcast %30 : vector<1x96xf32> to vector<8x96xf32>
    %32 = arith.addf %29, %31 : vector<8x96xf32>
    %33 = vector.shape_cast %32 : vector<8x96xf32> to vector<2x4x96xf32>
    %34 = arith.truncf %33 : vector<2x4x96xf32> to vector<2x4x96xbf16>
    %c0_12 = arith.constant 0 : index
    %c0_13 = arith.constant 0 : index
    %c0_14 = arith.constant 0 : index
    %35 = vector.load %arg5[%c0_12, %c0_13, %c0_14] : memref<2x4x4xf32, #tpu.memory_space<vmem>>, vector<2x4x4xf32>
    %cst_15 = arith.constant 0.000000e+00 : f32
    %36 = vector.broadcast %cst_15 : f32 to vector<8x32xf32>
    %37 = vector.extract_strided_slice %34 {offsets = [0, 0, 0], sizes = [2, 4, 16], strides = [1, 1, 1]} : vector<2x4x96xbf16> to vector<2x4x16xbf16>
    %38 = vector.extract_strided_slice %34 {offsets = [0, 0, 32], sizes = [2, 4, 16], strides = [1, 1, 1]} : vector<2x4x96xbf16> to vector<2x4x16xbf16>
    %39 = vector.extract_strided_slice %34 {offsets = [0, 0, 64], sizes = [2, 4, 16], strides = [1, 1, 1]} : vector<2x4x96xbf16> to vector<2x4x16xbf16>
    "tpu.trace_start"() <{level = 10 : i32, message = "wnd,wmd->wnm"}> : () -> ()
    %cst_16 = arith.constant dense<0.000000e+00> : vector<2x4x4xf32>
    %40 = tpu.matmul %37, %38, %cst_16 {dimension_numbers = #tpu.dot_dimension_numbers<[2], [2], [1], [1], [0, 0, 0, 1, 1, 1], [0], [0]>} : vector<2x4x16xbf16>, vector<2x4x16xbf16>, vector<2x4x4xf32> -> vector<2x4x4xf32>
    "tpu.trace_stop"() : () -> ()
    %cst_17 = arith.constant 2.500000e-01 : f32
    %41 = vector.broadcast %cst_17 : f32 to vector<2x4x4xf32>
    %42 = arith.mulf %40, %41 : vector<2x4x4xf32>
    %43 = vector.extract_strided_slice %35 {offsets = [0, 0, 0], sizes = [1, 4, 4], strides = [1, 1, 1]} : vector<2x4x4xf32> to vector<1x4x4xf32>
    %44 = vector.shape_cast %43 : vector<1x4x4xf32> to vector<4x4xf32>
    %45 = vector.shape_cast %44 : vector<4x4xf32> to vector<1x4x4xf32>
    %46 = vector.broadcast %45 : vector<1x4x4xf32> to vector<2x4x4xf32>
    %47 = arith.addf %42, %46 : vector<2x4x4xf32>
    %c0_18 = arith.constant 0 : index
    %c0_19 = arith.constant 0 : index
    %c0_20 = arith.constant 0 : index
    %48 = vector.load %arg6[%c0_18, %c0_19, %c0_20] : memref<2x4x4xf32, #tpu.memory_space<vmem>>, vector<2x4x4xf32>
    %49 = arith.addf %47, %48 : vector<2x4x4xf32>
    %cst_21 = arith.constant dense<0xFF800000> : vector<2x4xf32>
    %50 = vector.multi_reduction <maximumf>, %49, %cst_21 [2] : vector<2x4x4xf32> to vector<2x4xf32>
    %51 = vector.shape_cast %50 : vector<2x4xf32> to vector<2x4x1xf32>
    %52 = vector.broadcast %51 : vector<2x4x1xf32> to vector<2x4x4xf32>
    %53 = arith.subf %49, %52 : vector<2x4x4xf32>
    %54 = math.exp %53 : vector<2x4x4xf32>
    %cst_22 = arith.constant dense<0.000000e+00> : vector<2x4xf32>
    %55 = vector.multi_reduction <add>, %54, %cst_22 [2] : vector<2x4x4xf32> to vector<2x4xf32>
    %56 = vector.shape_cast %55 : vector<2x4xf32> to vector<2x4x1xf32>
    %57 = vector.broadcast %56 : vector<2x4x1xf32> to vector<2x4x4xf32>
    %58 = arith.divf %54, %57 : vector<2x4x4xf32>
    %59 = arith.truncf %58 : vector<2x4x4xf32> to vector<2x4x4xbf16>
    "tpu.trace_start"() <{level = 10 : i32, message = "wnm,wmd->wnd"}> : () -> ()
    %cst_23 = arith.constant dense<0.000000e+00> : vector<2x4x16xf32>
    %60 = tpu.matmul %59, %39, %cst_23 {dimension_numbers = #tpu.dot_dimension_numbers<[2], [1], [1], [2], [0, 0, 0, 1, 1, 2], [0], [0]>} : vector<2x4x4xbf16>, vector<2x4x16xbf16>, vector<2x4x16xf32> -> vector<2x4x16xf32>
    "tpu.trace_stop"() : () -> ()
    %61 = vector.shape_cast %60 : vector<2x4x16xf32> to vector<8x16xf32>
    %62 = arith.truncf %61 : vector<8x16xf32> to vector<8x16xbf16>
    %c0_24 = arith.constant 0 : index
    %c0_25 = arith.constant 0 : index
    %63 = vector.load %arg7[%c0_24, %c0_25] : memref<32x32xbf16, #tpu.memory_space<vmem>>, vector<16x32xbf16>
    %cst_26 = arith.constant dense<0.000000e+00> : vector<8x32xf32>
    %64 = tpu.matmul %62, %63, %cst_26 {dimension_numbers = #tpu.dot_dimension_numbers<[1], [0], [0], [1], [0, 0, 1, 1], [], []>} : vector<8x16xbf16>, vector<16x32xbf16>, vector<8x32xf32> -> vector<8x32xf32>
    %65 = arith.addf %36, %64 : vector<8x32xf32>
    %66 = vector.extract_strided_slice %34 {offsets = [0, 0, 16], sizes = [2, 4, 16], strides = [1, 1, 1]} : vector<2x4x96xbf16> to vector<2x4x16xbf16>
    %67 = vector.extract_strided_slice %34 {offsets = [0, 0, 48], sizes = [2, 4, 16], strides = [1, 1, 1]} : vector<2x4x96xbf16> to vector<2x4x16xbf16>
    %68 = vector.extract_strided_slice %34 {offsets = [0, 0, 80], sizes = [2, 4, 16], strides = [1, 1, 1]} : vector<2x4x96xbf16> to vector<2x4x16xbf16>
    "tpu.trace_start"() <{level = 10 : i32, message = "wnd,wmd->wnm"}> : () -> ()
    %cst_27 = arith.constant dense<0.000000e+00> : vector<2x4x4xf32>
    %69 = tpu.matmul %66, %67, %cst_27 {dimension_numbers = #tpu.dot_dimension_numbers<[2], [2], [1], [1], [0, 0, 0, 1, 1, 1], [0], [0]>} : vector<2x4x16xbf16>, vector<2x4x16xbf16>, vector<2x4x4xf32> -> vector<2x4x4xf32>
    "tpu.trace_stop"() : () -> ()
    %cst_28 = arith.constant 2.500000e-01 : f32
    %70 = vector.broadcast %cst_28 : f32 to vector<2x4x4xf32>
    %71 = arith.mulf %69, %70 : vector<2x4x4xf32>
    %72 = vector.extract_strided_slice %35 {offsets = [1, 0, 0], sizes = [1, 4, 4], strides = [1, 1, 1]} : vector<2x4x4xf32> to vector<1x4x4xf32>
    %73 = vector.shape_cast %72 : vector<1x4x4xf32> to vector<4x4xf32>
    %74 = vector.shape_cast %73 : vector<4x4xf32> to vector<1x4x4xf32>
    %75 = vector.broadcast %74 : vector<1x4x4xf32> to vector<2x4x4xf32>
    %76 = arith.addf %71, %75 : vector<2x4x4xf32>
    %c0_29 = arith.constant 0 : index
    %c0_30 = arith.constant 0 : index
    %c0_31 = arith.constant 0 : index
    %77 = vector.load %arg6[%c0_29, %c0_30, %c0_31] : memref<2x4x4xf32, #tpu.memory_space<vmem>>, vector<2x4x4xf32>
    %78 = arith.addf %76, %77 : vector<2x4x4xf32>
    %cst_32 = arith.constant dense<0xFF800000> : vector<2x4xf32>
    %79 = vector.multi_reduction <maximumf>, %78, %cst_32 [2] : vector<2x4x4xf32> to vector<2x4xf32>
    %80 = vector.shape_cast %79 : vector<2x4xf32> to vector<2x4x1xf32>
    %81 = vector.broadcast %80 : vector<2x4x1xf32> to vector<2x4x4xf32>
    %82 = arith.subf %78, %81 : vector<2x4x4xf32>
    %83 = math.exp %82 : vector<2x4x4xf32>
    %cst_33 = arith.constant dense<0.000000e+00> : vector<2x4xf32>
    %84 = vector.multi_reduction <add>, %83, %cst_33 [2] : vector<2x4x4xf32> to vector<2x4xf32>
    %85 = vector.shape_cast %84 : vector<2x4xf32> to vector<2x4x1xf32>
    %86 = vector.broadcast %85 : vector<2x4x1xf32> to vector<2x4x4xf32>
    %87 = arith.divf %83, %86 : vector<2x4x4xf32>
    %88 = arith.truncf %87 : vector<2x4x4xf32> to vector<2x4x4xbf16>
    "tpu.trace_start"() <{level = 10 : i32, message = "wnm,wmd->wnd"}> : () -> ()
    %cst_34 = arith.constant dense<0.000000e+00> : vector<2x4x16xf32>
    %89 = tpu.matmul %88, %68, %cst_34 {dimension_numbers = #tpu.dot_dimension_numbers<[2], [1], [1], [2], [0, 0, 0, 1, 1, 2], [0], [0]>} : vector<2x4x4xbf16>, vector<2x4x16xbf16>, vector<2x4x16xf32> -> vector<2x4x16xf32>
    "tpu.trace_stop"() : () -> ()
    %90 = vector.shape_cast %89 : vector<2x4x16xf32> to vector<8x16xf32>
    %91 = arith.truncf %90 : vector<8x16xf32> to vector<8x16xbf16>
    %c16 = arith.constant 16 : index
    %c0_35 = arith.constant 0 : index
    %92 = vector.load %arg7[%c16, %c0_35] : memref<32x32xbf16, #tpu.memory_space<vmem>>, vector<16x32xbf16>
    %cst_36 = arith.constant dense<0.000000e+00> : vector<8x32xf32>
    %93 = tpu.matmul %91, %92, %cst_36 {dimension_numbers = #tpu.dot_dimension_numbers<[1], [0], [0], [1], [0, 0, 1, 1], [], []>} : vector<8x16xbf16>, vector<16x32xbf16>, vector<8x32xf32> -> vector<8x32xf32>
    %94 = arith.addf %65, %93 : vector<8x32xf32>
    %c0_37 = arith.constant 0 : index
    %c0_38 = arith.constant 0 : index
    %95 = vector.load %arg8[%c0_37, %c0_38] : memref<1x32xf32, #tpu.memory_space<vmem>>, vector<1x32xf32>
    %96 = vector.broadcast %95 : vector<1x32xf32> to vector<8x32xf32>
    %97 = arith.addf %94, %96 : vector<8x32xf32>
    %98 = arith.addf %10, %97 : vector<8x32xf32>
    %cst_39 = arith.constant dense<0.000000e+00> : vector<8xf32>
    %99 = vector.multi_reduction <add>, %98, %cst_39 [1] : vector<8x32xf32> to vector<8xf32>
    %100 = vector.shape_cast %99 : vector<8xf32> to vector<8x1xf32>
    %cst_40 = arith.constant 3.200000e+01 : f32
    %101 = vector.broadcast %cst_40 : f32 to vector<8x1xf32>
    %102 = arith.divf %100, %101 : vector<8x1xf32>
    %103 = vector.broadcast %102 : vector<8x1xf32> to vector<8x32xf32>
    %104 = arith.subf %98, %103 : vector<8x32xf32>
    %105 = arith.mulf %104, %104 : vector<8x32xf32>
    %cst_41 = arith.constant dense<0.000000e+00> : vector<8xf32>
    %106 = vector.multi_reduction <add>, %105, %cst_41 [1] : vector<8x32xf32> to vector<8xf32>
    %107 = vector.shape_cast %106 : vector<8xf32> to vector<8x1xf32>
    %cst_42 = arith.constant 3.200000e+01 : f32
    %108 = vector.broadcast %cst_42 : f32 to vector<8x1xf32>
    %109 = arith.divf %107, %108 : vector<8x1xf32>
    %cst_43 = arith.constant 9.99999974E-6 : f32
    %110 = vector.broadcast %cst_43 : f32 to vector<8x1xf32>
    %111 = arith.addf %109, %110 : vector<8x1xf32>
    %112 = math.rsqrt %111 : vector<8x1xf32>
    %113 = vector.broadcast %112 : vector<8x1xf32> to vector<8x32xf32>
    %114 = arith.mulf %104, %113 : vector<8x32xf32>
    %115 = arith.truncf %114 : vector<8x32xf32> to vector<8x32xbf16>
    %c0_44 = arith.constant 0 : index
    %c0_45 = arith.constant 0 : index
    %116 = vector.load %arg9[%c0_44, %c0_45] : memref<32x128xbf16, #tpu.memory_space<vmem>>, vector<32x128xbf16>
    %cst_46 = arith.constant dense<0.000000e+00> : vector<8x128xf32>
    %117 = tpu.matmul %115, %116, %cst_46 {dimension_numbers = #tpu.dot_dimension_numbers<[1], [0], [0], [1], [0, 0, 1, 1], [], []>} : vector<8x32xbf16>, vector<32x128xbf16>, vector<8x128xf32> -> vector<8x128xf32>
    %c0_47 = arith.constant 0 : index
    %c0_48 = arith.constant 0 : index
    %118 = vector.load %arg10[%c0_47, %c0_48] : memref<1x128xf32, #tpu.memory_space<vmem>>, vector<1x128xf32>
    %119 = vector.broadcast %118 : vector<1x128xf32> to vector<8x128xf32>
    %120 = arith.addf %117, %119 : vector<8x128xf32>
    %cst_49 = arith.constant 5.000000e-01 : f32
    %121 = vector.broadcast %cst_49 : f32 to vector<8x128xf32>
    %122 = arith.mulf %121, %120 : vector<8x128xf32>
    %cst_50 = arith.constant 4.471500e-02 : f32
    %123 = vector.broadcast %cst_50 : f32 to vector<8x128xf32>
    %124 = arith.mulf %123, %120 : vector<8x128xf32>
    %125 = arith.mulf %124, %120 : vector<8x128xf32>
    %126 = arith.mulf %125, %120 : vector<8x128xf32>
    %127 = arith.addf %120, %126 : vector<8x128xf32>
    %cst_51 = arith.constant 0.797884583 : f32
    %128 = vector.broadcast %cst_51 : f32 to vector<8x128xf32>
    %129 = arith.mulf %128, %127 : vector<8x128xf32>
    %130 = math.tanh %129 : vector<8x128xf32>
    %cst_52 = arith.constant 1.000000e+00 : f32
    %131 = vector.broadcast %cst_52 : f32 to vector<8x128xf32>
    %132 = arith.addf %131, %130 : vector<8x128xf32>
    %133 = arith.mulf %122, %132 : vector<8x128xf32>
    %134 = arith.truncf %133 : vector<8x128xf32> to vector<8x128xbf16>
    %c0_53 = arith.constant 0 : index
    %c0_54 = arith.constant 0 : index
    %135 = vector.load %arg11[%c0_53, %c0_54] : memref<128x32xbf16, #tpu.memory_space<vmem>>, vector<128x32xbf16>
    %cst_55 = arith.constant dense<0.000000e+00> : vector<8x32xf32>
    %136 = tpu.matmul %134, %135, %cst_55 {dimension_numbers = #tpu.dot_dimension_numbers<[1], [0], [0], [1], [0, 0, 1, 1], [], []>} : vector<8x128xbf16>, vector<128x32xbf16>, vector<8x32xf32> -> vector<8x32xf32>
    %c0_56 = arith.constant 0 : index
    %c0_57 = arith.constant 0 : index
    %137 = vector.load %arg12[%c0_56, %c0_57] : memref<1x32xf32, #tpu.memory_space<vmem>>, vector<1x32xf32>
    %138 = vector.broadcast %137 : vector<1x32xf32> to vector<8x32xf32>
    %139 = arith.addf %136, %138 : vector<8x32xf32>
    %140 = arith.addf %139, %98 : vector<8x32xf32>
    %141 = vector.shape_cast %140 : vector<8x32xf32> to vector<2x4x32xf32>
    %142 = vector.extract_strided_slice %141 {offsets = [0, 0, 0], sizes = [1, 4, 32], strides = [1, 1, 1]} : vector<2x4x32xf32> to vector<1x4x32xf32>
    %143 = vector.shape_cast %142 : vector<1x4x32xf32> to vector<4x32xf32>
    %144 = vector.shape_cast %143 : vector<4x32xf32> to vector<2x2x32xf32>
    %145 = arith.truncf %144 : vector<2x2x32xf32> to vector<2x2x32xbf16>
    %c0_58 = arith.constant 0 : index
    %c0_59 = arith.constant 0 : index
    %c0_60 = arith.constant 0 : index
    %c0_61 = arith.constant 0 : index
    %146 = vector.load %arg13[%c0_58, %c0_59, %c0_60, %c0_61] : memref<1x2x4x32xbf16, #tpu.memory_space<vmem>>, vector<1x2x2x32xbf16>
    %147 = vector.shape_cast %146 : vector<1x2x2x32xbf16> to vector<2x2x32xbf16>
    %148 = vector.shape_cast %145 : vector<2x2x32xbf16> to vector<1x2x2x32xbf16>
    tpu.vector_store %arg13[%c0_58, %c0_59, %c0_60, %c0_61], %148 {strides = array<i32>} : memref<1x2x4x32xbf16, #tpu.memory_space<vmem>>, vector<1x2x2x32xbf16>,
    %149 = vector.extract_strided_slice %141 {offsets = [1, 0, 0], sizes = [1, 4, 32], strides = [1, 1, 1]} : vector<2x4x32xf32> to vector<1x4x32xf32>
    %150 = vector.shape_cast %149 : vector<1x4x32xf32> to vector<4x32xf32>
    %151 = vector.shape_cast %150 : vector<4x32xf32> to vector<2x2x32xf32>
    %152 = arith.truncf %151 : vector<2x2x32xf32> to vector<2x2x32xbf16>
    %c0_62 = arith.constant 0 : index
    %c0_63 = arith.constant 0 : index
    %c2 = arith.constant 2 : index
    %c0_64 = arith.constant 0 : index
    %153 = vector.load %arg13[%c0_62, %c0_63, %c2, %c0_64] : memref<1x2x4x32xbf16, #tpu.memory_space<vmem>>, vector<1x2x2x32xbf16>
    %154 = vector.shape_cast %153 : vector<1x2x2x32xbf16> to vector<2x2x32xbf16>
    %155 = vector.shape_cast %152 : vector<2x2x32xbf16> to vector<1x2x2x32xbf16>
    tpu.vector_store %arg13[%c0_62, %c0_63, %c2, %c0_64], %155 {strides = array<i32>} : memref<1x2x4x32xbf16, #tpu.memory_space<vmem>>, vector<1x2x2x32xbf16>,
    return
  }
  func.func @transform_0(%arg0: i32, %arg1: i32) -> (i32, i32, i32, i32) {
    %c0_i32 = arith.constant 0 : i32
    %c0_i32_0 = arith.constant 0 : i32
    %c0_i32_1 = arith.constant 0 : i32
    return %arg0, %arg1, %c0_i32, %c0_i32_0 : i32, i32, i32, i32
  }
  func.func @transform_1(%arg0: i32, %arg1: i32) -> (i32, i32) {
    %c0_i32 = arith.constant 0 : i32
    %c0_i32_0 = arith.constant 0 : i32
    %c0_i32_1 = arith.constant 0 : i32
    return %c0_i32, %c0_i32_0 : i32, i32
  }
  func.func @transform_2(%arg0: i32, %arg1: i32) -> (i32, i32) {
    %c0_i32 = arith.constant 0 : i32
    %c0_i32_0 = arith.constant 0 : i32
    %c0_i32_1 = arith.constant 0 : i32
    return %c0_i32, %c0_i32_0 : i32, i32
  }
  func.func @transform_3(%arg0: i32, %arg1: i32) -> (i32, i32, i32) {
    %c0_i32 = arith.constant 0 : i32
    %c0_i32_0 = arith.constant 0 : i32
    %c0_i32_1 = arith.constant 0 : i32
    %c0_i32_2 = arith.constant 0 : i32
    return %c0_i32, %c0_i32_0, %c0_i32_1 : i32, i32, i32
  }
  func.func @transform_4(%arg0: i32, %arg1: i32) -> (i32, i32, i32) {
    %c0_i32 = arith.constant 0 : i32
    %c0_i32_0 = arith.constant 0 : i32
    %c0_i32_1 = arith.constant 0 : i32
    return %arg1, %c0_i32, %c0_i32_0 : i32, i32, i32
  }
  func.func @transform_5(%arg0: i32, %arg1: i32) -> (i32, i32) {
    %c0_i32 = arith.constant 0 : i32
    %c0_i32_0 = arith.constant 0 : i32
    %c0_i32_1 = arith.constant 0 : i32
    return %c0_i32, %c0_i32_0 : i32, i32
  }
  func.func @transform_6(%arg0: i32, %arg1: i32) -> (i32, i32) {
    %c0_i32 = arith.constant 0 : i32
    %c0_i32_0 = arith.constant 0 : i32
    %c0_i32_1 = arith.constant 0 : i32
    return %c0_i32, %c0_i32_0 : i32, i32
  }
  func.func @transform_7(%arg0: i32, %arg1: i32) -> (i32, i32) {
    %c0_i32 = arith.constant 0 : i32
    %c0_i32_0 = arith.constant 0 : i32
    %c0_i32_1 = arith.constant 0 : i32
    return %c0_i32, %c0_i32_0 : i32, i32
  }
  func.func @transform_8(%arg0: i32, %arg1: i32) -> (i32, i32) {
    %c0_i32 = arith.constant 0 : i32
    %c0_i32_0 = arith.constant 0 : i32
    %c0_i32_1 = arith.constant 0 : i32
    return %c0_i32, %c0_i32_0 : i32, i32
  }
  func.func @transform_9(%arg0: i32, %arg1: i32) -> (i32, i32) {
    %c0_i32 = arith.constant 0 : i32
    %c0_i32_0 = arith.constant 0 : i32
    %c0_i32_1 = arith.constant 0 : i32
    return %c0_i32, %c0_i32_0 : i32, i32
  }
  func.func @transform_10(%arg0: i32, %arg1: i32) -> (i32, i32) {
    %c0_i32 = arith.constant 0 : i32
    %c0_i32_0 = arith.constant 0 : i32
    %c0_i32_1 = arith.constant 0 : i32
    return %c0_i32, %c0_i32_0 : i32, i32
  }
  func.func @transform_11(%arg0: i32, %arg1: i32) -> (i32, i32, i32, i32) {
    %c0_i32 = arith.constant 0 : i32
    %c0_i32_0 = arith.constant 0 : i32
    %c0_i32_1 = arith.constant 0 : i32
    return %arg0, %arg1, %c0_i32, %c0_i32_0 : i32, i32, i32, i32
  }
}

module attributes {stable_mosaic.version = 11 : i64} {
  func.func @_std_linear_kernel(%arg0: i32, %arg1: memref<8x128xbf16, #tpu.memory_space<vmem>>, %arg2: memref<128x64xbf16, #tpu.memory_space<vmem>>, %arg3: memref<1x64xf32, #tpu.memory_space<vmem>>, %arg4: memref<8x64xbf16, #tpu.memory_space<vmem>>) attributes {dimension_semantics = [#tpu.dimension_semantics<parallel>], iteration_bounds = array<i64: 1>, scalar_prefetch = 0 : i64, scratch_operands = 0 : i64, tpu.core_type = #tpu.core_type<tc>, window_params = [{transform_indices = @transform_0, window_bounds = array<i64: 8, 128>}, {pipeline_mode = #tpu.pipeline_mode<synchronous>, transform_indices = @transform_1, window_bounds = array<i64: 128, 64>}, {pipeline_mode = #tpu.pipeline_mode<synchronous>, transform_indices = @transform_2, window_bounds = array<i64: 1, 64>}, {transform_indices = @transform_3, window_bounds = array<i64: 8, 64>}]} {
    %c0 = arith.constant 0 : index
    %c0_0 = arith.constant 0 : index
    %0 = vector.load %arg1[%c0, %c0_0] : memref<8x128xbf16, #tpu.memory_space<vmem>>, vector<8x128xbf16>
    %1 = arith.extf %0 : vector<8x128xbf16> to vector<8x128xf32>
    %cst = arith.constant dense<0.000000e+00> : vector<8xf32>
    %2 = vector.multi_reduction <add>, %1, %cst [1] : vector<8x128xf32> to vector<8xf32>
    %3 = vector.shape_cast %2 : vector<8xf32> to vector<8x1xf32>
    %cst_1 = arith.constant 1.280000e+02 : f32
    %4 = vector.broadcast %cst_1 : f32 to vector<8x1xf32>
    %5 = arith.divf %3, %4 : vector<8x1xf32>
    %6 = vector.broadcast %5 : vector<8x1xf32> to vector<8x128xf32>
    %7 = arith.subf %1, %6 : vector<8x128xf32>
    %8 = arith.mulf %7, %7 : vector<8x128xf32>
    %cst_2 = arith.constant dense<0.000000e+00> : vector<8xf32>
    %9 = vector.multi_reduction <add>, %8, %cst_2 [1] : vector<8x128xf32> to vector<8xf32>
    %10 = vector.shape_cast %9 : vector<8xf32> to vector<8x1xf32>
    %cst_3 = arith.constant 1.280000e+02 : f32
    %11 = vector.broadcast %cst_3 : f32 to vector<8x1xf32>
    %12 = arith.divf %10, %11 : vector<8x1xf32>
    %cst_4 = arith.constant 9.99999974E-6 : f32
    %13 = vector.broadcast %cst_4 : f32 to vector<8x1xf32>
    %14 = arith.addf %12, %13 : vector<8x1xf32>
    %15 = math.rsqrt %14 : vector<8x1xf32>
    %16 = vector.broadcast %15 : vector<8x1xf32> to vector<8x128xf32>
    %17 = arith.mulf %7, %16 : vector<8x128xf32>
    %18 = arith.truncf %17 : vector<8x128xf32> to vector<8x128xbf16>
    %c0_5 = arith.constant 0 : index
    %c0_6 = arith.constant 0 : index
    %19 = vector.load %arg2[%c0_5, %c0_6] : memref<128x64xbf16, #tpu.memory_space<vmem>>, vector<128x64xbf16>
    %cst_7 = arith.constant dense<0.000000e+00> : vector<8x64xf32>
    %20 = tpu.matmul %18, %19, %cst_7 {dimension_numbers = #tpu.dot_dimension_numbers<[1], [0], [0], [1], [0, 0, 1, 1], [], []>} : vector<8x128xbf16>, vector<128x64xbf16>, vector<8x64xf32> -> vector<8x64xf32>
    %c0_8 = arith.constant 0 : index
    %c0_9 = arith.constant 0 : index
    %21 = vector.load %arg3[%c0_8, %c0_9] : memref<1x64xf32, #tpu.memory_space<vmem>>, vector<1x64xf32>
    %22 = vector.broadcast %21 : vector<1x64xf32> to vector<8x64xf32>
    %23 = arith.addf %20, %22 : vector<8x64xf32>
    %24 = arith.truncf %23 : vector<8x64xf32> to vector<8x64xbf16>
    %c0_10 = arith.constant 0 : index
    %c0_11 = arith.constant 0 : index
    %25 = vector.load %arg4[%c0_10, %c0_11] : memref<8x64xbf16, #tpu.memory_space<vmem>>, vector<8x64xbf16>
    tpu.vector_store %arg4[%c0_10, %c0_11], %24 {strides = array<i32>} : memref<8x64xbf16, #tpu.memory_space<vmem>>, vector<8x64xbf16>,
    return
  }
  func.func @transform_0(%arg0: i32) -> (i32, i32) {
    %c0_i32 = arith.constant 0 : i32
    %c0_i32_0 = arith.constant 0 : i32
    return %arg0, %c0_i32 : i32, i32
  }
  func.func @transform_1(%arg0: i32) -> (i32, i32) {
    %c0_i32 = arith.constant 0 : i32
    %c0_i32_0 = arith.constant 0 : i32
    %c0_i32_1 = arith.constant 0 : i32
    return %c0_i32, %c0_i32_0 : i32, i32
  }
  func.func @transform_2(%arg0: i32) -> (i32, i32) {
    %c0_i32 = arith.constant 0 : i32
    %c0_i32_0 = arith.constant 0 : i32
    %c0_i32_1 = arith.constant 0 : i32
    return %c0_i32, %c0_i32_0 : i32, i32
  }
  func.func @transform_3(%arg0: i32) -> (i32, i32) {
    %c0_i32 = arith.constant 0 : i32
    %c0_i32_0 = arith.constant 0 : i32
    return %arg0, %c0_i32 : i32, i32
  }
}

module attributes {stable_mosaic.version = 11 : i64} {
  func.func @_swin_block_kernel(%arg0: i32, %arg1: i32, %arg2: memref<1x2x2x64xbf16, #tpu.memory_space<vmem>>, %arg3: memref<64x192xbf16, #tpu.memory_space<vmem>>, %arg4: memref<1x192xf32, #tpu.memory_space<vmem>>, %arg5: memref<4x4x4xf32, #tpu.memory_space<vmem>>, %arg6: memref<64x64xbf16, #tpu.memory_space<vmem>>, %arg7: memref<1x64xf32, #tpu.memory_space<vmem>>, %arg8: memref<64x256xbf16, #tpu.memory_space<vmem>>, %arg9: memref<1x256xf32, #tpu.memory_space<vmem>>, %arg10: memref<256x64xbf16, #tpu.memory_space<vmem>>, %arg11: memref<1x64xf32, #tpu.memory_space<vmem>>, %arg12: memref<1x2x2x64xbf16, #tpu.memory_space<vmem>>) attributes {dimension_semantics = [#tpu.dimension_semantics<parallel>, #tpu.dimension_semantics<parallel>], iteration_bounds = array<i64: 2, 1>, scalar_prefetch = 0 : i64, scratch_operands = 0 : i64, tpu.core_type = #tpu.core_type<tc>, window_params = [{transform_indices = @transform_0, window_bounds = array<i64: 1, 2, 2, 64>}, {pipeline_mode = #tpu.pipeline_mode<synchronous>, transform_indices = @transform_1, window_bounds = array<i64: 64, 192>}, {pipeline_mode = #tpu.pipeline_mode<synchronous>, transform_indices = @transform_2, window_bounds = array<i64: 1, 192>}, {pipeline_mode = #tpu.pipeline_mode<synchronous>, transform_indices = @transform_3, window_bounds = array<i64: 4, 4, 4>}, {pipeline_mode = #tpu.pipeline_mode<synchronous>, transform_indices = @transform_4, window_bounds = array<i64: 64, 64>}, {pipeline_mode = #tpu.pipeline_mode<synchronous>, transform_indices = @transform_5, window_bounds = array<i64: 1, 64>}, {pipeline_mode = #tpu.pipeline_mode<synchronous>, transform_indices = @transform_6, window_bounds = array<i64: 64, 256>}, {pipeline_mode = #tpu.pipeline_mode<synchronous>, transform_indices = @transform_7, window_bounds = array<i64: 1, 256>}, {pipeline_mode = #tpu.pipeline_mode<synchronous>, transform_indices = @transform_8, window_bounds = array<i64: 256, 64>}, {pipeline_mode = #tpu.pipeline_mode<synchronous>, transform_indices = @transform_9, window_bounds = array<i64: 1, 64>}, {transform_indices = @transform_10, window_bounds = array<i64: 1, 2, 2, 64>}]} {
    %c0 = arith.constant 0 : index
    %c0_0 = arith.constant 0 : index
    %c0_1 = arith.constant 0 : index
    %c0_2 = arith.constant 0 : index
    %0 = vector.load %arg2[%c0, %c0_0, %c0_1, %c0_2] : memref<1x2x2x64xbf16, #tpu.memory_space<vmem>>, vector<1x2x2x64xbf16>
    %1 = vector.shape_cast %0 : vector<1x2x2x64xbf16> to vector<2x2x64xbf16>
    %2 = arith.extf %1 : vector<2x2x64xbf16> to vector<2x2x64xf32>
    %3 = vector.shape_cast %2 : vector<2x2x64xf32> to vector<4x64xf32>
    %4 = vector.shape_cast %3 : vector<4x64xf32> to vector<1x4x64xf32>
    %5 = vector.shape_cast %4 : vector<1x4x64xf32> to vector<4x64xf32>
    %cst = arith.constant dense<0.000000e+00> : vector<4xf32>
    %6 = vector.multi_reduction <add>, %5, %cst [1] : vector<4x64xf32> to vector<4xf32>
    %7 = vector.shape_cast %6 : vector<4xf32> to vector<4x1xf32>
    %cst_3 = arith.constant 6.400000e+01 : f32
    %8 = vector.broadcast %cst_3 : f32 to vector<4x1xf32>
    %9 = arith.divf %7, %8 : vector<4x1xf32>
    %10 = vector.broadcast %9 : vector<4x1xf32> to vector<4x64xf32>
    %11 = arith.subf %5, %10 : vector<4x64xf32>
    %12 = arith.mulf %11, %11 : vector<4x64xf32>
    %cst_4 = arith.constant dense<0.000000e+00> : vector<4xf32>
    %13 = vector.multi_reduction <add>, %12, %cst_4 [1] : vector<4x64xf32> to vector<4xf32>
    %14 = vector.shape_cast %13 : vector<4xf32> to vector<4x1xf32>
    %cst_5 = arith.constant 6.400000e+01 : f32
    %15 = vector.broadcast %cst_5 : f32 to vector<4x1xf32>
    %16 = arith.divf %14, %15 : vector<4x1xf32>
    %cst_6 = arith.constant 9.99999974E-6 : f32
    %17 = vector.broadcast %cst_6 : f32 to vector<4x1xf32>
    %18 = arith.addf %16, %17 : vector<4x1xf32>
    %19 = math.rsqrt %18 : vector<4x1xf32>
    %20 = vector.broadcast %19 : vector<4x1xf32> to vector<4x64xf32>
    %21 = arith.mulf %11, %20 : vector<4x64xf32>
    %22 = arith.truncf %21 : vector<4x64xf32> to vector<4x64xbf16>
    %c0_7 = arith.constant 0 : index
    %c0_8 = arith.constant 0 : index
    %23 = vector.load %arg3[%c0_7, %c0_8] : memref<64x192xbf16, #tpu.memory_space<vmem>>, vector<64x192xbf16>
    %cst_9 = arith.constant dense<0.000000e+00> : vector<4x192xf32>
    %24 = tpu.matmul %22, %23, %cst_9 {dimension_numbers = #tpu.dot_dimension_numbers<[1], [0], [0], [1], [0, 0, 1, 1], [], []>} : vector<4x64xbf16>, vector<64x192xbf16>, vector<4x192xf32> -> vector<4x192xf32>
    %c0_10 = arith.constant 0 : index
    %c0_11 = arith.constant 0 : index
    %25 = vector.load %arg4[%c0_10, %c0_11] : memref<1x192xf32, #tpu.memory_space<vmem>>, vector<1x192xf32>
    %26 = vector.broadcast %25 : vector<1x192xf32> to vector<4x192xf32>
    %27 = arith.addf %24, %26 : vector<4x192xf32>
    %28 = vector.shape_cast %27 : vector<4x192xf32> to vector<1x4x192xf32>
    %29 = arith.truncf %28 : vector<1x4x192xf32> to vector<1x4x192xbf16>
    %c0_12 = arith.constant 0 : index
    %c0_13 = arith.constant 0 : index
    %c0_14 = arith.constant 0 : index
    %30 = vector.load %arg5[%c0_12, %c0_13, %c0_14] : memref<4x4x4xf32, #tpu.memory_space<vmem>>, vector<4x4x4xf32>
    %cst_15 = arith.constant 0.000000e+00 : f32
    %31 = vector.broadcast %cst_15 : f32 to vector<4x64xf32>
    %32 = vector.extract_strided_slice %29 {offsets = [0, 0, 0], sizes = [1, 4, 16], strides = [1, 1, 1]} : vector<1x4x192xbf16> to vector<1x4x16xbf16>
    %33 = vector.extract_strided_slice %29 {offsets = [0, 0, 64], sizes = [1, 4, 16], strides = [1, 1, 1]} : vector<1x4x192xbf16> to vector<1x4x16xbf16>
    %34 = vector.extract_strided_slice %29 {offsets = [0, 0, 128], sizes = [1, 4, 16], strides = [1, 1, 1]} : vector<1x4x192xbf16> to vector<1x4x16xbf16>
    "tpu.trace_start"() <{level = 10 : i32, message = "wnd,wmd->wnm"}> : () -> ()
    %cst_16 = arith.constant dense<0.000000e+00> : vector<1x4x4xf32>
    %35 = tpu.matmul %32, %33, %cst_16 {dimension_numbers = #tpu.dot_dimension_numbers<[2], [2], [1], [1], [0, 0, 0, 1, 1, 1], [0], [0]>} : vector<1x4x16xbf16>, vector<1x4x16xbf16>, vector<1x4x4xf32> -> vector<1x4x4xf32>
    "tpu.trace_stop"() : () -> ()
    %cst_17 = arith.constant 2.500000e-01 : f32
    %36 = vector.broadcast %cst_17 : f32 to vector<1x4x4xf32>
    %37 = arith.mulf %35, %36 : vector<1x4x4xf32>
    %38 = vector.extract_strided_slice %30 {offsets = [0, 0, 0], sizes = [1, 4, 4], strides = [1, 1, 1]} : vector<4x4x4xf32> to vector<1x4x4xf32>
    %39 = vector.shape_cast %38 : vector<1x4x4xf32> to vector<4x4xf32>
    %40 = vector.shape_cast %39 : vector<4x4xf32> to vector<1x4x4xf32>
    %41 = arith.addf %37, %40 : vector<1x4x4xf32>
    %cst_18 = arith.constant dense<0xFF800000> : vector<1x4xf32>
    %42 = vector.multi_reduction <maximumf>, %41, %cst_18 [2] : vector<1x4x4xf32> to vector<1x4xf32>
    %43 = vector.shape_cast %42 : vector<1x4xf32> to vector<1x4x1xf32>
    %44 = vector.broadcast %43 : vector<1x4x1xf32> to vector<1x4x4xf32>
    %45 = arith.subf %41, %44 : vector<1x4x4xf32>
    %46 = math.exp %45 : vector<1x4x4xf32>
    %cst_19 = arith.constant dense<0.000000e+00> : vector<1x4xf32>
    %47 = vector.multi_reduction <add>, %46, %cst_19 [2] : vector<1x4x4xf32> to vector<1x4xf32>
    %48 = vector.shape_cast %47 : vector<1x4xf32> to vector<1x4x1xf32>
    %49 = vector.broadcast %48 : vector<1x4x1xf32> to vector<1x4x4xf32>
    %50 = arith.divf %46, %49 : vector<1x4x4xf32>
    %51 = arith.truncf %50 : vector<1x4x4xf32> to vector<1x4x4xbf16>
    "tpu.trace_start"() <{level = 10 : i32, message = "wnm,wmd->wnd"}> : () -> ()
    %cst_20 = arith.constant dense<0.000000e+00> : vector<1x4x16xf32>
    %52 = tpu.matmul %51, %34, %cst_20 {dimension_numbers = #tpu.dot_dimension_numbers<[2], [1], [1], [2], [0, 0, 0, 1, 1, 2], [0], [0]>} : vector<1x4x4xbf16>, vector<1x4x16xbf16>, vector<1x4x16xf32> -> vector<1x4x16xf32>
    "tpu.trace_stop"() : () -> ()
    %53 = vector.shape_cast %52 : vector<1x4x16xf32> to vector<4x16xf32>
    %54 = arith.truncf %53 : vector<4x16xf32> to vector<4x16xbf16>
    %c0_21 = arith.constant 0 : index
    %c0_22 = arith.constant 0 : index
    %55 = vector.load %arg6[%c0_21, %c0_22] : memref<64x64xbf16, #tpu.memory_space<vmem>>, vector<16x64xbf16>
    %cst_23 = arith.constant dense<0.000000e+00> : vector<4x64xf32>
    %56 = tpu.matmul %54, %55, %cst_23 {dimension_numbers = #tpu.dot_dimension_numbers<[1], [0], [0], [1], [0, 0, 1, 1], [], []>} : vector<4x16xbf16>, vector<16x64xbf16>, vector<4x64xf32> -> vector<4x64xf32>
    %57 = arith.addf %31, %56 : vector<4x64xf32>
    %58 = vector.extract_strided_slice %29 {offsets = [0, 0, 16], sizes = [1, 4, 16], strides = [1, 1, 1]} : vector<1x4x192xbf16> to vector<1x4x16xbf16>
    %59 = vector.extract_strided_slice %29 {offsets = [0, 0, 80], sizes = [1, 4, 16], strides = [1, 1, 1]} : vector<1x4x192xbf16> to vector<1x4x16xbf16>
    %60 = vector.extract_strided_slice %29 {offsets = [0, 0, 144], sizes = [1, 4, 16], strides = [1, 1, 1]} : vector<1x4x192xbf16> to vector<1x4x16xbf16>
    "tpu.trace_start"() <{level = 10 : i32, message = "wnd,wmd->wnm"}> : () -> ()
    %cst_24 = arith.constant dense<0.000000e+00> : vector<1x4x4xf32>
    %61 = tpu.matmul %58, %59, %cst_24 {dimension_numbers = #tpu.dot_dimension_numbers<[2], [2], [1], [1], [0, 0, 0, 1, 1, 1], [0], [0]>} : vector<1x4x16xbf16>, vector<1x4x16xbf16>, vector<1x4x4xf32> -> vector<1x4x4xf32>
    "tpu.trace_stop"() : () -> ()
    %cst_25 = arith.constant 2.500000e-01 : f32
    %62 = vector.broadcast %cst_25 : f32 to vector<1x4x4xf32>
    %63 = arith.mulf %61, %62 : vector<1x4x4xf32>
    %64 = vector.extract_strided_slice %30 {offsets = [1, 0, 0], sizes = [1, 4, 4], strides = [1, 1, 1]} : vector<4x4x4xf32> to vector<1x4x4xf32>
    %65 = vector.shape_cast %64 : vector<1x4x4xf32> to vector<4x4xf32>
    %66 = vector.shape_cast %65 : vector<4x4xf32> to vector<1x4x4xf32>
    %67 = arith.addf %63, %66 : vector<1x4x4xf32>
    %cst_26 = arith.constant dense<0xFF800000> : vector<1x4xf32>
    %68 = vector.multi_reduction <maximumf>, %67, %cst_26 [2] : vector<1x4x4xf32> to vector<1x4xf32>
    %69 = vector.shape_cast %68 : vector<1x4xf32> to vector<1x4x1xf32>
    %70 = vector.broadcast %69 : vector<1x4x1xf32> to vector<1x4x4xf32>
    %71 = arith.subf %67, %70 : vector<1x4x4xf32>
    %72 = math.exp %71 : vector<1x4x4xf32>
    %cst_27 = arith.constant dense<0.000000e+00> : vector<1x4xf32>
    %73 = vector.multi_reduction <add>, %72, %cst_27 [2] : vector<1x4x4xf32> to vector<1x4xf32>
    %74 = vector.shape_cast %73 : vector<1x4xf32> to vector<1x4x1xf32>
    %75 = vector.broadcast %74 : vector<1x4x1xf32> to vector<1x4x4xf32>
    %76 = arith.divf %72, %75 : vector<1x4x4xf32>
    %77 = arith.truncf %76 : vector<1x4x4xf32> to vector<1x4x4xbf16>
    "tpu.trace_start"() <{level = 10 : i32, message = "wnm,wmd->wnd"}> : () -> ()
    %cst_28 = arith.constant dense<0.000000e+00> : vector<1x4x16xf32>
    %78 = tpu.matmul %77, %60, %cst_28 {dimension_numbers = #tpu.dot_dimension_numbers<[2], [1], [1], [2], [0, 0, 0, 1, 1, 2], [0], [0]>} : vector<1x4x4xbf16>, vector<1x4x16xbf16>, vector<1x4x16xf32> -> vector<1x4x16xf32>
    "tpu.trace_stop"() : () -> ()
    %79 = vector.shape_cast %78 : vector<1x4x16xf32> to vector<4x16xf32>
    %80 = arith.truncf %79 : vector<4x16xf32> to vector<4x16xbf16>
    %c16 = arith.constant 16 : index
    %c0_29 = arith.constant 0 : index
    %81 = vector.load %arg6[%c16, %c0_29] : memref<64x64xbf16, #tpu.memory_space<vmem>>, vector<16x64xbf16>
    %cst_30 = arith.constant dense<0.000000e+00> : vector<4x64xf32>
    %82 = tpu.matmul %80, %81, %cst_30 {dimension_numbers = #tpu.dot_dimension_numbers<[1], [0], [0], [1], [0, 0, 1, 1], [], []>} : vector<4x16xbf16>, vector<16x64xbf16>, vector<4x64xf32> -> vector<4x64xf32>
    %83 = arith.addf %57, %82 : vector<4x64xf32>
    %84 = vector.extract_strided_slice %29 {offsets = [0, 0, 32], sizes = [1, 4, 16], strides = [1, 1, 1]} : vector<1x4x192xbf16> to vector<1x4x16xbf16>
    %85 = vector.extract_strided_slice %29 {offsets = [0, 0, 96], sizes = [1, 4, 16], strides = [1, 1, 1]} : vector<1x4x192xbf16> to vector<1x4x16xbf16>
    %86 = vector.extract_strided_slice %29 {offsets = [0, 0, 160], sizes = [1, 4, 16], strides = [1, 1, 1]} : vector<1x4x192xbf16> to vector<1x4x16xbf16>
    "tpu.trace_start"() <{level = 10 : i32, message = "wnd,wmd->wnm"}> : () -> ()
    %cst_31 = arith.constant dense<0.000000e+00> : vector<1x4x4xf32>
    %87 = tpu.matmul %84, %85, %cst_31 {dimension_numbers = #tpu.dot_dimension_numbers<[2], [2], [1], [1], [0, 0, 0, 1, 1, 1], [0], [0]>} : vector<1x4x16xbf16>, vector<1x4x16xbf16>, vector<1x4x4xf32> -> vector<1x4x4xf32>
    "tpu.trace_stop"() : () -> ()
    %cst_32 = arith.constant 2.500000e-01 : f32
    %88 = vector.broadcast %cst_32 : f32 to vector<1x4x4xf32>
    %89 = arith.mulf %87, %88 : vector<1x4x4xf32>
    %90 = vector.extract_strided_slice %30 {offsets = [2, 0, 0], sizes = [1, 4, 4], strides = [1, 1, 1]} : vector<4x4x4xf32> to vector<1x4x4xf32>
    %91 = vector.shape_cast %90 : vector<1x4x4xf32> to vector<4x4xf32>
    %92 = vector.shape_cast %91 : vector<4x4xf32> to vector<1x4x4xf32>
    %93 = arith.addf %89, %92 : vector<1x4x4xf32>
    %cst_33 = arith.constant dense<0xFF800000> : vector<1x4xf32>
    %94 = vector.multi_reduction <maximumf>, %93, %cst_33 [2] : vector<1x4x4xf32> to vector<1x4xf32>
    %95 = vector.shape_cast %94 : vector<1x4xf32> to vector<1x4x1xf32>
    %96 = vector.broadcast %95 : vector<1x4x1xf32> to vector<1x4x4xf32>
    %97 = arith.subf %93, %96 : vector<1x4x4xf32>
    %98 = math.exp %97 : vector<1x4x4xf32>
    %cst_34 = arith.constant dense<0.000000e+00> : vector<1x4xf32>
    %99 = vector.multi_reduction <add>, %98, %cst_34 [2] : vector<1x4x4xf32> to vector<1x4xf32>
    %100 = vector.shape_cast %99 : vector<1x4xf32> to vector<1x4x1xf32>
    %101 = vector.broadcast %100 : vector<1x4x1xf32> to vector<1x4x4xf32>
    %102 = arith.divf %98, %101 : vector<1x4x4xf32>
    %103 = arith.truncf %102 : vector<1x4x4xf32> to vector<1x4x4xbf16>
    "tpu.trace_start"() <{level = 10 : i32, message = "wnm,wmd->wnd"}> : () -> ()
    %cst_35 = arith.constant dense<0.000000e+00> : vector<1x4x16xf32>
    %104 = tpu.matmul %103, %86, %cst_35 {dimension_numbers = #tpu.dot_dimension_numbers<[2], [1], [1], [2], [0, 0, 0, 1, 1, 2], [0], [0]>} : vector<1x4x4xbf16>, vector<1x4x16xbf16>, vector<1x4x16xf32> -> vector<1x4x16xf32>
    "tpu.trace_stop"() : () -> ()
    %105 = vector.shape_cast %104 : vector<1x4x16xf32> to vector<4x16xf32>
    %106 = arith.truncf %105 : vector<4x16xf32> to vector<4x16xbf16>
    %c32 = arith.constant 32 : index
    %c0_36 = arith.constant 0 : index
    %107 = vector.load %arg6[%c32, %c0_36] : memref<64x64xbf16, #tpu.memory_space<vmem>>, vector<16x64xbf16>
    %cst_37 = arith.constant dense<0.000000e+00> : vector<4x64xf32>
    %108 = tpu.matmul %106, %107, %cst_37 {dimension_numbers = #tpu.dot_dimension_numbers<[1], [0], [0], [1], [0, 0, 1, 1], [], []>} : vector<4x16xbf16>, vector<16x64xbf16>, vector<4x64xf32> -> vector<4x64xf32>
    %109 = arith.addf %83, %108 : vector<4x64xf32>
    %110 = vector.extract_strided_slice %29 {offsets = [0, 0, 48], sizes = [1, 4, 16], strides = [1, 1, 1]} : vector<1x4x192xbf16> to vector<1x4x16xbf16>
    %111 = vector.extract_strided_slice %29 {offsets = [0, 0, 112], sizes = [1, 4, 16], strides = [1, 1, 1]} : vector<1x4x192xbf16> to vector<1x4x16xbf16>
    %112 = vector.extract_strided_slice %29 {offsets = [0, 0, 176], sizes = [1, 4, 16], strides = [1, 1, 1]} : vector<1x4x192xbf16> to vector<1x4x16xbf16>
    "tpu.trace_start"() <{level = 10 : i32, message = "wnd,wmd->wnm"}> : () -> ()
    %cst_38 = arith.constant dense<0.000000e+00> : vector<1x4x4xf32>
    %113 = tpu.matmul %110, %111, %cst_38 {dimension_numbers = #tpu.dot_dimension_numbers<[2], [2], [1], [1], [0, 0, 0, 1, 1, 1], [0], [0]>} : vector<1x4x16xbf16>, vector<1x4x16xbf16>, vector<1x4x4xf32> -> vector<1x4x4xf32>
    "tpu.trace_stop"() : () -> ()
    %cst_39 = arith.constant 2.500000e-01 : f32
    %114 = vector.broadcast %cst_39 : f32 to vector<1x4x4xf32>
    %115 = arith.mulf %113, %114 : vector<1x4x4xf32>
    %116 = vector.extract_strided_slice %30 {offsets = [3, 0, 0], sizes = [1, 4, 4], strides = [1, 1, 1]} : vector<4x4x4xf32> to vector<1x4x4xf32>
    %117 = vector.shape_cast %116 : vector<1x4x4xf32> to vector<4x4xf32>
    %118 = vector.shape_cast %117 : vector<4x4xf32> to vector<1x4x4xf32>
    %119 = arith.addf %115, %118 : vector<1x4x4xf32>
    %cst_40 = arith.constant dense<0xFF800000> : vector<1x4xf32>
    %120 = vector.multi_reduction <maximumf>, %119, %cst_40 [2] : vector<1x4x4xf32> to vector<1x4xf32>
    %121 = vector.shape_cast %120 : vector<1x4xf32> to vector<1x4x1xf32>
    %122 = vector.broadcast %121 : vector<1x4x1xf32> to vector<1x4x4xf32>
    %123 = arith.subf %119, %122 : vector<1x4x4xf32>
    %124 = math.exp %123 : vector<1x4x4xf32>
    %cst_41 = arith.constant dense<0.000000e+00> : vector<1x4xf32>
    %125 = vector.multi_reduction <add>, %124, %cst_41 [2] : vector<1x4x4xf32> to vector<1x4xf32>
    %126 = vector.shape_cast %125 : vector<1x4xf32> to vector<1x4x1xf32>
    %127 = vector.broadcast %126 : vector<1x4x1xf32> to vector<1x4x4xf32>
    %128 = arith.divf %124, %127 : vector<1x4x4xf32>
    %129 = arith.truncf %128 : vector<1x4x4xf32> to vector<1x4x4xbf16>
    "tpu.trace_start"() <{level = 10 : i32, message = "wnm,wmd->wnd"}> : () -> ()
    %cst_42 = arith.constant dense<0.000000e+00> : vector<1x4x16xf32>
    %130 = tpu.matmul %129, %112, %cst_42 {dimension_numbers = #tpu.dot_dimension_numbers<[2], [1], [1], [2], [0, 0, 0, 1, 1, 2], [0], [0]>} : vector<1x4x4xbf16>, vector<1x4x16xbf16>, vector<1x4x16xf32> -> vector<1x4x16xf32>
    "tpu.trace_stop"() : () -> ()
    %131 = vector.shape_cast %130 : vector<1x4x16xf32> to vector<4x16xf32>
    %132 = arith.truncf %131 : vector<4x16xf32> to vector<4x16xbf16>
    %c48 = arith.constant 48 : index
    %c0_43 = arith.constant 0 : index
    %133 = vector.load %arg6[%c48, %c0_43] : memref<64x64xbf16, #tpu.memory_space<vmem>>, vector<16x64xbf16>
    %cst_44 = arith.constant dense<0.000000e+00> : vector<4x64xf32>
    %134 = tpu.matmul %132, %133, %cst_44 {dimension_numbers = #tpu.dot_dimension_numbers<[1], [0], [0], [1], [0, 0, 1, 1], [], []>} : vector<4x16xbf16>, vector<16x64xbf16>, vector<4x64xf32> -> vector<4x64xf32>
    %135 = arith.addf %109, %134 : vector<4x64xf32>
    %c0_45 = arith.constant 0 : index
    %c0_46 = arith.constant 0 : index
    %136 = vector.load %arg7[%c0_45, %c0_46] : memref<1x64xf32, #tpu.memory_space<vmem>>, vector<1x64xf32>
    %137 = vector.broadcast %136 : vector<1x64xf32> to vector<4x64xf32>
    %138 = arith.addf %135, %137 : vector<4x64xf32>
    %139 = arith.addf %5, %138 : vector<4x64xf32>
    %cst_47 = arith.constant dense<0.000000e+00> : vector<4xf32>
    %140 = vector.multi_reduction <add>, %139, %cst_47 [1] : vector<4x64xf32> to vector<4xf32>
    %141 = vector.shape_cast %140 : vector<4xf32> to vector<4x1xf32>
    %cst_48 = arith.constant 6.400000e+01 : f32
    %142 = vector.broadcast %cst_48 : f32 to vector<4x1xf32>
    %143 = arith.divf %141, %142 : vector<4x1xf32>
    %144 = vector.broadcast %143 : vector<4x1xf32> to vector<4x64xf32>
    %145 = arith.subf %139, %144 : vector<4x64xf32>
    %146 = arith.mulf %145, %145 : vector<4x64xf32>
    %cst_49 = arith.constant dense<0.000000e+00> : vector<4xf32>
    %147 = vector.multi_reduction <add>, %146, %cst_49 [1] : vector<4x64xf32> to vector<4xf32>
    %148 = vector.shape_cast %147 : vector<4xf32> to vector<4x1xf32>
    %cst_50 = arith.constant 6.400000e+01 : f32
    %149 = vector.broadcast %cst_50 : f32 to vector<4x1xf32>
    %150 = arith.divf %148, %149 : vector<4x1xf32>
    %cst_51 = arith.constant 9.99999974E-6 : f32
    %151 = vector.broadcast %cst_51 : f32 to vector<4x1xf32>
    %152 = arith.addf %150, %151 : vector<4x1xf32>
    %153 = math.rsqrt %152 : vector<4x1xf32>
    %154 = vector.broadcast %153 : vector<4x1xf32> to vector<4x64xf32>
    %155 = arith.mulf %145, %154 : vector<4x64xf32>
    %156 = arith.truncf %155 : vector<4x64xf32> to vector<4x64xbf16>
    %c0_52 = arith.constant 0 : index
    %c0_53 = arith.constant 0 : index
    %157 = vector.load %arg8[%c0_52, %c0_53] : memref<64x256xbf16, #tpu.memory_space<vmem>>, vector<64x256xbf16>
    %cst_54 = arith.constant dense<0.000000e+00> : vector<4x256xf32>
    %158 = tpu.matmul %156, %157, %cst_54 {dimension_numbers = #tpu.dot_dimension_numbers<[1], [0], [0], [1], [0, 0, 1, 1], [], []>} : vector<4x64xbf16>, vector<64x256xbf16>, vector<4x256xf32> -> vector<4x256xf32>
    %c0_55 = arith.constant 0 : index
    %c0_56 = arith.constant 0 : index
    %159 = vector.load %arg9[%c0_55, %c0_56] : memref<1x256xf32, #tpu.memory_space<vmem>>, vector<1x256xf32>
    %160 = vector.broadcast %159 : vector<1x256xf32> to vector<4x256xf32>
    %161 = arith.addf %158, %160 : vector<4x256xf32>
    %cst_57 = arith.constant 5.000000e-01 : f32
    %162 = vector.broadcast %cst_57 : f32 to vector<4x256xf32>
    %163 = arith.mulf %162, %161 : vector<4x256xf32>
    %cst_58 = arith.constant 4.471500e-02 : f32
    %164 = vector.broadcast %cst_58 : f32 to vector<4x256xf32>
    %165 = arith.mulf %164, %161 : vector<4x256xf32>
    %166 = arith.mulf %165, %161 : vector<4x256xf32>
    %167 = arith.mulf %166, %161 : vector<4x256xf32>
    %168 = arith.addf %161, %167 : vector<4x256xf32>
    %cst_59 = arith.constant 0.797884583 : f32
    %169 = vector.broadcast %cst_59 : f32 to vector<4x256xf32>
    %170 = arith.mulf %169, %168 : vector<4x256xf32>
    %171 = math.tanh %170 : vector<4x256xf32>
    %cst_60 = arith.constant 1.000000e+00 : f32
    %172 = vector.broadcast %cst_60 : f32 to vector<4x256xf32>
    %173 = arith.addf %172, %171 : vector<4x256xf32>
    %174 = arith.mulf %163, %173 : vector<4x256xf32>
    %175 = arith.truncf %174 : vector<4x256xf32> to vector<4x256xbf16>
    %c0_61 = arith.constant 0 : index
    %c0_62 = arith.constant 0 : index
    %176 = vector.load %arg10[%c0_61, %c0_62] : memref<256x64xbf16, #tpu.memory_space<vmem>>, vector<256x64xbf16>
    %cst_63 = arith.constant dense<0.000000e+00> : vector<4x64xf32>
    %177 = tpu.matmul %175, %176, %cst_63 {dimension_numbers = #tpu.dot_dimension_numbers<[1], [0], [0], [1], [0, 0, 1, 1], [], []>} : vector<4x256xbf16>, vector<256x64xbf16>, vector<4x64xf32> -> vector<4x64xf32>
    %c0_64 = arith.constant 0 : index
    %c0_65 = arith.constant 0 : index
    %178 = vector.load %arg11[%c0_64, %c0_65] : memref<1x64xf32, #tpu.memory_space<vmem>>, vector<1x64xf32>
    %179 = vector.broadcast %178 : vector<1x64xf32> to vector<4x64xf32>
    %180 = arith.addf %177, %179 : vector<4x64xf32>
    %181 = arith.addf %180, %139 : vector<4x64xf32>
    %182 = vector.shape_cast %181 : vector<4x64xf32> to vector<1x4x64xf32>
    %183 = vector.shape_cast %182 : vector<1x4x64xf32> to vector<4x64xf32>
    %184 = vector.shape_cast %183 : vector<4x64xf32> to vector<2x2x64xf32>
    %185 = arith.truncf %184 : vector<2x2x64xf32> to vector<2x2x64xbf16>
    %c0_66 = arith.constant 0 : index
    %c0_67 = arith.constant 0 : index
    %c0_68 = arith.constant 0 : index
    %c0_69 = arith.constant 0 : index
    %186 = vector.load %arg12[%c0_66, %c0_67, %c0_68, %c0_69] : memref<1x2x2x64xbf16, #tpu.memory_space<vmem>>, vector<1x2x2x64xbf16>
    %187 = vector.shape_cast %186 : vector<1x2x2x64xbf16> to vector<2x2x64xbf16>
    %188 = vector.shape_cast %185 : vector<2x2x64xbf16> to vector<1x2x2x64xbf16>
    tpu.vector_store %arg12[%c0_66, %c0_67, %c0_68, %c0_69], %188 {strides = array<i32>} : memref<1x2x2x64xbf16, #tpu.memory_space<vmem>>, vector<1x2x2x64xbf16>,
    return
  }
  func.func @transform_0(%arg0: i32, %arg1: i32) -> (i32, i32, i32, i32) {
    %c0_i32 = arith.constant 0 : i32
    %c0_i32_0 = arith.constant 0 : i32
    %c0_i32_1 = arith.constant 0 : i32
    return %arg0, %arg1, %c0_i32, %c0_i32_0 : i32, i32, i32, i32
  }
  func.func @transform_1(%arg0: i32, %arg1: i32) -> (i32, i32) {
    %c0_i32 = arith.constant 0 : i32
    %c0_i32_0 = arith.constant 0 : i32
    %c0_i32_1 = arith.constant 0 : i32
    return %c0_i32, %c0_i32_0 : i32, i32
  }
  func.func @transform_2(%arg0: i32, %arg1: i32) -> (i32, i32) {
    %c0_i32 = arith.constant 0 : i32
    %c0_i32_0 = arith.constant 0 : i32
    %c0_i32_1 = arith.constant 0 : i32
    return %c0_i32, %c0_i32_0 : i32, i32
  }
  func.func @transform_3(%arg0: i32, %arg1: i32) -> (i32, i32, i32) {
    %c0_i32 = arith.constant 0 : i32
    %c0_i32_0 = arith.constant 0 : i32
    %c0_i32_1 = arith.constant 0 : i32
    %c0_i32_2 = arith.constant 0 : i32
    return %c0_i32, %c0_i32_0, %c0_i32_1 : i32, i32, i32
  }
  func.func @transform_4(%arg0: i32, %arg1: i32) -> (i32, i32) {
    %c0_i32 = arith.constant 0 : i32
    %c0_i32_0 = arith.constant 0 : i32
    %c0_i32_1 = arith.constant 0 : i32
    return %c0_i32, %c0_i32_0 : i32, i32
  }
  func.func @transform_5(%arg0: i32, %arg1: i32) -> (i32, i32) {
    %c0_i32 = arith.constant 0 : i32
    %c0_i32_0 = arith.constant 0 : i32
    %c0_i32_1 = arith.constant 0 : i32
    return %c0_i32, %c0_i32_0 : i32, i32
  }
  func.func @transform_6(%arg0: i32, %arg1: i32) -> (i32, i32) {
    %c0_i32 = arith.constant 0 : i32
    %c0_i32_0 = arith.constant 0 : i32
    %c0_i32_1 = arith.constant 0 : i32
    return %c0_i32, %c0_i32_0 : i32, i32
  }
  func.func @transform_7(%arg0: i32, %arg1: i32) -> (i32, i32) {
    %c0_i32 = arith.constant 0 : i32
    %c0_i32_0 = arith.constant 0 : i32
    %c0_i32_1 = arith.constant 0 : i32
    return %c0_i32, %c0_i32_0 : i32, i32
  }
  func.func @transform_8(%arg0: i32, %arg1: i32) -> (i32, i32) {
    %c0_i32 = arith.constant 0 : i32
    %c0_i32_0 = arith.constant 0 : i32
    %c0_i32_1 = arith.constant 0 : i32
    return %c0_i32, %c0_i32_0 : i32, i32
  }
  func.func @transform_9(%arg0: i32, %arg1: i32) -> (i32, i32) {
    %c0_i32 = arith.constant 0 : i32
    %c0_i32_0 = arith.constant 0 : i32
    %c0_i32_1 = arith.constant 0 : i32
    return %c0_i32, %c0_i32_0 : i32, i32
  }
  func.func @transform_10(%arg0: i32, %arg1: i32) -> (i32, i32, i32, i32) {
    %c0_i32 = arith.constant 0 : i32
    %c0_i32_0 = arith.constant 0 : i32
    %c0_i32_1 = arith.constant 0 : i32
    return %arg0, %arg1, %c0_i32, %c0_i32_0 : i32, i32, i32, i32
  }
}

module attributes {stable_mosaic.version = 11 : i64} {
  func.func @_std_linear_kernel(%arg0: i32, %arg1: memref<8x64xbf16, #tpu.memory_space<vmem>>, %arg2: memref<64x128xbf16, #tpu.memory_space<vmem>>, %arg3: memref<1x128xf32, #tpu.memory_space<vmem>>, %arg4: memref<8x128xbf16, #tpu.memory_space<vmem>>) attributes {dimension_semantics = [#tpu.dimension_semantics<parallel>], iteration_bounds = array<i64: 1>, scalar_prefetch = 0 : i64, scratch_operands = 0 : i64, tpu.core_type = #tpu.core_type<tc>, window_params = [{transform_indices = @transform_0, window_bounds = array<i64: 8, 64>}, {pipeline_mode = #tpu.pipeline_mode<synchronous>, transform_indices = @transform_1, window_bounds = array<i64: 64, 128>}, {pipeline_mode = #tpu.pipeline_mode<synchronous>, transform_indices = @transform_2, window_bounds = array<i64: 1, 128>}, {transform_indices = @transform_3, window_bounds = array<i64: 8, 128>}]} {
    %c0 = arith.constant 0 : index
    %c0_0 = arith.constant 0 : index
    %0 = vector.load %arg1[%c0, %c0_0] : memref<8x64xbf16, #tpu.memory_space<vmem>>, vector<8x64xbf16>
    %1 = arith.extf %0 : vector<8x64xbf16> to vector<8x64xf32>
    %cst = arith.constant dense<0.000000e+00> : vector<8xf32>
    %2 = vector.multi_reduction <add>, %1, %cst [1] : vector<8x64xf32> to vector<8xf32>
    %3 = vector.shape_cast %2 : vector<8xf32> to vector<8x1xf32>
    %cst_1 = arith.constant 6.400000e+01 : f32
    %4 = vector.broadcast %cst_1 : f32 to vector<8x1xf32>
    %5 = arith.divf %3, %4 : vector<8x1xf32>
    %6 = vector.broadcast %5 : vector<8x1xf32> to vector<8x64xf32>
    %7 = arith.subf %1, %6 : vector<8x64xf32>
    %8 = arith.mulf %7, %7 : vector<8x64xf32>
    %cst_2 = arith.constant dense<0.000000e+00> : vector<8xf32>
    %9 = vector.multi_reduction <add>, %8, %cst_2 [1] : vector<8x64xf32> to vector<8xf32>
    %10 = vector.shape_cast %9 : vector<8xf32> to vector<8x1xf32>
    %cst_3 = arith.constant 6.400000e+01 : f32
    %11 = vector.broadcast %cst_3 : f32 to vector<8x1xf32>
    %12 = arith.divf %10, %11 : vector<8x1xf32>
    %cst_4 = arith.constant 9.99999974E-6 : f32
    %13 = vector.broadcast %cst_4 : f32 to vector<8x1xf32>
    %14 = arith.addf %12, %13 : vector<8x1xf32>
    %15 = math.rsqrt %14 : vector<8x1xf32>
    %16 = vector.broadcast %15 : vector<8x1xf32> to vector<8x64xf32>
    %17 = arith.mulf %7, %16 : vector<8x64xf32>
    %18 = arith.truncf %17 : vector<8x64xf32> to vector<8x64xbf16>
    %c0_5 = arith.constant 0 : index
    %c0_6 = arith.constant 0 : index
    %19 = vector.load %arg2[%c0_5, %c0_6] : memref<64x128xbf16, #tpu.memory_space<vmem>>, vector<64x128xbf16>
    %cst_7 = arith.constant dense<0.000000e+00> : vector<8x128xf32>
    %20 = tpu.matmul %18, %19, %cst_7 {dimension_numbers = #tpu.dot_dimension_numbers<[1], [0], [0], [1], [0, 0, 1, 1], [], []>} : vector<8x64xbf16>, vector<64x128xbf16>, vector<8x128xf32> -> vector<8x128xf32>
    %c0_8 = arith.constant 0 : index
    %c0_9 = arith.constant 0 : index
    %21 = vector.load %arg3[%c0_8, %c0_9] : memref<1x128xf32, #tpu.memory_space<vmem>>, vector<1x128xf32>
    %22 = vector.broadcast %21 : vector<1x128xf32> to vector<8x128xf32>
    %23 = arith.addf %20, %22 : vector<8x128xf32>
    %24 = arith.truncf %23 : vector<8x128xf32> to vector<8x128xbf16>
    %c0_10 = arith.constant 0 : index
    %c0_11 = arith.constant 0 : index
    %25 = vector.load %arg4[%c0_10, %c0_11] : memref<8x128xbf16, #tpu.memory_space<vmem>>, vector<8x128xbf16>
    tpu.vector_store %arg4[%c0_10, %c0_11], %24 {strides = array<i32>} : memref<8x128xbf16, #tpu.memory_space<vmem>>, vector<8x128xbf16>,
    return
  }
  func.func @transform_0(%arg0: i32) -> (i32, i32) {
    %c0_i32 = arith.constant 0 : i32
    %c0_i32_0 = arith.constant 0 : i32
    return %arg0, %c0_i32 : i32, i32
  }
  func.func @transform_1(%arg0: i32) -> (i32, i32) {
    %c0_i32 = arith.constant 0 : i32
    %c0_i32_0 = arith.constant 0 : i32
    %c0_i32_1 = arith.constant 0 : i32
    return %c0_i32, %c0_i32_0 : i32, i32
  }
  func.func @transform_2(%arg0: i32) -> (i32, i32) {
    %c0_i32 = arith.constant 0 : i32
    %c0_i32_0 = arith.constant 0 : i32
    %c0_i32_1 = arith.constant 0 : i32
    return %c0_i32, %c0_i32_0 : i32, i32
  }
  func.func @transform_3(%arg0: i32) -> (i32, i32) {
    %c0_i32 = arith.constant 0 : i32
    %c0_i32_0 = arith.constant 0 : i32
    return %arg0, %c0_i32 : i32, i32
  }
}

module attributes {stable_mosaic.version = 11 : i64} {
  func.func @_std_cat_linear_kernel(%arg0: i32, %arg1: memref<32x32xbf16, #tpu.memory_space<vmem>>, %arg2: memref<32x32xbf16, #tpu.memory_space<vmem>>, %arg3: memref<32x32xbf16, #tpu.memory_space<vmem>>, %arg4: memref<32x32xbf16, #tpu.memory_space<vmem>>, %arg5: memref<1x32xf32, #tpu.memory_space<vmem>>, %arg6: memref<32x32xbf16, #tpu.memory_space<vmem>>) attributes {dimension_semantics = [#tpu.dimension_semantics<parallel>], iteration_bounds = array<i64: 1>, scalar_prefetch = 0 : i64, scratch_operands = 0 : i64, tpu.core_type = #tpu.core_type<tc>, window_params = [{transform_indices = @transform_0, window_bounds = array<i64: 32, 32>}, {transform_indices = @transform_1, window_bounds = array<i64: 32, 32>}, {pipeline_mode = #tpu.pipeline_mode<synchronous>, transform_indices = @transform_2, window_bounds = array<i64: 32, 32>}, {pipeline_mode = #tpu.pipeline_mode<synchronous>, transform_indices = @transform_3, window_bounds = array<i64: 32, 32>}, {pipeline_mode = #tpu.pipeline_mode<synchronous>, transform_indices = @transform_4, window_bounds = array<i64: 1, 32>}, {transform_indices = @transform_5, window_bounds = array<i64: 32, 32>}]} {
    %c0 = arith.constant 0 : index
    %c0_0 = arith.constant 0 : index
    %0 = vector.load %arg1[%c0, %c0_0] : memref<32x32xbf16, #tpu.memory_space<vmem>>, vector<32x32xbf16>
    %1 = arith.extf %0 : vector<32x32xbf16> to vector<32x32xf32>
    %cst = arith.constant dense<0.000000e+00> : vector<32xf32>
    %2 = vector.multi_reduction <add>, %1, %cst [1] : vector<32x32xf32> to vector<32xf32>
    %3 = vector.shape_cast %2 : vector<32xf32> to vector<32x1xf32>
    %cst_1 = arith.constant 3.200000e+01 : f32
    %4 = vector.broadcast %cst_1 : f32 to vector<32x1xf32>
    %5 = arith.divf %3, %4 : vector<32x1xf32>
    %6 = vector.broadcast %5 : vector<32x1xf32> to vector<32x32xf32>
    %7 = arith.subf %1, %6 : vector<32x32xf32>
    %8 = arith.mulf %7, %7 : vector<32x32xf32>
    %cst_2 = arith.constant dense<0.000000e+00> : vector<32xf32>
    %9 = vector.multi_reduction <add>, %8, %cst_2 [1] : vector<32x32xf32> to vector<32xf32>
    %10 = vector.shape_cast %9 : vector<32xf32> to vector<32x1xf32>
    %cst_3 = arith.constant 3.200000e+01 : f32
    %11 = vector.broadcast %cst_3 : f32 to vector<32x1xf32>
    %12 = arith.divf %10, %11 : vector<32x1xf32>
    %cst_4 = arith.constant 9.99999974E-6 : f32
    %13 = vector.broadcast %cst_4 : f32 to vector<32x1xf32>
    %14 = arith.addf %12, %13 : vector<32x1xf32>
    %15 = math.rsqrt %14 : vector<32x1xf32>
    %16 = vector.broadcast %15 : vector<32x1xf32> to vector<32x32xf32>
    %17 = arith.mulf %7, %16 : vector<32x32xf32>
    %18 = arith.truncf %17 : vector<32x32xf32> to vector<32x32xbf16>
    %c0_5 = arith.constant 0 : index
    %c0_6 = arith.constant 0 : index
    %19 = vector.load %arg3[%c0_5, %c0_6] : memref<32x32xbf16, #tpu.memory_space<vmem>>, vector<32x32xbf16>
    %cst_7 = arith.constant dense<0.000000e+00> : vector<32x32xf32>
    %20 = tpu.matmul %18, %19, %cst_7 {dimension_numbers = #tpu.dot_dimension_numbers<[1], [0], [0], [1], [0, 0, 1, 1], [], []>} : vector<32x32xbf16>, vector<32x32xbf16>, vector<32x32xf32> -> vector<32x32xf32>
    %c0_8 = arith.constant 0 : index
    %c0_9 = arith.constant 0 : index
    %21 = vector.load %arg2[%c0_8, %c0_9] : memref<32x32xbf16, #tpu.memory_space<vmem>>, vector<32x32xbf16>
    %c0_10 = arith.constant 0 : index
    %c0_11 = arith.constant 0 : index
    %22 = vector.load %arg4[%c0_10, %c0_11] : memref<32x32xbf16, #tpu.memory_space<vmem>>, vector<32x32xbf16>
    %cst_12 = arith.constant dense<0.000000e+00> : vector<32x32xf32>
    %23 = tpu.matmul %21, %22, %cst_12 {dimension_numbers = #tpu.dot_dimension_numbers<[1], [0], [0], [1], [0, 0, 1, 1], [], []>} : vector<32x32xbf16>, vector<32x32xbf16>, vector<32x32xf32> -> vector<32x32xf32>
    %24 = arith.addf %20, %23 : vector<32x32xf32>
    %c0_13 = arith.constant 0 : index
    %c0_14 = arith.constant 0 : index
    %25 = vector.load %arg5[%c0_13, %c0_14] : memref<1x32xf32, #tpu.memory_space<vmem>>, vector<1x32xf32>
    %26 = vector.broadcast %25 : vector<1x32xf32> to vector<32x32xf32>
    %27 = arith.addf %24, %26 : vector<32x32xf32>
    %28 = arith.truncf %27 : vector<32x32xf32> to vector<32x32xbf16>
    %c0_15 = arith.constant 0 : index
    %c0_16 = arith.constant 0 : index
    %29 = vector.load %arg6[%c0_15, %c0_16] : memref<32x32xbf16, #tpu.memory_space<vmem>>, vector<32x32xbf16>
    tpu.vector_store %arg6[%c0_15, %c0_16], %28 {strides = array<i32>} : memref<32x32xbf16, #tpu.memory_space<vmem>>, vector<32x32xbf16>,
    return
  }
  func.func @transform_0(%arg0: i32) -> (i32, i32) {
    %c0_i32 = arith.constant 0 : i32
    %c0_i32_0 = arith.constant 0 : i32
    return %arg0, %c0_i32 : i32, i32
  }
  func.func @transform_1(%arg0: i32) -> (i32, i32) {
    %c0_i32 = arith.constant 0 : i32
    %c0_i32_0 = arith.constant 0 : i32
    return %arg0, %c0_i32 : i32, i32
  }
  func.func @transform_2(%arg0: i32) -> (i32, i32) {
    %c0_i32 = arith.constant 0 : i32
    %c0_i32_0 = arith.constant 0 : i32
    %c0_i32_1 = arith.constant 0 : i32
    return %c0_i32, %c0_i32_0 : i32, i32
  }
  func.func @transform_3(%arg0: i32) -> (i32, i32) {
    %c0_i32 = arith.constant 0 : i32
    %c0_i32_0 = arith.constant 0 : i32
    %c0_i32_1 = arith.constant 0 : i32
    return %c0_i32, %c0_i32_0 : i32, i32
  }
  func.func @transform_4(%arg0: i32) -> (i32, i32) {
    %c0_i32 = arith.constant 0 : i32
    %c0_i32_0 = arith.constant 0 : i32
    %c0_i32_1 = arith.constant 0 : i32
    return %c0_i32, %c0_i32_0 : i32, i32
  }
  func.func @transform_5(%arg0: i32) -> (i32, i32) {
    %c0_i32 = arith.constant 0 : i32
    %c0_i32_0 = arith.constant 0 : i32
    return %arg0, %c0_i32 : i32, i32
  }
}

module attributes {stable_mosaic.version = 11 : i64} {
  func.func @_std_linear_kernel(%arg0: i32, %arg1: memref<32x32xbf16, #tpu.memory_space<vmem>>, %arg2: memref<32x512xbf16, #tpu.memory_space<vmem>>, %arg3: memref<1x512xf32, #tpu.memory_space<vmem>>, %arg4: memref<32x512xbf16, #tpu.memory_space<vmem>>) attributes {dimension_semantics = [#tpu.dimension_semantics<parallel>], iteration_bounds = array<i64: 1>, scalar_prefetch = 0 : i64, scratch_operands = 0 : i64, tpu.core_type = #tpu.core_type<tc>, window_params = [{transform_indices = @transform_0, window_bounds = array<i64: 32, 32>}, {pipeline_mode = #tpu.pipeline_mode<synchronous>, transform_indices = @transform_1, window_bounds = array<i64: 32, 512>}, {pipeline_mode = #tpu.pipeline_mode<synchronous>, transform_indices = @transform_2, window_bounds = array<i64: 1, 512>}, {transform_indices = @transform_3, window_bounds = array<i64: 32, 512>}]} {
    %c0 = arith.constant 0 : index
    %c0_0 = arith.constant 0 : index
    %0 = vector.load %arg1[%c0, %c0_0] : memref<32x32xbf16, #tpu.memory_space<vmem>>, vector<32x32xbf16>
    %1 = arith.extf %0 : vector<32x32xbf16> to vector<32x32xf32>
    %cst = arith.constant dense<0.000000e+00> : vector<32xf32>
    %2 = vector.multi_reduction <add>, %1, %cst [1] : vector<32x32xf32> to vector<32xf32>
    %3 = vector.shape_cast %2 : vector<32xf32> to vector<32x1xf32>
    %cst_1 = arith.constant 3.200000e+01 : f32
    %4 = vector.broadcast %cst_1 : f32 to vector<32x1xf32>
    %5 = arith.divf %3, %4 : vector<32x1xf32>
    %6 = vector.broadcast %5 : vector<32x1xf32> to vector<32x32xf32>
    %7 = arith.subf %1, %6 : vector<32x32xf32>
    %8 = arith.mulf %7, %7 : vector<32x32xf32>
    %cst_2 = arith.constant dense<0.000000e+00> : vector<32xf32>
    %9 = vector.multi_reduction <add>, %8, %cst_2 [1] : vector<32x32xf32> to vector<32xf32>
    %10 = vector.shape_cast %9 : vector<32xf32> to vector<32x1xf32>
    %cst_3 = arith.constant 3.200000e+01 : f32
    %11 = vector.broadcast %cst_3 : f32 to vector<32x1xf32>
    %12 = arith.divf %10, %11 : vector<32x1xf32>
    %cst_4 = arith.constant 9.99999974E-6 : f32
    %13 = vector.broadcast %cst_4 : f32 to vector<32x1xf32>
    %14 = arith.addf %12, %13 : vector<32x1xf32>
    %15 = math.rsqrt %14 : vector<32x1xf32>
    %16 = vector.broadcast %15 : vector<32x1xf32> to vector<32x32xf32>
    %17 = arith.mulf %7, %16 : vector<32x32xf32>
    %18 = arith.truncf %17 : vector<32x32xf32> to vector<32x32xbf16>
    %c0_5 = arith.constant 0 : index
    %c0_6 = arith.constant 0 : index
    %19 = vector.load %arg2[%c0_5, %c0_6] : memref<32x512xbf16, #tpu.memory_space<vmem>>, vector<32x512xbf16>
    %cst_7 = arith.constant dense<0.000000e+00> : vector<32x512xf32>
    %20 = tpu.matmul %18, %19, %cst_7 {dimension_numbers = #tpu.dot_dimension_numbers<[1], [0], [0], [1], [0, 0, 1, 1], [], []>} : vector<32x32xbf16>, vector<32x512xbf16>, vector<32x512xf32> -> vector<32x512xf32>
    %c0_8 = arith.constant 0 : index
    %c0_9 = arith.constant 0 : index
    %21 = vector.load %arg3[%c0_8, %c0_9] : memref<1x512xf32, #tpu.memory_space<vmem>>, vector<1x512xf32>
    %22 = vector.broadcast %21 : vector<1x512xf32> to vector<32x512xf32>
    %23 = arith.addf %20, %22 : vector<32x512xf32>
    %24 = arith.truncf %23 : vector<32x512xf32> to vector<32x512xbf16>
    %c0_10 = arith.constant 0 : index
    %c0_11 = arith.constant 0 : index
    %25 = vector.load %arg4[%c0_10, %c0_11] : memref<32x512xbf16, #tpu.memory_space<vmem>>, vector<32x512xbf16>
    tpu.vector_store %arg4[%c0_10, %c0_11], %24 {strides = array<i32>} : memref<32x512xbf16, #tpu.memory_space<vmem>>, vector<32x512xbf16>,
    return
  }
  func.func @transform_0(%arg0: i32) -> (i32, i32) {
    %c0_i32 = arith.constant 0 : i32
    %c0_i32_0 = arith.constant 0 : i32
    return %arg0, %c0_i32 : i32, i32
  }
  func.func @transform_1(%arg0: i32) -> (i32, i32) {
    %c0_i32 = arith.constant 0 : i32
    %c0_i32_0 = arith.constant 0 : i32
    %c0_i32_1 = arith.constant 0 : i32
    return %c0_i32, %c0_i32_0 : i32, i32
  }
  func.func @transform_2(%arg0: i32) -> (i32, i32) {
    %c0_i32 = arith.constant 0 : i32
    %c0_i32_0 = arith.constant 0 : i32
    %c0_i32_1 = arith.constant 0 : i32
    return %c0_i32, %c0_i32_0 : i32, i32
  }
  func.func @transform_3(%arg0: i32) -> (i32, i32) {
    %c0_i32 = arith.constant 0 : i32
    %c0_i32_0 = arith.constant 0 : i32
    return %arg0, %c0_i32 : i32, i32
  }
}

module attributes {stable_mosaic.version = 11 : i64} {
  func.func @_std_linear_kernel(%arg0: i32, %arg1: memref<512x32xbf16, #tpu.memory_space<vmem>>, %arg2: memref<32x4xbf16, #tpu.memory_space<vmem>>, %arg3: memref<1x4xf32, #tpu.memory_space<vmem>>, %arg4: memref<512x4xf32, #tpu.memory_space<vmem>>) attributes {dimension_semantics = [#tpu.dimension_semantics<parallel>], iteration_bounds = array<i64: 1>, scalar_prefetch = 0 : i64, scratch_operands = 0 : i64, tpu.core_type = #tpu.core_type<tc>, window_params = [{transform_indices = @transform_0, window_bounds = array<i64: 512, 32>}, {pipeline_mode = #tpu.pipeline_mode<synchronous>, transform_indices = @transform_1, window_bounds = array<i64: 32, 4>}, {pipeline_mode = #tpu.pipeline_mode<synchronous>, transform_indices = @transform_2, window_bounds = array<i64: 1, 4>}, {transform_indices = @transform_3, window_bounds = array<i64: 512, 4>}]} {
    %c0 = arith.constant 0 : index
    %c0_0 = arith.constant 0 : index
    %0 = vector.load %arg1[%c0, %c0_0] : memref<512x32xbf16, #tpu.memory_space<vmem>>, vector<512x32xbf16>
    %1 = arith.extf %0 : vector<512x32xbf16> to vector<512x32xf32>
    %cst = arith.constant dense<0.000000e+00> : vector<512xf32>
    %2 = vector.multi_reduction <add>, %1, %cst [1] : vector<512x32xf32> to vector<512xf32>
    %3 = vector.shape_cast %2 : vector<512xf32> to vector<512x1xf32>
    %cst_1 = arith.constant 3.200000e+01 : f32
    %4 = vector.broadcast %cst_1 : f32 to vector<512x1xf32>
    %5 = arith.divf %3, %4 : vector<512x1xf32>
    %6 = vector.broadcast %5 : vector<512x1xf32> to vector<512x32xf32>
    %7 = arith.subf %1, %6 : vector<512x32xf32>
    %8 = arith.mulf %7, %7 : vector<512x32xf32>
    %cst_2 = arith.constant dense<0.000000e+00> : vector<512xf32>
    %9 = vector.multi_reduction <add>, %8, %cst_2 [1] : vector<512x32xf32> to vector<512xf32>
    %10 = vector.shape_cast %9 : vector<512xf32> to vector<512x1xf32>
    %cst_3 = arith.constant 3.200000e+01 : f32
    %11 = vector.broadcast %cst_3 : f32 to vector<512x1xf32>
    %12 = arith.divf %10, %11 : vector<512x1xf32>
    %cst_4 = arith.constant 9.99999974E-6 : f32
    %13 = vector.broadcast %cst_4 : f32 to vector<512x1xf32>
    %14 = arith.addf %12, %13 : vector<512x1xf32>
    %15 = math.rsqrt %14 : vector<512x1xf32>
    %16 = vector.broadcast %15 : vector<512x1xf32> to vector<512x32xf32>
    %17 = arith.mulf %7, %16 : vector<512x32xf32>
    %18 = arith.truncf %17 : vector<512x32xf32> to vector<512x32xbf16>
    %c0_5 = arith.constant 0 : index
    %c0_6 = arith.constant 0 : index
    %19 = vector.load %arg2[%c0_5, %c0_6] : memref<32x4xbf16, #tpu.memory_space<vmem>>, vector<32x4xbf16>
    %cst_7 = arith.constant dense<0.000000e+00> : vector<512x4xf32>
    %20 = tpu.matmul %18, %19, %cst_7 {dimension_numbers = #tpu.dot_dimension_numbers<[1], [0], [0], [1], [0, 0, 1, 1], [], []>} : vector<512x32xbf16>, vector<32x4xbf16>, vector<512x4xf32> -> vector<512x4xf32>
    %c0_8 = arith.constant 0 : index
    %c0_9 = arith.constant 0 : index
    %21 = vector.load %arg3[%c0_8, %c0_9] : memref<1x4xf32, #tpu.memory_space<vmem>>, vector<1x4xf32>
    %22 = vector.broadcast %21 : vector<1x4xf32> to vector<512x4xf32>
    %23 = arith.addf %20, %22 : vector<512x4xf32>
    %c0_10 = arith.constant 0 : index
    %c0_11 = arith.constant 0 : index
    %24 = vector.load %arg4[%c0_10, %c0_11] : memref<512x4xf32, #tpu.memory_space<vmem>>, vector<512x4xf32>
    tpu.vector_store %arg4[%c0_10, %c0_11], %23 {strides = array<i32>} : memref<512x4xf32, #tpu.memory_space<vmem>>, vector<512x4xf32>,
    return
  }
  func.func @transform_0(%arg0: i32) -> (i32, i32) {
    %c0_i32 = arith.constant 0 : i32
    %c0_i32_0 = arith.constant 0 : i32
    return %arg0, %c0_i32 : i32, i32
  }
  func.func @transform_1(%arg0: i32) -> (i32, i32) {
    %c0_i32 = arith.constant 0 : i32
    %c0_i32_0 = arith.constant 0 : i32
    %c0_i32_1 = arith.constant 0 : i32
    return %c0_i32, %c0_i32_0 : i32, i32
  }
  func.func @transform_2(%arg0: i32) -> (i32, i32) {
    %c0_i32 = arith.constant 0 : i32
    %c0_i32_0 = arith.constant 0 : i32
    %c0_i32_1 = arith.constant 0 : i32
    return %c0_i32, %c0_i32_0 : i32, i32
  }
  func.func @transform_3(%arg0: i32) -> (i32, i32) {
    %c0_i32 = arith.constant 0 : i32
    %c0_i32_0 = arith.constant 0 : i32
    return %arg0, %c0_i32 : i32, i32
  }
}

</mosaic_0001>

<bundles_post_ra>
// kernel: cs_unet_forward.12
= control target key start
LH: loop header
LB: loop body
LE: loop exit
PB: predicated region body
PF: predicated region fallthrough
CT: control target
= control target key end

     0   :  { %vm58_vm0 = vcmask 392192   ;;  %vm114_vm1 = vcmask 261120   ;;  %vm206_vm2 = vcmask 257024   ;;  %s341_s1 = inlined_call_operand.vmem [shape: bf16[48,32], index: 1, kind: input, shape index: {}]   ;;  %s342_s0 = inlined_call_operand.vmem [shape: f32[32,48], index: 0, kind: input, shape index: {}]   ;;  %s343_s2 = inlined_call_operand.vmem [shape: f32[1,32], index: 2, kind: input, shape index: {}]   ;;  %s344_s3 = inlined_call_operand.vmem [shape: f32[1,32], index: 3, kind: input, shape index: {}]   ;;  %s345_s4 = inlined_call_operand.vmem [shape: f32[1,32], index: 4, kind: input, shape index: {}]   ;;  %s346_s5 = inlined_call_operand.vmem [shape: bf16[32,32], index: 5, kind: output, shape index: {}]  }
   0x1   :  { %v246_v0 = vld [vmem:[%s341_s1 + $0x10] sm:$0xff]   ;;  %v247_v1 = vld [vmem:[%s341_s1 + $0x8] sm:$0xff]   ;;  %v21_v2 = vld [vmem:[%s342_s0] sm:$0xff] }
   0x2   :  { %236 = vmatprep.subr.bf16.mxu0 %v246_v0  ;;  %v22_v3 = vld [vmem:[%s342_s0 + $0x8] sm:$0xff]  ;;  %v248_v4 = vld [vmem:[%s341_s1] sm:$0xff]   ;;  %v23_v6 = vld [vmem:[%s342_s0 + $0x10] sm:$0xff] }
   0x3   :  { %237 = vmatpush3.bf16.msra.mxu0 %v246_v0  ;;  %v25_v5 = vpack.c.bf16 %v22_v3, %v21_v2  ;;  %v24_v7 = vld [vmem:[%s342_s0 + $0x18] sm:$0xff]  ;;  %v215_v9 = vld [vmem:[%s343_s2] ss:$0 sm:$0xff] }
   0x4   :  { %238 = vmatprep.subr.bf16.mxu0 %v247_v1  ;;  %v26_v8 = vpack.c.bf16 %v24_v7, %v23_v6  ;;  %v221_v55 = vld [vmem:[%s344_s3] ss:$0 sm:$0xff] }
   0x5   :  { %242 = vmatprep.mubr.msk.bf16.mxu0 %vm58_vm0, %v25_v5  ;;  %v222_v57 = vld [vmem:[%s345_s4] ss:$0 sm:$0xff] }
   0x7   :  { %239 = vmatpush3.bf16.msra.mxu0 %v247_v1 }
   0x8   :  { %240 = vmatprep.subr.bf16.mxu0 %v248_v4 }
   0xb   :  { %241 = vmatpush3.bf16.msra.mxu0 %v248_v4 }
   0xe   :  { %243 = vmatmul.mubr.msk.bf16.vlgmr.msra.gmra.mxu0 %vm58_vm0, %v26_v8 }
  0xce   :  { %v244_v10 = vpop.f32.mrf.mxu0 }
  0xcf   :  { %v108_v11 = vadd.f32 %v244_v10, %v215_v9 }
  0xd0   :  { %v99_v12 = vpop.f32.mrf.mxu0 }
  0xd1   :  { %v100_v13 = vadd.f32 %v215_v9, %v99_v12  ;;  %v121_v14 = vsel %vm114_vm1, %v108_v11, 0.0 }
  0xd2   :  { %122 = vadd.xlane.f32.xlu1 %v121_v14  ;;  %v245_v15 = vpop.f32.mrf.mxu0 }
  0xd3   :  { %v111_v16 = vadd.f32 %v245_v15, %v215_v9  ;;  %v115_v17 = vsel %vm114_vm1, %v100_v13, 0.0 }
  0xd4   :  { %v102_v18 = vpop.f32.mrf.mxu0  ;;  %116 = vadd.xlane.f32.xlu0 %v115_v17 }
  0xd5   :  { %v103_v19 = vadd.f32 %v215_v9, %v102_v18  ;;  %v124_v20 = vsel %vm114_vm1, %v111_v16, 0.0 }
  0xd6   :  { %125 = vadd.xlane.f32.xlu1 %v124_v20 }
  0xd7   :  { %v118_v21 = vsel %vm114_vm1, %v103_v19, 0.0 }
  0xd8   :  { %119 = vadd.xlane.f32.xlu0 %v118_v21 }
 0x15b   :  { %v123_v22 = vpop.xlane.xlu1 %122 }
 0x15c   :  { %v130_v23 = vmul.f32 0.03125, %v123_v22 }
 0x15d   :  { %v117_v24 = vpop.xlane.xlu0 %116 }
 0x15e   :  { %v128_v25 = vmul.f32 0.03125, %v117_v24  ;;  %v134_v27 = vsub.f32 %v108_v11, %v130_v23 }
 0x15f   :  { %v126_v26 = vpop.xlane.xlu1 %125 }
 0x160   :  { %v132_v28 = vsub.f32 %v100_v13, %v128_v25  ;;  %v131_v29 = vmul.f32 0.03125, %v126_v26  ;;  %v138_v36 = vmul.f32 %v134_v27, %v134_v27 }
 0x161   :  { %v120_v30 = vpop.xlane.xlu0 %119 }
 0x162   :  { %v129_v31 = vmul.f32 0.03125, %v120_v30  ;;  %v136_v32 = vmul.f32 %v132_v28, %v132_v28  ;;  %v135_v33 = vsub.f32 %v111_v16, %v131_v29  ;;  %v146_v38 = vsel %vm114_vm1, %v138_v36, 0.0 }
 0x164   :  { %v133_v34 = vsub.f32 %v103_v19, %v129_v31  ;;  %v140_v35 = vsel %vm114_vm1, %v136_v32, 0.0  ;;  %v139_v40 = vmul.f32 %v135_v33, %v135_v33 }
 0x165   :  { %141 = vadd.xlane.f32.xlu0 %v140_v35 }
 0x166   :  { %v137_v37 = vmul.f32 %v133_v34, %v133_v34  ;;  %v149_v41 = vsel %vm114_vm1, %v139_v40, 0.0 }
 0x168   :  { %v143_v39 = vsel %vm114_vm1, %v137_v37, 0.0 }
 0x169   :  { %147 = vadd.xlane.f32.xlu0 %v146_v38  ;;  %144 = vadd.xlane.f32.xlu1 %v143_v39 }
 0x16d   :  { %150 = vadd.xlane.f32.xlu1 %v149_v41 }
 0x1ee   :  { %v142_v42 = vpop.xlane.xlu0 %141 }
 0x1ef   :  { %v152_v43 = vmul.f32 0.03125, %v142_v42 }
 0x1f1   :  { %v156_v44 = vadd.f32 1e-05, %v152_v43 }
 0x1f2   :  { %v145_v45 = vpop.xlane.xlu1 %144  ;;  %v148_v46 = vpop.xlane.xlu0 %147 }
 0x1f3   :  { %249 = vrsqrt.f32 %v156_v44  ;;  %v153_v47 = vmul.f32 0.03125, %v145_v45  ;;  %v154_v48 = vmul.f32 0.03125, %v148_v46 }
 0x1f5   :  { %v157_v49 = vadd.f32 1e-05, %v153_v47  ;;  %v158_v50 = vadd.f32 1e-05, %v154_v48 }
 0x1f6   :  { %v151_v51 = vpop.xlane.xlu1 %150 }
 0x1f7   :  { %251 = vrsqrt.f32 %v157_v49  ;;  %v155_v52 = vmul.f32 0.03125, %v151_v51 }
 0x1f8   :  { %253 = vrsqrt.f32 %v158_v50 }
 0x1f9   :  { %v159_v53 = vadd.f32 1e-05, %v155_v52 }
 0x1fb   :  { %255 = vrsqrt.f32 %v159_v53 }
 0x200   :  { %v250_v54 = vpop.eup %249 }
 0x201   :  { %v164_v56 = vmul.f32 %v250_v54, %v132_v28 }
 0x203   :  { %v175_v58 = vmul.f32 %v221_v55, %v164_v56 }
 0x204   :  { %v252_v59 = vpop.eup %251 }
 0x205   :  { %v254_v60 = vpop.eup %253  ;;  %v186_v61 = vadd.f32 %v222_v57, %v175_v58  ;;  %v165_v62 = vmul.f32 %v252_v59, %v133_v34 }
 0x206   :  { %v166_v63 = vmul.f32 %v254_v60, %v134_v27 }
 0x207   :  { %v227_v0 = vpack.c.bf16 %v186_v61, %v186_v61  ;;  %v176_v1 = vmul.f32 %v221_v55, %v165_v62 }
 0x208   :  { %v256_v2 = vpop.eup %255  ;;  %v177_v3 = vmul.f32 %v221_v55, %v166_v63 }
 0x209   :  { %207 = vst.msk [vmem:[%s346_s5] sm:$0xf] %vm206_vm2, %v227_v0  ;;  %v187_v4 = vadd.f32 %v222_v57, %v176_v1  ;;  %v167_v5 = vmul.f32 %v256_v2, %v135_v33 }
 0x20a   :  { %v188_v6 = vadd.f32 %v222_v57, %v177_v3 }
 0x20b   :  { %v228_v7 = vpack.c.bf16 %v187_v4, %v187_v4  ;;  %v178_v8 = vmul.f32 %v221_v55, %v167_v5 }
 0x20c   :  { %v229_v9 = vpack.c.bf16 %v188_v6, %v188_v6 }
 0x20d   :  { %208 = vst.msk [vmem:[%s346_s5 + $0x4] sm:$0xf] %vm206_vm2, %v228_v7  ;;  %v189_v10 = vadd.f32 %v222_v57, %v178_v8 }
 0x20e   :  { %209 = vst.msk [vmem:[%s346_s5 + $0x8] sm:$0xf] %vm206_vm2, %v229_v9 }
 0x20f   :  { %v230_v11 = vpack.c.bf16 %v189_v10, %v189_v10 }
 0x211   :  { %210 = vst.msk [vmem:[%s346_s5 + $0xc] sm:$0xf] %vm206_vm2, %v230_v11 }

// kernel: cs_unet_forward.13
= control target key start
LH: loop header
LB: loop body
LE: loop exit
PB: predicated region body
PF: predicated region fallthrough
CT: control target
= control target key end

     0   :  { %s2101_s13 = smov 0   ;;  %s2103_s14 = smov 0   ;;  %s2389_s0 = inlined_call_operand.vmem [shape: bf16[2,4,4,32], index: 0, kind: input, shape index: {}]   ;;  %s2390_s1 = inlined_call_operand.vmem [shape: bf16[32,96], index: 1, kind: input, shape index: {}]   ;;  %s2391_s2 = inlined_call_operand.vmem [shape: f32[1,96], index: 2, kind: input, shape index: {}]   ;;  %s2392_s3 = inlined_call_operand.vmem [shape: f32[2,4,4], index: 3, kind: input, shape index: {}]   ;;  %s2393_s4 = inlined_call_operand.vmem [shape: bf16[32,32], index: 4, kind: input, shape index: {}]   ;;  %s2394_s5 = inlined_call_operand.vmem [shape: f32[1,32], index: 5, kind: input, shape index: {}]   ;;  %s2395_s6 = inlined_call_operand.vmem [shape: bf16[32,128], index: 6, kind: input, shape index: {}]   ;;  %s2396_s7 = inlined_call_operand.vmem [shape: f32[1,128], index: 7, kind: input, shape index: {}]   ;;  %s2397_s8 = inlined_call_operand.vmem [shape: bf16[128,32], index: 8, kind: input, shape index: {}]   ;;  %s2398_s9 = inlined_call_operand.vmem [shape: f32[1,32], index: 9, kind: input, shape index: {}]   ;;  %s2399_s10 = inlined_call_operand.vmem [shape: bf16[2,4,4,32], index: 10, kind: output, shape index: {}]  }
   0x1   :  { %s2105_s15 = smov 0   ;;  %s2107_s16 = smov 0  }
   0x2   :  { %s2109_s17 = smov 0  }
   0x3 LB: > { %s29_s18 = sadd.s32 1, %s2024_s15  ;;  %s32_s19 = sadd.s32 1, %s2028_s16  ;;  %s2032_s17 = sphi %s2109_s17, %s20_s17   ;;  %s2028_s16 = sphi %s2107_s16, %s2403_s16   ;;  %s2024_s15 = sphi %s2105_s15, %s2402_s15   ;;  %s2020_s14 = sphi %s2103_s14, %s2401_s14   ;;  %s2016_s13 = sphi %s2101_s13, %s2400_s13  }
   0x4   : > { %p30_p0 = scmp.ge.s32.totalorder %s29_s18, 2  ;;  %p1735_p1 = scmp.ge.s32.totalorder %s2032_s17, 1 }
   0x5   : > { %p333_p2 = scmp.lt.s32.totalorder %s2032_s17, 5 }
   0x6   : > { %s2405_s18 = smov (%p30_p0, %s29_s18), 0  ;;  %s2407_s19 = smov (!%p30_p0, %s32_s19), %s2028_s16 }
   0x7   : > { %p334_p3 = pnand %p1735_p1, %p333_p2  ;;  %p34_p4 = scmp.ge.s32.totalorder %s2407_s19, 2 }
   0x8   : > { %s1736_s20 = sshll.u32 (!%p334_p3), %s2016_s13, 1  ;;  %p380_p5 = scmp.lt.s32.totalorder (!%p334_p3), %s2020_s14, 1 }
   0x9   : > { %s2409_s19 = smov (%p34_p4, %s2407_s19), 0  ;;  %337 = sbr.rel (%p334_p3) target bundleno = 2875 (0xb3b), region = 60 }
   0xa   : > { %p382_p6 = scmp.lt.s32.totalorder (!%p334_p3), %s1736_s20, 3  ;;  %s2041_s13 = smov (!%p334_p3), 96  }
   0xb   : > { %s2043_s24 = smov (!%p334_p3), 80   ;;  %s2044_s25 = smov (!%p334_p3), 112  }
   0xc   : > { %s2045_s28 = smov (!%p334_p3), 48  }
   0xe   : > { %v409_v0 = vlaneseq  ;;  %v2034_v1 = vmov 1983009808   ;;  %s2411_s14 = smov (!%p380_p5, %s2020_s14), 1  ;;  %s2413_s20 = smov (!%p382_p6, %s1736_s20), 3  ;;  %vm442_vm0 = vcmask 261120   ;;  %v1958_v56 = vld [vmem:[%s2390_s1 + $0x8] sm:$0xff]  }
   0xf   : > { %v407_v2 = vunpack.c.l.s4 %v2034_v1  ;;  %s1737_s21 = sshll.u32 %s2411_s14, 2  ;;  %v2035_v18 = vmov 269488144   ;;  %v2036_v20 = vmov 842150450   ;;  %v2039_v57 = vmov 0.0  }
  0x10   : > { %v410_v4 = vshrl.u32 %v409_v0, 7  ;;  %s2131_s22 = sadd.s32 %s1737_s21, %s2413_s20  ;;  %v450_v19 = vunpack.c.l.s4 %v2035_v18  ;;  %v457_v21 = vunpack.c.l.s4 %v2036_v20  ;;  %v2037_v22 = vmov 1414812756   ;;  %1810 = vmatprep.subr.bf16.mxu1 %v2039_v57  ;;  %v1959_v58 = vld [vmem:[%s2390_s1] sm:$0xff]   ;;  %1836 = vmatprep.subr.bf16.mxu0 %v2039_v57  ;;  %s2042_s21 = smov 64  }
  0x11   : > { %v408_v3 = vunpack.c.0.s8 %v407_v2  ;;  %s1738_s23 = sshll.u32 %s2131_s22, 1  ;;  %v464_v23 = vunpack.c.l.s4 %v2037_v22  ;;  %v2038_v24 = vmov 1987475062   ;;  %vm2040_vm1 = vmmov 0   ;;  %1811 = vmatpush3.bf16.msra.mxu1 %v1958_v56 }
  0x12   : > { %s387_s26 = scalar_lea.vmem %s2389_s0, %s1738_s23  ;;  %v471_v25 = vunpack.c.l.s4 %v2038_v24  ;;  %v451_v26 = vunpack.c.0.s8 %v450_v19  ;;  %v458_v27 = vunpack.c.0.s8 %v457_v21  ;;  %1814 = vmatprep.mubr.msk.bf16.mxu1 %vm2040_vm1, %v2039_v57  ;;  %1812 = vmatprep.subr.bf16.mxu1 %v2039_v57  ;;  %vm653_vm2 = vcmask 130048   ;;  %s397_s20 = scalar_lea.vmem %s2399_s10, %s1738_s23 }
  0x13   : > { %v2139_v5 = vsub.s32 %v408_v3, %v410_v4  ;;  %v400_v6 = vld [vmem:[%s387_s26] sm:$0x3]  ;;  %v401_v7 = vld [vmem:[%s387_s26 + $0x2] sm:$0x3]  ;;  %v465_v28 = vunpack.c.0.s8 %v464_v23  ;;  %1838 = vmatprep.mubr.msk.bf16.mxu0 %vm2040_vm1, %v2039_v57  ;;  %vm753_vm3 = vcmask 27648   ;;  %vm784_vm4 = vcmask 1041408  }
  0x14   : > { %v2141_v8 = vunpack.c.l.bf16 %v400_v6  ;;  %v2143_v9 = vunpack.c.l.bf16 %v401_v7  ;;  %v472_v29 = vunpack.c.0.s8 %v471_v25  ;;  %v2154_v30 = vsub.s32 %v451_v26, %v410_v4 }
  0x15   : > { %v2156_v31 = vsub.s32 %v458_v27, %v410_v4  ;;  %v2158_v32 = vsub.s32 %v465_v28, %v410_v4  ;;  %1813 = vmatpush3.bf16.msra.mxu1 %v1959_v58  ;;  %vm780_vm5 = vcmask 31744   ;;  %vm1603_vm6 = vcmask 253952  }
  0x16   : > { %v412_v10 = vrot.slane %v2141_v8, %v2139_v5  ;;  %v420_v11 = vrot.slane %v2143_v9, %v2139_v5  ;;  %v424_v12 = vcombine.low %v2141_v8, %v2143_v9  ;;  %v2160_v33 = vsub.s32 %v472_v29, %v410_v4  ;;  %1818 = vmatprep.subr.bf16.mxu1 %v2039_v57 }
  0x17   : > { %vm1638_vm7 = vcmask 254977  }
  0x18   : > { %v1742_v13 = vcombine.high %v412_v10, %v420_v11  ;;  %v432_v14 = vrot.slane %v424_v12, %v2139_v5  ;;  %v2162_v35 = vcombine.high %v420_v11, %v420_v11  ;;  %v2164_v36 = vcombine.high %v412_v10, %v412_v10 }
  0x1a   : > { %v439_v15 = vrot.slane %v1742_v13, %v2139_v5 }
  0x1c   : > { %v440_v16 = vcombine.low %v432_v14, %v439_v15 }
  0x1e   : > { %v443_v17 = vsel %vm442_vm0, %v440_v16, 0.0  ;;  %v1743_v16 = vld [vmem:[%s2391_s2] ss:$0 sm:$0xff] }
  0x1f   : > { %444 = vadd.xlane.f32.xlu0 %v443_v17 }
  0xa8   : > { %v445_v34 = vpop.xlane.xlu0 %444 }
  0xa9   : > { %v447_v37 = vmul.f32 0.03125, %v445_v34  ;;  %v648_v34 = vld [vmem:[%s2392_s3] sm:$0xf] }
  0xab   : > { %v455_v38 = vrot.slane %v447_v37, %v2154_v30  ;;  %v462_v39 = vrot.slane %v447_v37, %v2156_v31  ;;  %v469_v40 = vrot.slane %v447_v37, %v2158_v32  ;;  %v476_v41 = vrot.slane %v447_v37, %v2160_v33 }
  0xad   : > { %v481_v42 = vsub.f32 %v2141_v8, %v455_v38  ;;  %v482_v43 = vsub.f32 %v2143_v9, %v462_v39  ;;  %v483_v44 = vsub.f32 %v2164_v36, %v469_v40  ;;  %v484_v45 = vsub.f32 %v2162_v35, %v476_v41 }
  0xaf   : > { %v485_v46 = vmul.f32 %v481_v42, %v481_v42  ;;  %v486_v47 = vmul.f32 %v482_v43, %v482_v43  ;;  %v487_v48 = vmul.f32 %v483_v44, %v483_v44  ;;  %v488_v49 = vmul.f32 %v484_v45, %v484_v45 }
  0xb1   : > { %v493_v50 = vcombine.low %v485_v46, %v486_v47  ;;  %v494_v51 = vcombine.low %v487_v48, %v488_v49 }
  0xb3   : > { %v501_v52 = vrot.slane %v493_v50, %v2139_v5  ;;  %v508_v53 = vrot.slane %v494_v51, %v2139_v5 }
  0xb5   : > { %v509_v54 = vcombine.low %v501_v52, %v508_v53 }
  0xb7   : > { %v511_v55 = vsel %vm442_vm0, %v509_v54, 0.0 }
  0xb8   : > { %512 = vadd.xlane.f32.xlu0 %v511_v55 }
 0x141   : > { %v513_v59 = vpop.xlane.xlu0 %512 }
 0x142   : > { %v514_v60 = vmul.f32 0.03125, %v513_v59 }
 0x144   : > { %v515_v61 = vadd.f32 1e-05, %v514_v60 }
 0x146   : > { %1972 = vrsqrt.f32 %v515_v61 }
 0x153   : > { %v1973_v62 = vpop.eup %1972 }
 0x154   : > { %v524_v63 = vrot.slane %v1973_v62, %v2154_v30  ;;  %v531_v0 = vrot.slane %v1973_v62, %v2156_v31  ;;  %v538_v1 = vrot.slane %v1973_v62, %v2158_v32  ;;  %v545_v2 = vrot.slane %v1973_v62, %v2160_v33 }
 0x156   : > { %v550_v3 = vmul.f32 %v524_v63, %v481_v42  ;;  %v551_v4 = vmul.f32 %v531_v0, %v482_v43  ;;  %v552_v6 = vmul.f32 %v538_v1, %v483_v44  ;;  %v553_v7 = vmul.f32 %v545_v2, %v484_v45 }
 0x158   : > { %v558_v10 = vcombine.low %v550_v3, %v551_v4  ;;  %v559_v11 = vcombine.low %v552_v6, %v553_v7 }
 0x15a   : > { %v566_v12 = vrot.slane %v558_v10, %v2139_v5  ;;  %v573_v13 = vrot.slane %v559_v11, %v2139_v5 }
 0x15c   : > { %v574_v14 = vcombine.low %v566_v12, %v573_v13 }
 0x15e   : > { %v576_v15 = vpack.c.bf16 %v574_v14, %v574_v14 }
 0x160   : > { %1815 = vmatmul.mubr.msk.bf16.vlgmr.msra.gmra.mxu1 %vm442_vm0, %v576_v15 }
 0x161   : > { %1820 = vmatprep.mubr.msk.bf16.mxu1 %vm2040_vm1, %v2039_v57 }
 0x220   : > { %v637_v17 = vpop.f32.mrf.mxu1 }
 0x221   : > { %v638_v18 = vadd.f32 %v1743_v16, %v637_v17 }
 0x222   : > { %v1816_v19 = vpop.f32.mrf.mxu1 }
 0x223   : > { %v644_v20 = vcombine.high %v638_v18, %v638_v18  ;;  %v2203_v21 = vpack.c.bf16 %v638_v18, %v638_v18 }
 0x224   : > { %v640_v22 = vpop.f32.mrf.mxu1 }
 0x225   : > { %651 = vrot.lane.b32.xlu1 %v2203_v21, %s2041_s13  ;;  %v2206_v24 = vpack.c.bf16 %v644_v20, %v644_v20 }
 0x226   : > { %v1817_v23 = vpop.f32.mrf.mxu1 }
 0x229   : > { %701 = vrot.lane.b32.xlu1 %v2206_v24, %s2041_s13 }
 0x297   : > { %v652_v25 = vpop.permute.xlu1 %651 }
 0x298   : > { %v658_v26 = vsel %vm653_vm2, %v652_v25, 0 }
 0x299   : > { %1819 = vmatpush3.bf16.xpose.msra.mxu1 %v658_v26  ;;  %v649_v26 = vld [vmem:[%s2392_s3 + $0x4] sm:$0xf] }
 0x29a   : > { %1824 = vmatprep.subr.bf16.mxu1 %v2039_v57 }
 0x29b   : > { %v702_v27 = vpop.permute.xlu1 %701 }
 0x29c   : > { %v707_v28 = vsel %vm653_vm2, %v702_v27, 0 }
 0x2a0   : > { %1821 = vmatmul.mubr.msk.bf16.vlgmr.msra.gmra.mxu1 %vm653_vm2, %v2203_v21 }
 0x2a1   : > { %1825 = vmatpush3.bf16.xpose.msra.mxu1 %v707_v28  ;;  %1826 = vmatprep.mubr.msk.bf16.mxu1 %vm2040_vm1, %v2039_v57 }
 0x2a2   : > { %1830 = vmatprep.subr.bf16.mxu1 %v2039_v57 }
 0x2a8   : > { %1827 = vmatmul.mubr.msk.bf16.vlgmr.msra.gmra.mxu1 %vm653_vm2, %v2206_v24 }
 0x2a9   : > { %1832 = vmatprep.mubr.msk.bf16.mxu1 %vm2040_vm1, %v2039_v57 }
 0x360   : > { %v694_v29 = vpop.f32.mrf.mxu1 }
 0x361   : > { %v749_v37 = vmul.f32 0.25, %v694_v29 }
 0x362   : > { %v1822_v38 = vpop.f32.mrf.mxu1 }
 0x363   : > { %v751_v39 = vadd.f32 %v749_v37, %v648_v34 }
 0x364   : > { %v697_v40 = vpop.f32.mrf.mxu1 }
 0x365   : > { %v754_v41 = vsel %vm753_vm3, %v751_v39, -inf }
 0x366   : > { %755 = vmax.xlane.f32.xlu0 %v754_v41  ;;  %v1823_v42 = vpop.f32.mrf.mxu1 }
 0x368   : > { %v743_v43 = vpop.f32.mrf.mxu1 }
 0x369   : > { %v750_v44 = vmul.f32 0.25, %v743_v43 }
 0x36a   : > { %v1828_v45 = vpop.f32.mrf.mxu1 }
 0x36b   : > { %v752_v46 = vadd.f32 %v750_v44, %v648_v34 }
 0x36c   : > { %v746_v47 = vpop.f32.mrf.mxu1 }
 0x36d   : > { %v757_v48 = vsel %vm753_vm3, %v752_v46, -inf }
 0x36e   : > { %758 = vmax.xlane.f32.xlu1 %v757_v48  ;;  %v1829_v49 = vpop.f32.mrf.mxu1 }
 0x37c   : > { %778 = vrot.lane.b32.xlu0 %v2203_v21, %s2042_s21 }
 0x37f   : > { %885 = vrot.lane.b32.xlu1 %v2203_v21, %s2043_s24 }
 0x380   : > { %828 = vrot.lane.b32.xlu0 %v2206_v24, %s2042_s21 }
 0x3ef   : > { %v756_v50 = vpop.xlane.xlu0 %755 }
 0x3f0   : > { %v760_v51 = vsub.f32 %v751_v39, %v756_v50 }
 0x3f2   : > { %v762_v52 = vmul.f32 1.442695, %v760_v51 }
 0x3f3   : > { %v779_v53 = vpop.permute.xlu0 %778 }
 0x3f4   : > { %1974 = vpow2.f32 %v762_v52  ;;  %v786_v54 = vsel %vm784_vm4, %v779_v53, 0 }
 0x3f5   : > { %1831 = vmatpush3.bf16.msra.mxu1 %v786_v54 }
 0x3f6   : > { %1842 = vmatprep.subr.bf16.mxu1 %v2039_v57 }
 0x3f7   : > { %v829_v55 = vpop.permute.xlu0 %828  ;;  %v759_v56 = vpop.xlane.xlu1 %758 }
 0x3f8   : > { %v761_v58 = vsub.f32 %v752_v46, %v759_v56  ;;  %v834_v59 = vsel %vm784_vm4, %v829_v55, 0 }
 0x3f9   : > { %1837 = vmatpush3.bf16.msra.mxu0 %v834_v59 }
 0x3fa   : > { %v764_v60 = vmul.f32 1.442695, %v761_v58  ;;  %1848 = vmatprep.subr.bf16.mxu0 %v2039_v57 }
 0x3fb   : > { %v886_v6 = vpop.permute.xlu1 %885 }
 0x3fc   : > { %1976 = vpow2.f32 %v764_v60  ;;  %v891_v10 = vsel %vm653_vm2, %v886_v6, 0 }
 0x401   : > { %v1975_v61 = vpop.eup %1974 }
 0x402   : > { %v766_v62 = vsel %vm753_vm3, %v1975_v61, 0.0 }
 0x403   : > { %767 = vadd.xlane.f32.xlu0 %v766_v62 }
 0x409   : > { %v1977_v63 = vpop.eup %1976 }
 0x40a   : > { %v769_v0 = vsel %vm753_vm3, %v1977_v63, 0.0 }
 0x40b   : > { %770 = vadd.xlane.f32.xlu0 %v769_v0 }
 0x421   : > { %935 = vrot.lane.b32.xlu0 %v2206_v24, %s2043_s24 }
 0x425   : > { %883 = vrot.lane.b32.xlu0 %v2203_v21, %s2044_s25 }
 0x429   : > { %933 = vrot.lane.b32.xlu0 %v2206_v24, %s2044_s25 }
 0x48c   : > { %v768_v1 = vpop.xlane.xlu0 %767 }
 0x48d   : > { %1978 = vrcp.f32 %v768_v1 }
 0x494   : > { %v771_v2 = vpop.xlane.xlu0 %770 }
 0x495   : > { %1980 = vrcp.f32 %v771_v2 }
 0x498   : > { %v936_v11 = vpop.permute.xlu0 %935 }
 0x499   : > { %v941_v16 = vsel %vm653_vm2, %v936_v11, 0 }
 0x49a   : > { %v1979_v3 = vpop.eup %1978 }
 0x49b   : > { %v773_v4 = vmul.f32 %v1979_v3, %v1975_v61 }
 0x49c   : > { %v884_v15 = vpop.permute.xlu0 %883 }
 0x49d   : > { %v776_v7 = vpack.c.bf16 %v773_v4, %v773_v4 }
 0x49f   : > { %1833 = vmatmul.mubr.msk.bf16.vlgmr.msra.gmra.mxu1 %vm780_vm5, %v776_v7  ;;  %v1960_v7 = vld [vmem:[%s2393_s4] sm:$0xff]  }
 0x4a0   : > { %1843 = vmatpush3.bf16.xpose.msra.mxu1 %v891_v10  ;;  %1844 = vmatprep.mubr.msk.bf16.mxu1 %vm2040_vm1, %v2039_v57  ;;  %v934_v17 = vpop.permute.xlu0 %933 }
 0x4a1   : > { %1854 = vmatprep.subr.bf16.mxu1 %v2039_v57 }
 0x4a2   : > { %v1981_v12 = vpop.eup %1980 }
 0x4a3   : > { %v775_v13 = vmul.f32 %v1981_v12, %v1977_v63  ;;  %v1961_v12 = vld [vmem:[%s2393_s4 + $0x8] sm:$0xff]  }
 0x4a5   : > { %v777_v14 = vpack.c.bf16 %v775_v13, %v775_v13 }
 0x4a7   : > { %1839 = vmatmul.mubr.msk.bf16.vlgmr.msra.gmra.mxu0 %vm780_vm5, %v777_v14  ;;  %1845 = vmatmul.mubr.msk.bf16.vlgmr.msra.gmra.mxu1 %vm653_vm2, %v884_v15 }
 0x4a8   : > { %1849 = vmatpush3.bf16.xpose.msra.mxu0 %v941_v16  ;;  %1850 = vmatprep.mubr.msk.bf16.mxu0 %vm2040_vm1, %v2039_v57 }
 0x4a9   : > { %1860 = vmatprep.subr.bf16.mxu0 %v2039_v57  ;;  %1856 = vmatprep.mubr.msk.bf16.mxu1 %vm2040_vm1, %v2039_v57 }
 0x4af   : > { %1851 = vmatmul.mubr.msk.bf16.vlgmr.msra.gmra.mxu0 %vm653_vm2, %v934_v17 }
 0x4b0   : > { %1862 = vmatprep.mubr.msk.bf16.mxu0 %vm2040_vm1, %v2039_v57 }
 0x55f   : > { %v822_v18 = vpop.f32.mrf.mxu1 }
 0x561   : > { %v1834_v19 = vpop.f32.mrf.mxu1 }
 0x563   : > { %v825_v20 = vpop.f32.mrf.mxu1 }
 0x565   : > { %v1835_v22 = vpop.f32.mrf.mxu1 }
 0x567   : > { %v870_v23 = vpop.f32.mrf.mxu0  ;;  %v927_v25 = vpop.f32.mrf.mxu1 }
 0x568   : > { %v2257_v27 = vcombine.low %v822_v18, %v870_v23  ;;  %v983_v28 = vmul.f32 0.25, %v927_v25 }
 0x569   : > { %v1840_v29 = vpop.f32.mrf.mxu0  ;;  %v1846_v34 = vpop.f32.mrf.mxu1 }
 0x56a   : > { %v985_v37 = vadd.f32 %v983_v28, %v649_v26  ;;  %v880_v11 = vpack.c.bf16 %v2257_v27, %v2257_v27  ;;  %v1759_v34 = vld [vmem:[%s2394_s5] ss:$0 sm:$0xff] }
 0x56b   : > { %v873_v38 = vpop.f32.mrf.mxu0  ;;  %v930_v39 = vpop.f32.mrf.mxu1 }
 0x56c   : > { %v987_v40 = vsel %vm753_vm3, %v985_v37, -inf }
 0x56d   : > { %v1841_v41 = vpop.f32.mrf.mxu0  ;;  %988 = vmax.xlane.f32.xlu0 %v987_v40  ;;  %v1847_v42 = vpop.f32.mrf.mxu1 }
 0x56f   : > { %v977_v43 = vpop.f32.mrf.mxu0 }
 0x570   : > { %v984_v44 = vmul.f32 0.25, %v977_v43 }
 0x571   : > { %v1852_v45 = vpop.f32.mrf.mxu0 }
 0x572   : > { %v986_v46 = vadd.f32 %v984_v44, %v649_v26 }
 0x573   : > { %v980_v47 = vpop.f32.mrf.mxu0 }
 0x574   : > { %v990_v48 = vsel %vm753_vm3, %v986_v46, -inf }
 0x575   : > { %991 = vmax.xlane.f32.xlu1 %v990_v48  ;;  %v1853_v49 = vpop.f32.mrf.mxu0 }
 0x586   : > { %1059 = vrot.lane.b32.xlu1 %v2206_v24, %s2045_s28 }
 0x5f6   : > { %v989_v50 = vpop.xlane.xlu0 %988 }
 0x5f7   : > { %v993_v51 = vsub.f32 %v985_v37, %v989_v50 }
 0x5f9   : > { %v995_v52 = vmul.f32 1.442695, %v993_v51 }
 0x5fb   : > { %1982 = vpow2.f32 %v995_v52 }
 0x5fe   : > { %v992_v53 = vpop.xlane.xlu1 %991 }
 0x5ff   : > { %v994_v54 = vsub.f32 %v986_v46, %v992_v53 }
 0x601   : > { %v997_v55 = vmul.f32 1.442695, %v994_v54 }
 0x602   : > { %v1060_v56 = vpop.permute.xlu1 %1059 }
 0x603   : > { %1984 = vpow2.f32 %v997_v55  ;;  %v1065_v58 = vsel %vm784_vm4, %v1060_v56, 0 }
 0x604   : > { %1861 = vmatpush3.bf16.msra.mxu0 %v1065_v58 }
 0x605   : > { %1872 = vmatprep.subr.bf16.mxu0 %v2039_v57 }
 0x608   : > { %v1983_v59 = vpop.eup %1982 }
 0x609   : > { %v999_v60 = vsel %vm753_vm3, %v1983_v59, 0.0 }
 0x60a   : > { %1000 = vadd.xlane.f32.xlu0 %v999_v60 }
 0x610   : > { %v1985_v61 = vpop.eup %1984 }
 0x611   : > { %v1002_v24 = vsel %vm753_vm3, %v1985_v61, 0.0 }
 0x612   : > { %1003 = vadd.xlane.f32.xlu0 %v1002_v24 }
 0x628   : > { %1011 = vrot.lane.b32.xlu0 %v2203_v21, %s2045_s28 }
 0x693   : > { %v1001_v62 = vpop.xlane.xlu0 %1000 }
 0x694   : > { %1986 = vrcp.f32 %v1001_v62 }
 0x69b   : > { %v1004_v63 = vpop.xlane.xlu0 %1003 }
 0x69c   : > { %1988 = vrcp.f32 %v1004_v63 }
 0x69f   : > { %v1012_v0 = vpop.permute.xlu0 %1011 }
 0x6a0   : > { %v1017_v1 = vsel %vm784_vm4, %v1012_v0, 0 }
 0x6a1   : > { %v1987_v2 = vpop.eup %1986  ;;  %1855 = vmatpush3.bf16.msra.mxu1 %v1017_v1 }
 0x6a2   : > { %v1006_v3 = vmul.f32 %v1987_v2, %v1983_v59  ;;  %1866 = vmatprep.subr.bf16.mxu1 %v2039_v57 }
 0x6a4   : > { %v1009_v4 = vpack.c.bf16 %v1006_v3, %v1006_v3 }
 0x6a6   : > { %1857 = vmatmul.mubr.msk.bf16.vlgmr.msra.gmra.mxu1 %vm780_vm5, %v1009_v4 }
 0x6a7   : > { %1868 = vmatprep.mubr.msk.bf16.mxu1 %vm2040_vm1, %v2039_v57  ;;  %1867 = vmatpush3.bf16.msra.mxu1 %v1961_v12  ;;  %v1963_v12 = vld [vmem:[%s2395_s6] sm:$0xff]  }
 0x6a8   : > { %1878 = vmatprep.subr.bf16.mxu1 %v2039_v57 }
 0x6a9   : > { %v1989_v6 = vpop.eup %1988 }
 0x6aa   : > { %v1008_v21 = vmul.f32 %v1989_v6, %v1985_v61 }
 0x6ac   : > { %v1010_v10 = vpack.c.bf16 %v1008_v21, %v1008_v21 }
 0x6ae   : > { %1863 = vmatmul.mubr.msk.bf16.vlgmr.msra.gmra.mxu0 %vm780_vm5, %v1010_v10 }
 0x6af   : > { %1873 = vmatpush3.bf16.msra.mxu0 %v1960_v7  ;;  %1874 = vmatprep.mubr.msk.bf16.mxu0 %vm2040_vm1, %v2039_v57 }
 0x6b0   : > { %1886 = vmatprep.subr.bf16.mxu0 %v2039_v57 }
 0x6b6   : > { %1875 = vmatmul.mubr.msk.bf16.vlgmr.msra.gmra.mxu0 %vm653_vm2, %v880_v11  ;;  %v1962_v11 = vld [vmem:[%s2395_s6 + $0x8] sm:$0xff]  }
 0x6b7   : > { %1902 = vmatprep.mubr.msk.bf16.mxu0 %vm2040_vm1, %v2039_v57 }
 0x766   : > { %v1053_v13 = vpop.f32.mrf.mxu1 }
 0x768   : > { %v1858_v14 = vpop.f32.mrf.mxu1 }
 0x76a   : > { %v1056_v15 = vpop.f32.mrf.mxu1 }
 0x76c   : > { %v1859_v16 = vpop.f32.mrf.mxu1 }
 0x76e   : > { %v1101_v17 = vpop.f32.mrf.mxu0 }
 0x76f   : > { %v1109_v18 = vcombine.low %v1053_v13, %v1101_v17 }
 0x770   : > { %v1864_v19 = vpop.f32.mrf.mxu0 }
 0x771   : > { %v1111_v20 = vpack.c.bf16 %v1109_v18, %v1109_v18 }
 0x772   : > { %v1104_v22 = vpop.f32.mrf.mxu0 }
 0x773   : > { %1869 = vmatmul.mubr.msk.bf16.vlgmr.msra.gmra.mxu1 %vm653_vm2, %v1111_v20 }
 0x774   : > { %v1865_v23 = vpop.f32.mrf.mxu0  ;;  %1882 = vmatprep.mubr.msk.bf16.mxu1 %vm2040_vm1, %v2039_v57  ;;  %1879 = vmatpush3.bf16.msra.mxu1 %v1962_v11 }
 0x775   : > { %1880 = vmatprep.subr.bf16.mxu1 %v2039_v57 }
 0x776   : > { %v1206_v25 = vpop.f32.mrf.mxu0 }
 0x778   : > { %v1876_v26 = vpop.f32.mrf.mxu0  ;;  %1881 = vmatpush3.bf16.msra.mxu1 %v1963_v12 }
 0x77a   : > { %v1209_v27 = vpop.f32.mrf.mxu0 }
 0x77c   : > { %v1877_v28 = vpop.f32.mrf.mxu0 }
 0x833   : > { %v1157_v29 = vpop.f32.mrf.mxu1 }
 0x834   : > { %v1207_v37 = vadd.f32 %v1206_v25, %v1157_v29 }
 0x835   : > { %v1870_v38 = vpop.f32.mrf.mxu1 }
 0x836   : > { %v1219_v39 = vadd.f32 %v1759_v34, %v1207_v37 }
 0x837   : > { %v1160_v40 = vpop.f32.mrf.mxu1 }
 0x838   : > { %v1221_v41 = vcombine.high %v1219_v39, %v1219_v39  ;;  %v1228_v42 = vrot.slane %v1219_v39, %v2139_v5  ;;  %v1968_v39 = vld [vmem:[%s2397_s8 + $0x18] sm:$0xff]   ;;  %v1969_v40 = vld [vmem:[%s2397_s8 + $0x10] sm:$0xff]  }
 0x839   : > { %v1871_v43 = vpop.f32.mrf.mxu1 }
 0x83a   : > { %v1235_v44 = vrot.slane %v1221_v41, %v2139_v5  ;;  %v1236_v45 = vcombine.high %v1228_v42, %v1228_v42  ;;  %v1242_v47 = vadd.f32 %v1228_v42, %v2141_v8  ;;  %v1970_v41 = vld [vmem:[%s2397_s8 + $0x8] sm:$0xff]   ;;  %v1971_v42 = vld [vmem:[%s2397_s8] sm:$0xff]  }
 0x83b   : > { %v1760_v43 = vld [vmem:[%s2396_s7] ss:$0 sm:$0xff] }
 0x83c   : > { %v1237_v46 = vcombine.high %v1235_v44, %v1235_v44  ;;  %v1243_v48 = vadd.f32 %v1236_v45, %v2143_v9  ;;  %v1244_v49 = vadd.f32 %v1235_v44, %v2164_v36 }
 0x83e   : > { %v1245_v50 = vadd.f32 %v1237_v46, %v2162_v35  ;;  %v1250_v51 = vcombine.low %v1242_v47, %v1243_v48 }
 0x840   : > { %v1251_v52 = vcombine.low %v1244_v49, %v1245_v50  ;;  %v1258_v53 = vrot.slane %v1250_v51, %v2139_v5 }
 0x842   : > { %v1265_v54 = vrot.slane %v1251_v52, %v2139_v5 }
 0x844   : > { %v2302_v55 = vcombine.low %v1258_v53, %v1265_v54 }
 0x846   : > { %v1268_v56 = vsel %vm442_vm0, %v2302_v55, 0.0 }
 0x847   : > { %1269 = vadd.xlane.f32.xlu1 %v1268_v56 }
 0x8d0   : > { %v1270_v58 = vpop.xlane.xlu1 %1269 }
 0x8d1   : > { %v1271_v8 = vmul.f32 0.03125, %v1270_v58 }
 0x8d3   : > { %v1279_v9 = vrot.slane %v1271_v8, %v2154_v30  ;;  %v1286_v36 = vrot.slane %v1271_v8, %v2156_v31  ;;  %v1293_v35 = vrot.slane %v1271_v8, %v2158_v32  ;;  %v1300_v59 = vrot.slane %v1271_v8, %v2160_v33 }
 0x8d5   : > { %v1305_v60 = vsub.f32 %v1242_v47, %v1279_v9  ;;  %v1306_v61 = vsub.f32 %v1243_v48, %v1286_v36  ;;  %v1307_v24 = vsub.f32 %v1244_v49, %v1293_v35  ;;  %v1308_v62 = vsub.f32 %v1245_v50, %v1300_v59  ;;  %v1764_v9 = vld [vmem:[%s2398_s9] ss:$0 sm:$0xff] }
 0x8d7   : > { %v1309_v63 = vmul.f32 %v1305_v60, %v1305_v60  ;;  %v1310_v0 = vmul.f32 %v1306_v61, %v1306_v61  ;;  %v1311_v1 = vmul.f32 %v1307_v24, %v1307_v24  ;;  %v1312_v2 = vmul.f32 %v1308_v62, %v1308_v62 }
 0x8d9   : > { %v1317_v3 = vcombine.low %v1309_v63, %v1310_v0  ;;  %v1318_v4 = vcombine.low %v1311_v1, %v1312_v2 }
 0x8db   : > { %v1325_v6 = vrot.slane %v1317_v3, %v2139_v5  ;;  %v1332_v21 = vrot.slane %v1318_v4, %v2139_v5 }
 0x8dd   : > { %v1333_v7 = vcombine.low %v1325_v6, %v1332_v21 }
 0x8df   : > { %v1335_v10 = vsel %vm442_vm0, %v1333_v7, 0.0 }
 0x8e0   : > { %1336 = vadd.xlane.f32.xlu0 %v1335_v10 }
 0x969   : > { %v1337_v13 = vpop.xlane.xlu0 %1336 }
 0x96a   : > { %v1338_v14 = vmul.f32 0.03125, %v1337_v13 }
 0x96c   : > { %v1339_v15 = vadd.f32 1e-05, %v1338_v14 }
 0x96e   : > { %1990 = vrsqrt.f32 %v1339_v15 }
 0x97b   : > { %v1991_v16 = vpop.eup %1990 }
 0x97c   : > { %v1348_v17 = vrot.slane %v1991_v16, %v2154_v30  ;;  %v1355_v18 = vrot.slane %v1991_v16, %v2156_v31  ;;  %v1362_v19 = vrot.slane %v1991_v16, %v2158_v32  ;;  %v1369_v20 = vrot.slane %v1991_v16, %v2160_v33  ;;  %v1964_v30 = vld [vmem:[%s2397_s8 + $0x38] sm:$0xff]   ;;  %v1965_v31 = vld [vmem:[%s2397_s8 + $0x30] sm:$0xff]   ;;  %v1966_v32 = vld [vmem:[%s2397_s8 + $0x28] sm:$0xff]  }
 0x97d   : > { %1887 = vmatpush3.bf16.msra.mxu0 %v1964_v30  ;;  %v1967_v33 = vld [vmem:[%s2397_s8 + $0x20] sm:$0xff]  }
 0x97e   : > { %v1374_v22 = vmul.f32 %v1348_v17, %v1305_v60  ;;  %v1375_v23 = vmul.f32 %v1355_v18, %v1306_v61  ;;  %v1376_v25 = vmul.f32 %v1362_v19, %v1307_v24  ;;  %v1377_v26 = vmul.f32 %v1369_v20, %v1308_v62  ;;  %1888 = vmatprep.subr.bf16.mxu0 %v2039_v57 }
 0x980   : > { %v1382_v27 = vcombine.low %v1374_v22, %v1375_v23  ;;  %v1383_v28 = vcombine.low %v1376_v25, %v1377_v26 }
 0x981   : > { %1889 = vmatpush3.bf16.msra.mxu0 %v1965_v31 }
 0x982   : > { %v1390_v29 = vrot.slane %v1382_v27, %v2139_v5  ;;  %v1397_v34 = vrot.slane %v1383_v28, %v2139_v5  ;;  %1890 = vmatprep.subr.bf16.mxu0 %v2039_v57 }
 0x984   : > { %v1398_v37 = vcombine.low %v1390_v29, %v1397_v34 }
 0x985   : > { %1891 = vmatpush3.bf16.msra.mxu0 %v1966_v32 }
 0x986   : > { %v1400_v38 = vpack.c.bf16 %v1398_v37, %v1398_v37  ;;  %1892 = vmatprep.subr.bf16.mxu0 %v2039_v57 }
 0x988   : > { %1883 = vmatmul.mubr.msk.bf16.vlgmr.msra.gmra.mxu1 %vm442_vm0, %v1400_v38 }
 0x989   : > { %1893 = vmatpush3.bf16.msra.mxu0 %v1967_v33 }
 0x98a   : > { %1894 = vmatprep.subr.bf16.mxu0 %v2039_v57 }
 0x98d   : > { %1895 = vmatpush3.bf16.msra.mxu0 %v1968_v39 }
 0x98e   : > { %1896 = vmatprep.subr.bf16.mxu0 %v2039_v57 }
 0x991   : > { %1897 = vmatpush3.bf16.msra.mxu0 %v1969_v40 }
 0x992   : > { %1898 = vmatprep.subr.bf16.mxu0 %v2039_v57 }
 0x995   : > { %1899 = vmatpush3.bf16.msra.mxu0 %v1970_v41 }
 0x996   : > { %1900 = vmatprep.subr.bf16.mxu0 %v2039_v57 }
 0x999   : > { %1901 = vmatpush3.bf16.msra.mxu0 %v1971_v42 }
 0xa48   : > { %v1461_v44 = vpop.f32.mrf.mxu1 }
 0xa49   : > { %v1462_v45 = vadd.f32 %v1760_v43, %v1461_v44 }
 0xa4a   : > { %v1884_v46 = vpop.f32.mrf.mxu1 }
 0xa4b   : > { %v1468_v47 = vmul.f32 0.044715, %v1462_v45  ;;  %v1467_v56 = vmul.f32 0.5, %v1462_v45 }
 0xa4c   : > { %v1464_v48 = vpop.f32.mrf.mxu1 }
 0xa4d   : > { %v1469_v49 = vmul.f32 %v1468_v47, %v1462_v45 }
 0xa4e   : > { %v1885_v50 = vpop.f32.mrf.mxu1 }
 0xa4f   : > { %v1470_v51 = vmul.f32 %v1469_v49, %v1462_v45 }
 0xa51   : > { %v1471_v52 = vadd.f32 %v1470_v51, %v1462_v45 }
 0xa53   : > { %v1472_v53 = vmul.f32 0.7978846, %v1471_v52 }
 0xa55   : > { %1992 = vtanh.f32 %v1472_v53 }
 0xa62   : > { %v1993_v54 = vpop.eup %1992 }
 0xa63   : > { %v1474_v57 = vadd.f32 1.0, %v1993_v54 }
 0xa65   : > { %v1475_v58 = vmul.f32 %v1474_v57, %v1467_v56 }
 0xa67   : > { %v1476_v8 = vpack.c.bf16 %v1475_v58, %v1475_v58 }
 0xa69   : > { %1903 = vmatmul.mubr.bf16.vlgmr.msra.gmra.mxu0 %v1476_v8 }
 0xb29   : > { %v1582_v36 = vpop.f32.mrf.mxu0 }
 0xb2a   : > { %v1583_v35 = vadd.f32 %v1764_v9, %v1582_v36 }
 0xb2b   : > { %v1904_v59 = vpop.f32.mrf.mxu0 }
 0xb2c   : > { %v1588_v60 = vadd.f32 %v1583_v35, %v2302_v55 }
 0xb2d   : > { %v1585_v61 = vpop.f32.mrf.mxu0 }
 0xb2e   : > { %v1590_v24 = vcombine.high %v1588_v60, %v1588_v60  ;;  %v1597_v62 = vrot.slane %v1588_v60, %v2139_v5 }
 0xb2f   : > { %v1905_v63 = vpop.f32.mrf.mxu0 }
 0xb30   : > { %v1598_v0 = vcombine.high %v1597_v62, %v1597_v62  ;;  %v1601_v1 = vpack.c.bf16 %v1597_v62, %v1597_v62  ;;  %v1612_v2 = vrot.slane %v1590_v24, %v2139_v5 }
 0xb32   : > { %v1602_v3 = vpack.c.bf16 %v1598_v0, %v1598_v0  ;;  %1604 = vst.msk [vmem:[%s397_s20] sm:$0x1] %vm1603_vm6, %v1601_v1  ;;  %v1613_v4 = vcombine.high %v1612_v2, %v1612_v2  ;;  %v1616_v6 = vpack.c.bf16 %v1612_v2, %v1612_v2 }
 0xb34   : > { %1605 = vst.msk [vmem:[%s397_s20 + $0x2] sm:$0x1] %vm1603_vm6, %v1602_v3  ;;  %v1617_v55 = vpack.c.bf16 %v1613_v4, %v1613_v4  ;;  %v1626_v21 = vrot.slane %v1616_v6, %v2139_v5 }
 0xb36   : > { %v1633_v7 = vrot.slane %v1617_v55, %v2139_v5  ;;  %v1634_v10 = vrot.slane %v1626_v21, 7 }
 0xb38   : > { %v1635_v11 = vrot.slane %v1633_v7, 7  ;;  %1639 = vst.msk [vmem:[%s397_s20] sm:$0x2] %vm1638_vm7, %v1634_v10 }
 0xb3a   : > { %1640 = vst.msk [vmem:[%s397_s20 + $0x2] sm:$0x2] %vm1638_vm7, %v1635_v11 }
 0xb3b PF: > { %s20_s17 = sadd.s32 1, %s2032_s17   ;;  %s2400_s13 = smov %s2024_s15 }
 0xb3c   : > { %p17_p7 = scmp.ge.s32.totalorder %s20_s17, 6   ;;  %s2401_s14 = smov %s2028_s16 }
 0xb3d   : > { %s2402_s15 = smov %s2405_s18  ;;  %s2403_s16 = smov %s2409_s19 }
 0xb3e   :  { %19 = sbr.rel (!%p17_p7) target bundleno = 3 (0x3), region = 90 }

// kernel: cs_unet_forward.14
= control target key start
LH: loop header
LB: loop body
LE: loop exit
PB: predicated region body
PF: predicated region fallthrough
CT: control target
= control target key end

     0   :  { %s2177_s17 = smov 0   ;;  %s2179_s18 = smov 0   ;;  %s2478_s0 = inlined_call_operand.vmem [shape: bf16[2,4,4,32], index: 0, kind: input, shape index: {}]   ;;  %s2479_s1 = inlined_call_operand.vmem [shape: bf16[32,96], index: 1, kind: input, shape index: {}]   ;;  %s2480_s2 = inlined_call_operand.vmem [shape: f32[1,96], index: 2, kind: input, shape index: {}]   ;;  %s2481_s3 = inlined_call_operand.vmem [shape: f32[2,4,4], index: 3, kind: input, shape index: {}]   ;;  %s2482_s4 = inlined_call_operand.vmem [shape: f32[4,4,4], index: 4, kind: input, shape index: {}]   ;;  %s2483_s5 = inlined_call_operand.vmem [shape: bf16[32,32], index: 5, kind: input, shape index: {}]   ;;  %s2484_s6 = inlined_call_operand.vmem [shape: f32[1,32], index: 6, kind: input, shape index: {}]   ;;  %s2485_s7 = inlined_call_operand.vmem [shape: bf16[32,128], index: 7, kind: input, shape index: {}]   ;;  %s2486_s8 = inlined_call_operand.vmem [shape: f32[1,128], index: 8, kind: input, shape index: {}]   ;;  %s2487_s9 = inlined_call_operand.vmem [shape: bf16[128,32], index: 9, kind: input, shape index: {}]   ;;  %s2488_s10 = inlined_call_operand.vmem [shape: f32[1,32], index: 10, kind: input, shape index: {}]   ;;  %s2489_s11 = inlined_call_operand.vmem [shape: bf16[2,4,4,32], index: 11, kind: output, shape index: {}]  }
   0x1   :  { %s2181_s19 = smov 0   ;;  %s2183_s20 = smov 0  }
   0x2   :  { %s2185_s21 = smov 0  }
   0x3 LB: > { %s30_s22 = sadd.s32 1, %s2095_s19  ;;  %s33_s23 = sadd.s32 1, %s2099_s20  ;;  %s2103_s21 = sphi %s2185_s21, %s21_s21   ;;  %s2099_s20 = sphi %s2183_s20, %s2493_s20   ;;  %s2095_s19 = sphi %s2181_s19, %s2492_s19   ;;  %s2091_s18 = sphi %s2179_s18, %s2491_s18   ;;  %s2087_s17 = sphi %s2177_s17, %s2490_s17  }
   0x4   : > { %p31_p0 = scmp.ge.s32.totalorder %s30_s22, 2  ;;  %p1804_p1 = scmp.ge.s32.totalorder %s2103_s21, 1 }
   0x5   : > { %p369_p2 = scmp.lt.s32.totalorder %s2103_s21, 5 }
   0x6   : > { %s2495_s22 = smov (%p31_p0, %s30_s22), 0  ;;  %s2497_s23 = smov (!%p31_p0, %s33_s23), %s2099_s20 }
   0x7   : > { %p370_p3 = pnand %p1804_p1, %p369_p2  ;;  %p35_p4 = scmp.ge.s32.totalorder %s2497_s23, 2 }
   0x8   : > { %s1805_s24 = sshll.u32 (!%p370_p3), %s2087_s17, 1  ;;  %p423_p5 = scmp.lt.s32.totalorder (!%p370_p3), %s2091_s18, 1 }
   0x9   : > { %s2499_s23 = smov (%p35_p4, %s2497_s23), 0  ;;  %373 = sbr.rel (%p370_p3) target bundleno = 2879 (0xb3f), region = 64 }
   0xa   : > { %p425_p6 = scmp.lt.s32.totalorder (!%p370_p3), %s1805_s24, 3  ;;  %s2114_s14 = smov (!%p370_p3), 80  }
   0xb   : > { %s2115_s15 = smov (!%p370_p3), 112  }
   0xe   : > { %v458_v0 = vlaneseq  ;;  %v2105_v1 = vmov 1983009808   ;;  %s2501_s18 = smov (!%p423_p5, %s2091_s18), 1  ;;  %s2503_s24 = smov (!%p425_p6, %s1805_s24), 3  ;;  %vm491_vm0 = vcmask 261120   ;;  %v2029_v56 = vld [vmem:[%s2479_s1 + $0x8] sm:$0xff]  }
   0xf   : > { %v456_v2 = vunpack.c.l.s4 %v2105_v1  ;;  %s1806_s25 = sshll.u32 %s2501_s18, 2  ;;  %v2106_v18 = vmov 269488144   ;;  %v2107_v20 = vmov 842150450   ;;  %v2110_v57 = vmov 0.0  }
  0x10   : > { %v459_v4 = vshrl.u32 %v458_v0, 7  ;;  %s2210_s26 = sadd.s32 %s1806_s25, %s2503_s24  ;;  %v499_v19 = vunpack.c.l.s4 %v2106_v18  ;;  %v506_v21 = vunpack.c.l.s4 %v2107_v20  ;;  %v2108_v22 = vmov 1414812756   ;;  %1881 = vmatprep.subr.bf16.mxu1 %v2110_v57  ;;  %v2030_v58 = vld [vmem:[%s2479_s1] sm:$0xff]   ;;  %1907 = vmatprep.subr.bf16.mxu0 %v2110_v57  ;;  %s2112_s18 = smov 96  }
  0x11   : > { %v457_v3 = vunpack.c.0.s8 %v456_v2  ;;  %s1807_s27 = sshll.u32 %s2210_s26, 1  ;;  %v513_v23 = vunpack.c.l.s4 %v2108_v22  ;;  %v2109_v24 = vmov 1987475062   ;;  %vm2111_vm1 = vmmov 0   ;;  %1882 = vmatpush3.bf16.msra.mxu1 %v2029_v56  ;;  %s1809_s25 = sshll.u32 %s2503_s24, 2 }
  0x12   : > { %s430_s30 = scalar_lea.vmem %s2478_s0, %s1807_s27  ;;  %v520_v25 = vunpack.c.l.s4 %v2109_v24  ;;  %v500_v26 = vunpack.c.0.s8 %v499_v19  ;;  %v507_v27 = vunpack.c.0.s8 %v506_v21  ;;  %1885 = vmatprep.mubr.msk.bf16.mxu1 %vm2111_vm1, %v2110_v57  ;;  %1883 = vmatprep.subr.bf16.mxu1 %v2110_v57  ;;  %vm702_vm2 = vcmask 130048   ;;  %s2113_s24 = smov 64  }
  0x13   : > { %v2218_v5 = vsub.s32 %v457_v3, %v459_v4  ;;  %v449_v6 = vld [vmem:[%s430_s30] sm:$0x3]  ;;  %v450_v7 = vld [vmem:[%s430_s30 + $0x2] sm:$0x3]  ;;  %v514_v28 = vunpack.c.0.s8 %v513_v23  ;;  %1909 = vmatprep.mubr.msk.bf16.mxu0 %vm2111_vm1, %v2110_v57  ;;  %s2304_s30 = scalar_lea.vmem %s2482_s4, %s1809_s25  ;;  %vm806_vm3 = vcmask 27648   ;;  %vm837_vm4 = vcmask 1041408  }
  0x14   : > { %v2220_v8 = vunpack.c.l.bf16 %v449_v6  ;;  %v2222_v9 = vunpack.c.l.bf16 %v450_v7  ;;  %v521_v29 = vunpack.c.0.s8 %v520_v25  ;;  %v2233_v30 = vsub.s32 %v500_v26, %v459_v4 }
  0x15   : > { %v2235_v31 = vsub.s32 %v507_v27, %v459_v4  ;;  %v2237_v32 = vsub.s32 %v514_v28, %v459_v4  ;;  %1884 = vmatpush3.bf16.msra.mxu1 %v2030_v58  ;;  %vm833_vm5 = vcmask 31744   ;;  %vm1660_vm6 = vcmask 253952  }
  0x16   : > { %v461_v10 = vrot.slane %v2220_v8, %v2218_v5  ;;  %v469_v11 = vrot.slane %v2222_v9, %v2218_v5  ;;  %v473_v12 = vcombine.low %v2220_v8, %v2222_v9  ;;  %v2239_v33 = vsub.s32 %v521_v29, %v459_v4  ;;  %1889 = vmatprep.subr.bf16.mxu1 %v2110_v57  ;;  %v697_v29 = vld [vmem:[%s2481_s3] sm:$0xf] }
  0x17   : > { %vm1695_vm7 = vcmask 254977  }
  0x18   : > { %v1813_v13 = vcombine.high %v461_v10, %v469_v11  ;;  %v481_v14 = vrot.slane %v473_v12, %v2218_v5  ;;  %v2241_v35 = vcombine.high %v469_v11, %v469_v11  ;;  %v2243_v36 = vcombine.high %v461_v10, %v461_v10 }
  0x1a   : > { %v488_v15 = vrot.slane %v1813_v13, %v2218_v5 }
  0x1c   : > { %v489_v16 = vcombine.low %v481_v14, %v488_v15 }
  0x1e   : > { %v492_v17 = vsel %vm491_vm0, %v489_v16, 0.0  ;;  %v1814_v16 = vld [vmem:[%s2480_s2] ss:$0 sm:$0xff] }
  0x1f   : > { %493 = vadd.xlane.f32.xlu0 %v492_v17 }
  0xa8   : > { %v494_v34 = vpop.xlane.xlu0 %493 }
  0xa9   : > { %v496_v37 = vmul.f32 0.03125, %v494_v34 }
  0xab   : > { %v504_v38 = vrot.slane %v496_v37, %v2233_v30  ;;  %v511_v39 = vrot.slane %v496_v37, %v2235_v31  ;;  %v518_v40 = vrot.slane %v496_v37, %v2237_v32  ;;  %v525_v41 = vrot.slane %v496_v37, %v2239_v33 }
  0xad   : > { %v530_v42 = vsub.f32 %v2220_v8, %v504_v38  ;;  %v531_v43 = vsub.f32 %v2222_v9, %v511_v39  ;;  %v532_v44 = vsub.f32 %v2243_v36, %v518_v40  ;;  %v533_v45 = vsub.f32 %v2241_v35, %v525_v41  ;;  %v802_v39 = vld [vmem:[%s2304_s30] sm:$0xf] }
  0xaf   : > { %v534_v46 = vmul.f32 %v530_v42, %v530_v42  ;;  %v535_v47 = vmul.f32 %v531_v43, %v531_v43  ;;  %v536_v48 = vmul.f32 %v532_v44, %v532_v44  ;;  %v537_v49 = vmul.f32 %v533_v45, %v533_v45 }
  0xb1   : > { %v542_v50 = vcombine.low %v534_v46, %v535_v47  ;;  %v543_v51 = vcombine.low %v536_v48, %v537_v49  ;;  %v803_v48 = vld [vmem:[%s2304_s30 + $0x4] sm:$0xf] }
  0xb3   : > { %v550_v52 = vrot.slane %v542_v50, %v2218_v5  ;;  %v557_v53 = vrot.slane %v543_v51, %v2218_v5 }
  0xb5   : > { %v558_v54 = vcombine.low %v550_v52, %v557_v53 }
  0xb7   : > { %v560_v55 = vsel %vm491_vm0, %v558_v54, 0.0 }
  0xb8   : > { %561 = vadd.xlane.f32.xlu0 %v560_v55 }
 0x141   : > { %v562_v59 = vpop.xlane.xlu0 %561 }
 0x142   : > { %v563_v60 = vmul.f32 0.03125, %v562_v59 }
 0x144   : > { %v564_v61 = vadd.f32 1e-05, %v563_v60 }
 0x146   : > { %2043 = vrsqrt.f32 %v564_v61 }
 0x153   : > { %v2044_v62 = vpop.eup %2043 }
 0x154   : > { %v573_v63 = vrot.slane %v2044_v62, %v2233_v30  ;;  %v580_v0 = vrot.slane %v2044_v62, %v2235_v31  ;;  %v587_v1 = vrot.slane %v2044_v62, %v2237_v32  ;;  %v594_v2 = vrot.slane %v2044_v62, %v2239_v33 }
 0x156   : > { %v599_v3 = vmul.f32 %v573_v63, %v530_v42  ;;  %v600_v4 = vmul.f32 %v580_v0, %v531_v43  ;;  %v601_v6 = vmul.f32 %v587_v1, %v532_v44  ;;  %v602_v7 = vmul.f32 %v594_v2, %v533_v45 }
 0x158   : > { %v607_v10 = vcombine.low %v599_v3, %v600_v4  ;;  %v608_v11 = vcombine.low %v601_v6, %v602_v7 }
 0x15a   : > { %v615_v12 = vrot.slane %v607_v10, %v2218_v5  ;;  %v622_v13 = vrot.slane %v608_v11, %v2218_v5 }
 0x15c   : > { %v623_v14 = vcombine.low %v615_v12, %v622_v13 }
 0x15e   : > { %v625_v15 = vpack.c.bf16 %v623_v14, %v623_v14 }
 0x160   : > { %1886 = vmatmul.mubr.msk.bf16.vlgmr.msra.gmra.mxu1 %vm491_vm0, %v625_v15 }
 0x161   : > { %1891 = vmatprep.mubr.msk.bf16.mxu1 %vm2111_vm1, %v2110_v57 }
 0x220   : > { %v686_v17 = vpop.f32.mrf.mxu1 }
 0x221   : > { %v687_v18 = vadd.f32 %v1814_v16, %v686_v17 }
 0x222   : > { %v1887_v19 = vpop.f32.mrf.mxu1 }
 0x223   : > { %v693_v20 = vcombine.high %v687_v18, %v687_v18  ;;  %v2282_v21 = vpack.c.bf16 %v687_v18, %v687_v18 }
 0x224   : > { %v689_v22 = vpop.f32.mrf.mxu1 }
 0x225   : > { %700 = vrot.lane.b32.xlu1 %v2282_v21, %s2112_s18  ;;  %v2285_v24 = vpack.c.bf16 %v693_v20, %v693_v20 }
 0x226   : > { %v1888_v23 = vpop.f32.mrf.mxu1 }
 0x229   : > { %750 = vrot.lane.b32.xlu1 %v2285_v24, %s2112_s18  ;;  %s2116_s18 = smov 48  }
 0x297   : > { %v701_v25 = vpop.permute.xlu1 %700 }
 0x298   : > { %v707_v26 = vsel %vm702_vm2, %v701_v25, 0 }
 0x299   : > { %1890 = vmatpush3.bf16.xpose.msra.mxu1 %v707_v26 }
 0x29a   : > { %1895 = vmatprep.subr.bf16.mxu1 %v2110_v57 }
 0x29b   : > { %v751_v27 = vpop.permute.xlu1 %750 }
 0x29c   : > { %v756_v28 = vsel %vm702_vm2, %v751_v27, 0 }
 0x2a0   : > { %1892 = vmatmul.mubr.msk.bf16.vlgmr.msra.gmra.mxu1 %vm702_vm2, %v2282_v21 }
 0x2a1   : > { %1896 = vmatpush3.bf16.xpose.msra.mxu1 %v756_v28  ;;  %1897 = vmatprep.mubr.msk.bf16.mxu1 %vm2111_vm1, %v2110_v57 }
 0x2a2   : > { %1901 = vmatprep.subr.bf16.mxu1 %v2110_v57 }
 0x2a8   : > { %1898 = vmatmul.mubr.msk.bf16.vlgmr.msra.gmra.mxu1 %vm702_vm2, %v2285_v24 }
 0x2a9   : > { %1903 = vmatprep.mubr.msk.bf16.mxu1 %vm2111_vm1, %v2110_v57 }
 0x360   : > { %v743_v34 = vpop.f32.mrf.mxu1 }
 0x361   : > { %v798_v37 = vmul.f32 0.25, %v743_v34 }
 0x362   : > { %v1893_v38 = vpop.f32.mrf.mxu1 }
 0x363   : > { %v800_v40 = vadd.f32 %v798_v37, %v697_v29 }
 0x364   : > { %v746_v41 = vpop.f32.mrf.mxu1 }
 0x365   : > { %v804_v42 = vadd.f32 %v802_v39, %v800_v40  ;;  %v1040_v41 = vld [vmem:[%s2304_s30] sm:$0xf] }
 0x366   : > { %v1894_v43 = vpop.f32.mrf.mxu1 }
 0x367   : > { %v807_v44 = vsel %vm806_vm3, %v804_v42, -inf }
 0x368   : > { %808 = vmax.xlane.f32.xlu0 %v807_v44  ;;  %v792_v45 = vpop.f32.mrf.mxu1 }
 0x369   : > { %v799_v46 = vmul.f32 0.25, %v792_v45 }
 0x36a   : > { %v1899_v47 = vpop.f32.mrf.mxu1 }
 0x36b   : > { %v801_v49 = vadd.f32 %v799_v46, %v697_v29  ;;  %v698_v29 = vld [vmem:[%s2481_s3 + $0x4] sm:$0xf] }
 0x36c   : > { %v795_v50 = vpop.f32.mrf.mxu1 }
 0x36d   : > { %v805_v51 = vadd.f32 %v803_v48, %v801_v49 }
 0x36e   : > { %v1900_v52 = vpop.f32.mrf.mxu1 }
 0x36f   : > { %v810_v53 = vsel %vm806_vm3, %v805_v51, -inf  ;;  %v1041_v52 = vld [vmem:[%s2304_s30 + $0x4] sm:$0xf] }
 0x370   : > { %811 = vmax.xlane.f32.xlu1 %v810_v53 }
 0x37e   : > { %831 = vrot.lane.b32.xlu0 %v2282_v21, %s2113_s24 }
 0x381   : > { %938 = vrot.lane.b32.xlu1 %v2282_v21, %s2114_s14 }
 0x382   : > { %881 = vrot.lane.b32.xlu0 %v2285_v24, %s2113_s24 }
 0x3f1   : > { %v809_v54 = vpop.xlane.xlu0 %808 }
 0x3f2   : > { %v813_v55 = vsub.f32 %v804_v42, %v809_v54 }
 0x3f4   : > { %v815_v56 = vmul.f32 1.442695, %v813_v55 }
 0x3f5   : > { %v832_v58 = vpop.permute.xlu0 %831 }
 0x3f6   : > { %2045 = vpow2.f32 %v815_v56  ;;  %v839_v59 = vsel %vm837_vm4, %v832_v58, 0 }
 0x3f7   : > { %1902 = vmatpush3.bf16.msra.mxu1 %v839_v59 }
 0x3f8   : > { %1913 = vmatprep.subr.bf16.mxu1 %v2110_v57 }
 0x3f9   : > { %v882_v60 = vpop.permute.xlu0 %881  ;;  %v812_v61 = vpop.xlane.xlu1 %811 }
 0x3fa   : > { %v814_v62 = vsub.f32 %v805_v51, %v812_v61  ;;  %v887_v63 = vsel %vm837_vm4, %v882_v60, 0 }
 0x3fb   : > { %1908 = vmatpush3.bf16.msra.mxu0 %v887_v63 }
 0x3fc   : > { %v817_v0 = vmul.f32 1.442695, %v814_v62  ;;  %1919 = vmatprep.subr.bf16.mxu0 %v2110_v57 }
 0x3fd   : > { %v939_v12 = vpop.permute.xlu1 %938 }
 0x3fe   : > { %2047 = vpow2.f32 %v817_v0  ;;  %v944_v14 = vsel %vm702_vm2, %v939_v12, 0 }
 0x403   : > { %v2046_v1 = vpop.eup %2045 }
 0x404   : > { %v819_v2 = vsel %vm806_vm3, %v2046_v1, 0.0 }
 0x405   : > { %820 = vadd.xlane.f32.xlu0 %v819_v2 }
 0x40b   : > { %v2048_v3 = vpop.eup %2047 }
 0x40c   : > { %v822_v4 = vsel %vm806_vm3, %v2048_v3, 0.0 }
 0x40d   : > { %823 = vadd.xlane.f32.xlu0 %v822_v4 }
 0x423   : > { %988 = vrot.lane.b32.xlu0 %v2285_v24, %s2114_s14 }
 0x427   : > { %936 = vrot.lane.b32.xlu0 %v2282_v21, %s2115_s15 }
 0x42b   : > { %986 = vrot.lane.b32.xlu0 %v2285_v24, %s2115_s15  ;;  %s446_s15 = scalar_lea.vmem %s2489_s11, %s1807_s27 }
 0x48e   : > { %v821_v6 = vpop.xlane.xlu0 %820 }
 0x48f   : > { %2049 = vrcp.f32 %v821_v6 }
 0x496   : > { %v824_v7 = vpop.xlane.xlu0 %823 }
 0x497   : > { %2051 = vrcp.f32 %v824_v7 }
 0x49a   : > { %v989_v15 = vpop.permute.xlu0 %988 }
 0x49b   : > { %v994_v20 = vsel %vm702_vm2, %v989_v15, 0 }
 0x49c   : > { %v2050_v10 = vpop.eup %2049 }
 0x49d   : > { %v826_v11 = vmul.f32 %v2050_v10, %v2046_v1 }
 0x49e   : > { %v937_v19 = vpop.permute.xlu0 %936 }
 0x49f   : > { %v829_v13 = vpack.c.bf16 %v826_v11, %v826_v11 }
 0x4a1   : > { %1904 = vmatmul.mubr.msk.bf16.vlgmr.msra.gmra.mxu1 %vm833_vm5, %v829_v13 }
 0x4a2   : > { %1914 = vmatpush3.bf16.xpose.msra.mxu1 %v944_v14  ;;  %1915 = vmatprep.mubr.msk.bf16.mxu1 %vm2111_vm1, %v2110_v57  ;;  %v987_v22 = vpop.permute.xlu0 %986 }
 0x4a3   : > { %1925 = vmatprep.subr.bf16.mxu1 %v2110_v57 }
 0x4a4   : > { %v2052_v16 = vpop.eup %2051 }
 0x4a5   : > { %v828_v17 = vmul.f32 %v2052_v16, %v2048_v3 }
 0x4a7   : > { %v830_v18 = vpack.c.bf16 %v828_v17, %v828_v17  ;;  %v2031_v17 = vld [vmem:[%s2483_s5] sm:$0xff]  }
 0x4a9   : > { %1910 = vmatmul.mubr.msk.bf16.vlgmr.msra.gmra.mxu0 %vm833_vm5, %v830_v18  ;;  %1916 = vmatmul.mubr.msk.bf16.vlgmr.msra.gmra.mxu1 %vm702_vm2, %v937_v19 }
 0x4aa   : > { %1920 = vmatpush3.bf16.xpose.msra.mxu0 %v994_v20  ;;  %1921 = vmatprep.mubr.msk.bf16.mxu0 %vm2111_vm1, %v2110_v57  ;;  %v2032_v20 = vld [vmem:[%s2483_s5 + $0x8] sm:$0xff]  }
 0x4ab   : > { %1931 = vmatprep.subr.bf16.mxu0 %v2110_v57  ;;  %1927 = vmatprep.mubr.msk.bf16.mxu1 %vm2111_vm1, %v2110_v57 }
 0x4b1   : > { %1922 = vmatmul.mubr.msk.bf16.vlgmr.msra.gmra.mxu0 %vm702_vm2, %v987_v22 }
 0x4b2   : > { %1933 = vmatprep.mubr.msk.bf16.mxu0 %vm2111_vm1, %v2110_v57 }
 0x561   : > { %v875_v23 = vpop.f32.mrf.mxu1 }
 0x563   : > { %v1905_v25 = vpop.f32.mrf.mxu1 }
 0x565   : > { %v878_v26 = vpop.f32.mrf.mxu1 }
 0x567   : > { %v1906_v27 = vpop.f32.mrf.mxu1 }
 0x569   : > { %v923_v28 = vpop.f32.mrf.mxu0  ;;  %v980_v34 = vpop.f32.mrf.mxu1 }
 0x56a   : > { %v2344_v37 = vcombine.low %v875_v23, %v923_v28  ;;  %v1036_v38 = vmul.f32 0.25, %v980_v34 }
 0x56b   : > { %v1911_v39 = vpop.f32.mrf.mxu0  ;;  %v1917_v40 = vpop.f32.mrf.mxu1 }
 0x56c   : > { %v1038_v42 = vadd.f32 %v1036_v38, %v698_v29  ;;  %v933_v19 = vpack.c.bf16 %v2344_v37, %v2344_v37 }
 0x56d   : > { %v926_v43 = vpop.f32.mrf.mxu0  ;;  %v983_v44 = vpop.f32.mrf.mxu1 }
 0x56e   : > { %v1042_v45 = vadd.f32 %v1040_v41, %v1038_v42  ;;  %v1830_v44 = vld [vmem:[%s2484_s6] ss:$0 sm:$0xff] }
 0x56f   : > { %v1912_v46 = vpop.f32.mrf.mxu0  ;;  %v1918_v47 = vpop.f32.mrf.mxu1 }
 0x570   : > { %v1044_v48 = vsel %vm806_vm3, %v1042_v45, -inf }
 0x571   : > { %v1030_v49 = vpop.f32.mrf.mxu0  ;;  %1045 = vmax.xlane.f32.xlu0 %v1044_v48 }
 0x572   : > { %v1037_v50 = vmul.f32 0.25, %v1030_v49 }
 0x573   : > { %v1923_v51 = vpop.f32.mrf.mxu0 }
 0x574   : > { %v1039_v53 = vadd.f32 %v1037_v50, %v698_v29 }
 0x575   : > { %v1033_v54 = vpop.f32.mrf.mxu0 }
 0x576   : > { %v1043_v55 = vadd.f32 %v1041_v52, %v1039_v53 }
 0x577   : > { %v1924_v56 = vpop.f32.mrf.mxu0 }
 0x578   : > { %v1047_v58 = vsel %vm806_vm3, %v1043_v55, -inf }
 0x579   : > { %1048 = vmax.xlane.f32.xlu1 %v1047_v58 }
 0x58a   : > { %1116 = vrot.lane.b32.xlu1 %v2285_v24, %s2116_s18 }
 0x5fa   : > { %v1046_v59 = vpop.xlane.xlu0 %1045 }
 0x5fb   : > { %v1050_v60 = vsub.f32 %v1042_v45, %v1046_v59 }
 0x5fd   : > { %v1052_v61 = vmul.f32 1.442695, %v1050_v60 }
 0x5ff   : > { %2053 = vpow2.f32 %v1052_v61 }
 0x602   : > { %v1049_v62 = vpop.xlane.xlu1 %1048 }
 0x603   : > { %v1051_v63 = vsub.f32 %v1043_v55, %v1049_v62 }
 0x605   : > { %v1054_v0 = vmul.f32 1.442695, %v1051_v63 }
 0x606   : > { %v1117_v1 = vpop.permute.xlu1 %1116 }
 0x607   : > { %2055 = vpow2.f32 %v1054_v0  ;;  %v1122_v2 = vsel %vm837_vm4, %v1117_v1, 0 }
 0x608   : > { %1932 = vmatpush3.bf16.msra.mxu0 %v1122_v2 }
 0x609   : > { %1943 = vmatprep.subr.bf16.mxu0 %v2110_v57 }
 0x60c   : > { %v2054_v3 = vpop.eup %2053 }
 0x60d   : > { %v1056_v4 = vsel %vm806_vm3, %v2054_v3, 0.0 }
 0x60e   : > { %1057 = vadd.xlane.f32.xlu0 %v1056_v4 }
 0x614   : > { %v2056_v6 = vpop.eup %2055 }
 0x615   : > { %v1059_v24 = vsel %vm806_vm3, %v2056_v6, 0.0 }
 0x616   : > { %1060 = vadd.xlane.f32.xlu0 %v1059_v24 }
 0x62c   : > { %1068 = vrot.lane.b32.xlu0 %v2282_v21, %s2116_s18 }
 0x697   : > { %v1058_v7 = vpop.xlane.xlu0 %1057 }
 0x698   : > { %2057 = vrcp.f32 %v1058_v7 }
 0x69f   : > { %v1061_v10 = vpop.xlane.xlu0 %1060 }
 0x6a0   : > { %2059 = vrcp.f32 %v1061_v10 }
 0x6a3   : > { %v1069_v11 = vpop.permute.xlu0 %1068 }
 0x6a4   : > { %v1074_v12 = vsel %vm837_vm4, %v1069_v11, 0 }
 0x6a5   : > { %v2058_v13 = vpop.eup %2057  ;;  %1926 = vmatpush3.bf16.msra.mxu1 %v1074_v12 }
 0x6a6   : > { %v1063_v14 = vmul.f32 %v2058_v13, %v2054_v3  ;;  %1937 = vmatprep.subr.bf16.mxu1 %v2110_v57 }
 0x6a8   : > { %v1066_v15 = vpack.c.bf16 %v1063_v14, %v1063_v14 }
 0x6aa   : > { %1928 = vmatmul.mubr.msk.bf16.vlgmr.msra.gmra.mxu1 %vm833_vm5, %v1066_v15 }
 0x6ab   : > { %1939 = vmatprep.mubr.msk.bf16.mxu1 %vm2111_vm1, %v2110_v57  ;;  %1938 = vmatpush3.bf16.msra.mxu1 %v2032_v20  ;;  %v2034_v20 = vld [vmem:[%s2485_s7] sm:$0xff]  }
 0x6ac   : > { %1949 = vmatprep.subr.bf16.mxu1 %v2110_v57 }
 0x6ad   : > { %v2060_v16 = vpop.eup %2059 }
 0x6ae   : > { %v1065_v21 = vmul.f32 %v2060_v16, %v2056_v6 }
 0x6b0   : > { %v1067_v18 = vpack.c.bf16 %v1065_v21, %v1065_v21 }
 0x6b2   : > { %1934 = vmatmul.mubr.msk.bf16.vlgmr.msra.gmra.mxu0 %vm833_vm5, %v1067_v18 }
 0x6b3   : > { %1944 = vmatpush3.bf16.msra.mxu0 %v2031_v17  ;;  %1945 = vmatprep.mubr.msk.bf16.mxu0 %vm2111_vm1, %v2110_v57 }
 0x6b4   : > { %1957 = vmatprep.subr.bf16.mxu0 %v2110_v57 }
 0x6ba   : > { %1946 = vmatmul.mubr.msk.bf16.vlgmr.msra.gmra.mxu0 %vm702_vm2, %v933_v19  ;;  %v2033_v19 = vld [vmem:[%s2485_s7 + $0x8] sm:$0xff]  }
 0x6bb   : > { %1973 = vmatprep.mubr.msk.bf16.mxu0 %vm2111_vm1, %v2110_v57 }
 0x76a   : > { %v1110_v22 = vpop.f32.mrf.mxu1 }
 0x76c   : > { %v1929_v23 = vpop.f32.mrf.mxu1 }
 0x76e   : > { %v1113_v25 = vpop.f32.mrf.mxu1 }
 0x770   : > { %v1930_v26 = vpop.f32.mrf.mxu1 }
 0x772   : > { %v1158_v27 = vpop.f32.mrf.mxu0 }
 0x773   : > { %v1166_v28 = vcombine.low %v1110_v22, %v1158_v27 }
 0x774   : > { %v1935_v29 = vpop.f32.mrf.mxu0 }
 0x775   : > { %v1168_v34 = vpack.c.bf16 %v1166_v28, %v1166_v28 }
 0x776   : > { %v1161_v37 = vpop.f32.mrf.mxu0 }
 0x777   : > { %1940 = vmatmul.mubr.msk.bf16.vlgmr.msra.gmra.mxu1 %vm702_vm2, %v1168_v34 }
 0x778   : > { %v1936_v38 = vpop.f32.mrf.mxu0  ;;  %1953 = vmatprep.mubr.msk.bf16.mxu1 %vm2111_vm1, %v2110_v57  ;;  %1950 = vmatpush3.bf16.msra.mxu1 %v2033_v19 }
 0x779   : > { %1951 = vmatprep.subr.bf16.mxu1 %v2110_v57 }
 0x77a   : > { %v1263_v39 = vpop.f32.mrf.mxu0 }
 0x77c   : > { %v1947_v40 = vpop.f32.mrf.mxu0  ;;  %1952 = vmatpush3.bf16.msra.mxu1 %v2034_v20 }
 0x77e   : > { %v1266_v41 = vpop.f32.mrf.mxu0 }
 0x780   : > { %v1948_v42 = vpop.f32.mrf.mxu0 }
 0x837   : > { %v1214_v43 = vpop.f32.mrf.mxu1 }
 0x838   : > { %v1264_v45 = vadd.f32 %v1263_v39, %v1214_v43 }
 0x839   : > { %v1941_v46 = vpop.f32.mrf.mxu1 }
 0x83a   : > { %v1276_v47 = vadd.f32 %v1830_v44, %v1264_v45 }
 0x83b   : > { %v1217_v48 = vpop.f32.mrf.mxu1 }
 0x83c   : > { %v1278_v49 = vcombine.high %v1276_v47, %v1276_v47  ;;  %v1285_v50 = vrot.slane %v1276_v47, %v2218_v5  ;;  %v2039_v47 = vld [vmem:[%s2487_s9 + $0x18] sm:$0xff]   ;;  %v2040_v48 = vld [vmem:[%s2487_s9 + $0x10] sm:$0xff]  }
 0x83d   : > { %v1942_v51 = vpop.f32.mrf.mxu1 }
 0x83e   : > { %v1292_v52 = vrot.slane %v1278_v49, %v2218_v5  ;;  %v1293_v53 = vcombine.high %v1285_v50, %v1285_v50  ;;  %v1299_v55 = vadd.f32 %v1285_v50, %v2220_v8  ;;  %v2041_v49 = vld [vmem:[%s2487_s9 + $0x8] sm:$0xff]   ;;  %v2042_v50 = vld [vmem:[%s2487_s9] sm:$0xff]  }
 0x83f   : > { %v1831_v51 = vld [vmem:[%s2486_s8] ss:$0 sm:$0xff] }
 0x840   : > { %v1294_v54 = vcombine.high %v1292_v52, %v1292_v52  ;;  %v1300_v56 = vadd.f32 %v1293_v53, %v2222_v9  ;;  %v1301_v58 = vadd.f32 %v1292_v52, %v2243_v36 }
 0x842   : > { %v1302_v59 = vadd.f32 %v1294_v54, %v2241_v35  ;;  %v1307_v60 = vcombine.low %v1299_v55, %v1300_v56 }
 0x844   : > { %v1308_v61 = vcombine.low %v1301_v58, %v1302_v59  ;;  %v1315_v62 = vrot.slane %v1307_v60, %v2218_v5 }
 0x846   : > { %v1322_v63 = vrot.slane %v1308_v61, %v2218_v5 }
 0x848   : > { %v2391_v0 = vcombine.low %v1315_v62, %v1322_v63 }
 0x84a   : > { %v1325_v1 = vsel %vm491_vm0, %v2391_v0, 0.0 }
 0x84b   : > { %1326 = vadd.xlane.f32.xlu1 %v1325_v1 }
 0x8d4   : > { %v1327_v2 = vpop.xlane.xlu1 %1326 }
 0x8d5   : > { %v1328_v8 = vmul.f32 0.03125, %v1327_v2 }
 0x8d7   : > { %v1336_v9 = vrot.slane %v1328_v8, %v2233_v30  ;;  %v1343_v36 = vrot.slane %v1328_v8, %v2235_v31  ;;  %v1350_v35 = vrot.slane %v1328_v8, %v2237_v32  ;;  %v1357_v3 = vrot.slane %v1328_v8, %v2239_v33 }
 0x8d9   : > { %v1362_v4 = vsub.f32 %v1299_v55, %v1336_v9  ;;  %v1363_v6 = vsub.f32 %v1300_v56, %v1343_v36  ;;  %v1364_v24 = vsub.f32 %v1301_v58, %v1350_v35  ;;  %v1365_v7 = vsub.f32 %v1302_v59, %v1357_v3  ;;  %v1835_v9 = vld [vmem:[%s2488_s10] ss:$0 sm:$0xff] }
 0x8db   : > { %v1366_v10 = vmul.f32 %v1362_v4, %v1362_v4  ;;  %v1367_v11 = vmul.f32 %v1363_v6, %v1363_v6  ;;  %v1368_v12 = vmul.f32 %v1364_v24, %v1364_v24  ;;  %v1369_v13 = vmul.f32 %v1365_v7, %v1365_v7 }
 0x8dd   : > { %v1374_v14 = vcombine.low %v1366_v10, %v1367_v11  ;;  %v1375_v15 = vcombine.low %v1368_v12, %v1369_v13 }
 0x8df   : > { %v1382_v16 = vrot.slane %v1374_v14, %v2218_v5  ;;  %v1389_v21 = vrot.slane %v1375_v15, %v2218_v5 }
 0x8e1   : > { %v1390_v17 = vcombine.low %v1382_v16, %v1389_v21 }
 0x8e3   : > { %v1392_v18 = vsel %vm491_vm0, %v1390_v17, 0.0 }
 0x8e4   : > { %1393 = vadd.xlane.f32.xlu0 %v1392_v18 }
 0x96d   : > { %v1394_v22 = vpop.xlane.xlu0 %1393 }
 0x96e   : > { %v1395_v23 = vmul.f32 0.03125, %v1394_v22 }
 0x970   : > { %v1396_v25 = vadd.f32 1e-05, %v1395_v23 }
 0x972   : > { %2061 = vrsqrt.f32 %v1396_v25 }
 0x97f   : > { %v2062_v26 = vpop.eup %2061 }
 0x980   : > { %v1405_v27 = vrot.slane %v2062_v26, %v2233_v30  ;;  %v1412_v28 = vrot.slane %v2062_v26, %v2235_v31  ;;  %v1419_v29 = vrot.slane %v2062_v26, %v2237_v32  ;;  %v1426_v34 = vrot.slane %v2062_v26, %v2239_v33  ;;  %v2035_v30 = vld [vmem:[%s2487_s9 + $0x38] sm:$0xff]   ;;  %v2036_v31 = vld [vmem:[%s2487_s9 + $0x30] sm:$0xff]   ;;  %v2037_v32 = vld [vmem:[%s2487_s9 + $0x28] sm:$0xff]  }
 0x981   : > { %1958 = vmatpush3.bf16.msra.mxu0 %v2035_v30  ;;  %v2038_v33 = vld [vmem:[%s2487_s9 + $0x20] sm:$0xff]  }
 0x982   : > { %v1431_v37 = vmul.f32 %v1405_v27, %v1362_v4  ;;  %v1432_v38 = vmul.f32 %v1412_v28, %v1363_v6  ;;  %v1433_v39 = vmul.f32 %v1419_v29, %v1364_v24  ;;  %v1434_v40 = vmul.f32 %v1426_v34, %v1365_v7  ;;  %1959 = vmatprep.subr.bf16.mxu0 %v2110_v57 }
 0x984   : > { %v1439_v41 = vcombine.low %v1431_v37, %v1432_v38  ;;  %v1440_v42 = vcombine.low %v1433_v39, %v1434_v40 }
 0x985   : > { %1960 = vmatpush3.bf16.msra.mxu0 %v2036_v31 }
 0x986   : > { %v1447_v43 = vrot.slane %v1439_v41, %v2218_v5  ;;  %v1454_v44 = vrot.slane %v1440_v42, %v2218_v5  ;;  %1961 = vmatprep.subr.bf16.mxu0 %v2110_v57 }
 0x988   : > { %v1455_v45 = vcombine.low %v1447_v43, %v1454_v44 }
 0x989   : > { %1962 = vmatpush3.bf16.msra.mxu0 %v2037_v32 }
 0x98a   : > { %v1457_v46 = vpack.c.bf16 %v1455_v45, %v1455_v45  ;;  %1963 = vmatprep.subr.bf16.mxu0 %v2110_v57 }
 0x98c   : > { %1954 = vmatmul.mubr.msk.bf16.vlgmr.msra.gmra.mxu1 %vm491_vm0, %v1457_v46 }
 0x98d   : > { %1964 = vmatpush3.bf16.msra.mxu0 %v2038_v33 }
 0x98e   : > { %1965 = vmatprep.subr.bf16.mxu0 %v2110_v57 }
 0x991   : > { %1966 = vmatpush3.bf16.msra.mxu0 %v2039_v47 }
 0x992   : > { %1967 = vmatprep.subr.bf16.mxu0 %v2110_v57 }
 0x995   : > { %1968 = vmatpush3.bf16.msra.mxu0 %v2040_v48 }
 0x996   : > { %1969 = vmatprep.subr.bf16.mxu0 %v2110_v57 }
 0x999   : > { %1970 = vmatpush3.bf16.msra.mxu0 %v2041_v49 }
 0x99a   : > { %1971 = vmatprep.subr.bf16.mxu0 %v2110_v57 }
 0x99d   : > { %1972 = vmatpush3.bf16.msra.mxu0 %v2042_v50 }
 0xa4c   : > { %v1518_v52 = vpop.f32.mrf.mxu1 }
 0xa4d   : > { %v1519_v53 = vadd.f32 %v1831_v51, %v1518_v52 }
 0xa4e   : > { %v1955_v54 = vpop.f32.mrf.mxu1 }
 0xa4f   : > { %v1525_v55 = vmul.f32 0.044715, %v1519_v53  ;;  %v1524_v1 = vmul.f32 0.5, %v1519_v53 }
 0xa50   : > { %v1521_v56 = vpop.f32.mrf.mxu1 }
 0xa51   : > { %v1526_v58 = vmul.f32 %v1525_v55, %v1519_v53 }
 0xa52   : > { %v1956_v59 = vpop.f32.mrf.mxu1 }
 0xa53   : > { %v1527_v60 = vmul.f32 %v1526_v58, %v1519_v53 }
 0xa55   : > { %v1528_v61 = vadd.f32 %v1527_v60, %v1519_v53 }
 0xa57   : > { %v1529_v62 = vmul.f32 0.7978846, %v1528_v61 }
 0xa59   : > { %2063 = vtanh.f32 %v1529_v62 }
 0xa66   : > { %v2064_v63 = vpop.eup %2063 }
 0xa67   : > { %v1531_v57 = vadd.f32 1.0, %v2064_v63 }
 0xa69   : > { %v1532_v2 = vmul.f32 %v1531_v57, %v1524_v1 }
 0xa6b   : > { %v1533_v8 = vpack.c.bf16 %v1532_v2, %v1532_v2 }
 0xa6d   : > { %1974 = vmatmul.mubr.bf16.vlgmr.msra.gmra.mxu0 %v1533_v8 }
 0xb2d   : > { %v1639_v36 = vpop.f32.mrf.mxu0 }
 0xb2e   : > { %v1640_v35 = vadd.f32 %v1835_v9, %v1639_v36 }
 0xb2f   : > { %v1975_v3 = vpop.f32.mrf.mxu0 }
 0xb30   : > { %v1645_v4 = vadd.f32 %v1640_v35, %v2391_v0 }
 0xb31   : > { %v1642_v6 = vpop.f32.mrf.mxu0 }
 0xb32   : > { %v1647_v24 = vcombine.high %v1645_v4, %v1645_v4  ;;  %v1654_v7 = vrot.slane %v1645_v4, %v2218_v5 }
 0xb33   : > { %v1976_v10 = vpop.f32.mrf.mxu0 }
 0xb34   : > { %v1655_v11 = vcombine.high %v1654_v7, %v1654_v7  ;;  %v1658_v12 = vpack.c.bf16 %v1654_v7, %v1654_v7  ;;  %v1669_v13 = vrot.slane %v1647_v24, %v2218_v5 }
 0xb36   : > { %v1659_v14 = vpack.c.bf16 %v1655_v11, %v1655_v11  ;;  %1661 = vst.msk [vmem:[%s446_s15] sm:$0x1] %vm1660_vm6, %v1658_v12  ;;  %v1670_v15 = vcombine.high %v1669_v13, %v1669_v13  ;;  %v1673_v16 = vpack.c.bf16 %v1669_v13, %v1669_v13 }
 0xb38   : > { %1662 = vst.msk [vmem:[%s446_s15 + $0x2] sm:$0x1] %vm1660_vm6, %v1659_v14  ;;  %v1674_v0 = vpack.c.bf16 %v1670_v15, %v1670_v15  ;;  %v1683_v21 = vrot.slane %v1673_v16, %v2218_v5 }
 0xb3a   : > { %v1690_v17 = vrot.slane %v1674_v0, %v2218_v5  ;;  %v1691_v18 = vrot.slane %v1683_v21, 7 }
 0xb3c   : > { %v1692_v19 = vrot.slane %v1690_v17, 7  ;;  %1696 = vst.msk [vmem:[%s446_s15] sm:$0x2] %vm1695_vm7, %v1691_v18 }
 0xb3e   : > { %1697 = vst.msk [vmem:[%s446_s15 + $0x2] sm:$0x2] %vm1695_vm7, %v1692_v19 }
 0xb3f PF: > { %s21_s21 = sadd.s32 1, %s2103_s21   ;;  %s2490_s17 = smov %s2095_s19 }
 0xb40   : > { %p18_p7 = scmp.ge.s32.totalorder %s21_s21, 6   ;;  %s2491_s18 = smov %s2099_s20 }
 0xb41   : > { %s2492_s19 = smov %s2495_s22  ;;  %s2493_s20 = smov %s2499_s23 }
 0xb42   :  { %20 = sbr.rel (!%p18_p7) target bundleno = 3 (0x3), region = 97 }

// kernel: cs_unet_forward.15
= control target key start
LH: loop header
LB: loop body
LE: loop exit
PB: predicated region body
PF: predicated region fallthrough
CT: control target
= control target key end

     0   :  { %v198_v2 = vmov 0.0   ;;  %vm199_vm0 = vmmov 0   ;;  %vm142_vm1 = vcmask 519168   ;;  %s253_s0 = inlined_call_operand.vmem [shape: bf16[8,128], index: 0, kind: input, shape index: {}]   ;;  %s254_s1 = inlined_call_operand.vmem [shape: bf16[128,64], index: 1, kind: input, shape index: {}]   ;;  %s255_s2 = inlined_call_operand.vmem [shape: f32[1,64], index: 2, kind: input, shape index: {}]   ;;  %s256_s3 = inlined_call_operand.vmem [shape: bf16[8,64], index: 3, kind: output, shape index: {}]  }
   0x1   :  { %v15_v0 = vld [vmem:[%s253_s0] sm:$0xf]  ;;  %166 = vmatprep.subr.bf16.mxu0 %v198_v2  ;;  %v188_v3 = vld [vmem:[%s254_s1 + $0x38] sm:$0xff]   ;;  %v189_v4 = vld [vmem:[%s254_s1 + $0x30] sm:$0xff]   ;;  %182 = vmatprep.mubr.msk.bf16.mxu0 %vm199_vm0, %v198_v2 }
   0x2   :  { %v16_v1 = vunpack.c.l.bf16 %v15_v0  ;;  %167 = vmatpush3.bf16.msra.mxu0 %v188_v3  ;;  %v190_v5 = vld [vmem:[%s254_s1 + $0x28] sm:$0xff]   ;;  %v191_v10 = vld [vmem:[%s254_s1 + $0x20] sm:$0xff]   ;;  %v192_v11 = vld [vmem:[%s254_s1 + $0x18] sm:$0xff]  }
   0x3   :  { %168 = vmatprep.subr.bf16.mxu0 %v198_v2  ;;  %v193_v12 = vld [vmem:[%s254_s1 + $0x10] sm:$0xff]   ;;  %v194_v13 = vld [vmem:[%s254_s1 + $0x8] sm:$0xff]   ;;  %v195_v14 = vld [vmem:[%s254_s1] sm:$0xff]  }
   0x4   :  { %17 = vadd.xlane.f32.xlu0 %v16_v1  ;;  %v148_v21 = vld [vmem:[%s255_s2] ss:$0 sm:$0xff] }
   0x6   :  { %169 = vmatpush3.bf16.msra.mxu0 %v189_v4 }
   0x7   :  { %170 = vmatprep.subr.bf16.mxu0 %v198_v2 }
   0xa   :  { %171 = vmatpush3.bf16.msra.mxu0 %v190_v5 }
   0xb   :  { %172 = vmatprep.subr.bf16.mxu0 %v198_v2 }
   0xe   :  { %173 = vmatpush3.bf16.msra.mxu0 %v191_v10 }
   0xf   :  { %174 = vmatprep.subr.bf16.mxu0 %v198_v2 }
  0x12   :  { %175 = vmatpush3.bf16.msra.mxu0 %v192_v11 }
  0x13   :  { %176 = vmatprep.subr.bf16.mxu0 %v198_v2 }
  0x16   :  { %177 = vmatpush3.bf16.msra.mxu0 %v193_v12 }
  0x17   :  { %178 = vmatprep.subr.bf16.mxu0 %v198_v2 }
  0x1a   :  { %179 = vmatpush3.bf16.msra.mxu0 %v194_v13 }
  0x1b   :  { %180 = vmatprep.subr.bf16.mxu0 %v198_v2 }
  0x1e   :  { %181 = vmatpush3.bf16.msra.mxu0 %v195_v14 }
  0x8d   :  { %v18_v6 = vpop.xlane.xlu0 %17 }
  0x8e   :  { %v20_v7 = vmul.f32 0.0078125, %v18_v6 }
  0x90   :  { %v21_v8 = vsub.f32 %v16_v1, %v20_v7 }
  0x92   :  { %v22_v9 = vmul.f32 %v21_v8, %v21_v8 }
  0x94   :  { %23 = vadd.xlane.f32.xlu0 %v22_v9 }
 0x11d   :  { %v24_v15 = vpop.xlane.xlu0 %23 }
 0x11e   :  { %v25_v16 = vmul.f32 0.0078125, %v24_v15 }
 0x120   :  { %v26_v17 = vadd.f32 1e-05, %v25_v16 }
 0x122   :  { %196 = vrsqrt.f32 %v26_v17 }
 0x12f   :  { %v197_v18 = vpop.eup %196 }
 0x130   :  { %v28_v19 = vmul.f32 %v197_v18, %v21_v8 }
 0x132   :  { %v29_v20 = vpack.c.bf16 %v28_v19, %v28_v19 }
 0x134   :  { %183 = vmatmul.mubr.bf16.vlgmr.msra.gmra.mxu0 %v29_v20 }
 0x1f4   :  { %v135_v22 = vpop.f32.mrf.mxu0 }
 0x1f5   :  { %v136_v23 = vadd.f32 %v148_v21, %v135_v22 }
 0x1f6   :  { %v184_v24 = vpop.f32.mrf.mxu0 }
 0x1f7   :  { %v141_v25 = vpack.c.bf16 %v136_v23, %v136_v23 }
 0x1f8   :  { %v138_v26 = vpop.f32.mrf.mxu0 }
 0x1f9   :  { %143 = vst.msk [vmem:[%s256_s3] sm:$0xf] %vm142_vm1, %v141_v25 }
 0x1fa   :  { %v185_v27 = vpop.f32.mrf.mxu0 }

// kernel: cs_unet_forward.18
= control target key start
LH: loop header
LB: loop body
LE: loop exit
PB: predicated region body
PF: predicated region fallthrough
CT: control target
= control target key end

     0   :  { %vm17_vm0 = vcmask 523264   ;;  %v152_v8 = vmov 0.0   ;;  %vm153_vm1 = vmmov 0   ;;  %s198_s0 = inlined_call_operand.vmem [shape: bf16[8,64], index: 0, kind: input, shape index: {}]   ;;  %s199_s1 = inlined_call_operand.vmem [shape: bf16[64,128], index: 1, kind: input, shape index: {}]   ;;  %s200_s2 = inlined_call_operand.vmem [shape: f32[1,128], index: 2, kind: input, shape index: {}]   ;;  %s201_s3 = inlined_call_operand.vmem [shape: bf16[8,128], index: 3, kind: output, shape index: {}]  }
   0x1   :  { %v15_v0 = vld [vmem:[%s198_s0] sm:$0xf]  ;;  %132 = vmatprep.subr.bf16.mxu0 %v152_v8  ;;  %v146_v9 = vld [vmem:[%s199_s1 + $0x18] sm:$0xff]   ;;  %140 = vmatprep.mubr.msk.bf16.mxu0 %vm153_vm1, %v152_v8  ;;  %v147_v10 = vld [vmem:[%s199_s1 + $0x10] sm:$0xff]  }
   0x2   :  { %v16_v1 = vunpack.c.l.bf16 %v15_v0  ;;  %133 = vmatpush3.bf16.msra.mxu0 %v146_v9  ;;  %v148_v11 = vld [vmem:[%s199_s1 + $0x8] sm:$0xff]   ;;  %v149_v12 = vld [vmem:[%s199_s1] sm:$0xff]  }
   0x3   :  { %134 = vmatprep.subr.bf16.mxu0 %v152_v8  ;;  %v121_v19 = vld [vmem:[%s200_s2] ss:$0 sm:$0xff] }
   0x4   :  { %v18_v2 = vsel %vm17_vm0, %v16_v1, 0.0 }
   0x5   :  { %19 = vadd.xlane.f32.xlu0 %v18_v2 }
   0x6   :  { %135 = vmatpush3.bf16.msra.mxu0 %v147_v10 }
   0x7   :  { %136 = vmatprep.subr.bf16.mxu0 %v152_v8 }
   0xa   :  { %137 = vmatpush3.bf16.msra.mxu0 %v148_v11 }
   0xb   :  { %138 = vmatprep.subr.bf16.mxu0 %v152_v8 }
   0xe   :  { %139 = vmatpush3.bf16.msra.mxu0 %v149_v12 }
  0x8e   :  { %v20_v3 = vpop.xlane.xlu0 %19 }
  0x8f   :  { %v22_v4 = vmul.f32 0.015625, %v20_v3 }
  0x91   :  { %v23_v5 = vsub.f32 %v16_v1, %v22_v4 }
  0x93   :  { %v24_v6 = vmul.f32 %v23_v5, %v23_v5 }
  0x95   :  { %v25_v7 = vsel %vm17_vm0, %v24_v6, 0.0 }
  0x96   :  { %26 = vadd.xlane.f32.xlu0 %v25_v7 }
 0x11f   :  { %v27_v13 = vpop.xlane.xlu0 %26 }
 0x120   :  { %v28_v14 = vmul.f32 0.015625, %v27_v13 }
 0x122   :  { %v29_v15 = vadd.f32 1e-05, %v28_v14 }
 0x124   :  { %150 = vrsqrt.f32 %v29_v15 }
 0x131   :  { %v151_v16 = vpop.eup %150 }
 0x132   :  { %v31_v17 = vmul.f32 %v151_v16, %v23_v5 }
 0x134   :  { %v32_v18 = vpack.c.bf16 %v31_v17, %v31_v17 }
 0x136   :  { %141 = vmatmul.mubr.msk.bf16.vlgmr.msra.gmra.mxu0 %vm17_vm0, %v32_v18 }
 0x1f6   :  { %v109_v20 = vpop.f32.mrf.mxu0 }
 0x1f7   :  { %v110_v21 = vadd.f32 %v121_v19, %v109_v20 }
 0x1f8   :  { %v142_v22 = vpop.f32.mrf.mxu0 }
 0x1f9   :  { %v115_v23 = vpack.c.bf16 %v110_v21, %v110_v21 }
 0x1fa   :  { %v112_v24 = vpop.f32.mrf.mxu0 }
 0x1fb   :  { %116 = vst [vmem:[%s201_s3] sm:$0xf] %v115_v23 }
 0x1fc   :  { %v143_v25 = vpop.f32.mrf.mxu0 }

// kernel: cs_unet_forward.19
= control target key start
LH: loop header
LB: loop body
LE: loop exit
PB: predicated region body
PF: predicated region fallthrough
CT: control target
= control target key end

     0   :  { %vm29_vm0 = vcmask 261120   ;;  %vm268_vm1 = vcmask 257024   ;;  %s428_s0 = inlined_call_operand.vmem [shape: bf16[32,32], index: 0, kind: input, shape index: {}]   ;;  %s429_s3 = inlined_call_operand.vmem [shape: bf16[32,32], index: 3, kind: input, shape index: {}]   ;;  %s430_s2 = inlined_call_operand.vmem [shape: bf16[32,32], index: 2, kind: input, shape index: {}]   ;;  %s431_s1 = inlined_call_operand.vmem [shape: bf16[32,32], index: 1, kind: input, shape index: {}]   ;;  %s432_s4 = inlined_call_operand.vmem [shape: f32[1,32], index: 4, kind: input, shape index: {}]   ;;  %s433_s5 = inlined_call_operand.vmem [shape: bf16[32,32], index: 5, kind: output, shape index: {}]  }
   0x1   :  { %v297_v0 = vld [vmem:[%s428_s0] sm:$0xff]   ;;  %v304_v1 = vld [vmem:[%s428_s0 + $0x8] sm:$0xff]  }
   0x2   :  { %v298_v2 = vunpack.c.l.bf16 %v297_v0  ;;  %v302_v3 = vunpack.c.l.bf16 %v304_v1  ;;  %v299_v4 = vunpack.c.h.bf16 %v297_v0  ;;  %v303_v5 = vunpack.c.h.bf16 %v304_v1  ;;  %v329_v30 = vld [vmem:[%s429_s3 + $0x8] sm:$0xff]   ;;  %v330_v31 = vld [vmem:[%s429_s3] sm:$0xff]  }
   0x3   :  { %313 = vmatprep.subr.bf16.mxu0 %v329_v30  ;;  %v331_v32 = vld [vmem:[%s430_s2 + $0x8] sm:$0xff]   ;;  %v332_v33 = vld [vmem:[%s431_s1] sm:$0xff]  }
   0x4   :  { %v30_v6 = vsel %vm29_vm0, %v298_v2, 0.0  ;;  %v36_v7 = vsel %vm29_vm0, %v302_v3, 0.0  ;;  %v33_v8 = vsel %vm29_vm0, %v299_v4, 0.0  ;;  %v39_v9 = vsel %vm29_vm0, %v303_v5, 0.0  ;;  %314 = vmatpush3.bf16.msra.mxu0 %v329_v30  ;;  %321 = vmatprep.subr.bf16.mxu1 %v331_v32  ;;  %v334_v34 = vld [vmem:[%s430_s2] sm:$0xff]   ;;  %v333_v35 = vld [vmem:[%s431_s1 + $0x8] sm:$0xff]  }
   0x5   :  { %31 = vadd.xlane.f32.xlu0 %v30_v6  ;;  %37 = vadd.xlane.f32.xlu1 %v36_v7  ;;  %v287_v61 = vld [vmem:[%s432_s4] ss:$0 sm:$0xff] }
   0x6   :  { %315 = vmatprep.subr.bf16.mxu0 %v330_v31  ;;  %317 = vmatprep.mubr.msk.bf16.mxu0 %vm29_vm0, %v332_v33 }
   0x7   :  { %322 = vmatpush3.bf16.msra.mxu1 %v331_v32 }
   0x8   :  { %316 = vmatpush3.bf16.msra.mxu0 %v330_v31  ;;  %323 = vmatprep.subr.bf16.mxu1 %v334_v34 }
   0x9   :  { %34 = vadd.xlane.f32.xlu0 %v33_v8  ;;  %40 = vadd.xlane.f32.xlu1 %v39_v9 }
   0xb   :  { %324 = vmatpush3.bf16.msra.mxu1 %v334_v34  ;;  %318 = vmatmul.mubr.msk.bf16.vlgmr.msra.gmra.mxu0 %vm29_vm0, %v333_v35 }
  0x8e   :  { %v32_v10 = vpop.xlane.xlu0 %31  ;;  %v38_v11 = vpop.xlane.xlu1 %37 }
  0x8f   :  { %v43_v12 = vmul.f32 0.03125, %v32_v10  ;;  %v45_v13 = vmul.f32 0.03125, %v38_v11 }
  0x91   :  { %v47_v14 = vsub.f32 %v298_v2, %v43_v12  ;;  %v49_v15 = vsub.f32 %v302_v3, %v45_v13 }
  0x92   :  { %v35_v16 = vpop.xlane.xlu0 %34  ;;  %v41_v17 = vpop.xlane.xlu1 %40 }
  0x93   :  { %v44_v18 = vmul.f32 0.03125, %v35_v16  ;;  %v46_v19 = vmul.f32 0.03125, %v41_v17  ;;  %v51_v20 = vmul.f32 %v47_v14, %v47_v14  ;;  %v53_v21 = vmul.f32 %v49_v15, %v49_v15 }
  0x95   :  { %v48_v22 = vsub.f32 %v299_v4, %v44_v18  ;;  %v50_v23 = vsub.f32 %v303_v5, %v46_v19  ;;  %v55_v24 = vsel %vm29_vm0, %v51_v20, 0.0  ;;  %v61_v25 = vsel %vm29_vm0, %v53_v21, 0.0 }
  0x96   :  { %56 = vadd.xlane.f32.xlu0 %v55_v24 }
  0x97   :  { %v52_v26 = vmul.f32 %v48_v22, %v48_v22  ;;  %v54_v27 = vmul.f32 %v50_v23, %v50_v23 }
  0x99   :  { %v58_v28 = vsel %vm29_vm0, %v52_v26, 0.0  ;;  %v64_v29 = vsel %vm29_vm0, %v54_v27, 0.0 }
  0x9a   :  { %62 = vadd.xlane.f32.xlu0 %v61_v25  ;;  %59 = vadd.xlane.f32.xlu1 %v58_v28 }
  0x9e   :  { %65 = vadd.xlane.f32.xlu1 %v64_v29 }
  0xcb   :  { %v319_v58 = vpop.f32.mrf.mxu0 }
  0xcd   :  { %v159_v59 = vpop.f32.mrf.mxu0 }
  0xcf   :  { %v320_v63 = vpop.f32.mrf.mxu0 }
  0xd1   :  { %v162_v7 = vpop.f32.mrf.mxu0 }
 0x11f   :  { %v57_v36 = vpop.xlane.xlu0 %56 }
 0x120   :  { %v67_v37 = vmul.f32 0.03125, %v57_v36 }
 0x122   :  { %v71_v38 = vadd.f32 1e-05, %v67_v37 }
 0x123   :  { %v60_v39 = vpop.xlane.xlu1 %59  ;;  %v63_v40 = vpop.xlane.xlu0 %62 }
 0x124   :  { %v68_v41 = vmul.f32 0.03125, %v60_v39  ;;  %v69_v42 = vmul.f32 0.03125, %v63_v40  ;;  %335 = vrsqrt.f32 %v71_v38 }
 0x126   :  { %v72_v43 = vadd.f32 1e-05, %v68_v41  ;;  %v73_v44 = vadd.f32 1e-05, %v69_v42 }
 0x127   :  { %v66_v45 = vpop.xlane.xlu1 %65 }
 0x128   :  { %337 = vrsqrt.f32 %v72_v43  ;;  %v70_v46 = vmul.f32 0.03125, %v66_v45 }
 0x129   :  { %339 = vrsqrt.f32 %v73_v44 }
 0x12a   :  { %v74_v47 = vadd.f32 1e-05, %v70_v46 }
 0x12c   :  { %341 = vrsqrt.f32 %v74_v47 }
 0x131   :  { %v336_v48 = vpop.eup %335 }
 0x132   :  { %v79_v50 = vmul.f32 %v336_v48, %v47_v14 }
 0x135   :  { %v338_v49 = vpop.eup %337 }
 0x136   :  { %v80_v51 = vmul.f32 %v338_v49, %v48_v22  ;;  %v340_v52 = vpop.eup %339 }
 0x137   :  { %v81_v55 = vmul.f32 %v340_v52, %v49_v15 }
 0x138   :  { %v83_v53 = vpack.c.bf16 %v80_v51, %v79_v50 }
 0x139   :  { %v342_v54 = vpop.eup %341 }
 0x13a   :  { %325 = vmatprep.mubr.msk.bf16.mxu1 %vm29_vm0, %v83_v53  ;;  %v82_v56 = vmul.f32 %v342_v54, %v50_v23 }
 0x13c   :  { %v84_v57 = vpack.c.bf16 %v82_v56, %v81_v55 }
 0x13e   :  { %326 = vmatmul.mubr.msk.bf16.vlgmr.msra.gmra.mxu1 %vm29_vm0, %v84_v57 }
 0x1fe   :  { %v327_v60 = vpop.f32.mrf.mxu1 }
 0x1ff   :  { %v235_v62 = vadd.f32 %v327_v60, %v319_v58 }
 0x200   :  { %v226_v0 = vpop.f32.mrf.mxu1 }
 0x201   :  { %v250_v1 = vadd.f32 %v287_v61, %v235_v62  ;;  %v227_v2 = vadd.f32 %v226_v0, %v159_v59 }
 0x202   :  { %v328_v3 = vpop.f32.mrf.mxu1 }
 0x203   :  { %v294_v4 = vpack.c.bf16 %v250_v1, %v250_v1  ;;  %v248_v5 = vadd.f32 %v287_v61, %v227_v2  ;;  %v238_v6 = vadd.f32 %v328_v3, %v320_v63 }
 0x204   :  { %v229_v8 = vpop.f32.mrf.mxu1 }
 0x205   :  { %271 = vst.msk [vmem:[%s433_s5 + $0x8] sm:$0xf] %vm268_vm1, %v294_v4  ;;  %v292_v9 = vpack.c.bf16 %v248_v5, %v248_v5  ;;  %v251_v10 = vadd.f32 %v287_v61, %v238_v6  ;;  %v230_v11 = vadd.f32 %v229_v8, %v162_v7 }
 0x207   :  { %269 = vst.msk [vmem:[%s433_s5] sm:$0xf] %vm268_vm1, %v292_v9  ;;  %v295_v12 = vpack.c.bf16 %v251_v10, %v251_v10  ;;  %v249_v13 = vadd.f32 %v287_v61, %v230_v11 }
 0x209   :  { %272 = vst.msk [vmem:[%s433_s5 + $0xc] sm:$0xf] %vm268_vm1, %v295_v12  ;;  %v293_v14 = vpack.c.bf16 %v249_v13, %v249_v13 }
 0x20b   :  { %270 = vst.msk [vmem:[%s433_s5 + $0x4] sm:$0xf] %vm268_vm1, %v293_v14 }

// kernel: cs_unet_forward.22
= control target key start
LH: loop header
LB: loop body
LE: loop exit
PB: predicated region body
PF: predicated region fallthrough
CT: control target
= control target key end

     0   :  { %vm23_vm0 = vcmask 261120   ;;  %v379_v31 = vmov 0   ;;  %v89_v61 = vlaneseq  ;;  %s474_s0 = inlined_call_operand.vmem [shape: bf16[32,32], index: 0, kind: input, shape index: {}]   ;;  %s475_s1 = inlined_call_operand.vmem [shape: bf16[32,512], index: 1, kind: input, shape index: {}]   ;;  %s476_s2 = inlined_call_operand.vmem [shape: f32[1,512], index: 2, kind: input, shape index: {}]   ;;  %s477_s3 = inlined_call_operand.vmem [shape: bf16[32,512], index: 3, kind: output, shape index: {}]  }
   0x1   :  { %v350_v0 = vld [vmem:[%s474_s0] sm:$0xff]   ;;  %v357_v1 = vld [vmem:[%s474_s0 + $0x8] sm:$0xff]   ;;  %187 = vmatprep.mubr.bf16.mxu0 %v379_v31  ;;  %240 = vmatprep.mubr.bf16.mxu1 %v379_v31 }
   0x2   :  { %v351_v2 = vunpack.c.l.bf16 %v350_v0  ;;  %v355_v3 = vunpack.c.l.bf16 %v357_v1  ;;  %v352_v4 = vunpack.c.h.bf16 %v350_v0  ;;  %v356_v5 = vunpack.c.h.bf16 %v357_v1  ;;  %v359_v30 = vld [vmem:[%s475_s1 + $0x24] ss:$16 sps:$4 sm:$0xff]   ;;  %v361_v32 = vld [vmem:[%s475_s1 + $0x2c] ss:$16 sps:$4 sm:$0xff]   ;;  %v363_v33 = vld [vmem:[%s475_s1 + $0x20] ss:$16 sps:$4 sm:$0xff]  }
   0x3   :  { %167 = vmatprep.subr.bf16.mxu0 %v359_v30  ;;  %v364_v34 = vld [vmem:[%s475_s1 + $0x28] ss:$16 sps:$4 sm:$0xff]   ;;  %220 = vmatprep.subr.bf16.mxu1 %v361_v32  ;;  %v365_v35 = vld [vmem:[%s475_s1 + $0x4] ss:$16 sps:$4 sm:$0xff]   ;;  %v367_v36 = vld [vmem:[%s475_s1 + $0xc] ss:$16 sps:$4 sm:$0xff]  }
   0x4   :  { %v24_v6 = vsel %vm23_vm0, %v351_v2, 0.0  ;;  %v30_v7 = vsel %vm23_vm0, %v355_v3, 0.0  ;;  %v27_v8 = vsel %vm23_vm0, %v352_v4, 0.0  ;;  %v33_v9 = vsel %vm23_vm0, %v356_v5, 0.0  ;;  %168 = vmatpush1.bf16.msra.mxu0 %v363_v33  ;;  %221 = vmatpush1.bf16.msra.mxu1 %v364_v34  ;;  %v369_v37 = vld [vmem:[%s475_s1] ss:$16 sps:$4 sm:$0xff]  }
   0x5   :  { %25 = vadd.xlane.f32.xlu0 %v24_v6  ;;  %31 = vadd.xlane.f32.xlu1 %v30_v7  ;;  %v370_v38 = vld [vmem:[%s475_s1 + $0x8] ss:$16 sps:$4 sm:$0xff]   ;;  %v90_v62 = vshrl.u32 %v89_v61, 7 }
   0x6   :  { %169 = vmatprep.subr.bf16.mxu0 %v365_v35  ;;  %222 = vmatprep.subr.bf16.mxu1 %v367_v36 }
   0x7   :  { %v91_v63 = vsub.s32 0, %v90_v62  ;;  %v99_v0 = vsub.s32 2, %v90_v62  ;;  %v95_v1 = vsub.s32 1, %v90_v62 }
   0x8   :  { %170 = vmatpush1.bf16.msra.mxu0 %v369_v37  ;;  %223 = vmatpush1.bf16.msra.mxu1 %v370_v38 }
   0x9   :  { %28 = vadd.xlane.f32.xlu0 %v27_v8  ;;  %34 = vadd.xlane.f32.xlu1 %v33_v9 }
  0x8e   :  { %v26_v10 = vpop.xlane.xlu0 %25  ;;  %v32_v11 = vpop.xlane.xlu1 %31 }
  0x8f   :  { %v37_v12 = vmul.f32 0.03125, %v26_v10  ;;  %v39_v13 = vmul.f32 0.03125, %v32_v11 }
  0x91   :  { %v41_v14 = vsub.f32 %v351_v2, %v37_v12  ;;  %v410_v15 = vsub.f32 %v355_v3, %v39_v13  ;;  %v103_v2 = vsub.s32 3, %v90_v62  ;;  %v87_v3 = vld [vmem:[%s476_s2] sm:$0xf] }
  0x92   :  { %v29_v16 = vpop.xlane.xlu0 %28  ;;  %v35_v17 = vpop.xlane.xlu1 %34  ;;  %v96_v6 = vrot.slane %v87_v3, %v95_v1 }
  0x93   :  { %v38_v18 = vmul.f32 0.03125, %v29_v16  ;;  %v40_v19 = vmul.f32 0.03125, %v35_v17  ;;  %v45_v20 = vmul.f32 %v41_v14, %v41_v14  ;;  %v47_v21 = vmul.f32 %v410_v15, %v410_v15 }
  0x94   :  { %v104_v7 = vrot.slane %v87_v3, %v103_v2 }
  0x95   :  { %v42_v22 = vsub.f32 %v352_v4, %v38_v18  ;;  %v44_v23 = vsub.f32 %v356_v5, %v40_v19  ;;  %v49_v24 = vsel %vm23_vm0, %v45_v20, 0.0  ;;  %v55_v25 = vsel %vm23_vm0, %v47_v21, 0.0 }
  0x96   :  { %50 = vadd.xlane.f32.xlu0 %v49_v24  ;;  %v92_v4 = vrot.slane %v87_v3, %v91_v63  ;;  %v100_v5 = vrot.slane %v87_v3, %v99_v0 }
  0x97   :  { %v46_v26 = vmul.f32 %v42_v22, %v42_v22  ;;  %v48_v27 = vmul.f32 %v44_v23, %v44_v23 }
  0x99   :  { %v52_v28 = vsel %vm23_vm0, %v46_v26, 0.0  ;;  %v58_v29 = vsel %vm23_vm0, %v48_v27, 0.0 }
  0x9a   :  { %56 = vadd.xlane.f32.xlu0 %v55_v25  ;;  %53 = vadd.xlane.f32.xlu1 %v52_v28 }
  0x9e   :  { %59 = vadd.xlane.f32.xlu1 %v58_v29 }
 0x11f   :  { %v51_v39 = vpop.xlane.xlu0 %50 }
 0x120   :  { %v61_v40 = vmul.f32 0.03125, %v51_v39 }
 0x122   :  { %v65_v41 = vadd.f32 1e-05, %v61_v40 }
 0x123   :  { %v54_v42 = vpop.xlane.xlu1 %53  ;;  %v57_v43 = vpop.xlane.xlu0 %56 }
 0x124   :  { %v62_v44 = vmul.f32 0.03125, %v54_v42  ;;  %371 = vrsqrt.f32 %v65_v41  ;;  %v63_v46 = vmul.f32 0.03125, %v57_v43 }
 0x126   :  { %v66_v45 = vadd.f32 1e-05, %v62_v44  ;;  %v67_v49 = vadd.f32 1e-05, %v63_v46 }
 0x127   :  { %v60_v47 = vpop.xlane.xlu1 %59 }
 0x128   :  { %373 = vrsqrt.f32 %v66_v45  ;;  %v64_v48 = vmul.f32 0.03125, %v60_v47 }
 0x12a   :  { %v68_v50 = vadd.f32 1e-05, %v64_v48 }
 0x12c   :  { %375 = vrsqrt.f32 %v68_v50 }
 0x12d   :  { %377 = vrsqrt.f32 %v67_v49 }
 0x131   :  { %v372_v51 = vpop.eup %371 }
 0x132   :  { %v73_v53 = vmul.f32 %v372_v51, %v41_v14 }
 0x135   :  { %v374_v52 = vpop.eup %373 }
 0x136   :  { %v74_v54 = vmul.f32 %v374_v52, %v42_v22 }
 0x138   :  { %v77_v55 = vpack.c.bf16 %v74_v54, %v73_v53 }
 0x139   :  { %v376_v56 = vpop.eup %375 }
 0x13a   :  { %329 = vmatmul.mubr.msk.bf16.vlgmr.msra.gmra.mxu0 %vm23_vm0, %v77_v55  ;;  %331 = vmatmul.mubr.msk.bf16.vlgmr.msra.gmra.mxu1 %vm23_vm0, %v77_v55  ;;  %v378_v57 = vpop.eup %377  ;;  %v76_v58 = vmul.f32 %v376_v56, %v44_v23 }
 0x13b   :  { %197 = vmatprep.mubr.bf16.mxu0 %v379_v31  ;;  %250 = vmatprep.mubr.bf16.mxu1 %v379_v31  ;;  %v75_v59 = vmul.f32 %v378_v57, %v410_v15 }
 0x13d   :  { %v78_v60 = vpack.c.bf16 %v76_v58, %v75_v59 }
 0x142   :  { %330 = vmatmul.mubr.msk.bf16.gmra.mxu0 %vm23_vm0, %v78_v60  ;;  %332 = vmatmul.mubr.msk.bf16.gmra.mxu1 %vm23_vm0, %v78_v60 }
 0x1fa   :  { %v189_v8 = vpop.f32.mrf.mxu0  ;;  %v242_v9 = vpop.f32.mrf.mxu1 }
 0x1fb   :  { %v190_v12 = vadd.f32 %v189_v8, %v92_v4  ;;  %v243_v13 = vadd.f32 %v242_v9, %v100_v5 }
 0x1fc   :  { %v191_v10 = vpop.f32.mrf.mxu0  ;;  %v244_v11 = vpop.f32.mrf.mxu1 }
 0x1fd   :  { %v192_v14 = vadd.f32 %v191_v10, %v96_v6  ;;  %v245_v15 = vadd.f32 %v244_v11, %v104_v7 }
 0x1fe   :  { %v193_v16 = vpop.f32.mrf.mxu0  ;;  %v246_v17 = vpop.f32.mrf.mxu1 }
 0x1ff   :  { %v341_v18 = vpack.c.bf16 %v192_v14, %v190_v12  ;;  %v342_v19 = vpack.c.bf16 %v245_v15, %v243_v13  ;;  %v194_v22 = vadd.f32 %v193_v16, %v92_v4  ;;  %v247_v23 = vadd.f32 %v246_v17, %v100_v5 }
 0x200   :  { %v195_v20 = vpop.f32.mrf.mxu0  ;;  %v248_v21 = vpop.f32.mrf.mxu1 }
 0x201   :  { %309 = vst [vmem:[%s477_s3] sm:$0xff] %v341_v18  ;;  %310 = vst [vmem:[%s477_s3 + $0x8] sm:$0xff] %v342_v19  ;;  %v196_v24 = vadd.f32 %v195_v20, %v96_v6  ;;  %v249_v25 = vadd.f32 %v248_v21, %v104_v7 }
 0x202   :  { %v199_v26 = vpop.f32.mrf.mxu0  ;;  %v252_v27 = vpop.f32.mrf.mxu1 }
 0x203   :  { %v343_v28 = vpack.c.bf16 %v196_v24, %v194_v22  ;;  %v344_v29 = vpack.c.bf16 %v249_v25, %v247_v23  ;;  %v200_v32 = vadd.f32 %v199_v26, %v92_v4  ;;  %v253_v33 = vadd.f32 %v252_v27, %v100_v5 }
 0x204   :  { %v201_v30 = vpop.f32.mrf.mxu0  ;;  %v254_v31 = vpop.f32.mrf.mxu1 }
 0x205   :  { %311 = vst [vmem:[%s477_s3 + $0x10] sm:$0xff] %v343_v28  ;;  %312 = vst [vmem:[%s477_s3 + $0x18] sm:$0xff] %v344_v29  ;;  %v202_v34 = vadd.f32 %v201_v30, %v96_v6  ;;  %v255_v35 = vadd.f32 %v254_v31, %v104_v7 }
 0x206   :  { %v203_v36 = vpop.f32.mrf.mxu0  ;;  %v256_v37 = vpop.f32.mrf.mxu1 }
 0x207   :  { %v345_v38 = vpack.c.bf16 %v202_v34, %v200_v32  ;;  %v346_v39 = vpack.c.bf16 %v255_v35, %v253_v33  ;;  %v204_v42 = vadd.f32 %v203_v36, %v92_v4  ;;  %v257_v43 = vadd.f32 %v256_v37, %v100_v5 }
 0x208   :  { %v205_v40 = vpop.f32.mrf.mxu0  ;;  %v258_v41 = vpop.f32.mrf.mxu1 }
 0x209   :  { %313 = vst [vmem:[%s477_s3 + $0x20] sm:$0xff] %v345_v38  ;;  %314 = vst [vmem:[%s477_s3 + $0x28] sm:$0xff] %v346_v39  ;;  %v206_v44 = vadd.f32 %v205_v40, %v96_v6  ;;  %v259_v45 = vadd.f32 %v258_v41, %v104_v7 }
 0x20b   :  { %v347_v46 = vpack.c.bf16 %v206_v44, %v204_v42  ;;  %v348_v47 = vpack.c.bf16 %v259_v45, %v257_v43 }
 0x20d   :  { %315 = vst [vmem:[%s477_s3 + $0x30] sm:$0xff] %v347_v46  ;;  %316 = vst [vmem:[%s477_s3 + $0x38] sm:$0xff] %v348_v47 }

// kernel: cs_unet_forward.16
= control target key start
LH: loop header
LB: loop body
LE: loop exit
PB: predicated region body
PF: predicated region fallthrough
CT: control target
= control target key end

     0   :  { %s2131_s13 = smov 0   ;;  %s2133_s14 = smov 0   ;;  %s2451_s0 = inlined_call_operand.vmem [shape: bf16[2,2,2,64], index: 0, kind: input, shape index: {}]   ;;  %s2452_s1 = inlined_call_operand.vmem [shape: bf16[64,192], index: 1, kind: input, shape index: {}]   ;;  %s2453_s2 = inlined_call_operand.vmem [shape: f32[1,192], index: 2, kind: input, shape index: {}]   ;;  %s2454_s3 = inlined_call_operand.vmem [shape: f32[4,4,4], index: 3, kind: input, shape index: {}]   ;;  %s2455_s4 = inlined_call_operand.vmem [shape: bf16[64,64], index: 4, kind: input, shape index: {}]   ;;  %s2456_s5 = inlined_call_operand.vmem [shape: f32[1,64], index: 5, kind: input, shape index: {}]   ;;  %s2457_s6 = inlined_call_operand.vmem [shape: bf16[64,256], index: 6, kind: input, shape index: {}]   ;;  %s2458_s7 = inlined_call_operand.vmem [shape: f32[1,256], index: 7, kind: input, shape index: {}]   ;;  %s2459_s8 = inlined_call_operand.vmem [shape: bf16[256,64], index: 8, kind: input, shape index: {}]   ;;  %s2460_s9 = inlined_call_operand.vmem [shape: f32[1,64], index: 9, kind: input, shape index: {}]   ;;  %s2461_s10 = inlined_call_operand.vmem [shape: bf16[2,2,2,64], index: 10, kind: output, shape index: {}]  }
   0x1   :  { %s2135_s15 = smov 0  }
   0x2 LB: > { %s32_s16 = sadd.s32 1, %s2057_s14  ;;  %p1759_p0 = scmp.ge.s32.totalorder %s2061_s15, 1  ;;  %s2061_s15 = sphi %s2135_s15, %s20_s15   ;;  %s2057_s14 = sphi %s2133_s14, %s2463_s14   ;;  %s2053_s13 = sphi %s2131_s13, %s2462_s13  }
   0x3   : > { %p34_p1 = scmp.ge.s32.totalorder %s32_s16, 2  ;;  %p332_p2 = scmp.lt.s32.totalorder %s2061_s15, 3 }
   0x5   : > { %s2465_s16 = smov (%p34_p1, %s32_s16), 0  ;;  %p333_p3 = pnand %p1759_p0, %p332_p2 }
   0x6   : > { %p377_p4 = scmp.lt.s32.totalorder (!%p333_p3), %s2053_s13, 1  ;;  %s2069_s24 = smov (!%p333_p3), 112  }
   0x7   : > { %336 = sbr.rel (%p333_p3) target bundleno = 3568 (0xdf0), region = 60  ;;  %s2070_s25 = smov (!%p333_p3), 64  }
   0x8   : > { %s2071_s26 = smov (!%p333_p3), 48   ;;  %s2072_s11 = smov (!%p333_p3), 32  }
   0x9   : > { %s2073_s12 = smov (!%p333_p3), 96  }
   0xc   : > { %v405_v0 = vlaneseq  ;;  %v2063_v1 = vmov 1983009808   ;;  %s2467_s13 = smov (!%p377_p4, %s2053_s13), 1  ;;  %vm410_vm0 = vcmask 519168   ;;  %v2064_v13 = vmov 269488144  }
   0xd   : > { %v403_v2 = vunpack.c.l.s4 %v2063_v1  ;;  %s1760_s17 = sshll.u32 %s2467_s13, 1  ;;  %v418_v14 = vunpack.c.l.s4 %v2064_v13  ;;  %v2065_v15 = vmov 842150450   ;;  %v1971_v32 = vld [vmem:[%s2452_s1 + $0x34] ss:$8 sps:$4 sm:$0xff]   ;;  %v2066_v36 = vmov 0  }
   0xe   : > { %v2151_v4 = vshrl.u32 %v405_v0, 7  ;;  %s383_s20 = scalar_lea.vmem %s2451_s0, %s1760_s17  ;;  %v425_v16 = vunpack.c.l.s4 %v2065_v15  ;;  %v1973_v33 = vld [vmem:[%s2452_s1 + $0x30] ss:$8 sps:$4 sm:$0xff]   ;;  %v1974_v34 = vld [vmem:[%s2452_s1 + $0x24] ss:$8 sps:$4 sm:$0xff]   ;;  %557 = vmatprep.subr.bf16.mxu0 %v1971_v32  ;;  %581 = vmatprep.mubr.bf16.mxu0 %v2066_v36  ;;  %vm545_vm1 = vcmask 523264   ;;  %s392_s28 = scalar_lea.vmem %s2461_s10, %s1760_s17 }
   0xf   : > { %v404_v3 = vunpack.c.0.s8 %v403_v2  ;;  %v395_v5 = vld [vmem:[%s383_s20] sm:$0x1]  ;;  %v396_v6 = vld [vmem:[%s383_s20 + $0x1] sm:$0x1]  ;;  %v419_v17 = vunpack.c.0.s8 %v418_v14  ;;  %558 = vmatpush1.bf16.msra.mxu0 %v1973_v33  ;;  %v1977_v37 = vld [vmem:[%s2452_s1 + $0x14] ss:$8 sps:$4 sm:$0xff]  }
  0x10   : > { %v2159_v7 = vunpack.c.l.bf16 %v395_v5  ;;  %v2161_v8 = vunpack.c.l.bf16 %v396_v6  ;;  %v426_v18 = vunpack.c.0.s8 %v425_v16  ;;  %v1976_v35 = vld [vmem:[%s2452_s1 + $0x20] ss:$8 sps:$4 sm:$0xff]   ;;  %559 = vmatprep.subr.bf16.mxu0 %v1974_v34  ;;  %v1979_v38 = vld [vmem:[%s2452_s1 + $0x10] ss:$8 sps:$4 sm:$0xff]   ;;  %v1980_v39 = vld [vmem:[%s2452_s1 + $0x4] ss:$8 sps:$4 sm:$0xff]  }
  0x11   : > { %v2164_v9 = vsub.s32 %v404_v3, %v2151_v4  ;;  %v2171_v19 = vsub.s32 %v419_v17, %v2151_v4  ;;  %v1982_v40 = vld [vmem:[%s2452_s1] ss:$8 sps:$4 sm:$0xff]   ;;  %v2067_v52 = vmov 0.0   ;;  %v497_v53 = vsub.s32 0, %v2151_v4 }
  0x12   : > { %v401_v10 = vcombine.low %v2159_v7, %v2161_v8  ;;  %v2174_v20 = vsub.s32 %v426_v18, %v2151_v4  ;;  %1868 = vmatprep.subr.bf16.mxu1 %v2067_v52  ;;  %v493_v54 = vld [vmem:[%s2453_s2] sm:$0x3]  ;;  %v501_v55 = vsub.s32 1, %v2151_v4  ;;  %vm2068_vm2 = vmmov 0  }
  0x13   : > { %560 = vmatpush1.bf16.msra.mxu0 %v1976_v35  ;;  %v498_v56 = vrot.slane %v493_v54, %v497_v53  ;;  %1870 = vmatprep.mubr.msk.bf16.mxu1 %vm2068_vm2, %v2067_v52  ;;  %vm665_vm3 = vcmask 1041408   ;;  %vm599_vm4 = vcmask 130048   ;;  %v592_v13 = vld [vmem:[%s2454_s3] sm:$0xf]  ;;  %vm648_vm5 = vcmask 27648  }
  0x14   : > { %v408_v11 = vrot.slane %v401_v10, %v2164_v9  ;;  %561 = vmatprep.subr.bf16.mxu0 %v1977_v37  ;;  %v502_v57 = vrot.slane %v493_v54, %v501_v55  ;;  %vm661_vm6 = vcmask 31744   ;;  %v1984_v54 = vld [vmem:[%s2455_s4 + $0x8] sm:$0xff]   ;;  %vm1674_vm7 = vcmask 516096  }
  0x16   : > { %v411_v12 = vsel %vm410_vm0, %v408_v11, 0.0 }
  0x17   : > { %412 = vadd.xlane.f32.xlu0 %v411_v12  ;;  %562 = vmatpush1.bf16.msra.mxu0 %v1979_v38 }
  0x18   : > { %563 = vmatprep.subr.bf16.mxu0 %v1980_v39 }
  0x1b   : > { %564 = vmatpush1.bf16.msra.mxu0 %v1982_v40 }
  0x1c   : > { %1862 = vmatprep.subr.bf16.mxu0 %v2067_v52 }
  0xa0   : > { %v413_v21 = vpop.xlane.xlu0 %412 }
  0xa1   : > { %v415_v22 = vmul.f32 0.015625, %v413_v21 }
  0xa3   : > { %v423_v23 = vrot.slane %v415_v22, %v2171_v19  ;;  %v430_v24 = vrot.slane %v415_v22, %v2174_v20 }
  0xa5   : > { %v433_v25 = vsub.f32 %v2159_v7, %v423_v23  ;;  %v434_v26 = vsub.f32 %v2161_v8, %v430_v24  ;;  %v593_v23 = vld [vmem:[%s2454_s3 + $0x4] sm:$0xf] }
  0xa7   : > { %v435_v27 = vmul.f32 %v433_v25, %v433_v25  ;;  %v436_v28 = vmul.f32 %v434_v26, %v434_v26 }
  0xa9   : > { %v439_v29 = vcombine.low %v435_v27, %v436_v28 }
  0xab   : > { %v446_v30 = vrot.slane %v439_v29, %v2164_v9 }
  0xad   : > { %v448_v31 = vsel %vm410_vm0, %v446_v30, 0.0 }
  0xae   : > { %449 = vadd.xlane.f32.xlu0 %v448_v31 }
 0x137   : > { %v450_v41 = vpop.xlane.xlu0 %449 }
 0x138   : > { %v451_v42 = vmul.f32 0.015625, %v450_v41 }
 0x13a   : > { %v452_v43 = vadd.f32 1e-05, %v451_v42 }
 0x13c   : > { %2015 = vrsqrt.f32 %v452_v43 }
 0x149   : > { %v2016_v44 = vpop.eup %2015 }
 0x14a   : > { %v461_v45 = vrot.slane %v2016_v44, %v2171_v19  ;;  %v468_v46 = vrot.slane %v2016_v44, %v2174_v20 }
 0x14c   : > { %v471_v47 = vmul.f32 %v461_v45, %v433_v25  ;;  %v472_v48 = vmul.f32 %v468_v46, %v434_v26 }
 0x14e   : > { %v475_v49 = vcombine.low %v471_v47, %v472_v48 }
 0x150   : > { %v482_v50 = vrot.slane %v475_v49, %v2164_v9 }
 0x152   : > { %v484_v51 = vpack.c.bf16 %v482_v50, %v482_v50 }
 0x154   : > { %1770 = vmatmul.mubr.msk.bf16.vlgmr.msra.gmra.mxu0 %vm545_vm1, %v484_v51  ;;  %v1983_v51 = vld [vmem:[%s2455_s4] sm:$0xff]  }
 0x155   : > { %1864 = vmatprep.mubr.msk.bf16.mxu0 %vm2068_vm2, %v2067_v52 }
 0x214   : > { %v583_v58 = vpop.f32.mrf.mxu0 }
 0x215   : > { %v584_v59 = vadd.f32 %v583_v58, %v498_v56 }
 0x216   : > { %v585_v60 = vpop.f32.mrf.mxu0 }
 0x217   : > { %v2226_v61 = vpack.c.bf16 %v584_v59, %v584_v59  ;;  %v586_v62 = vadd.f32 %v585_v60, %v502_v57 }
 0x218   : > { %v587_v63 = vpop.f32.mrf.mxu0 }
 0x219   : > { %v2228_v0 = vpack.c.bf16 %v586_v62, %v586_v62  ;;  %712 = vrot.lane.b32.xlu0 %v2226_v61, %s2069_s24  ;;  %597 = vrot.lane.b32.xlu1 %v2226_v61, %s2070_s25  ;;  %s2075_s25 = smov 16  }
 0x21a   : > { %v588_v1 = vpop.f32.mrf.mxu0 }
 0x21b   : > { %v667_v2 = vsel %vm665_vm3, %v2228_v0, 0 }
 0x21c   : > { %1869 = vmatpush3.bf16.msra.mxu1 %v667_v2 }
 0x21d   : > { %714 = vrot.lane.b32.xlu1 %v2226_v61, %s2071_s26  ;;  %1880 = vmatprep.subr.bf16.mxu1 %v2067_v52 }
 0x28b   : > { %v598_v3 = vpop.permute.xlu1 %597  ;;  %v713_v11 = vpop.permute.xlu0 %712 }
 0x28c   : > { %v604_v5 = vsel %vm599_vm4, %v598_v3, 0 }
 0x28d   : > { %1863 = vmatpush3.bf16.xpose.msra.mxu0 %v604_v5 }
 0x28e   : > { %1874 = vmatprep.subr.bf16.mxu0 %v2067_v52 }
 0x28f   : > { %v715_v6 = vpop.permute.xlu1 %714 }
 0x290   : > { %v720_v10 = vsel %vm599_vm4, %v715_v6, 0 }
 0x294   : > { %1865 = vmatmul.mubr.msk.bf16.vlgmr.msra.gmra.mxu0 %vm599_vm4, %v2226_v61 }
 0x295   : > { %1875 = vmatpush3.bf16.xpose.msra.mxu0 %v720_v10  ;;  %1876 = vmatprep.mubr.msk.bf16.mxu0 %vm2068_vm2, %v2067_v52 }
 0x296   : > { %1886 = vmatprep.subr.bf16.mxu0 %v2067_v52 }
 0x29c   : > { %1877 = vmatmul.mubr.msk.bf16.vlgmr.msra.gmra.mxu0 %vm599_vm4, %v713_v11 }
 0x29d   : > { %1888 = vmatprep.mubr.msk.bf16.mxu0 %vm2068_vm2, %v2067_v52  ;;  %1887 = vmatpush3.bf16.msra.mxu0 %v1984_v54 }
 0x29e   : > { %1898 = vmatprep.subr.bf16.mxu0 %v2067_v52 }
 0x354   : > { %v640_v12 = vpop.f32.mrf.mxu0 }
 0x355   : > { %v646_v14 = vmul.f32 0.25, %v640_v12 }
 0x356   : > { %v1866_v15 = vpop.f32.mrf.mxu0 }
 0x357   : > { %v647_v16 = vadd.f32 %v646_v14, %v592_v13 }
 0x358   : > { %v643_v17 = vpop.f32.mrf.mxu0 }
 0x359   : > { %v649_v18 = vsel %vm648_vm5, %v647_v16, -inf }
 0x35a   : > { %650 = vmax.xlane.f32.xlu1 %v649_v18  ;;  %v1867_v21 = vpop.f32.mrf.mxu0 }
 0x35c   : > { %v756_v22 = vpop.f32.mrf.mxu0 }
 0x35d   : > { %v762_v24 = vmul.f32 0.25, %v756_v22 }
 0x35e   : > { %v1878_v25 = vpop.f32.mrf.mxu0 }
 0x35f   : > { %v763_v26 = vadd.f32 %v762_v24, %v593_v23  ;;  %v594_v23 = vld [vmem:[%s2454_s3 + $0x8] sm:$0xf] }
 0x360   : > { %v759_v27 = vpop.f32.mrf.mxu0 }
 0x361   : > { %v764_v28 = vsel %vm648_vm5, %v763_v26, -inf }
 0x362   : > { %765 = vmax.xlane.f32.xlu0 %v764_v28  ;;  %v1879_v29 = vpop.f32.mrf.mxu0 }
 0x378   : > { %928 = vrot.lane.b32.xlu0 %v2226_v61, %s2072_s11 }
 0x3e3   : > { %v651_v30 = vpop.xlane.xlu1 %650 }
 0x3e4   : > { %v652_v31 = vsub.f32 %v647_v16, %v651_v30 }
 0x3e6   : > { %v653_v32 = vmul.f32 1.442695, %v652_v31 }
 0x3e8   : > { %2017 = vpow2.f32 %v653_v32 }
 0x3eb   : > { %v766_v33 = vpop.xlane.xlu0 %765 }
 0x3ec   : > { %v767_v34 = vsub.f32 %v763_v26, %v766_v33 }
 0x3ee   : > { %v768_v35 = vmul.f32 1.442695, %v767_v34 }
 0x3ef   : > { %v929_v62 = vpop.permute.xlu0 %928 }
 0x3f0   : > { %2019 = vpow2.f32 %v768_v35  ;;  %v934_v3 = vsel %vm599_vm4, %v929_v62, 0 }
 0x3f5   : > { %v2018_v37 = vpop.eup %2017 }
 0x3f6   : > { %v655_v38 = vsel %vm648_vm5, %v2018_v37, 0.0 }
 0x3f7   : > { %656 = vadd.xlane.f32.xlu1 %v655_v38 }
 0x3fd   : > { %v2020_v39 = vpop.eup %2019 }
 0x3fe   : > { %v770_v40 = vsel %vm648_vm5, %v2020_v39, 0.0 }
 0x3ff   : > { %771 = vadd.xlane.f32.xlu1 %v770_v40 }
 0x410   : > { %777 = vrot.lane.b32.xlu1 %v2228_v0, %s2069_s24  ;;  %s2074_s24 = smov 80  }
 0x414   : > { %926 = vrot.lane.b32.xlu1 %v2226_v61, %s2073_s12 }
 0x480   : > { %v657_v41 = vpop.xlane.xlu1 %656 }
 0x481   : > { %2021 = vrcp.f32 %v657_v41 }
 0x488   : > { %v772_v42 = vpop.xlane.xlu1 %771 }
 0x489   : > { %2023 = vrcp.f32 %v772_v42 }
 0x48c   : > { %v778_v45 = vpop.permute.xlu1 %777 }
 0x48d   : > { %v783_v47 = vsel %vm665_vm3, %v778_v45, 0 }
 0x48e   : > { %v2022_v43 = vpop.eup %2021 }
 0x48f   : > { %v659_v44 = vmul.f32 %v2022_v43, %v2018_v37 }
 0x490   : > { %v927_v10 = vpop.permute.xlu1 %926 }
 0x491   : > { %v660_v46 = vpack.c.bf16 %v659_v44, %v659_v44 }
 0x493   : > { %1871 = vmatmul.mubr.msk.bf16.vlgmr.msra.gmra.mxu1 %vm661_vm6, %v660_v46 }
 0x494   : > { %1881 = vmatpush3.bf16.msra.mxu1 %v783_v47  ;;  %1882 = vmatprep.mubr.msk.bf16.mxu1 %vm2068_vm2, %v2067_v52 }
 0x495   : > { %1892 = vmatprep.subr.bf16.mxu1 %v2067_v52 }
 0x496   : > { %v2024_v48 = vpop.eup %2023 }
 0x497   : > { %v774_v49 = vmul.f32 %v2024_v48, %v2020_v39 }
 0x499   : > { %v775_v50 = vpack.c.bf16 %v774_v49, %v774_v49 }
 0x49b   : > { %1883 = vmatmul.mubr.msk.bf16.vlgmr.msra.gmra.mxu1 %vm661_vm6, %v775_v50 }
 0x49c   : > { %1894 = vmatprep.mubr.msk.bf16.mxu1 %vm2068_vm2, %v2067_v52  ;;  %1893 = vmatpush3.bf16.msra.mxu1 %v1983_v51  ;;  %v595_v51 = vld [vmem:[%s2454_s3 + $0xc] sm:$0xf] }
 0x49d   : > { %1904 = vmatprep.subr.bf16.mxu1 %v2067_v52 }
 0x553   : > { %v703_v56 = vpop.f32.mrf.mxu1 }
 0x554   : > { %v709_v57 = vpack.c.bf16 %v703_v56, %v703_v56 }
 0x555   : > { %v1872_v58 = vpop.f32.mrf.mxu1 }
 0x556   : > { %1895 = vmatmul.mubr.msk.bf16.vlgmr.msra.gmra.mxu1 %vm599_vm4, %v709_v57 }
 0x557   : > { %v706_v59 = vpop.f32.mrf.mxu1  ;;  %1906 = vmatprep.mubr.msk.bf16.mxu1 %vm2068_vm2, %v2067_v52 }
 0x559   : > { %v1873_v60 = vpop.f32.mrf.mxu1 }
 0x55b   : > { %v819_v63 = vpop.f32.mrf.mxu1 }
 0x55c   : > { %v825_v1 = vpack.c.bf16 %v819_v63, %v819_v63 }
 0x55d   : > { %v1884_v2 = vpop.f32.mrf.mxu1 }
 0x55e   : > { %1889 = vmatmul.mubr.msk.bf16.vlgmr.msra.gmra.mxu0 %vm599_vm4, %v825_v1 }
 0x55f   : > { %1899 = vmatpush3.bf16.xpose.msra.mxu0 %v934_v3  ;;  %v822_v5 = vpop.f32.mrf.mxu1  ;;  %1900 = vmatprep.mubr.msk.bf16.mxu0 %vm2068_vm2, %v2067_v52 }
 0x560   : > { %1910 = vmatprep.subr.bf16.mxu0 %v2067_v52 }
 0x561   : > { %v1885_v6 = vpop.f32.mrf.mxu1 }
 0x566   : > { %1901 = vmatmul.mubr.msk.bf16.vlgmr.msra.gmra.mxu0 %vm599_vm4, %v927_v10 }
 0x567   : > { %1912 = vmatprep.mubr.msk.bf16.mxu0 %vm2068_vm2, %v2067_v52 }
 0x616   : > { %v920_v11 = vpop.f32.mrf.mxu1 }
 0x618   : > { %v1896_v12 = vpop.f32.mrf.mxu1 }
 0x61a   : > { %v923_v13 = vpop.f32.mrf.mxu1 }
 0x61c   : > { %v1897_v14 = vpop.f32.mrf.mxu1 }
 0x61e   : > { %v871_v15 = vpop.f32.mrf.mxu0 }
 0x61f   : > { %v2290_v16 = vadd.f32 %v920_v11, %v871_v15 }
 0x620   : > { %v1890_v17 = vpop.f32.mrf.mxu0 }
 0x622   : > { %v874_v18 = vpop.f32.mrf.mxu0 }
 0x624   : > { %v1891_v21 = vpop.f32.mrf.mxu0 }
 0x626   : > { %v970_v22 = vpop.f32.mrf.mxu0 }
 0x627   : > { %v976_v24 = vmul.f32 0.25, %v970_v22 }
 0x628   : > { %v1902_v25 = vpop.f32.mrf.mxu0 }
 0x629   : > { %v977_v26 = vadd.f32 %v976_v24, %v594_v23 }
 0x62a   : > { %v973_v27 = vpop.f32.mrf.mxu0 }
 0x62b   : > { %v978_v28 = vsel %vm648_vm5, %v977_v26, -inf }
 0x62c   : > { %979 = vmax.xlane.f32.xlu1 %v978_v28  ;;  %v1903_v29 = vpop.f32.mrf.mxu0 }
 0x63d   : > { %990 = vrot.lane.b32.xlu1 %v2228_v0, %s2073_s12 }
 0x641   : > { %1091 = vrot.lane.b32.xlu1 %v2226_v61, %s2074_s24 }
 0x6b5   : > { %v980_v30 = vpop.xlane.xlu1 %979 }
 0x6b6   : > { %v981_v31 = vsub.f32 %v977_v26, %v980_v30  ;;  %v1787_v26 = vld [vmem:[%s2456_s5] ss:$0 sm:$0xff] }
 0x6b8   : > { %v982_v32 = vmul.f32 1.442695, %v981_v31 }
 0x6b9   : > { %v991_v33 = vpop.permute.xlu1 %990 }
 0x6ba   : > { %2025 = vpow2.f32 %v982_v32  ;;  %v996_v34 = vsel %vm665_vm3, %v991_v33, 0 }
 0x6bb   : > { %1905 = vmatpush3.bf16.msra.mxu1 %v996_v34 }
 0x6bc   : > { %1916 = vmatprep.subr.bf16.mxu1 %v2067_v52 }
 0x6bd   : > { %v1092_v44 = vpop.permute.xlu1 %1091 }
 0x6c7   : > { %v2026_v35 = vpop.eup %2025 }
 0x6c8   : > { %v984_v37 = vsel %vm648_vm5, %v2026_v35, 0.0 }
 0x6c9   : > { %985 = vadd.xlane.f32.xlu0 %v984_v37 }
 0x6df   : > { %1093 = vrot.lane.b32.xlu0 %v2226_v61, %s2075_s25  ;;  %v1985_v61 = vld [vmem:[%s2455_s4 + $0x10] sm:$0xff]  }
 0x6e0   : > { %1911 = vmatpush3.bf16.msra.mxu0 %v1985_v61 }
 0x6e1   : > { %1922 = vmatprep.subr.bf16.mxu0 %v2067_v52 }
 0x752   : > { %v986_v38 = vpop.xlane.xlu0 %985 }
 0x753   : > { %2027 = vrcp.f32 %v986_v38 }
 0x756   : > { %v1094_v41 = vpop.permute.xlu0 %1093 }
 0x757   : > { %v1099_v43 = vsel %vm599_vm4, %v1094_v41, 0 }
 0x760   : > { %v2028_v39 = vpop.eup %2027 }
 0x761   : > { %v988_v40 = vmul.f32 %v2028_v39, %v2026_v35 }
 0x763   : > { %v989_v42 = vpack.c.bf16 %v988_v40, %v988_v40 }
 0x765   : > { %1907 = vmatmul.mubr.msk.bf16.vlgmr.msra.gmra.mxu1 %vm661_vm6, %v989_v42 }
 0x766   : > { %1917 = vmatpush3.bf16.xpose.msra.mxu1 %v1099_v43  ;;  %1918 = vmatprep.mubr.msk.bf16.mxu1 %vm2068_vm2, %v2067_v52 }
 0x767   : > { %1928 = vmatprep.subr.bf16.mxu1 %v2067_v52 }
 0x76d   : > { %1919 = vmatmul.mubr.msk.bf16.vlgmr.msra.gmra.mxu1 %vm599_vm4, %v1092_v44 }
 0x76e   : > { %1930 = vmatprep.mubr.msk.bf16.mxu1 %vm2068_vm2, %v2067_v52 }
 0x825   : > { %v1032_v45 = vpop.f32.mrf.mxu1 }
 0x826   : > { %v1038_v46 = vpack.c.bf16 %v1032_v45, %v1032_v45 }
 0x827   : > { %v1908_v47 = vpop.f32.mrf.mxu1 }
 0x828   : > { %1913 = vmatmul.mubr.msk.bf16.vlgmr.msra.gmra.mxu0 %vm599_vm4, %v1038_v46  ;;  %v1989_v47 = vld [vmem:[%s2457_s6 + $0x34] ss:$8 sps:$4 sm:$0xff]  }
 0x829   : > { %v1035_v48 = vpop.f32.mrf.mxu1  ;;  %1924 = vmatprep.mubr.msk.bf16.mxu0 %vm2068_vm2, %v2067_v52 }
 0x82a   : > { %v1987_v48 = vld [vmem:[%s2457_s6 + $0x30] ss:$8 sps:$4 sm:$0xff]  }
 0x82b   : > { %v1909_v49 = vpop.f32.mrf.mxu1 }
 0x82c   : > { %v1992_v49 = vld [vmem:[%s2457_s6 + $0x24] ss:$8 sps:$4 sm:$0xff]  }
 0x82d   : > { %v1135_v50 = vpop.f32.mrf.mxu1 }
 0x82e   : > { %v1141_v54 = vmul.f32 0.25, %v1135_v50  ;;  %v1990_v50 = vld [vmem:[%s2457_s6 + $0x20] ss:$8 sps:$4 sm:$0xff]  }
 0x82f   : > { %v1920_v56 = vpop.f32.mrf.mxu1 }
 0x830   : > { %v1142_v57 = vadd.f32 %v1141_v54, %v595_v51  ;;  %v1993_v51 = vld [vmem:[%s2457_s6 + $0x10] ss:$8 sps:$4 sm:$0xff]   ;;  %v1995_v54 = vld [vmem:[%s2457_s6 + $0x14] ss:$8 sps:$4 sm:$0xff]   ;;  %v1998_v56 = vld [vmem:[%s2457_s6 + $0x4] ss:$8 sps:$4 sm:$0xff]  }
 0x831   : > { %v1138_v58 = vpop.f32.mrf.mxu1 }
 0x832   : > { %v1143_v59 = vsel %vm648_vm5, %v1142_v57, -inf }
 0x833   : > { %1144 = vmax.xlane.f32.xlu1 %v1143_v59  ;;  %v1921_v60 = vpop.f32.mrf.mxu1 }
 0x844   : > { %1155 = vrot.lane.b32.xlu1 %v2228_v0, %s2074_s24  ;;  %v1986_v0 = vld [vmem:[%s2455_s4 + $0x18] sm:$0xff]  }
 0x845   : > { %1929 = vmatpush3.bf16.msra.mxu1 %v1986_v0  ;;  %v2004_v0 = vld [vmem:[%s2459_s8 + $0x28] sm:$0xff]  }
 0x8bc   : > { %v1145_v62 = vpop.xlane.xlu1 %1144 }
 0x8bd   : > { %v1146_v63 = vsub.f32 %v1142_v57, %v1145_v62  ;;  %v1996_v57 = vld [vmem:[%s2457_s6] ss:$8 sps:$4 sm:$0xff]  }
 0x8bf   : > { %v1147_v52 = vmul.f32 1.442695, %v1146_v63 }
 0x8c0   : > { %v1156_v1 = vpop.permute.xlu1 %1155 }
 0x8c1   : > { %2029 = vpow2.f32 %v1147_v52  ;;  %v1161_v2 = vsel %vm665_vm3, %v1156_v1, 0 }
 0x8c2   : > { %1923 = vmatpush3.bf16.msra.mxu0 %v1161_v2 }
 0x8c3   : > { %1432 = vmatprep.subr.bf16.mxu0 %v1989_v47 }
 0x8ce   : > { %v2030_v3 = vpop.eup %2029 }
 0x8cf   : > { %v1149_v5 = vsel %vm648_vm5, %v2030_v3, 0.0 }
 0x8d0   : > { %1150 = vadd.xlane.f32.xlu0 %v1149_v5 }
 0x8e8   : > { %v1084_v6 = vpop.f32.mrf.mxu0 }
 0x8e9   : > { %v1090_v10 = vadd.f32 %v1084_v6, %v2290_v16 }
 0x8ea   : > { %v1914_v11 = vpop.f32.mrf.mxu0 }
 0x8eb   : > { %v2000_v11 = vld [vmem:[%s2459_s8 + $0x38] sm:$0xff]  }
 0x8ec   : > { %v1087_v12 = vpop.f32.mrf.mxu0 }
 0x8ed   : > { %v2003_v12 = vld [vmem:[%s2459_s8 + $0x68] sm:$0xff]  }
 0x8ee   : > { %v1915_v13 = vpop.f32.mrf.mxu0 }
 0x8ef   : > { %v2005_v13 = vld [vmem:[%s2459_s8 + $0x60] sm:$0xff]  }
 0x959   : > { %v1151_v14 = vpop.xlane.xlu0 %1150 }
 0x95a   : > { %2031 = vrcp.f32 %v1151_v14  ;;  %v2006_v14 = vld [vmem:[%s2459_s8 + $0x20] sm:$0xff]  }
 0x967   : > { %v2032_v15 = vpop.eup %2031 }
 0x968   : > { %v1153_v17 = vmul.f32 %v2032_v15, %v2030_v3  ;;  %v2007_v15 = vld [vmem:[%s2459_s8 + $0x58] sm:$0xff]  }
 0x96a   : > { %v1154_v18 = vpack.c.bf16 %v1153_v17, %v1153_v17  ;;  %v2008_v17 = vld [vmem:[%s2459_s8 + $0x18] sm:$0xff]  }
 0x96c   : > { %1925 = vmatmul.mubr.msk.bf16.vlgmr.msra.gmra.mxu0 %vm661_vm6, %v1154_v18  ;;  %v2009_v18 = vld [vmem:[%s2459_s8 + $0x50] sm:$0xff]  }
 0x96d   : > { %1456 = vmatprep.mubr.bf16.mxu0 %v2066_v36  ;;  %1433 = vmatpush1.bf16.msra.mxu0 %v1987_v48 }
 0x96e   : > { %1434 = vmatprep.subr.bf16.mxu0 %v1992_v49 }
 0x971   : > { %1435 = vmatpush1.bf16.msra.mxu0 %v1990_v50  ;;  %v1797_v50 = vld [vmem:[%s2460_s9] ss:$0 sm:$0xff] }
 0x972   : > { %1436 = vmatprep.subr.bf16.mxu0 %v1995_v54 }
 0x975   : > { %1437 = vmatpush1.bf16.msra.mxu0 %v1993_v51 }
 0x976   : > { %1438 = vmatprep.subr.bf16.mxu0 %v1998_v56 }
 0x979   : > { %1439 = vmatpush1.bf16.msra.mxu0 %v1996_v57 }
 0xa2c   : > { %v1197_v21 = vpop.f32.mrf.mxu0 }
 0xa2d   : > { %v1203_v22 = vpack.c.bf16 %v1197_v21, %v1197_v21  ;;  %v2010_v21 = vld [vmem:[%s2459_s8 + $0x10] sm:$0xff]  }
 0xa2e   : > { %v1926_v16 = vpop.f32.mrf.mxu0 }
 0xa2f   : > { %1931 = vmatmul.mubr.msk.bf16.vlgmr.msra.gmra.mxu1 %vm599_vm4, %v1203_v22  ;;  %v2011_v22 = vld [vmem:[%s2459_s8 + $0x48] sm:$0xff]  }
 0xa30   : > { %v1200_v23 = vpop.f32.mrf.mxu0  ;;  %v2012_v16 = vld [vmem:[%s2459_s8 + $0x8] sm:$0xff]  }
 0xa31   : > { %v2013_v23 = vld [vmem:[%s2459_s8 + $0x40] sm:$0xff]  }
 0xa32   : > { %v1927_v24 = vpop.f32.mrf.mxu0 }
 0xa33   : > { %v2014_v24 = vld [vmem:[%s2459_s8] sm:$0xff]  }
 0xaef   : > { %v1249_v25 = vpop.f32.mrf.mxu1 }
 0xaf0   : > { %v1255_v27 = vadd.f32 %v1249_v25, %v1090_v10  ;;  %v1999_v10 = vld [vmem:[%s2459_s8 + $0x78] sm:$0xff]   ;;  %v1369_v25 = vld [vmem:[%s2458_s7] sm:$0x3] }
 0xaf1   : > { %v1932_v28 = vpop.f32.mrf.mxu1  ;;  %1840 = vmatprep.subr.bf16.mxu1 %v1999_v10 }
 0xaf2   : > { %v1263_v29 = vadd.f32 %v1787_v26, %v1255_v27  ;;  %1841 = vmatpush3.bf16.msra.mxu1 %v2000_v11  ;;  %v1374_v26 = vrot.slane %v1369_v25, %v497_v53  ;;  %v1378_v27 = vrot.slane %v1369_v25, %v501_v55 }
 0xaf3   : > { %v1252_v30 = vpop.f32.mrf.mxu1 }
 0xaf4   : > { %v1271_v31 = vrot.slane %v1263_v29, %v2164_v9 }
 0xaf5   : > { %v1933_v32 = vpop.f32.mrf.mxu1 }
 0xaf6   : > { %v1272_v36 = vcombine.high %v1271_v31, %v1271_v31  ;;  %v1275_v33 = vadd.f32 %v1271_v31, %v2159_v7 }
 0xaf8   : > { %v1276_v34 = vadd.f32 %v1272_v36, %v2161_v8 }
 0xafa   : > { %v1279_v35 = vcombine.low %v1275_v33, %v1276_v34 }
 0xafc   : > { %v2341_v37 = vrot.slane %v1279_v35, %v2164_v9 }
 0xafe   : > { %v1288_v38 = vsel %vm410_vm0, %v2341_v37, 0.0 }
 0xaff   : > { %1289 = vadd.xlane.f32.xlu0 %v1288_v38 }
 0xb88   : > { %v1290_v39 = vpop.xlane.xlu0 %1289 }
 0xb89   : > { %v1291_v40 = vmul.f32 0.015625, %v1290_v39 }
 0xb8b   : > { %v1299_v41 = vrot.slane %v1291_v40, %v2171_v19  ;;  %v1306_v42 = vrot.slane %v1291_v40, %v2174_v20 }
 0xb8d   : > { %v1309_v43 = vsub.f32 %v1275_v33, %v1299_v41  ;;  %v1310_v44 = vsub.f32 %v1276_v34, %v1306_v42 }
 0xb8f   : > { %v1311_v61 = vmul.f32 %v1309_v43, %v1309_v43  ;;  %v1312_v7 = vmul.f32 %v1310_v44, %v1310_v44 }
 0xb91   : > { %v1315_v45 = vcombine.low %v1311_v61, %v1312_v7 }
 0xb93   : > { %v1322_v8 = vrot.slane %v1315_v45, %v2164_v9 }
 0xb95   : > { %v1324_v46 = vsel %vm410_vm0, %v1322_v8, 0.0 }
 0xb96   : > { %1325 = vadd.xlane.f32.xlu0 %v1324_v46 }
 0xc1f   : > { %v1326_v58 = vpop.xlane.xlu0 %1325 }
 0xc20   : > { %v1327_v59 = vmul.f32 0.015625, %v1326_v58 }
 0xc22   : > { %v1328_v60 = vadd.f32 1e-05, %v1327_v59 }
 0xc24   : > { %2033 = vrsqrt.f32 %v1328_v60 }
 0xc31   : > { %v2034_v62 = vpop.eup %2033 }
 0xc32   : > { %v1337_v63 = vrot.slane %v2034_v62, %v2171_v19  ;;  %v1344_v52 = vrot.slane %v2034_v62, %v2174_v20  ;;  %v2001_v19 = vld [vmem:[%s2459_s8 + $0x70] sm:$0xff]  }
 0xc33   : > { %v2002_v20 = vld [vmem:[%s2459_s8 + $0x30] sm:$0xff]   ;;  %1842 = vmatprep.subr.bf16.mxu1 %v2001_v19 }
 0xc34   : > { %v1347_v1 = vmul.f32 %v1337_v63, %v1309_v43  ;;  %v1348_v2 = vmul.f32 %v1344_v52, %v1310_v44  ;;  %1843 = vmatpush3.bf16.msra.mxu1 %v2002_v20 }
 0xc35   : > { %1844 = vmatprep.subr.bf16.mxu1 %v2003_v12 }
 0xc36   : > { %v1351_v3 = vcombine.low %v1347_v1, %v1348_v2 }
 0xc38   : > { %v1358_v5 = vrot.slane %v1351_v3, %v2164_v9  ;;  %1845 = vmatpush3.bf16.msra.mxu1 %v2004_v0 }
 0xc39   : > { %1846 = vmatprep.subr.bf16.mxu1 %v2005_v13 }
 0xc3a   : > { %v1360_v6 = vpack.c.bf16 %v1358_v5, %v1358_v5 }
 0xc3c   : > { %1796 = vmatmul.mubr.msk.bf16.vlgmr.msra.gmra.mxu0 %vm545_vm1, %v1360_v6  ;;  %1847 = vmatpush3.bf16.msra.mxu1 %v2006_v14 }
 0xc3d   : > { %1848 = vmatprep.subr.bf16.mxu1 %v2007_v15 }
 0xc40   : > { %1849 = vmatpush3.bf16.msra.mxu1 %v2008_v17 }
 0xc41   : > { %1850 = vmatprep.subr.bf16.mxu1 %v2009_v18 }
 0xc44   : > { %1851 = vmatpush3.bf16.msra.mxu1 %v2010_v21 }
 0xc45   : > { %1852 = vmatprep.subr.bf16.mxu1 %v2011_v22 }
 0xc48   : > { %1853 = vmatpush3.bf16.msra.mxu1 %v2012_v16 }
 0xc49   : > { %1854 = vmatprep.subr.bf16.mxu1 %v2013_v23 }
 0xc4c   : > { %1855 = vmatpush3.bf16.msra.mxu1 %v2014_v24 }
 0xcfc   : > { %v1458_v28 = vpop.f32.mrf.mxu0 }
 0xcfd   : > { %v1459_v29 = vadd.f32 %v1458_v28, %v1374_v26 }
 0xcfe   : > { %v1460_v30 = vpop.f32.mrf.mxu0 }
 0xcff   : > { %v1467_v31 = vmul.f32 0.044715, %v1459_v29  ;;  %v1461_v32 = vadd.f32 %v1460_v30, %v1378_v27  ;;  %v1465_v61 = vmul.f32 0.5, %v1459_v29 }
 0xd00   : > { %v1462_v36 = vpop.f32.mrf.mxu0 }
 0xd01   : > { %v1469_v33 = vmul.f32 %v1467_v31, %v1459_v29  ;;  %v1468_v34 = vmul.f32 0.044715, %v1461_v32  ;;  %v1466_v7 = vmul.f32 0.5, %v1461_v32 }
 0xd02   : > { %v1463_v35 = vpop.f32.mrf.mxu0 }
 0xd03   : > { %v1471_v38 = vmul.f32 %v1469_v33, %v1459_v29  ;;  %v1470_v39 = vmul.f32 %v1468_v34, %v1461_v32 }
 0xd05   : > { %v1473_v40 = vadd.f32 %v1471_v38, %v1459_v29  ;;  %v1472_v41 = vmul.f32 %v1470_v39, %v1461_v32 }
 0xd07   : > { %v1475_v42 = vmul.f32 0.7978846, %v1473_v40  ;;  %v1474_v43 = vadd.f32 %v1472_v41, %v1461_v32 }
 0xd09   : > { %v1476_v44 = vmul.f32 0.7978846, %v1474_v43  ;;  %2035 = vtanh.f32 %v1475_v42 }
 0xd0b   : > { %2037 = vtanh.f32 %v1476_v44 }
 0xd16   : > { %v2036_v4 = vpop.eup %2035 }
 0xd17   : > { %v1479_v53 = vadd.f32 1.0, %v2036_v4 }
 0xd18   : > { %v2038_v55 = vpop.eup %2037 }
 0xd19   : > { %v1480_v45 = vadd.f32 1.0, %v2038_v55  ;;  %v1481_v8 = vmul.f32 %v1479_v53, %v1465_v61 }
 0xd1b   : > { %v1482_v46 = vmul.f32 %v1480_v45, %v1466_v7  ;;  %v1483_v48 = vpack.c.bf16 %v1481_v8, %v1481_v8 }
 0xd1d   : > { %v1484_v47 = vpack.c.bf16 %v1482_v46, %v1482_v46 }
 0xd1f   : > { %1652 = vmatprep.mubr.bf16.mxu1 %v1484_v47 }
 0xd20   : > { %1653 = vmatmul.mubr.bf16.vlgmr.msra.gmra.mxu1 %v1483_v48 }
 0xde0   : > { %v1856_v49 = vpop.f32.mrf.mxu1 }
 0xde2   : > { %v1857_v51 = vpop.f32.mrf.mxu1 }
 0xde3   : > { %v1858_v54 = vadd.f32 %v1857_v51, %v1856_v49 }
 0xde4   : > { %v1859_v56 = vpop.f32.mrf.mxu1 }
 0xde5   : > { %v1655_v57 = vadd.f32 %v1858_v54, %v1797_v50 }
 0xde6   : > { %v1860_v58 = vpop.f32.mrf.mxu1 }
 0xde7   : > { %v1660_v59 = vadd.f32 %v1655_v57, %v2341_v37 }
 0xde9   : > { %v1668_v60 = vrot.slane %v1660_v59, %v2164_v9 }
 0xdeb   : > { %v1669_v62 = vcombine.high %v1668_v60, %v1668_v60  ;;  %v1672_v63 = vpack.c.bf16 %v1668_v60, %v1668_v60 }
 0xded   : > { %v1673_v52 = vpack.c.bf16 %v1669_v62, %v1669_v62  ;;  %1675 = vst.msk [vmem:[%s392_s28] sm:$0x1] %vm1674_vm7, %v1672_v63 }
 0xdef   : > { %1676 = vst.msk [vmem:[%s392_s28 + $0x1] sm:$0x1] %vm1674_vm7, %v1673_v52 }
 0xdf0 PF: > { %s20_s15 = sadd.s32 1, %s2061_s15   ;;  %s2462_s13 = smov %s2057_s14 }
 0xdf1   : > { %p17_p5 = scmp.ge.s32.totalorder %s20_s15, 4   ;;  %s2463_s14 = smov %s2465_s16 }
 0xdf3   :  { %19 = sbr.rel (!%p17_p5) target bundleno = 2 (0x2), region = 90 }

// kernel: cs_unet_forward.23
= control target key start
LH: loop header
LB: loop body
LE: loop exit
PB: predicated region body
PF: predicated region fallthrough
CT: control target
= control target key end

     0   :  { %vm143_vm0 = vcmask 261120   ;;  %vm1417_vm1 = vcmask 31744   ;;  %s3227_s0 = inlined_call_operand.vmem [shape: bf16[512,32], index: 0, kind: input, shape index: {}]   ;;  %s3228_s1 = inlined_call_operand.vmem [shape: bf16[32,4], index: 1, kind: input, shape index: {}]   ;;  %s3229_s2 = inlined_call_operand.vmem [shape: f32[1,4], index: 2, kind: input, shape index: {}]   ;;  %s3230_s3 = inlined_call_operand.vmem [shape: f32[512,4], index: 3, kind: output, shape index: {}]  }
   0x1   :  { %v1939_v0 = vld [vmem:[%s3227_s0] sm:$0xff]   ;;  %v1953_v6 = vld [vmem:[%s3227_s0 + $0x8] sm:$0xff]   ;;  %v1985_v18 = vld [vmem:[%s3227_s0 + $0x10] sm:$0xff]  }
   0x2   :  { %v1944_v1 = vld [vmem:[%s3227_s0 + $0x80] sm:$0xff]   ;;  %v1523_v2 = vunpack.c.l.bf16 %v1939_v0  ;;  %v1524_v4 = vunpack.c.h.bf16 %v1939_v0  ;;  %v1527_v11 = vunpack.c.l.bf16 %v1953_v6  ;;  %v1528_v12 = vunpack.c.h.bf16 %v1953_v6  ;;  %v1972_v13 = vld [vmem:[%s3227_s0 + $0x88] sm:$0xff]   ;;  %v1998_v23 = vld [vmem:[%s3227_s0 + $0x90] sm:$0xff]  }
   0x3   :  { %v1587_v3 = vunpack.c.l.bf16 %v1944_v1  ;;  %v1588_v5 = vunpack.c.h.bf16 %v1944_v1  ;;  %v1591_v16 = vunpack.c.l.bf16 %v1972_v13  ;;  %v1592_v17 = vunpack.c.h.bf16 %v1972_v13  ;;  %v2011_v28 = vld [vmem:[%s3227_s0 + $0x18] sm:$0xff]   ;;  %v2037_v38 = vld [vmem:[%s3227_s0 + $0x20] sm:$0xff]   ;;  %v2063_v48 = vld [vmem:[%s3227_s0 + $0x28] sm:$0xff]  }
   0x4   :  { %v144_v7 = vsel %vm143_vm0, %v1523_v2, 0.0  ;;  %v147_v9 = vsel %vm143_vm0, %v1524_v4, 0.0  ;;  %v150_v14 = vsel %vm143_vm0, %v1527_v11, 0.0  ;;  %v153_v15 = vsel %vm143_vm0, %v1528_v12, 0.0  ;;  %v2024_v33 = vld [vmem:[%s3227_s0 + $0x98] sm:$0xff]   ;;  %v2050_v43 = vld [vmem:[%s3227_s0 + $0xa0] sm:$0xff]  }
   0x5   :  { %v240_v8 = vsel %vm143_vm0, %v1587_v3, 0.0  ;;  %145 = vadd.xlane.f32.xlu0 %v144_v7  ;;  %v243_v10 = vsel %vm143_vm0, %v1588_v5, 0.0  ;;  %v246_v19 = vsel %vm143_vm0, %v1591_v16, 0.0  ;;  %v249_v20 = vsel %vm143_vm0, %v1592_v17, 0.0  ;;  %v2076_v53 = vld [vmem:[%s3227_s0 + $0xa8] sm:$0xff]   ;;  %v2089_v58 = vld [vmem:[%s3227_s0 + $0x30] sm:$0xff]  }
   0x6   :  { %241 = vadd.xlane.f32.xlu1 %v240_v8  ;;  %v1531_v21 = vunpack.c.l.bf16 %v1985_v18  ;;  %v1532_v22 = vunpack.c.h.bf16 %v1985_v18  ;;  %v1595_v26 = vunpack.c.l.bf16 %v1998_v23  ;;  %v1596_v27 = vunpack.c.h.bf16 %v1998_v23  ;;  %v2102_v63 = vld [vmem:[%s3227_s0 + $0xb0] sm:$0xff]  }
   0x7   :  { %v1535_v31 = vunpack.c.l.bf16 %v2011_v28  ;;  %v1536_v32 = vunpack.c.h.bf16 %v2011_v28  ;;  %v1599_v36 = vunpack.c.l.bf16 %v2024_v33  ;;  %v1600_v37 = vunpack.c.h.bf16 %v2024_v33 }
   0x8   :  { %v156_v24 = vsel %vm143_vm0, %v1531_v21, 0.0  ;;  %v159_v25 = vsel %vm143_vm0, %v1532_v22, 0.0  ;;  %v252_v29 = vsel %vm143_vm0, %v1595_v26, 0.0  ;;  %v255_v30 = vsel %vm143_vm0, %v1596_v27, 0.0 }
   0x9   :  { %148 = vadd.xlane.f32.xlu0 %v147_v9  ;;  %v162_v34 = vsel %vm143_vm0, %v1535_v31, 0.0  ;;  %v165_v35 = vsel %vm143_vm0, %v1536_v32, 0.0  ;;  %v258_v39 = vsel %vm143_vm0, %v1599_v36, 0.0  ;;  %v261_v40 = vsel %vm143_vm0, %v1600_v37, 0.0 }
   0xa   :  { %244 = vadd.xlane.f32.xlu1 %v243_v10  ;;  %v1539_v41 = vunpack.c.l.bf16 %v2037_v38  ;;  %v1540_v42 = vunpack.c.h.bf16 %v2037_v38  ;;  %v1603_v46 = vunpack.c.l.bf16 %v2050_v43  ;;  %v3274_v47 = vunpack.c.h.bf16 %v2050_v43 }
   0xb   :  { %v3273_v51 = vunpack.c.l.bf16 %v2063_v48  ;;  %v3271_v52 = vunpack.c.h.bf16 %v2063_v48  ;;  %v3269_v56 = vunpack.c.l.bf16 %v2076_v53  ;;  %v3267_v57 = vunpack.c.h.bf16 %v2076_v53 }
   0xc   :  { %v168_v44 = vsel %vm143_vm0, %v1539_v41, 0.0  ;;  %v171_v45 = vsel %vm143_vm0, %v1540_v42, 0.0  ;;  %v264_v49 = vsel %vm143_vm0, %v1603_v46, 0.0  ;;  %v267_v50 = vsel %vm143_vm0, %v3274_v47, 0.0 }
   0xd   :  { %151 = vadd.xlane.f32.xlu0 %v150_v14  ;;  %v174_v54 = vsel %vm143_vm0, %v3273_v51, 0.0  ;;  %v177_v55 = vsel %vm143_vm0, %v3271_v52, 0.0  ;;  %v270_v59 = vsel %vm143_vm0, %v3269_v56, 0.0  ;;  %v273_v60 = vsel %vm143_vm0, %v3267_v57, 0.0  ;;  %v2115_v14 = vld [vmem:[%s3227_s0 + $0x38] sm:$0xff]  }
   0xe   :  { %154 = vadd.xlane.f32.xlu1 %v153_v15  ;;  %v3264_v61 = vunpack.c.l.bf16 %v2089_v58  ;;  %v3261_v62 = vunpack.c.h.bf16 %v2089_v58  ;;  %v3258_v9 = vunpack.c.l.bf16 %v2102_v63  ;;  %v3255_v10 = vunpack.c.h.bf16 %v2102_v63 }
  0x10   :  { %v180_v7 = vsel %vm143_vm0, %v3264_v61, 0.0  ;;  %v183_v8 = vsel %vm143_vm0, %v3261_v62, 0.0  ;;  %v276_v15 = vsel %vm143_vm0, %v3258_v9, 0.0  ;;  %v2310_v9 = vld [vmem:[%s3227_s0 + $0xf0] sm:$0xff]   ;;  %v2323_v62 = vld [vmem:[%s3227_s0 + $0x78] sm:$0xff]  }
  0x11   :  { %247 = vadd.xlane.f32.xlu0 %v246_v19  ;;  %v279_v19 = vsel %vm143_vm0, %v3255_v10, 0.0  ;;  %v2297_v10 = vld [vmem:[%s3227_s0 + $0x70] sm:$0xff]   ;;  %v2336_v61 = vld [vmem:[%s3227_s0 + $0xf8] sm:$0xff]  }
  0x12   :  { %250 = vadd.xlane.f32.xlu1 %v249_v20  ;;  %v3252_v20 = vunpack.c.l.bf16 %v2115_v14 }
  0x15   :  { %157 = vadd.xlane.f32.xlu0 %v156_v24  ;;  %v3249_v24 = vunpack.c.h.bf16 %v2115_v14 }
  0x16   :  { %160 = vadd.xlane.f32.xlu1 %v159_v25  ;;  %v2128_v25 = vld [vmem:[%s3227_s0 + $0xb8] sm:$0xff]  }
  0x19   :  { %253 = vadd.xlane.f32.xlu0 %v252_v29  ;;  %v186_v29 = vsel %vm143_vm0, %v3252_v20, 0.0  ;;  %v2284_v20 = vld [vmem:[%s3227_s0 + $0xe8] sm:$0xff]  }
  0x1a   :  { %256 = vadd.xlane.f32.xlu1 %v255_v30  ;;  %v189_v30 = vsel %vm143_vm0, %v3249_v24, 0.0  ;;  %v2271_v24 = vld [vmem:[%s3227_s0 + $0x68] sm:$0xff]  }
  0x1d   :  { %163 = vadd.xlane.f32.xlu0 %v162_v34  ;;  %v3246_v34 = vunpack.c.l.bf16 %v2128_v25 }
  0x1e   :  { %166 = vadd.xlane.f32.xlu1 %v165_v35  ;;  %v3243_v35 = vunpack.c.h.bf16 %v2128_v25 }
  0x21   :  { %259 = vadd.xlane.f32.xlu0 %v258_v39  ;;  %v2141_v39 = vld [vmem:[%s3227_s0 + $0x40] sm:$0xff]  }
  0x22   :  { %262 = vadd.xlane.f32.xlu1 %v261_v40  ;;  %v282_v40 = vsel %vm143_vm0, %v3246_v34, 0.0  ;;  %v2258_v34 = vld [vmem:[%s3227_s0 + $0xe0] sm:$0xff]  }
  0x25   :  { %169 = vadd.xlane.f32.xlu0 %v168_v44  ;;  %v285_v44 = vsel %vm143_vm0, %v3243_v35, 0.0  ;;  %v2245_v35 = vld [vmem:[%s3227_s0 + $0x60] sm:$0xff]  }
  0x26   :  { %172 = vadd.xlane.f32.xlu1 %v171_v45  ;;  %v3240_v45 = vunpack.c.l.bf16 %v2141_v39 }
  0x29   :  { %265 = vadd.xlane.f32.xlu0 %v264_v49  ;;  %v3237_v49 = vunpack.c.h.bf16 %v2141_v39 }
  0x2a   :  { %268 = vadd.xlane.f32.xlu1 %v267_v50  ;;  %v2154_v50 = vld [vmem:[%s3227_s0 + $0xc0] sm:$0xff]  }
  0x2d   :  { %175 = vadd.xlane.f32.xlu0 %v174_v54  ;;  %v192_v54 = vsel %vm143_vm0, %v3240_v45, 0.0  ;;  %v2232_v45 = vld [vmem:[%s3227_s0 + $0xd8] sm:$0xff]  }
  0x2e   :  { %178 = vadd.xlane.f32.xlu1 %v177_v55  ;;  %v195_v55 = vsel %vm143_vm0, %v3237_v49, 0.0  ;;  %v2219_v49 = vld [vmem:[%s3227_s0 + $0x58] sm:$0xff]  }
  0x31   :  { %271 = vadd.xlane.f32.xlu0 %v270_v59  ;;  %v3234_v59 = vunpack.c.l.bf16 %v2154_v50 }
  0x32   :  { %274 = vadd.xlane.f32.xlu1 %v273_v60  ;;  %v3231_v60 = vunpack.c.h.bf16 %v2154_v50 }
  0x35   :  { %181 = vadd.xlane.f32.xlu0 %v180_v7  ;;  %v2167_v7 = vld [vmem:[%s3227_s0 + $0x48] sm:$0xff]  }
  0x36   :  { %184 = vadd.xlane.f32.xlu1 %v183_v8  ;;  %v288_v8 = vsel %vm143_vm0, %v3234_v59, 0.0  ;;  %v2206_v59 = vld [vmem:[%s3227_s0 + $0xd0] sm:$0xff]  }
  0x39   :  { %277 = vadd.xlane.f32.xlu0 %v276_v15  ;;  %v291_v15 = vsel %vm143_vm0, %v3231_v60, 0.0  ;;  %v2193_v60 = vld [vmem:[%s3227_s0 + $0x50] sm:$0xff]  }
  0x3a   :  { %280 = vadd.xlane.f32.xlu1 %v279_v19  ;;  %v3233_v19 = vunpack.c.l.bf16 %v2167_v7 }
  0x3d   :  { %187 = vadd.xlane.f32.xlu0 %v186_v29  ;;  %v3232_v29 = vunpack.c.h.bf16 %v2167_v7 }
  0x3e   :  { %190 = vadd.xlane.f32.xlu1 %v189_v30  ;;  %v2180_v30 = vld [vmem:[%s3227_s0 + $0xc8] sm:$0xff]  }
  0x41   :  { %283 = vadd.xlane.f32.xlu0 %v282_v40  ;;  %v198_v40 = vsel %vm143_vm0, %v3233_v19, 0.0  ;;  %v3238_v19 = vunpack.c.h.bf16 %v2193_v60 }
  0x42   :  { %286 = vadd.xlane.f32.xlu1 %v285_v44  ;;  %v201_v44 = vsel %vm143_vm0, %v3232_v29, 0.0  ;;  %v3239_v29 = vunpack.c.l.bf16 %v2193_v60 }
  0x45   :  { %193 = vadd.xlane.f32.xlu0 %v192_v54  ;;  %v3236_v54 = vunpack.c.l.bf16 %v2180_v30 }
  0x46   :  { %196 = vadd.xlane.f32.xlu1 %v195_v55  ;;  %v3235_v55 = vunpack.c.h.bf16 %v2180_v30 }
  0x49   :  { %289 = vadd.xlane.f32.xlu0 %v288_v8  ;;  %v294_v8 = vsel %vm143_vm0, %v3236_v54, 0.0  ;;  %v3241_v54 = vunpack.c.h.bf16 %v2206_v59 }
  0x4a   :  { %292 = vadd.xlane.f32.xlu1 %v291_v15  ;;  %v297_v15 = vsel %vm143_vm0, %v3235_v55, 0.0  ;;  %v3242_v55 = vunpack.c.l.bf16 %v2206_v59 }
  0x4d   :  { %199 = vadd.xlane.f32.xlu0 %v198_v40  ;;  %v204_v40 = vsel %vm143_vm0, %v3239_v29, 0.0  ;;  %v3244_v29 = vunpack.c.h.bf16 %v2219_v49 }
  0x4e   :  { %202 = vadd.xlane.f32.xlu1 %v201_v44  ;;  %v207_v44 = vsel %vm143_vm0, %v3238_v19, 0.0  ;;  %v3245_v19 = vunpack.c.l.bf16 %v2219_v49 }
  0x51   :  { %295 = vadd.xlane.f32.xlu0 %v294_v8  ;;  %v300_v8 = vsel %vm143_vm0, %v3242_v55, 0.0  ;;  %v3247_v55 = vunpack.c.h.bf16 %v2232_v45 }
  0x52   :  { %298 = vadd.xlane.f32.xlu1 %v297_v15  ;;  %v303_v15 = vsel %vm143_vm0, %v3241_v54, 0.0  ;;  %v3248_v54 = vunpack.c.l.bf16 %v2232_v45 }
  0x55   :  { %205 = vadd.xlane.f32.xlu0 %v204_v40  ;;  %v210_v40 = vsel %vm143_vm0, %v3245_v19, 0.0  ;;  %v3250_v19 = vunpack.c.h.bf16 %v2245_v35 }
  0x56   :  { %208 = vadd.xlane.f32.xlu1 %v207_v44  ;;  %v213_v44 = vsel %vm143_vm0, %v3244_v29, 0.0  ;;  %v3251_v29 = vunpack.c.l.bf16 %v2245_v35 }
  0x59   :  { %301 = vadd.xlane.f32.xlu0 %v300_v8  ;;  %v306_v8 = vsel %vm143_vm0, %v3248_v54, 0.0  ;;  %v3253_v54 = vunpack.c.h.bf16 %v2258_v34 }
  0x5a   :  { %304 = vadd.xlane.f32.xlu1 %v303_v15  ;;  %v309_v15 = vsel %vm143_vm0, %v3247_v55, 0.0  ;;  %v3254_v55 = vunpack.c.l.bf16 %v2258_v34 }
  0x5d   :  { %211 = vadd.xlane.f32.xlu0 %v210_v40  ;;  %v216_v40 = vsel %vm143_vm0, %v3251_v29, 0.0  ;;  %v3256_v29 = vunpack.c.h.bf16 %v2271_v24 }
  0x5e   :  { %214 = vadd.xlane.f32.xlu1 %v213_v44  ;;  %v219_v44 = vsel %vm143_vm0, %v3250_v19, 0.0  ;;  %v3257_v19 = vunpack.c.l.bf16 %v2271_v24 }
  0x61   :  { %307 = vadd.xlane.f32.xlu0 %v306_v8  ;;  %v312_v8 = vsel %vm143_vm0, %v3254_v55, 0.0  ;;  %v3259_v55 = vunpack.c.h.bf16 %v2284_v20 }
  0x62   :  { %310 = vadd.xlane.f32.xlu1 %v309_v15  ;;  %v315_v15 = vsel %vm143_vm0, %v3253_v54, 0.0  ;;  %v3260_v54 = vunpack.c.l.bf16 %v2284_v20 }
  0x65   :  { %217 = vadd.xlane.f32.xlu0 %v216_v40  ;;  %v222_v40 = vsel %vm143_vm0, %v3257_v19, 0.0  ;;  %v3262_v19 = vunpack.c.h.bf16 %v2297_v10 }
  0x66   :  { %220 = vadd.xlane.f32.xlu1 %v219_v44  ;;  %v225_v44 = vsel %vm143_vm0, %v3256_v29, 0.0  ;;  %v3263_v29 = vunpack.c.l.bf16 %v2297_v10 }
  0x69   :  { %313 = vadd.xlane.f32.xlu0 %v312_v8  ;;  %v318_v8 = vsel %vm143_vm0, %v3260_v54, 0.0  ;;  %v3265_v54 = vunpack.c.h.bf16 %v2310_v9 }
  0x6a   :  { %316 = vadd.xlane.f32.xlu1 %v315_v15  ;;  %v321_v15 = vsel %vm143_vm0, %v3259_v55, 0.0  ;;  %v3266_v55 = vunpack.c.l.bf16 %v2310_v9 }
  0x6d   :  { %223 = vadd.xlane.f32.xlu0 %v222_v40  ;;  %v228_v40 = vsel %vm143_vm0, %v3263_v29, 0.0  ;;  %v3270_v29 = vunpack.c.h.bf16 %v2323_v62 }
  0x6e   :  { %226 = vadd.xlane.f32.xlu1 %v225_v44  ;;  %v231_v44 = vsel %vm143_vm0, %v3262_v19, 0.0  ;;  %v3268_v19 = vunpack.c.l.bf16 %v2323_v62 }
  0x71   :  { %319 = vadd.xlane.f32.xlu0 %v318_v8  ;;  %v324_v8 = vsel %vm143_vm0, %v3266_v55, 0.0  ;;  %v3275_v55 = vunpack.c.h.bf16 %v2336_v61 }
  0x72   :  { %322 = vadd.xlane.f32.xlu1 %v321_v15  ;;  %v327_v15 = vsel %vm143_vm0, %v3265_v54, 0.0  ;;  %v3272_v54 = vunpack.c.l.bf16 %v2336_v61 }
  0x74   :  { %v330_v57 = vsel %vm143_vm0, %v3272_v54, 0.0 }
  0x75   :  { %229 = vadd.xlane.f32.xlu0 %v228_v40  ;;  %v234_v40 = vsel %vm143_vm0, %v3268_v19, 0.0 }
  0x76   :  { %232 = vadd.xlane.f32.xlu1 %v231_v44  ;;  %v237_v44 = vsel %vm143_vm0, %v3270_v29, 0.0 }
  0x79   :  { %325 = vadd.xlane.f32.xlu0 %v324_v8  ;;  %v333_v8 = vsel %vm143_vm0, %v3275_v55, 0.0 }
  0x7a   :  { %328 = vadd.xlane.f32.xlu1 %v327_v15 }
  0x7d   :  { %235 = vadd.xlane.f32.xlu0 %v234_v40 }
  0x7e   :  { %238 = vadd.xlane.f32.xlu1 %v237_v44 }
  0x81   :  { %331 = vadd.xlane.f32.xlu0 %v330_v57 }
  0x82   :  { %334 = vadd.xlane.f32.xlu1 %v333_v8 }
  0x8e   :  { %v146_v15 = vpop.xlane.xlu0 %145 }
  0x8f   :  { %v242_v19 = vpop.xlane.xlu1 %241  ;;  %v337_v56 = vmul.f32 0.03125, %v146_v15 }
  0x90   :  { %v369_v29 = vmul.f32 0.03125, %v242_v19 }
  0x91   :  { %v2354_v52 = vsub.f32 %v1523_v2, %v337_v56 }
  0x92   :  { %v2358_v40 = vsub.f32 %v1587_v3, %v369_v29  ;;  %v149_v44 = vpop.xlane.xlu0 %148 }
  0x93   :  { %v245_v54 = vpop.xlane.xlu1 %244  ;;  %v338_v51 = vmul.f32 0.03125, %v149_v44  ;;  %v465_v57 = vmul.f32 %v2354_v52, %v2354_v52 }
  0x94   :  { %v370_v47 = vmul.f32 0.03125, %v245_v54  ;;  %v497_v8 = vmul.f32 %v2358_v40, %v2358_v40 }
  0x95   :  { %v2366_v19 = vsub.f32 %v1524_v4, %v338_v51  ;;  %v529_v3 = vsel %vm143_vm0, %v465_v57, 0.0 }
  0x96   :  { %v2370_v2 = vsub.f32 %v1588_v5, %v370_v47  ;;  %530 = vadd.xlane.f32.xlu0 %v529_v3  ;;  %v152_v56 = vpop.xlane.xlu0 %151  ;;  %v625_v54 = vsel %vm143_vm0, %v497_v8, 0.0 }
  0x97   :  { %v155_v29 = vpop.xlane.xlu1 %154  ;;  %v339_v15 = vmul.f32 0.03125, %v152_v56  ;;  %v466_v55 = vmul.f32 %v2366_v19, %v2366_v19 }
  0x98   :  { %v340_v44 = vmul.f32 0.03125, %v155_v29  ;;  %v498_v0 = vmul.f32 %v2370_v2, %v2370_v2 }
  0x99   :  { %v2380_v1 = vsub.f32 %v1527_v11, %v339_v15  ;;  %v532_v5 = vsel %vm143_vm0, %v466_v55, 0.0 }
  0x9a   :  { %v2384_v4 = vsub.f32 %v1528_v12, %v340_v44  ;;  %626 = vadd.xlane.f32.xlu0 %v625_v54  ;;  %533 = vadd.xlane.f32.xlu1 %v532_v5  ;;  %v248_v47 = vpop.xlane.xlu0 %247  ;;  %v628_v57 = vsel %vm143_vm0, %v498_v0, 0.0 }
  0x9b   :  { %v251_v51 = vpop.xlane.xlu1 %250  ;;  %v371_v8 = vmul.f32 0.03125, %v248_v47  ;;  %v467_v56 = vmul.f32 %v2380_v1, %v2380_v1 }
  0x9c   :  { %v372_v3 = vmul.f32 0.03125, %v251_v51  ;;  %v468_v11 = vmul.f32 %v2384_v4, %v2384_v4 }
  0x9d   :  { %v2394_v6 = vsub.f32 %v1591_v16, %v371_v8  ;;  %v535_v55 = vsel %vm143_vm0, %v467_v56, 0.0 }
  0x9e   :  { %v2398_v12 = vsub.f32 %v1592_v17, %v372_v3  ;;  %629 = vadd.xlane.f32.xlu1 %v628_v57  ;;  %536 = vadd.xlane.f32.xlu0 %v535_v55  ;;  %v158_v29 = vpop.xlane.xlu0 %157  ;;  %v538_v15 = vsel %vm143_vm0, %v468_v11, 0.0 }
  0x9f   :  { %v161_v54 = vpop.xlane.xlu1 %160  ;;  %v341_v44 = vmul.f32 0.03125, %v158_v29  ;;  %v499_v5 = vmul.f32 %v2394_v6, %v2394_v6 }
  0xa0   :  { %v342_v0 = vmul.f32 0.03125, %v161_v54  ;;  %v500_v16 = vmul.f32 %v2398_v12, %v2398_v12 }
  0xa1   :  { %v2408_v13 = vsub.f32 %v1531_v21, %v341_v44  ;;  %v631_v47 = vsel %vm143_vm0, %v499_v5, 0.0 }
  0xa2   :  { %v2412_v17 = vsub.f32 %v1532_v22, %v342_v0  ;;  %539 = vadd.xlane.f32.xlu1 %v538_v15  ;;  %632 = vadd.xlane.f32.xlu0 %v631_v47  ;;  %v254_v51 = vpop.xlane.xlu0 %253  ;;  %v634_v8 = vsel %vm143_vm0, %v500_v16, 0.0 }
  0xa3   :  { %v257_v57 = vpop.xlane.xlu1 %256  ;;  %v373_v3 = vmul.f32 0.03125, %v254_v51  ;;  %v469_v11 = vmul.f32 %v2408_v13, %v2408_v13 }
  0xa4   :  { %v374_v56 = vmul.f32 0.03125, %v257_v57  ;;  %v470_v21 = vmul.f32 %v2412_v17, %v2412_v17 }
  0xa5   :  { %v2422_v18 = vsub.f32 %v1595_v26, %v373_v3  ;;  %v541_v55 = vsel %vm143_vm0, %v469_v11, 0.0 }
  0xa6   :  { %v2426_v22 = vsub.f32 %v1596_v27, %v374_v56  ;;  %635 = vadd.xlane.f32.xlu1 %v634_v8  ;;  %542 = vadd.xlane.f32.xlu0 %v541_v55  ;;  %v164_v29 = vpop.xlane.xlu0 %163  ;;  %v544_v15 = vsel %vm143_vm0, %v470_v21, 0.0 }
  0xa7   :  { %v167_v54 = vpop.xlane.xlu1 %166  ;;  %v343_v44 = vmul.f32 0.03125, %v164_v29  ;;  %v501_v5 = vmul.f32 %v2422_v18, %v2422_v18 }
  0xa8   :  { %v344_v0 = vmul.f32 0.03125, %v167_v54  ;;  %v502_v26 = vmul.f32 %v2426_v22, %v2426_v22 }
  0xa9   :  { %v2436_v23 = vsub.f32 %v1535_v31, %v343_v44  ;;  %v637_v16 = vsel %vm143_vm0, %v501_v5, 0.0 }
  0xaa   :  { %v2440_v27 = vsub.f32 %v1536_v32, %v344_v0  ;;  %545 = vadd.xlane.f32.xlu1 %v544_v15  ;;  %638 = vadd.xlane.f32.xlu0 %v637_v16  ;;  %v260_v47 = vpop.xlane.xlu0 %259  ;;  %v640_v57 = vsel %vm143_vm0, %v502_v26, 0.0 }
  0xab   :  { %v263_v51 = vpop.xlane.xlu1 %262  ;;  %v375_v8 = vmul.f32 0.03125, %v260_v47  ;;  %v471_v56 = vmul.f32 %v2436_v23, %v2436_v23 }
  0xac   :  { %v376_v3 = vmul.f32 0.03125, %v263_v51  ;;  %v472_v31 = vmul.f32 %v2440_v27, %v2440_v27 }
  0xad   :  { %v2450_v28 = vsub.f32 %v1599_v36, %v375_v8  ;;  %v547_v11 = vsel %vm143_vm0, %v471_v56, 0.0 }
  0xae   :  { %v2454_v32 = vsub.f32 %v1600_v37, %v376_v3  ;;  %641 = vadd.xlane.f32.xlu1 %v640_v57  ;;  %548 = vadd.xlane.f32.xlu0 %v547_v11  ;;  %v170_v21 = vpop.xlane.xlu0 %169  ;;  %v550_v29 = vsel %vm143_vm0, %v472_v31, 0.0 }
  0xaf   :  { %v173_v55 = vpop.xlane.xlu1 %172  ;;  %v345_v54 = vmul.f32 0.03125, %v170_v21  ;;  %v503_v44 = vmul.f32 %v2450_v28, %v2450_v28 }
  0xb0   :  { %v346_v15 = vmul.f32 0.03125, %v173_v55  ;;  %v504_v36 = vmul.f32 %v2454_v32, %v2454_v32 }
  0xb1   :  { %v2464_v33 = vsub.f32 %v1539_v41, %v345_v54  ;;  %v643_v0 = vsel %vm143_vm0, %v503_v44, 0.0 }
  0xb2   :  { %v2468_v37 = vsub.f32 %v1540_v42, %v346_v15  ;;  %551 = vadd.xlane.f32.xlu1 %v550_v29  ;;  %644 = vadd.xlane.f32.xlu0 %v643_v0  ;;  %v266_v5 = vpop.xlane.xlu0 %265  ;;  %v646_v16 = vsel %vm143_vm0, %v504_v36, 0.0  ;;  %v3296_v42 = vunpack.c.h.bf16 %v2050_v43  ;;  %v3297_v43 = vunpack.c.l.bf16 %v2063_v48 }
  0xb3   :  { %v269_v26 = vpop.xlane.xlu1 %268  ;;  %v377_v47 = vmul.f32 0.03125, %v266_v5  ;;  %v473_v57 = vmul.f32 %v2464_v33, %v2464_v33  ;;  %v3298_v15 = vunpack.c.h.bf16 %v2063_v48 }
  0xb4   :  { %v378_v51 = vmul.f32 0.03125, %v269_v26  ;;  %v474_v41 = vmul.f32 %v2468_v37, %v2468_v37 }
  0xb5   :  { %v2478_v38 = vsub.f32 %v1603_v46, %v377_v47  ;;  %v553_v3 = vsel %vm143_vm0, %v473_v57, 0.0 }
  0xb6   :  { %v2482_v8 = vsub.f32 %v3296_v42, %v378_v51  ;;  %647 = vadd.xlane.f32.xlu1 %v646_v16  ;;  %554 = vadd.xlane.f32.xlu0 %v553_v3  ;;  %v176_v56 = vpop.xlane.xlu0 %175  ;;  %v556_v11 = vsel %vm143_vm0, %v474_v41, 0.0  ;;  %v1786_v16 = vld [vmem:[%s3228_s1 + $0x8] sm:$0xff]   ;;  %v3299_v41 = vunpack.c.l.bf16 %v2076_v53  ;;  %v3300_v3 = vunpack.c.h.bf16 %v2076_v53 }
  0xb7   :  { %v179_v31 = vpop.xlane.xlu1 %178  ;;  %v347_v21 = vmul.f32 0.03125, %v176_v56  ;;  %v505_v29 = vmul.f32 %v2478_v38, %v2478_v38  ;;  %1714 = vmatprep.subr.bf16.mxu0 %v1786_v16  ;;  %1782 = vmatprep.subr.bf16.mxu1 %v1786_v16 }
  0xb8   :  { %v348_v55 = vmul.f32 0.03125, %v179_v31  ;;  %v506_v46 = vmul.f32 %v2482_v8, %v2482_v8  ;;  %1715 = vmatpush3.bf16.msra.mxu0 %v1786_v16  ;;  %1784 = vmatpush3.bf16.msra.mxu1 %v1786_v16 }
  0xb9   :  { %v2492_v54 = vsub.f32 %v3297_v43, %v347_v21  ;;  %v649_v36 = vsel %vm143_vm0, %v505_v29, 0.0 }
  0xba   :  { %v2496_v44 = vsub.f32 %v3298_v15, %v348_v55  ;;  %557 = vadd.xlane.f32.xlu1 %v556_v11  ;;  %650 = vadd.xlane.f32.xlu0 %v649_v36  ;;  %v272_v0 = vpop.xlane.xlu0 %271  ;;  %v652_v26 = vsel %vm143_vm0, %v506_v46, 0.0  ;;  %v1787_v11 = vld [vmem:[%s3228_s1] sm:$0xff]   ;;  %v3301_v36 = vunpack.c.l.bf16 %v2089_v58 }
  0xbb   :  { %v275_v5 = vpop.xlane.xlu1 %274  ;;  %v379_v47 = vmul.f32 0.03125, %v272_v0  ;;  %v475_v57 = vmul.f32 %v2492_v54, %v2492_v54  ;;  %1716 = vmatprep.subr.bf16.mxu0 %v1787_v11  ;;  %1783 = vmatprep.subr.bf16.mxu1 %v1787_v11 }
  0xbc   :  { %v380_v51 = vmul.f32 0.03125, %v275_v5  ;;  %v476_v48 = vmul.f32 %v2496_v44, %v2496_v44  ;;  %v3302_v5 = vunpack.c.h.bf16 %v2089_v58  ;;  %1717 = vmatpush3.bf16.msra.mxu0 %v1787_v11  ;;  %1785 = vmatpush3.bf16.msra.mxu1 %v1787_v11  ;;  %v3304_v11 = vunpack.c.h.bf16 %v2102_v63 }
  0xbd   :  { %v2509_v42 = vsub.f32 %v3299_v41, %v379_v47  ;;  %v559_v31 = vsel %vm143_vm0, %v475_v57, 0.0 }
  0xbe   :  { %v2513_v56 = vsub.f32 %v3300_v3, %v380_v51  ;;  %653 = vadd.xlane.f32.xlu1 %v652_v26  ;;  %560 = vadd.xlane.f32.xlu0 %v559_v31  ;;  %v182_v21 = vpop.xlane.xlu0 %181  ;;  %v562_v29 = vsel %vm143_vm0, %v476_v48, 0.0  ;;  %v3303_v31 = vunpack.c.l.bf16 %v2102_v63  ;;  %v3305_v63 = vunpack.c.l.bf16 %v2115_v14 }
  0xbf   :  { %v185_v55 = vpop.xlane.xlu1 %184  ;;  %v349_v46 = vmul.f32 0.03125, %v182_v21  ;;  %v507_v53 = vmul.f32 %v2509_v42, %v2509_v42 }
  0xc0   :  { %v350_v43 = vmul.f32 0.03125, %v185_v55  ;;  %v508_v15 = vmul.f32 %v2513_v56, %v2513_v56 }
  0xc1   :  { %v2526_v0 = vsub.f32 %v3301_v36, %v349_v46  ;;  %v655_v16 = vsel %vm143_vm0, %v507_v53, 0.0 }
  0xc2   :  { %v2530_v26 = vsub.f32 %v3302_v5, %v350_v43  ;;  %563 = vadd.xlane.f32.xlu1 %v562_v29  ;;  %656 = vadd.xlane.f32.xlu0 %v655_v16  ;;  %v278_v47 = vpop.xlane.xlu0 %277  ;;  %v658_v57 = vsel %vm143_vm0, %v508_v15, 0.0 }
  0xc3   :  { %v281_v51 = vpop.xlane.xlu1 %280  ;;  %v381_v48 = vmul.f32 0.03125, %v278_v47  ;;  %v477_v3 = vmul.f32 %v2526_v0, %v2526_v0 }
  0xc4   :  { %v382_v41 = vmul.f32 0.03125, %v281_v51  ;;  %v478_v58 = vmul.f32 %v2530_v26, %v2530_v26  ;;  %v3306_v51 = vunpack.c.h.bf16 %v2115_v14  ;;  %v3307_v14 = vunpack.c.l.bf16 %v2128_v25 }
  0xc5   :  { %v2540_v21 = vsub.f32 %v3303_v31, %v381_v48  ;;  %v565_v29 = vsel %vm143_vm0, %v477_v3, 0.0 }
  0xc6   :  { %v2544_v55 = vsub.f32 %v3304_v11, %v382_v41  ;;  %659 = vadd.xlane.f32.xlu1 %v658_v57  ;;  %566 = vadd.xlane.f32.xlu0 %v565_v29  ;;  %v188_v46 = vpop.xlane.xlu0 %187  ;;  %v568_v53 = vsel %vm143_vm0, %v478_v58, 0.0 }
  0xc7   :  { %v191_v43 = vpop.xlane.xlu1 %190  ;;  %v351_v15 = vmul.f32 0.03125, %v188_v46  ;;  %v509_v5 = vmul.f32 %v2540_v21, %v2540_v21 }
  0xc8   :  { %v352_v36 = vmul.f32 0.03125, %v191_v43  ;;  %v510_v16 = vmul.f32 %v2544_v55, %v2544_v55 }
  0xc9   :  { %v2554_v47 = vsub.f32 %v3305_v63, %v351_v15  ;;  %v661_v48 = vsel %vm143_vm0, %v509_v5, 0.0  ;;  %v3308_v15 = vunpack.c.h.bf16 %v2128_v25  ;;  %v3309_v25 = vunpack.c.l.bf16 %v2141_v39 }
  0xca   :  { %v2558_v57 = vsub.f32 %v3306_v51, %v352_v36  ;;  %569 = vadd.xlane.f32.xlu1 %v568_v53  ;;  %662 = vadd.xlane.f32.xlu0 %v661_v48  ;;  %v284_v41 = vpop.xlane.xlu0 %283  ;;  %v664_v58 = vsel %vm143_vm0, %v510_v16, 0.0 }
  0xcb   :  { %v287_v3 = vpop.xlane.xlu1 %286  ;;  %v383_v31 = vmul.f32 0.03125, %v284_v41  ;;  %v479_v29 = vmul.f32 %v2554_v47, %v2554_v47 }
  0xcc   :  { %v384_v11 = vmul.f32 0.03125, %v287_v3  ;;  %v480_v46 = vmul.f32 %v2558_v57, %v2558_v57 }
  0xcd   :  { %v2568_v43 = vsub.f32 %v3307_v14, %v383_v31  ;;  %v571_v36 = vsel %vm143_vm0, %v479_v29, 0.0 }
  0xce   :  { %v2572_v53 = vsub.f32 %v3308_v15, %v384_v11  ;;  %665 = vadd.xlane.f32.xlu1 %v664_v58  ;;  %572 = vadd.xlane.f32.xlu0 %v571_v36  ;;  %v194_v5 = vpop.xlane.xlu0 %193  ;;  %v574_v63 = vsel %vm143_vm0, %v480_v46, 0.0  ;;  %v3310_v11 = vunpack.c.h.bf16 %v2141_v39  ;;  %v3312_v39 = vunpack.c.l.bf16 %v2154_v50 }
  0xcf   :  { %v197_v16 = vpop.xlane.xlu1 %196  ;;  %v353_v51 = vmul.f32 0.03125, %v194_v5  ;;  %v511_v41 = vmul.f32 %v2568_v43, %v2568_v43 }
  0xd0   :  { %v354_v48 = vmul.f32 0.03125, %v197_v16  ;;  %v512_v3 = vmul.f32 %v2572_v53, %v2572_v53 }
  0xd1   :  { %v2582_v31 = vsub.f32 %v3309_v25, %v353_v51  ;;  %v667_v29 = vsel %vm143_vm0, %v511_v41, 0.0  ;;  %v3313_v41 = vunpack.c.h.bf16 %v2154_v50  ;;  %v3315_v50 = vunpack.c.l.bf16 %v2167_v7 }
  0xd2   :  { %v2586_v58 = vsub.f32 %v3310_v11, %v354_v48  ;;  %575 = vadd.xlane.f32.xlu1 %v574_v63  ;;  %668 = vadd.xlane.f32.xlu0 %v667_v29  ;;  %v290_v46 = vpop.xlane.xlu0 %289  ;;  %v670_v15 = vsel %vm143_vm0, %v512_v3, 0.0 }
  0xd3   :  { %v293_v14 = vpop.xlane.xlu1 %292  ;;  %v385_v36 = vmul.f32 0.03125, %v290_v46  ;;  %v481_v16 = vmul.f32 %v2582_v31, %v2582_v31 }
  0xd4   :  { %3311 = vst [vmem:[#allocation2_spill] sm:$0xff] %v2586_v58  ;;  %v386_v5 = vmul.f32 0.03125, %v293_v14  ;;  %v482_v51 = vmul.f32 %v2586_v58, %v2586_v58 }
  0xd5   :  { %v2596_v48 = vsub.f32 %v3312_v39, %v385_v36  ;;  %v577_v25 = vsel %vm143_vm0, %v481_v16, 0.0  ;;  %v3316_v16 = vunpack.c.h.bf16 %v2167_v7  ;;  %v3318_v7 = vunpack.c.l.bf16 %v2180_v30 }
  0xd6   :  { %v2600_v63 = vsub.f32 %v3313_v41, %v386_v5  ;;  %671 = vadd.xlane.f32.xlu1 %v670_v15  ;;  %578 = vadd.xlane.f32.xlu0 %v577_v25  ;;  %v200_v3 = vpop.xlane.xlu0 %199  ;;  %v580_v29 = vsel %vm143_vm0, %v482_v51, 0.0 }
  0xd7   :  { %v203_v11 = vpop.xlane.xlu1 %202  ;;  %v355_v46 = vmul.f32 0.03125, %v200_v3  ;;  %v513_v58 = vmul.f32 %v2596_v48, %v2596_v48 }
  0xd8   :  { %3314 = vst [vmem:[#allocation3_spill] sm:$0xff] %v2600_v63  ;;  %v356_v14 = vmul.f32 0.03125, %v203_v11  ;;  %v514_v36 = vmul.f32 %v2600_v63, %v2600_v63 }
  0xd9   :  { %v2610_v5 = vsub.f32 %v3315_v50, %v355_v46  ;;  %v673_v39 = vsel %vm143_vm0, %v513_v58, 0.0  ;;  %v3319_v58 = vunpack.c.h.bf16 %v2180_v30  ;;  %v3321_v30 = vunpack.c.l.bf16 %v2193_v60 }
  0xda   :  { %v2614_v15 = vsub.f32 %v3316_v16, %v356_v14  ;;  %581 = vadd.xlane.f32.xlu1 %v580_v29  ;;  %674 = vadd.xlane.f32.xlu0 %v673_v39  ;;  %v296_v51 = vpop.xlane.xlu0 %295  ;;  %v676_v25 = vsel %vm143_vm0, %v514_v36, 0.0 }
  0xdb   :  { %v299_v41 = vpop.xlane.xlu1 %298  ;;  %v387_v3 = vmul.f32 0.03125, %v296_v51  ;;  %v483_v63 = vmul.f32 %v2610_v5, %v2610_v5 }
  0xdc   :  { %3317 = vst [vmem:[#allocation4_spill] sm:$0xff] %v2614_v15  ;;  %v388_v11 = vmul.f32 0.03125, %v299_v41  ;;  %v484_v46 = vmul.f32 %v2614_v15, %v2614_v15 }
  0xdd   :  { %v2624_v14 = vsub.f32 %v3318_v7, %v387_v3  ;;  %v583_v50 = vsel %vm143_vm0, %v483_v63, 0.0  ;;  %v3322_v63 = vunpack.c.h.bf16 %v2193_v60  ;;  %v3324_v60 = vunpack.c.l.bf16 %v2206_v59 }
  0xde   :  { %v2628_v29 = vsub.f32 %v3319_v58, %v388_v11  ;;  %677 = vadd.xlane.f32.xlu1 %v676_v25  ;;  %584 = vadd.xlane.f32.xlu0 %v583_v50  ;;  %v206_v36 = vpop.xlane.xlu0 %205  ;;  %v586_v39 = vsel %vm143_vm0, %v484_v46, 0.0 }
  0xdf   :  { %v209_v16 = vpop.xlane.xlu1 %208  ;;  %v357_v51 = vmul.f32 0.03125, %v206_v36  ;;  %v515_v15 = vmul.f32 %v2624_v14, %v2624_v14 }
  0xe0   :  { %3320 = vst [vmem:[#allocation5_spill] sm:$0xff] %v2628_v29  ;;  %v358_v41 = vmul.f32 0.03125, %v209_v16  ;;  %v516_v3 = vmul.f32 %v2628_v29, %v2628_v29 }
  0xe1   :  { %v2638_v11 = vsub.f32 %v3321_v30, %v357_v51  ;;  %v679_v7 = vsel %vm143_vm0, %v515_v15, 0.0  ;;  %v3325_v15 = vunpack.c.h.bf16 %v2206_v59  ;;  %v3327_v59 = vunpack.c.l.bf16 %v2219_v49 }
  0xe2   :  { %v2642_v25 = vsub.f32 %v3322_v63, %v358_v41  ;;  %587 = vadd.xlane.f32.xlu1 %v586_v39  ;;  %680 = vadd.xlane.f32.xlu0 %v679_v7  ;;  %v302_v46 = vpop.xlane.xlu0 %301  ;;  %v682_v50 = vsel %vm143_vm0, %v516_v3, 0.0 }
  0xe3   :  { %v305_v58 = vpop.xlane.xlu1 %304  ;;  %v389_v36 = vmul.f32 0.03125, %v302_v46  ;;  %v485_v29 = vmul.f32 %v2638_v11, %v2638_v11 }
  0xe4   :  { %3323 = vst [vmem:[#allocation6_spill] sm:$0xff] %v2642_v25  ;;  %v390_v16 = vmul.f32 0.03125, %v305_v58  ;;  %v486_v51 = vmul.f32 %v2642_v25, %v2642_v25 }
  0xe5   :  { %v2652_v41 = vsub.f32 %v3324_v60, %v389_v36  ;;  %v589_v30 = vsel %vm143_vm0, %v485_v29, 0.0  ;;  %v3328_v29 = vunpack.c.h.bf16 %v2219_v49  ;;  %v3330_v49 = vunpack.c.l.bf16 %v2232_v45 }
  0xe6   :  { %v2656_v39 = vsub.f32 %v3325_v15, %v390_v16  ;;  %683 = vadd.xlane.f32.xlu1 %v682_v50  ;;  %590 = vadd.xlane.f32.xlu0 %v589_v30  ;;  %v212_v3 = vpop.xlane.xlu0 %211  ;;  %v592_v7 = vsel %vm143_vm0, %v486_v51, 0.0 }
  0xe7   :  { %v215_v63 = vpop.xlane.xlu1 %214  ;;  %v359_v46 = vmul.f32 0.03125, %v212_v3  ;;  %v517_v25 = vmul.f32 %v2652_v41, %v2652_v41 }
  0xe8   :  { %3326 = vst [vmem:[#allocation7_spill] sm:$0xff] %v2656_v39  ;;  %v360_v58 = vmul.f32 0.03125, %v215_v63  ;;  %v518_v36 = vmul.f32 %v2656_v39, %v2656_v39 }
  0xe9   :  { %v2666_v16 = vsub.f32 %v3327_v59, %v359_v46  ;;  %v685_v60 = vsel %vm143_vm0, %v517_v25, 0.0  ;;  %v3331_v25 = vunpack.c.h.bf16 %v2232_v45  ;;  %v3333_v45 = vunpack.c.l.bf16 %v2245_v35 }
  0xea   :  { %v2670_v50 = vsub.f32 %v3328_v29, %v360_v58  ;;  %593 = vadd.xlane.f32.xlu1 %v592_v7  ;;  %686 = vadd.xlane.f32.xlu0 %v685_v60  ;;  %v308_v51 = vpop.xlane.xlu0 %307  ;;  %v688_v30 = vsel %vm143_vm0, %v518_v36, 0.0 }
  0xeb   :  { %v311_v15 = vpop.xlane.xlu1 %310  ;;  %v391_v3 = vmul.f32 0.03125, %v308_v51  ;;  %v487_v39 = vmul.f32 %v2666_v16, %v2666_v16 }
  0xec   :  { %3329 = vst [vmem:[#allocation8_spill] sm:$0xff] %v2670_v50  ;;  %v392_v63 = vmul.f32 0.03125, %v311_v15  ;;  %v488_v46 = vmul.f32 %v2670_v50, %v2670_v50 }
  0xed   :  { %v2680_v58 = vsub.f32 %v3330_v49, %v391_v3  ;;  %v595_v59 = vsel %vm143_vm0, %v487_v39, 0.0  ;;  %v3334_v39 = vunpack.c.h.bf16 %v2245_v35  ;;  %v3336_v35 = vunpack.c.l.bf16 %v2258_v34 }
  0xee   :  { %v2684_v7 = vsub.f32 %v3331_v25, %v392_v63  ;;  %689 = vadd.xlane.f32.xlu1 %v688_v30  ;;  %596 = vadd.xlane.f32.xlu0 %v595_v59  ;;  %v218_v36 = vpop.xlane.xlu0 %217  ;;  %v598_v60 = vsel %vm143_vm0, %v488_v46, 0.0 }
  0xef   :  { %v221_v29 = vpop.xlane.xlu1 %220  ;;  %v361_v51 = vmul.f32 0.03125, %v218_v36  ;;  %v519_v50 = vmul.f32 %v2680_v58, %v2680_v58 }
  0xf0   :  { %3332 = vst [vmem:[#allocation9_spill] sm:$0xff] %v2684_v7  ;;  %v362_v15 = vmul.f32 0.03125, %v221_v29  ;;  %v520_v3 = vmul.f32 %v2684_v7, %v2684_v7 }
  0xf1   :  { %v2694_v63 = vsub.f32 %v3333_v45, %v361_v51  ;;  %v691_v49 = vsel %vm143_vm0, %v519_v50, 0.0  ;;  %v3337_v50 = vunpack.c.h.bf16 %v2258_v34  ;;  %v3339_v34 = vunpack.c.l.bf16 %v2271_v24 }
  0xf2   :  { %v2698_v30 = vsub.f32 %v3334_v39, %v362_v15  ;;  %599 = vadd.xlane.f32.xlu1 %v598_v60  ;;  %692 = vadd.xlane.f32.xlu0 %v691_v49  ;;  %v314_v46 = vpop.xlane.xlu0 %313  ;;  %v694_v59 = vsel %vm143_vm0, %v520_v3, 0.0 }
  0xf3   :  { %v317_v25 = vpop.xlane.xlu1 %316  ;;  %v393_v36 = vmul.f32 0.03125, %v314_v46  ;;  %v489_v7 = vmul.f32 %v2694_v63, %v2694_v63 }
  0xf4   :  { %3335 = vst [vmem:[#allocation10_spill] sm:$0xff] %v2698_v30  ;;  %v394_v29 = vmul.f32 0.03125, %v317_v25  ;;  %v490_v51 = vmul.f32 %v2698_v30, %v2698_v30 }
  0xf5   :  { %v2708_v15 = vsub.f32 %v3336_v35, %v393_v36  ;;  %v601_v45 = vsel %vm143_vm0, %v489_v7, 0.0  ;;  %v3340_v7 = vunpack.c.h.bf16 %v2271_v24  ;;  %v3342_v24 = vunpack.c.l.bf16 %v2284_v20 }
  0xf6   :  { %v2712_v60 = vsub.f32 %v3337_v50, %v394_v29  ;;  %695 = vadd.xlane.f32.xlu1 %v694_v59  ;;  %602 = vadd.xlane.f32.xlu0 %v601_v45  ;;  %v224_v3 = vpop.xlane.xlu0 %223  ;;  %v604_v49 = vsel %vm143_vm0, %v490_v51, 0.0 }
  0xf7   :  { %v227_v39 = vpop.xlane.xlu1 %226  ;;  %v363_v46 = vmul.f32 0.03125, %v224_v3  ;;  %v521_v30 = vmul.f32 %v2708_v15, %v2708_v15 }
  0xf8   :  { %3338 = vst [vmem:[#allocation11_spill] sm:$0xff] %v2712_v60  ;;  %v364_v25 = vmul.f32 0.03125, %v227_v39  ;;  %v522_v36 = vmul.f32 %v2712_v60, %v2712_v60 }
  0xf9   :  { %v2722_v29 = vsub.f32 %v3339_v34, %v363_v46  ;;  %v697_v35 = vsel %vm143_vm0, %v521_v30, 0.0  ;;  %v3343_v30 = vunpack.c.h.bf16 %v2284_v20  ;;  %v3345_v20 = vunpack.c.l.bf16 %v2297_v10 }
  0xfa   :  { %v2726_v59 = vsub.f32 %v3340_v7, %v364_v25  ;;  %605 = vadd.xlane.f32.xlu1 %v604_v49  ;;  %698 = vadd.xlane.f32.xlu0 %v697_v35  ;;  %v320_v51 = vpop.xlane.xlu0 %319  ;;  %v700_v45 = vsel %vm143_vm0, %v522_v36, 0.0 }
  0xfb   :  { %v323_v50 = vpop.xlane.xlu1 %322  ;;  %v395_v3 = vmul.f32 0.03125, %v320_v51  ;;  %v491_v60 = vmul.f32 %v2722_v29, %v2722_v29 }
  0xfc   :  { %3341 = vst [vmem:[#allocation12_spill] sm:$0xff] %v2726_v59  ;;  %v396_v39 = vmul.f32 0.03125, %v323_v50  ;;  %v492_v46 = vmul.f32 %v2726_v59, %v2726_v59 }
  0xfd   :  { %v2736_v25 = vsub.f32 %v3342_v24, %v395_v3  ;;  %v607_v34 = vsel %vm143_vm0, %v491_v60, 0.0  ;;  %v3347_v60 = vunpack.c.h.bf16 %v2297_v10  ;;  %v3349_v10 = vunpack.c.l.bf16 %v2310_v9 }
  0xfe   :  { %v2740_v49 = vsub.f32 %v3343_v30, %v396_v39  ;;  %701 = vadd.xlane.f32.xlu1 %v700_v45  ;;  %608 = vadd.xlane.f32.xlu0 %v607_v34  ;;  %v230_v36 = vpop.xlane.xlu0 %229  ;;  %v610_v35 = vsel %vm143_vm0, %v492_v46, 0.0 }
  0xff   :  { %v233_v7 = vpop.xlane.xlu1 %232  ;;  %v365_v51 = vmul.f32 0.03125, %v230_v36  ;;  %v523_v59 = vmul.f32 %v2736_v25, %v2736_v25 }
 0x100   :  { %3344 = vst [vmem:[#allocation13_spill] sm:$0xff] %v2740_v49  ;;  %v366_v50 = vmul.f32 0.03125, %v233_v7  ;;  %v524_v3 = vmul.f32 %v2740_v49, %v2740_v49 }
 0x101   :  { %v2750_v39 = vsub.f32 %v3345_v20, %v365_v51  ;;  %v703_v24 = vsel %vm143_vm0, %v523_v59, 0.0  ;;  %v3351_v59 = vunpack.c.h.bf16 %v2310_v9  ;;  %v3353_v9 = vunpack.c.l.bf16 %v2323_v62 }
 0x102   :  { %v2754_v45 = vsub.f32 %v3347_v60, %v366_v50  ;;  %611 = vadd.xlane.f32.xlu1 %v610_v35  ;;  %704 = vadd.xlane.f32.xlu0 %v703_v24  ;;  %v326_v46 = vpop.xlane.xlu0 %325  ;;  %v706_v34 = vsel %vm143_vm0, %v524_v3, 0.0 }
 0x103   :  { %3346 = vst [vmem:[#allocation14_spill] sm:$0xff] %v2750_v39  ;;  %v329_v30 = vpop.xlane.xlu1 %328  ;;  %v397_v36 = vmul.f32 0.03125, %v326_v46  ;;  %v493_v49 = vmul.f32 %v2750_v39, %v2750_v39 }
 0x104   :  { %3348 = vst [vmem:[#allocation15_spill] sm:$0xff] %v2754_v45  ;;  %v398_v7 = vmul.f32 0.03125, %v329_v30  ;;  %v494_v51 = vmul.f32 %v2754_v45, %v2754_v45 }
 0x105   :  { %v2764_v50 = vsub.f32 %v3349_v10, %v397_v36  ;;  %v613_v20 = vsel %vm143_vm0, %v493_v49, 0.0  ;;  %v3355_v49 = vunpack.c.h.bf16 %v2323_v62  ;;  %v3357_v62 = vunpack.c.l.bf16 %v2336_v61 }
 0x106   :  { %v2768_v35 = vsub.f32 %v3351_v59, %v398_v7  ;;  %707 = vadd.xlane.f32.xlu1 %v706_v34  ;;  %614 = vadd.xlane.f32.xlu0 %v613_v20  ;;  %v236_v3 = vpop.xlane.xlu0 %235  ;;  %v616_v24 = vsel %vm143_vm0, %v494_v51, 0.0 }
 0x107   :  { %3350 = vst [vmem:[#allocation16_spill] sm:$0xff] %v2764_v50  ;;  %v239_v60 = vpop.xlane.xlu1 %238  ;;  %v367_v46 = vmul.f32 0.03125, %v236_v3  ;;  %v525_v45 = vmul.f32 %v2764_v50, %v2764_v50 }
 0x108   :  { %3352 = vst [vmem:[#allocation17_spill] sm:$0xff] %v2768_v35  ;;  %v368_v30 = vmul.f32 0.03125, %v239_v60  ;;  %v526_v36 = vmul.f32 %v2768_v35, %v2768_v35 }
 0x109   :  { %v2778_v7 = vsub.f32 %v3353_v9, %v367_v46  ;;  %v709_v10 = vsel %vm143_vm0, %v525_v45, 0.0  ;;  %v3359_v45 = vunpack.c.h.bf16 %v2336_v61 }
 0x10a   :  { %v2782_v34 = vsub.f32 %v3355_v49, %v368_v30  ;;  %617 = vadd.xlane.f32.xlu1 %v616_v24  ;;  %710 = vadd.xlane.f32.xlu0 %v709_v10  ;;  %v332_v51 = vpop.xlane.xlu0 %331  ;;  %v712_v20 = vsel %vm143_vm0, %v526_v36, 0.0 }
 0x10b   :  { %3354 = vst [vmem:[#allocation18_spill] sm:$0xff] %v2778_v7  ;;  %v335_v59 = vpop.xlane.xlu1 %334  ;;  %v399_v3 = vmul.f32 0.03125, %v332_v51  ;;  %v495_v35 = vmul.f32 %v2778_v7, %v2778_v7 }
 0x10c   :  { %3356 = vst [vmem:[#allocation19_spill] sm:$0xff] %v2782_v34  ;;  %v400_v60 = vmul.f32 0.03125, %v335_v59  ;;  %v496_v46 = vmul.f32 %v2782_v34, %v2782_v34 }
 0x10d   :  { %v2792_v30 = vsub.f32 %v3357_v62, %v399_v3  ;;  %v619_v9 = vsel %vm143_vm0, %v495_v35, 0.0 }
 0x10e   :  { %v2796_v24 = vsub.f32 %v3359_v45, %v400_v60  ;;  %713 = vadd.xlane.f32.xlu1 %v712_v20  ;;  %620 = vadd.xlane.f32.xlu0 %v619_v9  ;;  %v622_v36 = vsel %vm143_vm0, %v496_v46, 0.0 }
 0x10f   :  { %3358 = vst [vmem:[#allocation20_spill] sm:$0xff] %v2792_v30  ;;  %v527_v49 = vmul.f32 %v2792_v30, %v2792_v30 }
 0x110   :  { %3360 = vst [vmem:[#allocation21_spill] sm:$0xff] %v2796_v24  ;;  %v528_v10 = vmul.f32 %v2796_v24, %v2796_v24 }
 0x111   :  { %v715_v51 = vsel %vm143_vm0, %v527_v49, 0.0 }
 0x112   :  { %623 = vadd.xlane.f32.xlu1 %v622_v36  ;;  %716 = vadd.xlane.f32.xlu0 %v715_v51  ;;  %v718_v61 = vsel %vm143_vm0, %v528_v10, 0.0 }
 0x116   :  { %719 = vadd.xlane.f32.xlu1 %v718_v61 }
 0x11f   :  { %v531_v59 = vpop.xlane.xlu0 %530 }
 0x120   :  { %v721_v3 = vmul.f32 0.03125, %v531_v59 }
 0x122   :  { %v785_v35 = vadd.f32 1e-05, %v721_v3 }
 0x123   :  { %v534_v20 = vpop.xlane.xlu1 %533  ;;  %v627_v60 = vpop.xlane.xlu0 %626 }
 0x124   :  { %v722_v62 = vmul.f32 0.03125, %v534_v20  ;;  %v753_v46 = vmul.f32 0.03125, %v627_v60  ;;  %1788 = vrsqrt.f32 %v785_v35 }
 0x126   :  { %v786_v45 = vadd.f32 1e-05, %v722_v62  ;;  %v817_v9 = vadd.f32 1e-05, %v753_v46 }
 0x127   :  { %v630_v30 = vpop.xlane.xlu1 %629  ;;  %v537_v34 = vpop.xlane.xlu0 %536 }
 0x128   :  { %1790 = vrsqrt.f32 %v786_v45  ;;  %v754_v24 = vmul.f32 0.03125, %v630_v30  ;;  %v723_v49 = vmul.f32 0.03125, %v537_v34 }
 0x129   :  { %1792 = vrsqrt.f32 %v817_v9 }
 0x12a   :  { %v818_v36 = vadd.f32 1e-05, %v754_v24  ;;  %v787_v51 = vadd.f32 1e-05, %v723_v49 }
 0x12b   :  { %v540_v10 = vpop.xlane.xlu1 %539  ;;  %v633_v61 = vpop.xlane.xlu0 %632 }
 0x12c   :  { %1794 = vrsqrt.f32 %v818_v36  ;;  %v724_v59 = vmul.f32 0.03125, %v540_v10  ;;  %v755_v3 = vmul.f32 0.03125, %v633_v61 }
 0x12d   :  { %1796 = vrsqrt.f32 %v787_v51 }
 0x12e   :  { %v788_v7 = vadd.f32 1e-05, %v724_v59  ;;  %v819_v20 = vadd.f32 1e-05, %v755_v3 }
 0x12f   :  { %v636_v60 = vpop.xlane.xlu1 %635  ;;  %v543_v35 = vpop.xlane.xlu0 %542 }
 0x130   :  { %1798 = vrsqrt.f32 %v788_v7  ;;  %v756_v62 = vmul.f32 0.03125, %v636_v60  ;;  %v725_v46 = vmul.f32 0.03125, %v543_v35 }
 0x131   :  { %v1789_v50 = vpop.eup %1788  ;;  %1800 = vrsqrt.f32 %v819_v20 }
 0x132   :  { %v820_v30 = vadd.f32 1e-05, %v756_v62  ;;  %v789_v34 = vadd.f32 1e-05, %v725_v46  ;;  %v913_v10 = vmul.f32 %v1789_v50, %v2354_v52 }
 0x133   :  { %v546_v45 = vpop.xlane.xlu1 %545  ;;  %v639_v24 = vpop.xlane.xlu0 %638 }
 0x134   :  { %1802 = vrsqrt.f32 %v820_v30  ;;  %v726_v9 = vmul.f32 0.03125, %v546_v45  ;;  %v757_v49 = vmul.f32 0.03125, %v639_v24 }
 0x135   :  { %v1791_v36 = vpop.eup %1790  ;;  %1804 = vrsqrt.f32 %v789_v34 }
 0x136   :  { %v1793_v51 = vpop.eup %1792  ;;  %v790_v61 = vadd.f32 1e-05, %v726_v9  ;;  %v821_v59 = vadd.f32 1e-05, %v757_v49  ;;  %v914_v7 = vmul.f32 %v1791_v36, %v2366_v19 }
 0x137   :  { %v642_v3 = vpop.xlane.xlu1 %641  ;;  %v549_v60 = vpop.xlane.xlu0 %548  ;;  %v945_v30 = vmul.f32 %v1793_v51, %v2358_v40 }
 0x138   :  { %1806 = vrsqrt.f32 %v790_v61  ;;  %v758_v20 = vmul.f32 0.03125, %v642_v3  ;;  %v727_v35 = vmul.f32 0.03125, %v549_v60  ;;  %v977_v62 = vpack.c.bf16 %v914_v7, %v913_v10 }
 0x139   :  { %v1795_v46 = vpop.eup %1794  ;;  %1808 = vrsqrt.f32 %v821_v59 }
 0x13a   :  { %v1797_v45 = vpop.eup %1796  ;;  %v822_v24 = vadd.f32 1e-05, %v758_v20  ;;  %v791_v39 = vadd.f32 1e-05, %v727_v35  ;;  %1718 = vmatprep.mubr.msk.bf16.mxu0 %vm143_vm0, %v977_v62  ;;  %v946_v52 = vmul.f32 %v1795_v46, %v2370_v2 }
 0x13b   :  { %v552_v50 = vpop.xlane.xlu1 %551  ;;  %v645_v34 = vpop.xlane.xlu0 %644  ;;  %v915_v10 = vmul.f32 %v1797_v45, %v2380_v1 }
 0x13c   :  { %1810 = vrsqrt.f32 %v822_v24  ;;  %v728_v19 = vmul.f32 0.03125, %v552_v50  ;;  %v759_v9 = vmul.f32 0.03125, %v645_v34  ;;  %v993_v49 = vpack.c.bf16 %v946_v52, %v945_v30 }
 0x13d   :  { %v1799_v36 = vpop.eup %1798  ;;  %1812 = vrsqrt.f32 %v791_v39 }
 0x13e   :  { %v792_v61 = vadd.f32 1e-05, %v728_v19  ;;  %v823_v40 = vadd.f32 1e-05, %v759_v9  ;;  %1750 = vmatprep.mubr.msk.bf16.mxu1 %vm143_vm0, %v993_v49  ;;  %v916_v51 = vmul.f32 %v1799_v36, %v2384_v4  ;;  %v1801_v59 = vpop.eup %1800 }
 0x13f   :  { %v648_v7 = vpop.xlane.xlu1 %647  ;;  %v555_v3 = vpop.xlane.xlu0 %554  ;;  %v947_v1 = vmul.f32 %v1801_v59, %v2394_v6 }
 0x140   :  { %1814 = vrsqrt.f32 %v792_v61  ;;  %v760_v2 = vmul.f32 0.03125, %v648_v7  ;;  %v729_v60 = vmul.f32 0.03125, %v555_v3  ;;  %v978_v20 = vpack.c.bf16 %v916_v51, %v915_v10 }
 0x141   :  { %v1803_v35 = vpop.eup %1802  ;;  %1816 = vrsqrt.f32 %v823_v40 }
 0x142   :  { %v824_v62 = vadd.f32 1e-05, %v760_v2  ;;  %v793_v46 = vadd.f32 1e-05, %v729_v60  ;;  %1719 = vmatmul.mubr.msk.bf16.vlgmr.msra.gmra.mxu0 %vm143_vm0, %v978_v20  ;;  %v948_v39 = vmul.f32 %v1803_v35, %v2398_v12  ;;  %v1805_v30 = vpop.eup %1804 }
 0x143   :  { %v558_v45 = vpop.xlane.xlu1 %557  ;;  %v651_v4 = vpop.xlane.xlu0 %650  ;;  %v917_v49 = vmul.f32 %v1805_v30, %v2408_v13 }
 0x144   :  { %1818 = vrsqrt.f32 %v824_v62  ;;  %v730_v24 = vmul.f32 0.03125, %v558_v45  ;;  %v761_v52 = vmul.f32 0.03125, %v651_v4  ;;  %v994_v50 = vpack.c.bf16 %v948_v39, %v947_v1 }
 0x145   :  { %v1807_v34 = vpop.eup %1806  ;;  %1820 = vrsqrt.f32 %v793_v46 }
 0x146   :  { %v794_v19 = vadd.f32 1e-05, %v730_v24  ;;  %v825_v9 = vadd.f32 1e-05, %v761_v52  ;;  %1751 = vmatmul.mubr.msk.bf16.vlgmr.msra.gmra.mxu1 %vm143_vm0, %v994_v50  ;;  %v918_v36 = vmul.f32 %v1807_v34, %v2412_v17  ;;  %v1809_v6 = vpop.eup %1808 }
 0x147   :  { %v654_v10 = vpop.xlane.xlu1 %653  ;;  %v561_v12 = vpop.xlane.xlu0 %560  ;;  %v949_v2 = vmul.f32 %v1809_v6, %v2422_v18 }
 0x148   :  { %1822 = vrsqrt.f32 %v794_v19  ;;  %v762_v61 = vmul.f32 0.03125, %v654_v10  ;;  %v731_v40 = vmul.f32 0.03125, %v561_v12  ;;  %v979_v51 = vpack.c.bf16 %v918_v36, %v917_v49 }
 0x149   :  { %v1811_v59 = vpop.eup %1810  ;;  %1824 = vrsqrt.f32 %v825_v9 }
 0x14a   :  { %v826_v7 = vadd.f32 1e-05, %v762_v61  ;;  %v795_v3 = vadd.f32 1e-05, %v731_v40  ;;  %1722 = vmatprep.mubr.msk.bf16.mxu0 %vm143_vm0, %v979_v51  ;;  %v950_v60 = vmul.f32 %v1811_v59, %v2426_v22  ;;  %v1813_v13 = vpop.eup %1812 }
 0x14b   :  { %v564_v20 = vpop.xlane.xlu1 %563  ;;  %v657_v17 = vpop.xlane.xlu0 %656  ;;  %v919_v4 = vmul.f32 %v1813_v13, %v2436_v23 }
 0x14c   :  { %1826 = vrsqrt.f32 %v826_v7  ;;  %v732_v35 = vmul.f32 0.03125, %v564_v20  ;;  %v763_v62 = vmul.f32 0.03125, %v657_v17  ;;  %v995_v46 = vpack.c.bf16 %v950_v60, %v949_v2 }
 0x14d   :  { %v1815_v1 = vpop.eup %1814  ;;  %1828 = vrsqrt.f32 %v795_v3 }
 0x14e   :  { %v1817_v39 = vpop.eup %1816  ;;  %v796_v30 = vadd.f32 1e-05, %v732_v35  ;;  %v827_v45 = vadd.f32 1e-05, %v763_v62  ;;  %1754 = vmatprep.mubr.msk.bf16.mxu1 %vm143_vm0, %v995_v46  ;;  %v920_v18 = vmul.f32 %v1815_v1, %v2440_v27 }
 0x14f   :  { %v660_v24 = vpop.xlane.xlu1 %659  ;;  %v567_v22 = vpop.xlane.xlu0 %566  ;;  %v951_v9 = vmul.f32 %v1817_v39, %v2450_v28 }
 0x150   :  { %1830 = vrsqrt.f32 %v796_v30  ;;  %v764_v52 = vmul.f32 0.03125, %v660_v24  ;;  %v733_v50 = vmul.f32 0.03125, %v567_v22  ;;  %v980_v34 = vpack.c.bf16 %v920_v18, %v919_v4 }
 0x151   :  { %v1819_v19 = vpop.eup %1818  ;;  %1832 = vrsqrt.f32 %v827_v45 }
 0x152   :  { %v1821_v49 = vpop.eup %1820  ;;  %v828_v36 = vadd.f32 1e-05, %v764_v52  ;;  %v797_v6 = vadd.f32 1e-05, %v733_v50  ;;  %1723 = vmatmul.mubr.msk.bf16.gmra.mxu0 %vm143_vm0, %v980_v34  ;;  %v952_v10 = vmul.f32 %v1819_v19, %v2454_v32 }
 0x153   :  { %v570_v23 = vpop.xlane.xlu1 %569  ;;  %v663_v12 = vpop.xlane.xlu0 %662  ;;  %v921_v59 = vmul.f32 %v1821_v49, %v2464_v33 }
 0x154   :  { %1834 = vrsqrt.f32 %v828_v36  ;;  %v734_v27 = vmul.f32 0.03125, %v570_v23  ;;  %v765_v61 = vmul.f32 0.03125, %v663_v12  ;;  %v996_v40 = vpack.c.bf16 %v952_v10, %v951_v9 }
 0x155   :  { %v1823_v51 = vpop.eup %1822  ;;  %1836 = vrsqrt.f32 %v797_v6 }
 0x156   :  { %v1825_v7 = vpop.eup %1824  ;;  %v798_v28 = vadd.f32 1e-05, %v734_v27  ;;  %v829_v3 = vadd.f32 1e-05, %v765_v61  ;;  %1755 = vmatmul.mubr.msk.bf16.gmra.mxu1 %vm143_vm0, %v996_v40  ;;  %v922_v2 = vmul.f32 %v1823_v51, %v2468_v37 }
 0x157   :  { %v666_v60 = vpop.xlane.xlu1 %665  ;;  %v573_v13 = vpop.xlane.xlu0 %572  ;;  %v953_v62 = vmul.f32 %v1825_v7, %v2478_v38 }
 0x158   :  { %1838 = vrsqrt.f32 %v798_v28  ;;  %v766_v32 = vmul.f32 0.03125, %v666_v60  ;;  %v735_v20 = vmul.f32 0.03125, %v573_v13  ;;  %v981_v17 = vpack.c.bf16 %v922_v2, %v921_v59 }
 0x159   :  { %v1827_v35 = vpop.eup %1826  ;;  %1840 = vrsqrt.f32 %v829_v3 }
 0x15a   :  { %v1829_v46 = vpop.eup %1828  ;;  %v830_v33 = vadd.f32 1e-05, %v766_v32  ;;  %v799_v1 = vadd.f32 1e-05, %v735_v20  ;;  %1726 = vmatprep.mubr.msk.bf16.mxu0 %vm143_vm0, %v981_v17  ;;  %v954_v39 = vmul.f32 %v1827_v35, %v2482_v8 }
 0x15b   :  { %v576_v30 = vpop.xlane.xlu1 %575  ;;  %v669_v45 = vpop.xlane.xlu0 %668  ;;  %v923_v22 = vmul.f32 %v1829_v46, %v2492_v54 }
 0x15c   :  { %1842 = vrsqrt.f32 %v830_v33  ;;  %v736_v37 = vmul.f32 0.03125, %v576_v30  ;;  %v767_v4 = vmul.f32 0.03125, %v669_v45  ;;  %v997_v18 = vpack.c.bf16 %v954_v39, %v953_v62 }
 0x15d   :  { %v1831_v24 = vpop.eup %1830  ;;  %1844 = vrsqrt.f32 %v799_v1 }
 0x15e   :  { %v800_v52 = vadd.f32 1e-05, %v736_v37  ;;  %v831_v38 = vadd.f32 1e-05, %v767_v4  ;;  %1758 = vmatprep.mubr.msk.bf16.mxu1 %vm143_vm0, %v997_v18  ;;  %v924_v50 = vmul.f32 %v1831_v24, %v2496_v44  ;;  %v1833_v34 = vpop.eup %1832 }
 0x15f   :  { %v672_v19 = vpop.xlane.xlu1 %671  ;;  %v579_v9 = vpop.xlane.xlu0 %578  ;;  %v955_v54 = vmul.f32 %v1833_v34, %v2509_v42 }
 0x160   :  { %1846 = vrsqrt.f32 %v800_v52  ;;  %v768_v8 = vmul.f32 0.03125, %v672_v19  ;;  %v737_v49 = vmul.f32 0.03125, %v579_v9  ;;  %v982_v36 = vpack.c.bf16 %v924_v50, %v923_v22 }
 0x161   :  { %v1835_v6 = vpop.eup %1834  ;;  %1848 = vrsqrt.f32 %v831_v38 }
 0x162   :  { %v832_v10 = vadd.f32 1e-05, %v768_v8  ;;  %v801_v23 = vadd.f32 1e-05, %v737_v49  ;;  %1727 = vmatmul.mubr.msk.bf16.gmra.mxu0 %vm143_vm0, %v982_v36  ;;  %v956_v12 = vmul.f32 %v1835_v6, %v2513_v56  ;;  %v1837_v27 = vpop.eup %1836 }
 0x163   :  { %v582_v61 = vpop.xlane.xlu1 %581  ;;  %v675_v44 = vpop.xlane.xlu0 %674  ;;  %v925_v2 = vmul.f32 %v1837_v27, %v2526_v0 }
 0x164   :  { %1850 = vrsqrt.f32 %v832_v10  ;;  %v738_v40 = vmul.f32 0.03125, %v582_v61  ;;  %v769_v51 = vmul.f32 0.03125, %v675_v44  ;;  %v998_v59 = vpack.c.bf16 %v956_v12, %v955_v54 }
 0x165   :  { %v1839_v7 = vpop.eup %1838  ;;  %1852 = vrsqrt.f32 %v801_v23 }
 0x166   :  { %v802_v28 = vadd.f32 1e-05, %v738_v40  ;;  %v833_v3 = vadd.f32 1e-05, %v769_v51  ;;  %1759 = vmatmul.mubr.msk.bf16.gmra.mxu1 %vm143_vm0, %v998_v59  ;;  %v926_v60 = vmul.f32 %v1839_v7, %v2530_v26  ;;  %v1841_v42 = vpop.eup %1840  ;;  %v3361_v51 = vld [vmem:[#allocation2_spill] sm:$0xff] }
 0x167   :  { %v678_v13 = vpop.xlane.xlu1 %677  ;;  %v585_v56 = vpop.xlane.xlu0 %584  ;;  %v957_v33 = vmul.f32 %v1841_v42, %v2540_v21 }
 0x168   :  { %1854 = vrsqrt.f32 %v802_v28  ;;  %v770_v32 = vmul.f32 0.03125, %v678_v13  ;;  %v739_v20 = vmul.f32 0.03125, %v585_v56  ;;  %v983_v17 = vpack.c.bf16 %v926_v60, %v925_v2 }
 0x169   :  { %v1843_v35 = vpop.eup %1842  ;;  %1856 = vrsqrt.f32 %v833_v3 }
 0x16a   :  { %v834_v62 = vadd.f32 1e-05, %v770_v32  ;;  %v803_v46 = vadd.f32 1e-05, %v739_v20  ;;  %1730 = vmatprep.mubr.msk.bf16.mxu0 %vm143_vm0, %v983_v17  ;;  %v958_v1 = vmul.f32 %v1843_v35, %v2544_v55  ;;  %v1845_v0 = vpop.eup %1844  ;;  %v3362_v32 = vld [vmem:[#allocation3_spill] sm:$0xff] }
 0x16b   :  { %v588_v39 = vpop.xlane.xlu1 %587  ;;  %v681_v26 = vpop.xlane.xlu0 %680  ;;  %v927_v52 = vmul.f32 %v1845_v0, %v2554_v47 }
 0x16c   :  { %1858 = vrsqrt.f32 %v834_v62  ;;  %v740_v30 = vmul.f32 0.03125, %v588_v39  ;;  %v771_v45 = vmul.f32 0.03125, %v681_v26  ;;  %v999_v37 = vpack.c.bf16 %v958_v1, %v957_v33  ;;  %v3363_v26 = vld [vmem:[#allocation4_spill] sm:$0xff] }
 0x16d   :  { %v1847_v4 = vpop.eup %1846  ;;  %1860 = vrsqrt.f32 %v803_v46 }
 0x16e   :  { %v1849_v18 = vpop.eup %1848  ;;  %v804_v24 = vadd.f32 1e-05, %v740_v30  ;;  %v835_v22 = vadd.f32 1e-05, %v771_v45  ;;  %1762 = vmatprep.mubr.msk.bf16.mxu1 %vm143_vm0, %v999_v37  ;;  %v928_v21 = vmul.f32 %v1847_v4, %v2558_v57 }
 0x16f   :  { %v684_v38 = vpop.xlane.xlu1 %683  ;;  %v591_v55 = vpop.xlane.xlu0 %590  ;;  %v959_v8 = vmul.f32 %v1849_v18, %v2568_v43 }
 0x170   :  { %1862 = vrsqrt.f32 %v804_v24  ;;  %v772_v50 = vmul.f32 0.03125, %v684_v38  ;;  %v741_v34 = vmul.f32 0.03125, %v591_v55  ;;  %v984_v19 = vpack.c.bf16 %v928_v21, %v927_v52  ;;  %v3364_v55 = vld [vmem:[#allocation5_spill] sm:$0xff] }
 0x171   :  { %v1851_v9 = vpop.eup %1850  ;;  %1864 = vrsqrt.f32 %v835_v22 }
 0x172   :  { %v1853_v49 = vpop.eup %1852  ;;  %v836_v36 = vadd.f32 1e-05, %v772_v50  ;;  %v805_v6 = vadd.f32 1e-05, %v741_v34  ;;  %1731 = vmatmul.mubr.msk.bf16.gmra.mxu0 %vm143_vm0, %v984_v19  ;;  %v960_v10 = vmul.f32 %v1851_v9, %v2572_v53 }
 0x173   :  { %v594_v47 = vpop.xlane.xlu1 %593  ;;  %v687_v23 = vpop.xlane.xlu0 %686  ;;  %v929_v61 = vmul.f32 %v1853_v49, %v2582_v31 }
 0x174   :  { %1866 = vrsqrt.f32 %v836_v36  ;;  %v742_v57 = vmul.f32 0.03125, %v594_v47  ;;  %v773_v54 = vmul.f32 0.03125, %v687_v23  ;;  %v1000_v12 = vpack.c.bf16 %v960_v10, %v959_v8 }
 0x175   :  { %v1855_v27 = vpop.eup %1854  ;;  %1868 = vrsqrt.f32 %v805_v6 }
 0x176   :  { %v1857_v44 = vpop.eup %1856  ;;  %v806_v43 = vadd.f32 1e-05, %v742_v57  ;;  %v837_v40 = vadd.f32 1e-05, %v773_v54  ;;  %1763 = vmatmul.mubr.msk.bf16.gmra.mxu1 %vm143_vm0, %v1000_v12  ;;  %v930_v59 = vmul.f32 %v1855_v27, %v3361_v51  ;;  %v3365_v57 = vld [vmem:[#allocation6_spill] sm:$0xff] }
 0x177   :  { %v690_v7 = vpop.xlane.xlu1 %689  ;;  %v597_v28 = vpop.xlane.xlu0 %596  ;;  %v961_v42 = vmul.f32 %v1857_v44, %v2596_v48 }
 0x178   :  { %1870 = vrsqrt.f32 %v806_v43  ;;  %v774_v53 = vmul.f32 0.03125, %v690_v7  ;;  %v743_v3 = vmul.f32 0.03125, %v597_v28  ;;  %v985_v2 = vpack.c.bf16 %v930_v59, %v929_v61  ;;  %v3366_v28 = vld [vmem:[#allocation7_spill] sm:$0xff] }
 0x179   :  { %v1859_v60 = vpop.eup %1858  ;;  %1872 = vrsqrt.f32 %v837_v40 }
 0x17a   :  { %v1861_v13 = vpop.eup %1860  ;;  %v838_v31 = vadd.f32 1e-05, %v774_v53  ;;  %v807_v56 = vadd.f32 1e-05, %v743_v3  ;;  %1734 = vmatprep.mubr.msk.bf16.mxu0 %vm143_vm0, %v985_v2  ;;  %v962_v20 = vmul.f32 %v1859_v60, %v3362_v32 }
 0x17b   :  { %v600_v17 = vpop.xlane.xlu1 %599  ;;  %v693_v35 = vpop.xlane.xlu0 %692  ;;  %v931_v0 = vmul.f32 %v1861_v13, %v2610_v5 }
 0x17c   :  { %1874 = vrsqrt.f32 %v838_v31  ;;  %v744_v62 = vmul.f32 0.03125, %v600_v17  ;;  %v775_v46 = vmul.f32 0.03125, %v693_v35  ;;  %v1001_v33 = vpack.c.bf16 %v962_v20, %v961_v42  ;;  %v3367_v35 = vld [vmem:[#allocation8_spill] sm:$0xff] }
 0x17d   :  { %v1863_v1 = vpop.eup %1862  ;;  %1876 = vrsqrt.f32 %v807_v56 }
 0x17e   :  { %v808_v39 = vadd.f32 1e-05, %v744_v62  ;;  %v839_v48 = vadd.f32 1e-05, %v775_v46  ;;  %1766 = vmatprep.mubr.msk.bf16.mxu1 %vm143_vm0, %v1001_v33  ;;  %v932_v30 = vmul.f32 %v1863_v1, %v3363_v26  ;;  %v1865_v45 = vpop.eup %1864 }
 0x17f   :  { %v696_v37 = vpop.xlane.xlu1 %695  ;;  %v603_v4 = vpop.xlane.xlu0 %602  ;;  %v963_v5 = vmul.f32 %v1865_v45, %v2624_v14 }
 0x180   :  { %1878 = vrsqrt.f32 %v808_v39  ;;  %v776_v18 = vmul.f32 0.03125, %v696_v37  ;;  %v745_v24 = vmul.f32 0.03125, %v603_v4  ;;  %v986_v22 = vpack.c.bf16 %v932_v30, %v931_v0  ;;  %v3368_v37 = vld [vmem:[#allocation9_spill] sm:$0xff] }
 0x181   :  { %v1867_v52 = vpop.eup %1866  ;;  %1880 = vrsqrt.f32 %v839_v48 }
 0x182   :  { %v840_v21 = vadd.f32 1e-05, %v776_v18  ;;  %v809_v38 = vadd.f32 1e-05, %v745_v24  ;;  %1735 = vmatmul.mubr.msk.bf16.gmra.mxu0 %vm143_vm0, %v986_v22  ;;  %v964_v50 = vmul.f32 %v1867_v52, %v3364_v55  ;;  %v1869_v34 = vpop.eup %1868 }
 0x183   :  { %v606_v19 = vpop.xlane.xlu1 %605  ;;  %v699_v9 = vpop.xlane.xlu0 %698  ;;  %v933_v23 = vmul.f32 %v1869_v34, %v2638_v11 }
 0x184   :  { %1882 = vrsqrt.f32 %v840_v21  ;;  %v746_v8 = vmul.f32 0.03125, %v606_v19  ;;  %v777_v49 = vmul.f32 0.03125, %v699_v9  ;;  %v1002_v36 = vpack.c.bf16 %v964_v50, %v963_v5  ;;  %v3369_v50 = vld [vmem:[#allocation10_spill] sm:$0xff] }
 0x185   :  { %v1871_v6 = vpop.eup %1870  ;;  %1884 = vrsqrt.f32 %v809_v38 }
 0x186   :  { %v810_v10 = vadd.f32 1e-05, %v746_v8  ;;  %v841_v47 = vadd.f32 1e-05, %v777_v49  ;;  %1767 = vmatmul.mubr.msk.bf16.gmra.mxu1 %vm143_vm0, %v1002_v36  ;;  %v934_v54 = vmul.f32 %v1871_v6, %v3365_v57  ;;  %v1873_v14 = vpop.eup %1872  ;;  %v3370_v57 = vld [vmem:[#allocation11_spill] sm:$0xff] }
 0x187   :  { %v702_v12 = vpop.xlane.xlu1 %701  ;;  %v609_v27 = vpop.xlane.xlu0 %608  ;;  %v965_v7 = vmul.f32 %v1873_v14, %v2652_v41 }
 0x188   :  { %1886 = vrsqrt.f32 %v810_v10  ;;  %v778_v61 = vmul.f32 0.03125, %v702_v12  ;;  %v747_v44 = vmul.f32 0.03125, %v609_v27  ;;  %v987_v43 = vpack.c.bf16 %v934_v54, %v933_v23 }
 0x189   :  { %v1875_v40 = vpop.eup %1874  ;;  %1888 = vrsqrt.f32 %v841_v47 }
 0x18a   :  { %v842_v51 = vadd.f32 1e-05, %v778_v61  ;;  %v811_v59 = vadd.f32 1e-05, %v747_v44  ;;  %1738 = vmatprep.mubr.msk.bf16.mxu0 %vm143_vm0, %v987_v43  ;;  %v966_v53 = vmul.f32 %v1875_v40, %v3366_v28  ;;  %v1877_v11 = vpop.eup %1876 }
 0x18b   :  { %v612_v3 = vpop.xlane.xlu1 %611  ;;  %v705_v2 = vpop.xlane.xlu0 %704  ;;  %v935_v17 = vmul.f32 %v1877_v11, %v2666_v16 }
 0x18c   :  { %1890 = vrsqrt.f32 %v842_v51  ;;  %v748_v60 = vmul.f32 0.03125, %v612_v3  ;;  %v779_v42 = vmul.f32 0.03125, %v705_v2  ;;  %v1003_v13 = vpack.c.bf16 %v966_v53, %v965_v7 }
 0x18d   :  { %v1879_v31 = vpop.eup %1878  ;;  %1892 = vrsqrt.f32 %v811_v59  ;;  %v3371_v59 = vld [vmem:[#allocation12_spill] sm:$0xff] }
 0x18e   :  { %v1881_v56 = vpop.eup %1880  ;;  %v812_v32 = vadd.f32 1e-05, %v748_v60  ;;  %v843_v20 = vadd.f32 1e-05, %v779_v42  ;;  %1770 = vmatprep.mubr.msk.bf16.mxu1 %vm143_vm0, %v1003_v13  ;;  %v936_v41 = vmul.f32 %v1879_v31, %v3367_v35  ;;  %v3374_v35 = vld [vmem:[#allocation15_spill] sm:$0xff] }
 0x18f   :  { %v708_v62 = vpop.xlane.xlu1 %707  ;;  %v615_v46 = vpop.xlane.xlu0 %614  ;;  %v967_v48 = vmul.f32 %v1881_v56, %v2680_v58 }
 0x190   :  { %1894 = vrsqrt.f32 %v812_v32  ;;  %v780_v33 = vmul.f32 0.03125, %v708_v62  ;;  %v749_v1 = vmul.f32 0.03125, %v615_v46  ;;  %v988_v0 = vpack.c.bf16 %v936_v41, %v935_v17 }
 0x191   :  { %v1883_v39 = vpop.eup %1882  ;;  %1896 = vrsqrt.f32 %v843_v20  ;;  %v3373_v20 = vld [vmem:[#allocation14_spill] sm:$0xff] }
 0x192   :  { %v1885_v26 = vpop.eup %1884  ;;  %v844_v30 = vadd.f32 1e-05, %v780_v33  ;;  %v813_v45 = vadd.f32 1e-05, %v749_v1  ;;  %1739 = vmatmul.mubr.msk.bf16.gmra.mxu0 %vm143_vm0, %v988_v0  ;;  %v968_v4 = vmul.f32 %v1883_v39, %v3368_v37  ;;  %v3375_v1 = vld [vmem:[#allocation16_spill] sm:$0xff] }
 0x193   :  { %v618_v16 = vpop.xlane.xlu1 %617  ;;  %v711_v18 = vpop.xlane.xlu0 %710  ;;  %v937_v38 = vmul.f32 %v1885_v26, %v2694_v63 }
 0x194   :  { %1898 = vrsqrt.f32 %v844_v30  ;;  %v750_v24 = vmul.f32 0.03125, %v618_v16  ;;  %v781_v22 = vmul.f32 0.03125, %v711_v18  ;;  %v1004_v52 = vpack.c.bf16 %v968_v4, %v967_v48  ;;  %v3378_v4 = vld [vmem:[#allocation19_spill] sm:$0xff] }
 0x195   :  { %v1887_v21 = vpop.eup %1886  ;;  %1900 = vrsqrt.f32 %v813_v45  ;;  %v3377_v45 = vld [vmem:[#allocation18_spill] sm:$0xff] }
 0x196   :  { %v1889_v5 = vpop.eup %1888  ;;  %v814_v58 = vadd.f32 1e-05, %v750_v24  ;;  %v845_v55 = vadd.f32 1e-05, %v781_v22  ;;  %1771 = vmatmul.mubr.msk.bf16.gmra.mxu1 %vm143_vm0, %v1004_v52  ;;  %v938_v34 = vmul.f32 %v1887_v21, %v3369_v50  ;;  %v3379_v52 = vld [vmem:[#allocation20_spill] sm:$0xff] }
 0x197   :  { %v714_v19 = vpop.xlane.xlu1 %713  ;;  %v621_v9 = vpop.xlane.xlu0 %620  ;;  %v969_v10 = vmul.f32 %v1889_v5, %v2708_v15 }
 0x198   :  { %1902 = vrsqrt.f32 %v814_v58  ;;  %v782_v8 = vmul.f32 0.03125, %v714_v19  ;;  %v751_v49 = vmul.f32 0.03125, %v621_v9  ;;  %v989_v36 = vpack.c.bf16 %v938_v34, %v937_v38  ;;  %v3380_v38 = vld [vmem:[#allocation21_spill] sm:$0xff] }
 0x199   :  { %v1891_v6 = vpop.eup %1890  ;;  %1904 = vrsqrt.f32 %v845_v55  ;;  %v2905_v55 = vld [vmem:[%s3229_s2] ss:$0 sm:$0xff] }
 0x19a   :  { %v1893_v47 = vpop.eup %1892  ;;  %v846_v63 = vadd.f32 1e-05, %v782_v8  ;;  %v815_v23 = vadd.f32 1e-05, %v751_v49  ;;  %1742 = vmatprep.mubr.msk.bf16.mxu0 %vm143_vm0, %v989_v36  ;;  %v970_v54 = vmul.f32 %v1891_v6, %v3370_v57 }
 0x19b   :  { %v624_v14 = vpop.xlane.xlu1 %623  ;;  %v717_v12 = vpop.xlane.xlu0 %716  ;;  %v939_v40 = vmul.f32 %v1893_v47, %v2722_v29  ;;  %v3372_v29 = vld [vmem:[#allocation13_spill] sm:$0xff] }
 0x19c   :  { %1906 = vrsqrt.f32 %v846_v63  ;;  %v752_v27 = vmul.f32 0.03125, %v624_v14  ;;  %v783_v61 = vmul.f32 0.03125, %v717_v12  ;;  %v1005_v44 = vpack.c.bf16 %v970_v54, %v969_v10 }
 0x19d   :  { %v1895_v43 = vpop.eup %1894  ;;  %1908 = vrsqrt.f32 %v815_v23 }
 0x19e   :  { %v816_v51 = vadd.f32 1e-05, %v752_v27  ;;  %v847_v15 = vadd.f32 1e-05, %v783_v61  ;;  %1774 = vmatprep.mubr.msk.bf16.mxu1 %vm143_vm0, %v1005_v44  ;;  %v940_v7 = vmul.f32 %v1895_v43, %v3371_v59  ;;  %v1897_v28 = vpop.eup %1896 }
 0x19f   :  { %v720_v53 = vpop.xlane.xlu1 %719  ;;  %v971_v42 = vmul.f32 %v1897_v28, %v2736_v25  ;;  %v3376_v25 = vld [vmem:[#allocation17_spill] sm:$0xff] }
 0x1a0   :  { %1910 = vrsqrt.f32 %v816_v51  ;;  %v784_v11 = vmul.f32 0.03125, %v720_v53  ;;  %v990_v3 = vpack.c.bf16 %v940_v7, %v939_v40 }
 0x1a1   :  { %v1899_v2 = vpop.eup %1898  ;;  %1912 = vrsqrt.f32 %v847_v15 }
 0x1a2   :  { %v848_v60 = vadd.f32 1e-05, %v784_v11  ;;  %1743 = vmatmul.mubr.msk.bf16.gmra.mxu0 %vm143_vm0, %v990_v3  ;;  %v972_v13 = vmul.f32 %v1899_v2, %v3372_v29  ;;  %v1901_v31 = vpop.eup %1900 }
 0x1a3   :  { %v941_v17 = vmul.f32 %v1901_v31, %v3373_v20 }
 0x1a4   :  { %1914 = vrsqrt.f32 %v848_v60  ;;  %v1006_v56 = vpack.c.bf16 %v972_v13, %v971_v42 }
 0x1a5   :  { %v1903_v32 = vpop.eup %1902 }
 0x1a6   :  { %1775 = vmatmul.mubr.msk.bf16.gmra.mxu1 %vm143_vm0, %v1006_v56  ;;  %v942_v41 = vmul.f32 %v1903_v32, %v3374_v35  ;;  %v1905_v62 = vpop.eup %1904 }
 0x1a7   :  { %v973_v0 = vmul.f32 %v1905_v62, %v3375_v1 }
 0x1a8   :  { %v991_v46 = vpack.c.bf16 %v942_v41, %v941_v17 }
 0x1a9   :  { %v1907_v33 = vpop.eup %1906 }
 0x1aa   :  { %1746 = vmatprep.mubr.msk.bf16.mxu0 %vm143_vm0, %v991_v46  ;;  %v974_v39 = vmul.f32 %v1907_v33, %v3376_v25  ;;  %v1909_v48 = vpop.eup %1908 }
 0x1ab   :  { %v943_v37 = vmul.f32 %v1909_v48, %v3377_v45 }
 0x1ac   :  { %v1007_v26 = vpack.c.bf16 %v974_v39, %v973_v0 }
 0x1ad   :  { %v1911_v30 = vpop.eup %1910 }
 0x1ae   :  { %1778 = vmatprep.mubr.msk.bf16.mxu1 %vm143_vm0, %v1007_v26  ;;  %v944_v16 = vmul.f32 %v1911_v30, %v3378_v4  ;;  %v1913_v18 = vpop.eup %1912 }
 0x1af   :  { %v975_v21 = vmul.f32 %v1913_v18, %v3379_v52 }
 0x1b0   :  { %v992_v24 = vpack.c.bf16 %v944_v16, %v943_v37 }
 0x1b1   :  { %v1915_v22 = vpop.eup %1914 }
 0x1b2   :  { %1747 = vmatmul.mubr.msk.bf16.gmra.mxu0 %vm143_vm0, %v992_v24  ;;  %v976_v5 = vmul.f32 %v1915_v22, %v3380_v38 }
 0x1b4   :  { %v1008_v58 = vpack.c.bf16 %v976_v5, %v975_v21 }
 0x1b6   :  { %1779 = vmatmul.mubr.msk.bf16.gmra.mxu1 %vm143_vm0, %v1008_v58 }
 0x202   :  { %v1720_v50 = vpop.f32.mrf.mxu0 }
 0x203   :  { %v1171_v34 = vadd.f32 %v1720_v50, %v2905_v55 }
 0x204   :  { %v1162_v19 = vpop.f32.mrf.mxu0 }
 0x205   :  { %1420 = vst.msk [vmem:[%s3230_s3 + $0x10] sm:$0xff] %vm1417_vm1, %v1171_v34  ;;  %v1163_v9 = vadd.f32 %v2905_v55, %v1162_v19 }
 0x206   :  { %v1721_v8 = vpop.f32.mrf.mxu0  ;;  %v1752_v49 = vpop.f32.mrf.mxu1 }
 0x207   :  { %1418 = vst.msk [vmem:[%s3230_s3] sm:$0xff] %vm1417_vm1, %v1163_v9  ;;  %v1174_v36 = vadd.f32 %v1721_v8, %v2905_v55  ;;  %v1299_v6 = vadd.f32 %v1752_v49, %v2905_v55 }
 0x208   :  { %v1165_v10 = vpop.f32.mrf.mxu0  ;;  %v1290_v47 = vpop.f32.mrf.mxu1 }
 0x209   :  { %1421 = vst.msk [vmem:[%s3230_s3 + $0x18] sm:$0xff] %vm1417_vm1, %v1174_v36  ;;  %1452 = vst.msk [vmem:[%s3230_s3 + $0x110] sm:$0xff] %vm1417_vm1, %v1299_v6  ;;  %v1166_v63 = vadd.f32 %v2905_v55, %v1165_v10  ;;  %v1291_v23 = vadd.f32 %v2905_v55, %v1290_v47 }
 0x20a   :  { %v1753_v57 = vpop.f32.mrf.mxu1 }
 0x20b   :  { %1419 = vst.msk [vmem:[%s3230_s3 + $0x8] sm:$0xff] %vm1417_vm1, %v1166_v63  ;;  %1450 = vst.msk [vmem:[%s3230_s3 + $0x100] sm:$0xff] %vm1417_vm1, %v1291_v23  ;;  %v1302_v54 = vadd.f32 %v1753_v57, %v2905_v55 }
 0x20c   :  { %v1293_v14 = vpop.f32.mrf.mxu1 }
 0x20d   :  { %1453 = vst.msk [vmem:[%s3230_s3 + $0x118] sm:$0xff] %vm1417_vm1, %v1302_v54  ;;  %v1294_v12 = vadd.f32 %v2905_v55, %v1293_v14 }
 0x20f   :  { %1451 = vst.msk [vmem:[%s3230_s3 + $0x108] sm:$0xff] %vm1417_vm1, %v1294_v12 }
 0x212   :  { %v1724_v27 = vpop.f32.mrf.mxu0 }
 0x213   :  { %v1187_v61 = vadd.f32 %v1724_v27, %v2905_v55 }
 0x214   :  { %v1178_v44 = vpop.f32.mrf.mxu0 }
 0x215   :  { %1424 = vst.msk [vmem:[%s3230_s3 + $0x30] sm:$0xff] %vm1417_vm1, %v1187_v61  ;;  %v1179_v43 = vadd.f32 %v2905_v55, %v1178_v44 }
 0x216   :  { %v1725_v40 = vpop.f32.mrf.mxu0  ;;  %v1756_v51 = vpop.f32.mrf.mxu1 }
 0x217   :  { %1422 = vst.msk [vmem:[%s3230_s3 + $0x20] sm:$0xff] %vm1417_vm1, %v1179_v43  ;;  %v1190_v15 = vadd.f32 %v1725_v40, %v2905_v55  ;;  %v1315_v59 = vadd.f32 %v1756_v51, %v2905_v55 }
 0x218   :  { %v1181_v7 = vpop.f32.mrf.mxu0  ;;  %v1306_v28 = vpop.f32.mrf.mxu1 }
 0x219   :  { %1425 = vst.msk [vmem:[%s3230_s3 + $0x38] sm:$0xff] %vm1417_vm1, %v1190_v15  ;;  %1456 = vst.msk [vmem:[%s3230_s3 + $0x130] sm:$0xff] %vm1417_vm1, %v1315_v59  ;;  %v1182_v53 = vadd.f32 %v2905_v55, %v1181_v7  ;;  %v1307_v11 = vadd.f32 %v2905_v55, %v1306_v28 }
 0x21a   :  { %v1757_v3 = vpop.f32.mrf.mxu1 }
 0x21b   :  { %1423 = vst.msk [vmem:[%s3230_s3 + $0x28] sm:$0xff] %vm1417_vm1, %v1182_v53  ;;  %1454 = vst.msk [vmem:[%s3230_s3 + $0x120] sm:$0xff] %vm1417_vm1, %v1307_v11  ;;  %v1318_v2 = vadd.f32 %v1757_v3, %v2905_v55 }
 0x21c   :  { %v1309_v60 = vpop.f32.mrf.mxu1 }
 0x21d   :  { %1457 = vst.msk [vmem:[%s3230_s3 + $0x138] sm:$0xff] %vm1417_vm1, %v1318_v2  ;;  %v1310_v42 = vadd.f32 %v2905_v55, %v1309_v60 }
 0x21f   :  { %1455 = vst.msk [vmem:[%s3230_s3 + $0x128] sm:$0xff] %vm1417_vm1, %v1310_v42 }
 0x222   :  { %v1728_v29 = vpop.f32.mrf.mxu0 }
 0x223   :  { %v1203_v13 = vadd.f32 %v1728_v29, %v2905_v55 }
 0x224   :  { %v1194_v31 = vpop.f32.mrf.mxu0 }
 0x225   :  { %1428 = vst.msk [vmem:[%s3230_s3 + $0x50] sm:$0xff] %vm1417_vm1, %v1203_v13  ;;  %v1195_v56 = vadd.f32 %v2905_v55, %v1194_v31 }
 0x226   :  { %v1729_v32 = vpop.f32.mrf.mxu0  ;;  %v1760_v20 = vpop.f32.mrf.mxu1 }
 0x227   :  { %1426 = vst.msk [vmem:[%s3230_s3 + $0x40] sm:$0xff] %vm1417_vm1, %v1195_v56  ;;  %v1206_v17 = vadd.f32 %v1729_v32, %v2905_v55  ;;  %v1331_v35 = vadd.f32 %v1760_v20, %v2905_v55 }
 0x228   :  { %v1197_v41 = vpop.f32.mrf.mxu0  ;;  %v1322_v62 = vpop.f32.mrf.mxu1 }
 0x229   :  { %1429 = vst.msk [vmem:[%s3230_s3 + $0x58] sm:$0xff] %vm1417_vm1, %v1206_v17  ;;  %1460 = vst.msk [vmem:[%s3230_s3 + $0x150] sm:$0xff] %vm1417_vm1, %v1331_v35  ;;  %v1198_v46 = vadd.f32 %v2905_v55, %v1197_v41  ;;  %v1323_v33 = vadd.f32 %v2905_v55, %v1322_v62 }
 0x22a   :  { %v1761_v1 = vpop.f32.mrf.mxu1 }
 0x22b   :  { %1427 = vst.msk [vmem:[%s3230_s3 + $0x48] sm:$0xff] %vm1417_vm1, %v1198_v46  ;;  %1458 = vst.msk [vmem:[%s3230_s3 + $0x140] sm:$0xff] %vm1417_vm1, %v1323_v33  ;;  %v1334_v0 = vadd.f32 %v1761_v1, %v2905_v55 }
 0x22c   :  { %v1325_v25 = vpop.f32.mrf.mxu1 }
 0x22d   :  { %1461 = vst.msk [vmem:[%s3230_s3 + $0x158] sm:$0xff] %vm1417_vm1, %v1334_v0  ;;  %v1326_v39 = vadd.f32 %v2905_v55, %v1325_v25 }
 0x22f   :  { %1459 = vst.msk [vmem:[%s3230_s3 + $0x148] sm:$0xff] %vm1417_vm1, %v1326_v39 }
 0x232   :  { %v1732_v48 = vpop.f32.mrf.mxu0 }
 0x233   :  { %v1219_v26 = vadd.f32 %v1732_v48, %v2905_v55 }
 0x234   :  { %v1210_v30 = vpop.f32.mrf.mxu0 }
 0x235   :  { %1432 = vst.msk [vmem:[%s3230_s3 + $0x70] sm:$0xff] %vm1417_vm1, %v1219_v26  ;;  %v1211_v45 = vadd.f32 %v2905_v55, %v1210_v30 }
 0x236   :  { %v1733_v37 = vpop.f32.mrf.mxu0  ;;  %v1764_v4 = vpop.f32.mrf.mxu1 }
 0x237   :  { %1430 = vst.msk [vmem:[%s3230_s3 + $0x60] sm:$0xff] %vm1417_vm1, %v1211_v45  ;;  %v1222_v16 = vadd.f32 %v1733_v37, %v2905_v55  ;;  %v1347_v18 = vadd.f32 %v1764_v4, %v2905_v55 }
 0x238   :  { %v1213_v24 = vpop.f32.mrf.mxu0  ;;  %v1338_v22 = vpop.f32.mrf.mxu1 }
 0x239   :  { %1433 = vst.msk [vmem:[%s3230_s3 + $0x78] sm:$0xff] %vm1417_vm1, %v1222_v16  ;;  %1464 = vst.msk [vmem:[%s3230_s3 + $0x170] sm:$0xff] %vm1417_vm1, %v1347_v18  ;;  %v1214_v52 = vadd.f32 %v2905_v55, %v1213_v24  ;;  %v1339_v21 = vadd.f32 %v2905_v55, %v1338_v22 }
 0x23a   :  { %v1765_v38 = vpop.f32.mrf.mxu1 }
 0x23b   :  { %1431 = vst.msk [vmem:[%s3230_s3 + $0x68] sm:$0xff] %vm1417_vm1, %v1214_v52  ;;  %1462 = vst.msk [vmem:[%s3230_s3 + $0x160] sm:$0xff] %vm1417_vm1, %v1339_v21  ;;  %v1350_v5 = vadd.f32 %v1765_v38, %v2905_v55 }
 0x23c   :  { %v1341_v58 = vpop.f32.mrf.mxu1 }
 0x23d   :  { %1465 = vst.msk [vmem:[%s3230_s3 + $0x178] sm:$0xff] %vm1417_vm1, %v1350_v5  ;;  %v1342_v50 = vadd.f32 %v2905_v55, %v1341_v58 }
 0x23f   :  { %1463 = vst.msk [vmem:[%s3230_s3 + $0x168] sm:$0xff] %vm1417_vm1, %v1342_v50 }
 0x242   :  { %v1736_v34 = vpop.f32.mrf.mxu0 }
 0x243   :  { %v1235_v19 = vadd.f32 %v1736_v34, %v2905_v55 }
 0x244   :  { %v1226_v9 = vpop.f32.mrf.mxu0 }
 0x245   :  { %1436 = vst.msk [vmem:[%s3230_s3 + $0x90] sm:$0xff] %vm1417_vm1, %v1235_v19  ;;  %v1227_v8 = vadd.f32 %v2905_v55, %v1226_v9 }
 0x246   :  { %v1737_v49 = vpop.f32.mrf.mxu0  ;;  %v1768_v36 = vpop.f32.mrf.mxu1 }
 0x247   :  { %1434 = vst.msk [vmem:[%s3230_s3 + $0x80] sm:$0xff] %vm1417_vm1, %v1227_v8  ;;  %v1238_v6 = vadd.f32 %v1737_v49, %v2905_v55  ;;  %v1363_v10 = vadd.f32 %v1768_v36, %v2905_v55 }
 0x248   :  { %v1229_v47 = vpop.f32.mrf.mxu0  ;;  %v1354_v63 = vpop.f32.mrf.mxu1 }
 0x249   :  { %1437 = vst.msk [vmem:[%s3230_s3 + $0x98] sm:$0xff] %vm1417_vm1, %v1238_v6  ;;  %1468 = vst.msk [vmem:[%s3230_s3 + $0x190] sm:$0xff] %vm1417_vm1, %v1363_v10  ;;  %v1230_v23 = vadd.f32 %v2905_v55, %v1229_v47  ;;  %v1355_v57 = vadd.f32 %v2905_v55, %v1354_v63 }
 0x24a   :  { %v1769_v54 = vpop.f32.mrf.mxu1 }
 0x24b   :  { %1435 = vst.msk [vmem:[%s3230_s3 + $0x88] sm:$0xff] %vm1417_vm1, %v1230_v23  ;;  %1466 = vst.msk [vmem:[%s3230_s3 + $0x180] sm:$0xff] %vm1417_vm1, %v1355_v57  ;;  %v1366_v14 = vadd.f32 %v1769_v54, %v2905_v55 }
 0x24c   :  { %v1357_v12 = vpop.f32.mrf.mxu1 }
 0x24d   :  { %1469 = vst.msk [vmem:[%s3230_s3 + $0x198] sm:$0xff] %vm1417_vm1, %v1366_v14  ;;  %v1358_v27 = vadd.f32 %v2905_v55, %v1357_v12 }
 0x24f   :  { %1467 = vst.msk [vmem:[%s3230_s3 + $0x188] sm:$0xff] %vm1417_vm1, %v1358_v27 }
 0x252   :  { %v1740_v61 = vpop.f32.mrf.mxu0 }
 0x253   :  { %v1251_v44 = vadd.f32 %v1740_v61, %v2905_v55 }
 0x254   :  { %v1242_v43 = vpop.f32.mrf.mxu0 }
 0x255   :  { %1440 = vst.msk [vmem:[%s3230_s3 + $0xb0] sm:$0xff] %vm1417_vm1, %v1251_v44  ;;  %v1243_v40 = vadd.f32 %v2905_v55, %v1242_v43 }
 0x256   :  { %v1741_v51 = vpop.f32.mrf.mxu0  ;;  %v1772_v15 = vpop.f32.mrf.mxu1 }
 0x257   :  { %1438 = vst.msk [vmem:[%s3230_s3 + $0xa0] sm:$0xff] %vm1417_vm1, %v1243_v40  ;;  %v1254_v59 = vadd.f32 %v1741_v51, %v2905_v55  ;;  %v1379_v7 = vadd.f32 %v1772_v15, %v2905_v55 }
 0x258   :  { %v1245_v28 = vpop.f32.mrf.mxu0  ;;  %v1370_v53 = vpop.f32.mrf.mxu1 }
 0x259   :  { %1441 = vst.msk [vmem:[%s3230_s3 + $0xb8] sm:$0xff] %vm1417_vm1, %v1254_v59  ;;  %1472 = vst.msk [vmem:[%s3230_s3 + $0x1b0] sm:$0xff] %vm1417_vm1, %v1379_v7  ;;  %v1246_v11 = vadd.f32 %v2905_v55, %v1245_v28  ;;  %v1371_v3 = vadd.f32 %v2905_v55, %v1370_v53 }
 0x25a   :  { %v1773_v2 = vpop.f32.mrf.mxu1 }
 0x25b   :  { %1439 = vst.msk [vmem:[%s3230_s3 + $0xa8] sm:$0xff] %vm1417_vm1, %v1246_v11  ;;  %1470 = vst.msk [vmem:[%s3230_s3 + $0x1a0] sm:$0xff] %vm1417_vm1, %v1371_v3  ;;  %v1382_v60 = vadd.f32 %v1773_v2, %v2905_v55 }
 0x25c   :  { %v1373_v42 = vpop.f32.mrf.mxu1 }
 0x25d   :  { %1473 = vst.msk [vmem:[%s3230_s3 + $0x1b8] sm:$0xff] %vm1417_vm1, %v1382_v60  ;;  %v1374_v29 = vadd.f32 %v2905_v55, %v1373_v42 }
 0x25f   :  { %1471 = vst.msk [vmem:[%s3230_s3 + $0x1a8] sm:$0xff] %vm1417_vm1, %v1374_v29 }
 0x262   :  { %v1744_v13 = vpop.f32.mrf.mxu0 }
 0x263   :  { %v1267_v31 = vadd.f32 %v1744_v13, %v2905_v55 }
 0x264   :  { %v1258_v56 = vpop.f32.mrf.mxu0 }
 0x265   :  { %1444 = vst.msk [vmem:[%s3230_s3 + $0xd0] sm:$0xff] %vm1417_vm1, %v1267_v31  ;;  %v1259_v32 = vadd.f32 %v2905_v55, %v1258_v56 }
 0x266   :  { %v1745_v20 = vpop.f32.mrf.mxu0  ;;  %v1776_v17 = vpop.f32.mrf.mxu1 }
 0x267   :  { %1442 = vst.msk [vmem:[%s3230_s3 + $0xc0] sm:$0xff] %vm1417_vm1, %v1259_v32  ;;  %v1270_v35 = vadd.f32 %v1745_v20, %v2905_v55  ;;  %v1395_v41 = vadd.f32 %v1776_v17, %v2905_v55 }
 0x268   :  { %v1261_v62 = vpop.f32.mrf.mxu0  ;;  %v1386_v46 = vpop.f32.mrf.mxu1 }
 0x269   :  { %1445 = vst.msk [vmem:[%s3230_s3 + $0xd8] sm:$0xff] %vm1417_vm1, %v1270_v35  ;;  %1476 = vst.msk [vmem:[%s3230_s3 + $0x1d0] sm:$0xff] %vm1417_vm1, %v1395_v41  ;;  %v1262_v33 = vadd.f32 %v2905_v55, %v1261_v62  ;;  %v1387_v1 = vadd.f32 %v2905_v55, %v1386_v46 }
 0x26a   :  { %v1777_v0 = vpop.f32.mrf.mxu1 }
 0x26b   :  { %1443 = vst.msk [vmem:[%s3230_s3 + $0xc8] sm:$0xff] %vm1417_vm1, %v1262_v33  ;;  %1474 = vst.msk [vmem:[%s3230_s3 + $0x1c0] sm:$0xff] %vm1417_vm1, %v1387_v1  ;;  %v1398_v25 = vadd.f32 %v1777_v0, %v2905_v55 }
 0x26c   :  { %v1389_v39 = vpop.f32.mrf.mxu1 }
 0x26d   :  { %1477 = vst.msk [vmem:[%s3230_s3 + $0x1d8] sm:$0xff] %vm1417_vm1, %v1398_v25  ;;  %v1390_v48 = vadd.f32 %v2905_v55, %v1389_v39 }
 0x26f   :  { %1475 = vst.msk [vmem:[%s3230_s3 + $0x1c8] sm:$0xff] %vm1417_vm1, %v1390_v48 }
 0x272   :  { %v1748_v26 = vpop.f32.mrf.mxu0 }
 0x273   :  { %v1283_v30 = vadd.f32 %v1748_v26, %v2905_v55 }
 0x274   :  { %v1274_v45 = vpop.f32.mrf.mxu0 }
 0x275   :  { %1448 = vst.msk [vmem:[%s3230_s3 + $0xf0] sm:$0xff] %vm1417_vm1, %v1283_v30  ;;  %v1275_v37 = vadd.f32 %v2905_v55, %v1274_v45 }
 0x276   :  { %v1749_v4 = vpop.f32.mrf.mxu0  ;;  %v1780_v16 = vpop.f32.mrf.mxu1 }
 0x277   :  { %1446 = vst.msk [vmem:[%s3230_s3 + $0xe0] sm:$0xff] %vm1417_vm1, %v1275_v37  ;;  %v1286_v18 = vadd.f32 %v1749_v4, %v2905_v55  ;;  %v1411_v24 = vadd.f32 %v1780_v16, %v2905_v55 }
 0x278   :  { %v1277_v22 = vpop.f32.mrf.mxu0  ;;  %v1402_v52 = vpop.f32.mrf.mxu1 }
 0x279   :  { %1449 = vst.msk [vmem:[%s3230_s3 + $0xf8] sm:$0xff] %vm1417_vm1, %v1286_v18  ;;  %1480 = vst.msk [vmem:[%s3230_s3 + $0x1f0] sm:$0xff] %vm1417_vm1, %v1411_v24  ;;  %v1278_v21 = vadd.f32 %v2905_v55, %v1277_v22  ;;  %v1403_v38 = vadd.f32 %v2905_v55, %v1402_v52 }
 0x27a   :  { %v1781_v5 = vpop.f32.mrf.mxu1 }
 0x27b   :  { %1447 = vst.msk [vmem:[%s3230_s3 + $0xe8] sm:$0xff] %vm1417_vm1, %v1278_v21  ;;  %1478 = vst.msk [vmem:[%s3230_s3 + $0x1e0] sm:$0xff] %vm1417_vm1, %v1403_v38  ;;  %v1414_v58 = vadd.f32 %v1781_v5, %v2905_v55 }
 0x27c   :  { %v1405_v50 = vpop.f32.mrf.mxu1 }
 0x27d   :  { %1481 = vst.msk [vmem:[%s3230_s3 + $0x1f8] sm:$0xff] %vm1417_vm1, %v1414_v58  ;;  %v1406_v34 = vadd.f32 %v2905_v55, %v1405_v50 }
 0x27f   :  { %1479 = vst.msk [vmem:[%s3230_s3 + $0x1e8] sm:$0xff] %vm1417_vm1, %v1406_v34 }

</bundles_post_ra>
